<compile_context>
chip_gen: v5e
topology: v5e:2x2
jax: 0.10.0
libtpu: 0.0.40
codegen_flags: <defaults>
</compile_context>

<pallas_src>
import functools

import jax
import jax.numpy as jnp
from jax.experimental import pallas as pl
from jax.experimental.pallas import tpu as pltpu


# ----------------------------------------------------------------------------
# Pallas kernel: fused matmul + bias + optional ReLU
# ----------------------------------------------------------------------------
def _mm_bias_kernel(x_ref, w_ref, b_ref, o_ref, *, apply_relu):
    """out = relu?( x @ w + bias ); bf16 inputs, f32 accumulation."""
    acc = jnp.dot(x_ref[...], w_ref[...], preferred_element_type=jnp.float32)
    y = acc + b_ref[...]
    if apply_relu:
        y = jnp.maximum(y, 0.0)
    o_ref[...] = y.astype(o_ref.dtype)


def _pick_tm(m, target=512):
    """Largest multiple-of-8 divisor of m that is <= target (or m itself if small)."""
    if m <= target:
        return m
    t = (target // 8) * 8
    while t >= 8:
        if m % t == 0:
            return t
        t -= 8
    return m  # fallback: single block


def matmul_bias_act(x, w, bias, *, relu, block_n=None, tm_target=512):
    """Fused (M,K)@(K,N) matmul + bias + optional ReLU.

    Grid = (N-blocks, M-blocks); M is the inner (fastest) axis so the weight and
    bias tiles (index_map constant over M) stay resident in VMEM while activation
    row-tiles stream through.  Both axes are 'parallel' for megacore sharding.
    """
    M, K = x.shape
    Kw, Nout = w.shape
    assert K == Kw
    bn = Nout if block_n is None else block_n
    assert Nout % bn == 0
    tm = _pick_tm(M, tm_target)
    gm = M // tm
    gn = Nout // bn

    kernel = functools.partial(_mm_bias_kernel, apply_relu=relu)
    return pl.pallas_call(
        kernel,
        out_shape=jax.ShapeDtypeStruct((M, Nout), jnp.float32),
        grid_spec=pltpu.PrefetchScalarGridSpec(
            num_scalar_prefetch=0,
            grid=(gn, gm),  # N outer, M inner -> weight tile resident across M sweep
            in_specs=[
                pl.BlockSpec((tm, K), lambda j, i: (i, 0)),   # activations: stream over M
                pl.BlockSpec((K, bn), lambda j, i: (0, j)),   # weights: constant over M
                pl.BlockSpec((1, bn), lambda j, i: (0, j)),   # bias: constant over M
            ],
            out_specs=pl.BlockSpec((tm, bn), lambda j, i: (i, j)),
        ),
        compiler_params=pltpu.CompilerParams(
            dimension_semantics=("parallel", "parallel"),
        ),
    )(x, w, bias.reshape(1, -1))


# ----------------------------------------------------------------------------
# Glue (plain JAX): im2col, maxpool, offline parameter folding
# ----------------------------------------------------------------------------
def im2col_3x3(x_padded_nhwc):
    """(N, H+2, W+2, C) -> (N*H*W, 9*C), tap-major / channel-minor ordering."""
    N, Hp, Wp, C = x_padded_nhwc.shape
    H, W = Hp - 2, Wp - 2
    cols = [x_padded_nhwc[:, dy:dy + H, dx:dx + W, :]
            for dy in range(3) for dx in range(3)]
    patches = jnp.stack(cols, axis=3)          # (N, H, W, 9, C)
    return patches.reshape(N * H * W, 9 * C)


def maxpool2x2(x_nhwc):
    """MaxPool2d(2,2) as reshape+max; XLA fuses with surrounding slice/cast."""
    N, H, W, C = x_nhwc.shape
    return x_nhwc.reshape(N, H // 2, 2, W // 2, 2, C).max(axis=(2, 4))


def prepare_params(p, eps=1e-5, pad_to=128):
    """One-time (outside jit) folding: BN->conv weights, lane padding, bf16 cast,
    fc weight transposition / NHWC column permutation."""

    def conv_prep(w_oihw, conv_b, gamma, beta, mean, var):
        Cout, Cin, _, _ = w_oihw.shape
        s = gamma / jnp.sqrt(var + eps)
        bias = (conv_b - mean) * s + beta
        # (Cout,Cin,3,3) -> (kh,kw,Cin,Cout) -> (9*Cin, Cout); fold BN scale into columns.
        w_cols = jnp.transpose(w_oihw, (2, 3, 1, 0)).reshape(9 * Cin, Cout) * s[None, :]
        # Zero-pad output channels to 128 so the matmul output block is lane-dense.
        w_cols = jnp.pad(w_cols, ((0, 0), (0, pad_to - Cout)))
        bias = jnp.pad(bias, (0, pad_to - Cout))
        return w_cols.astype(jnp.bfloat16), bias.astype(jnp.float32)

    c1w, c1b = conv_prep(p["conv1_w"], p["conv1_b"], p["bn1_gamma"],
                         p["bn1_beta"], p["bn1_mean"], p["bn1_var"])
    c2w, c2b = conv_prep(p["conv2_w"], p["conv2_b"], p["bn2_gamma"],
                         p["bn2_beta"], p["bn2_mean"], p["bn2_var"])

    # fc1: PyTorch (1024, 64*7*7) flattens NCHW (c,h,w).  Permute input columns to
    # NHWC (h,w,c) order and transpose to (K, N) so the forward pass can flatten the
    # pooled NHWC activations directly (no runtime transpose, no runtime .T).
    fc1_w_kn = jnp.transpose(p["fc1_w"].reshape(1024, 64, 7, 7),
                             (2, 3, 1, 0)).reshape(64 * 7 * 7, 1024)
    fc2_w_kn = jnp.transpose(p["fc2_w"], (1, 0))           # (1024, 10)

    return {
        "conv1_w_cols": c1w, "conv1_bias": c1b,
        "conv2_w_cols": c2w, "conv2_bias": c2b,
        "fc1_w_kn": fc1_w_kn.astype(jnp.bfloat16),
        "fc1_b": p["fc1_b"].astype(jnp.float32),
        "fc2_w_kn": fc2_w_kn.astype(jnp.bfloat16),
        "fc2_b": p["fc2_b"].astype(jnp.float32),
    }


# ----------------------------------------------------------------------------
# Forward pass
# ----------------------------------------------------------------------------
def complex_cnn_forward(x_nchw, p):
    N = x_nchw.shape[0]
    x = jnp.transpose(x_nchw, (0, 2, 3, 1)).astype(jnp.bfloat16)   # NHWC (N,28,28,1)

    # --- conv1 + bn1 + relu (BN folded into weights; Cout padded to 128 lanes) ---
    xp = jnp.pad(x, ((0, 0), (1, 1), (1, 1), (0, 0)))
    p1 = im2col_3x3(xp)                                            # (N*784, 9) bf16
    y1 = matmul_bias_act(p1, p["conv1_w_cols"], p["conv1_bias"], relu=True)
    y1 = y1.reshape(N, 28, 28, 128)[:, :, :, :32]                  # drop lane padding

    # --- pool1 (fused slice + reshape + max in XLA; no strided HBM gathers) -------
    y1 = maxpool2x2(y1).astype(jnp.bfloat16)                       # (N,14,14,32)

    # --- conv2 + bn2 + relu --------------------------------------------------------
    y1p = jnp.pad(y1, ((0, 0), (1, 1), (1, 1), (0, 0)))
    p2 = im2col_3x3(y1p)                                           # (N*196, 288) bf16
    y2 = matmul_bias_act(p2, p["conv2_w_cols"], p["conv2_bias"], relu=True)
    y2 = y2.reshape(N, 14, 14, 128)[:, :, :, :64]

    # --- pool2 ----------------------------------------------------------------------
    y2 = maxpool2x2(y2)                                            # (N,7,7,64)

    # --- flatten in NHWC order (fc1 columns were permuted offline to match) --------
    flat = y2.reshape(N, 64 * 7 * 7).astype(jnp.bfloat16)          # (N, 3136)

    # --- fc1 + relu (dropout is eval-mode identity) ----------------------------------
    h = matmul_bias_act(flat, p["fc1_w_kn"], p["fc1_b"], relu=True, block_n=512)

    # --- fc2 --------------------------------------------------------------------------
    out = matmul_bias_act(h.astype(jnp.bfloat16), p["fc2_w_kn"], p["fc2_b"], relu=False)
    return out                                                     # (N, 10) f32


# ----------------------------------------------------------------------------
# Deterministic parameter init (synthetic; PyTorch-layout shapes, distinct keys)
# ----------------------------------------------------------------------------
def init_params(key):
    ks = jax.random.split(key, 18)
    return {
        "conv1_w": 0.1 * jax.random.normal(ks[0], (32, 1, 3, 3), jnp.float32),
        "conv1_b": 0.1 * jax.random.normal(ks[1], (32,), jnp.float32),
        "bn1_gamma": 1.0 + 0.1 * jax.random.normal(ks[2], (32,), jnp.float32),
        "bn1_beta": 0.1 * jax.random.normal(ks[3], (32,), jnp.float32),
        "bn1_mean": 0.05 * jax.random.normal(ks[4], (32,), jnp.float32),
        "bn1_var": 1.0 + 0.1 * jnp.abs(jax.random.normal(ks[5], (32,), jnp.float32)),
        "conv2_w": 0.05 * jax.random.normal(ks[6], (64, 32, 3, 3), jnp.float32),
        "conv2_b": 0.1 * jax.random.normal(ks[7], (64,), jnp.float32),
        "bn2_gamma": 1.0 + 0.1 * jax.random.normal(ks[8], (64,), jnp.float32),
        "bn2_beta": 0.1 * jax.random.normal(ks[9], (64,), jnp.float32),
        "bn2_mean": 0.05 * jax.random.normal(ks[10], (64,), jnp.float32),
        "bn2_var": 1.0 + 0.1 * jnp.abs(jax.random.normal(ks[11], (64,), jnp.float32)),
        "fc1_w": 0.02 * jax.random.normal(ks[12], (1024, 64 * 7 * 7), jnp.float32),
        "fc1_b": 0.02 * jax.random.normal(ks[13], (1024,), jnp.float32),
        "fc2_w": 0.05 * jax.random.normal(ks[14], (10, 1024), jnp.float32),
        "fc2_b": 0.05 * jax.random.normal(ks[15], (10,), jnp.float32),
    }


if __name__ == "__main__":
    key = jax.random.PRNGKey(0)
    k_x, k_p = jax.random.split(key)

    # Shapes implied by the module: 28x28 single-channel input (fc1 expects 64*7*7).
    x = jax.random.normal(k_x, (2, 1, 28, 28), jnp.float32)
    params = init_params(k_p)
    prepped = prepare_params(params)   # one-time offline weight folding / layout prep

    fwd = jax.jit(complex_cnn_forward)
    out = fwd(x, prepped)
    jax.block_until_ready(out)

    assert out.shape == (2, 10), out.shape
    assert out.dtype == jnp.float32
    assert bool(jnp.all(jnp.isfinite(out)))
    print("KERNEL_OK")
</pallas_src>

<mosaic_0001>
module attributes {stable_mosaic.version = 11 : i64} {
  func.func @_mm_bias_kernel(%arg0: i32, %arg1: i32, %arg2: memref<392x9xbf16, #tpu.memory_space<vmem>>, %arg3: memref<9x128xbf16, #tpu.memory_space<vmem>>, %arg4: memref<1x128xf32, #tpu.memory_space<vmem>>, %arg5: memref<392x128xf32, #tpu.memory_space<vmem>>) attributes {dimension_semantics = [#tpu.dimension_semantics<parallel>, #tpu.dimension_semantics<parallel>], iteration_bounds = array<i64: 1, 4>, scalar_prefetch = 0 : i64, scratch_operands = 0 : i64, tpu.core_type = #tpu.core_type<tc>, window_params = [{transform_indices = @transform_0, window_bounds = array<i64: 392, 9>}, {transform_indices = @transform_1, window_bounds = array<i64: 9, 128>}, {transform_indices = @transform_2, window_bounds = array<i64: 1, 128>}, {transform_indices = @transform_3, window_bounds = array<i64: 392, 128>}]} {
    %c0 = arith.constant 0 : index
    %c0_0 = arith.constant 0 : index
    %0 = vector.load %arg2[%c0, %c0_0] : memref<392x9xbf16, #tpu.memory_space<vmem>>, vector<392x9xbf16>
    %c0_1 = arith.constant 0 : index
    %c0_2 = arith.constant 0 : index
    %1 = vector.load %arg3[%c0_1, %c0_2] : memref<9x128xbf16, #tpu.memory_space<vmem>>, vector<9x128xbf16>
    %cst = arith.constant dense<0.000000e+00> : vector<392x128xf32>
    %2 = tpu.matmul %0, %1, %cst {dimension_numbers = #tpu.dot_dimension_numbers<[1], [0], [0], [1], [0, 0, 1, 1], [], []>} : vector<392x9xbf16>, vector<9x128xbf16>, vector<392x128xf32> -> vector<392x128xf32>
    %c0_3 = arith.constant 0 : index
    %c0_4 = arith.constant 0 : index
    %3 = vector.load %arg4[%c0_3, %c0_4] : memref<1x128xf32, #tpu.memory_space<vmem>>, vector<1x128xf32>
    %4 = vector.broadcast %3 : vector<1x128xf32> to vector<392x128xf32>
    %5 = arith.addf %2, %4 : vector<392x128xf32>
    %cst_5 = arith.constant 0.000000e+00 : f32
    %6 = vector.broadcast %cst_5 : f32 to vector<392x128xf32>
    %7 = arith.maximumf %5, %6 : vector<392x128xf32>
    %c0_6 = arith.constant 0 : index
    %c0_7 = arith.constant 0 : index
    %8 = vector.load %arg5[%c0_6, %c0_7] : memref<392x128xf32, #tpu.memory_space<vmem>>, vector<392x128xf32>
    tpu.vector_store %arg5[%c0_6, %c0_7], %7 {strides = array<i32>} : memref<392x128xf32, #tpu.memory_space<vmem>>, vector<392x128xf32>,
    return
  }
  func.func @transform_0(%arg0: i32, %arg1: i32) -> (i32, i32) {
    %c0_i32 = arith.constant 0 : i32
    %c0_i32_0 = arith.constant 0 : i32
    return %arg1, %c0_i32 : i32, i32
  }
  func.func @transform_1(%arg0: i32, %arg1: i32) -> (i32, i32) {
    %c0_i32 = arith.constant 0 : i32
    %c0_i32_0 = arith.constant 0 : i32
    return %c0_i32, %arg0 : i32, i32
  }
  func.func @transform_2(%arg0: i32, %arg1: i32) -> (i32, i32) {
    %c0_i32 = arith.constant 0 : i32
    %c0_i32_0 = arith.constant 0 : i32
    return %c0_i32, %arg0 : i32, i32
  }
  func.func @transform_3(%arg0: i32, %arg1: i32) -> (i32, i32) {
    %c0_i32 = arith.constant 0 : i32
    return %arg1, %arg0 : i32, i32
  }
}

module attributes {stable_mosaic.version = 11 : i64} {
  func.func @_mm_bias_kernel(%arg0: i32, %arg1: i32, %arg2: memref<392x288xbf16, #tpu.memory_space<vmem>>, %arg3: memref<288x128xbf16, #tpu.memory_space<vmem>>, %arg4: memref<1x128xf32, #tpu.memory_space<vmem>>, %arg5: memref<392x128xf32, #tpu.memory_space<vmem>>) attributes {dimension_semantics = [#tpu.dimension_semantics<parallel>, #tpu.dimension_semantics<parallel>], iteration_bounds = array<i64: 1, 1>, scalar_prefetch = 0 : i64, scratch_operands = 0 : i64, tpu.core_type = #tpu.core_type<tc>, window_params = [{transform_indices = @transform_0, window_bounds = array<i64: 392, 288>}, {transform_indices = @transform_1, window_bounds = array<i64: 288, 128>}, {transform_indices = @transform_2, window_bounds = array<i64: 1, 128>}, {transform_indices = @transform_3, window_bounds = array<i64: 392, 128>}]} {
    %c0 = arith.constant 0 : index
    %c0_0 = arith.constant 0 : index
    %0 = vector.load %arg2[%c0, %c0_0] : memref<392x288xbf16, #tpu.memory_space<vmem>>, vector<392x288xbf16>
    %c0_1 = arith.constant 0 : index
    %c0_2 = arith.constant 0 : index
    %1 = vector.load %arg3[%c0_1, %c0_2] : memref<288x128xbf16, #tpu.memory_space<vmem>>, vector<288x128xbf16>
    %cst = arith.constant dense<0.000000e+00> : vector<392x128xf32>
    %2 = tpu.matmul %0, %1, %cst {dimension_numbers = #tpu.dot_dimension_numbers<[1], [0], [0], [1], [0, 0, 1, 1], [], []>} : vector<392x288xbf16>, vector<288x128xbf16>, vector<392x128xf32> -> vector<392x128xf32>
    %c0_3 = arith.constant 0 : index
    %c0_4 = arith.constant 0 : index
    %3 = vector.load %arg4[%c0_3, %c0_4] : memref<1x128xf32, #tpu.memory_space<vmem>>, vector<1x128xf32>
    %4 = vector.broadcast %3 : vector<1x128xf32> to vector<392x128xf32>
    %5 = arith.addf %2, %4 : vector<392x128xf32>
    %cst_5 = arith.constant 0.000000e+00 : f32
    %6 = vector.broadcast %cst_5 : f32 to vector<392x128xf32>
    %7 = arith.maximumf %5, %6 : vector<392x128xf32>
    %c0_6 = arith.constant 0 : index
    %c0_7 = arith.constant 0 : index
    %8 = vector.load %arg5[%c0_6, %c0_7] : memref<392x128xf32, #tpu.memory_space<vmem>>, vector<392x128xf32>
    tpu.vector_store %arg5[%c0_6, %c0_7], %7 {strides = array<i32>} : memref<392x128xf32, #tpu.memory_space<vmem>>, vector<392x128xf32>,
    return
  }
  func.func @transform_0(%arg0: i32, %arg1: i32) -> (i32, i32) {
    %c0_i32 = arith.constant 0 : i32
    %c0_i32_0 = arith.constant 0 : i32
    return %arg1, %c0_i32 : i32, i32
  }
  func.func @transform_1(%arg0: i32, %arg1: i32) -> (i32, i32) {
    %c0_i32 = arith.constant 0 : i32
    %c0_i32_0 = arith.constant 0 : i32
    return %c0_i32, %arg0 : i32, i32
  }
  func.func @transform_2(%arg0: i32, %arg1: i32) -> (i32, i32) {
    %c0_i32 = arith.constant 0 : i32
    %c0_i32_0 = arith.constant 0 : i32
    return %c0_i32, %arg0 : i32, i32
  }
  func.func @transform_3(%arg0: i32, %arg1: i32) -> (i32, i32) {
    %c0_i32 = arith.constant 0 : i32
    return %arg1, %arg0 : i32, i32
  }
}

module attributes {stable_mosaic.version = 11 : i64} {
  func.func @_mm_bias_kernel(%arg0: i32, %arg1: i32, %arg2: memref<2x3136xbf16, #tpu.memory_space<vmem>>, %arg3: memref<3136x512xbf16, #tpu.memory_space<vmem>>, %arg4: memref<1x512xf32, #tpu.memory_space<vmem>>, %arg5: memref<2x512xf32, #tpu.memory_space<vmem>>) attributes {dimension_semantics = [#tpu.dimension_semantics<parallel>, #tpu.dimension_semantics<parallel>], iteration_bounds = array<i64: 2, 1>, scalar_prefetch = 0 : i64, scratch_operands = 0 : i64, tpu.core_type = #tpu.core_type<tc>, window_params = [{transform_indices = @transform_0, window_bounds = array<i64: 2, 3136>}, {transform_indices = @transform_1, window_bounds = array<i64: 3136, 512>}, {transform_indices = @transform_2, window_bounds = array<i64: 1, 512>}, {transform_indices = @transform_3, window_bounds = array<i64: 2, 512>}]} {
    %c0 = arith.constant 0 : index
    %c0_0 = arith.constant 0 : index
    %0 = vector.load %arg2[%c0, %c0_0] : memref<2x3136xbf16, #tpu.memory_space<vmem>>, vector<2x3136xbf16>
    %c0_1 = arith.constant 0 : index
    %c0_2 = arith.constant 0 : index
    %1 = vector.load %arg3[%c0_1, %c0_2] : memref<3136x512xbf16, #tpu.memory_space<vmem>>, vector<3136x512xbf16>
    %cst = arith.constant dense<0.000000e+00> : vector<2x512xf32>
    %2 = tpu.matmul %0, %1, %cst {dimension_numbers = #tpu.dot_dimension_numbers<[1], [0], [0], [1], [0, 0, 1, 1], [], []>} : vector<2x3136xbf16>, vector<3136x512xbf16>, vector<2x512xf32> -> vector<2x512xf32>
    %c0_3 = arith.constant 0 : index
    %c0_4 = arith.constant 0 : index
    %3 = vector.load %arg4[%c0_3, %c0_4] : memref<1x512xf32, #tpu.memory_space<vmem>>, vector<1x512xf32>
    %4 = vector.broadcast %3 : vector<1x512xf32> to vector<2x512xf32>
    %5 = arith.addf %2, %4 : vector<2x512xf32>
    %cst_5 = arith.constant 0.000000e+00 : f32
    %6 = vector.broadcast %cst_5 : f32 to vector<2x512xf32>
    %7 = arith.maximumf %5, %6 : vector<2x512xf32>
    %c0_6 = arith.constant 0 : index
    %c0_7 = arith.constant 0 : index
    %8 = vector.load %arg5[%c0_6, %c0_7] : memref<2x512xf32, #tpu.memory_space<vmem>>, vector<2x512xf32>
    tpu.vector_store %arg5[%c0_6, %c0_7], %7 {strides = array<i32>} : memref<2x512xf32, #tpu.memory_space<vmem>>, vector<2x512xf32>,
    return
  }
  func.func @transform_0(%arg0: i32, %arg1: i32) -> (i32, i32) {
    %c0_i32 = arith.constant 0 : i32
    %c0_i32_0 = arith.constant 0 : i32
    return %arg1, %c0_i32 : i32, i32
  }
  func.func @transform_1(%arg0: i32, %arg1: i32) -> (i32, i32) {
    %c0_i32 = arith.constant 0 : i32
    %c0_i32_0 = arith.constant 0 : i32
    return %c0_i32, %arg0 : i32, i32
  }
  func.func @transform_2(%arg0: i32, %arg1: i32) -> (i32, i32) {
    %c0_i32 = arith.constant 0 : i32
    %c0_i32_0 = arith.constant 0 : i32
    return %c0_i32, %arg0 : i32, i32
  }
  func.func @transform_3(%arg0: i32, %arg1: i32) -> (i32, i32) {
    %c0_i32 = arith.constant 0 : i32
    return %arg1, %arg0 : i32, i32
  }
}

module attributes {stable_mosaic.version = 11 : i64} {
  func.func @_mm_bias_kernel(%arg0: i32, %arg1: i32, %arg2: memref<2x1024xbf16, #tpu.memory_space<vmem>>, %arg3: memref<1024x10xbf16, #tpu.memory_space<vmem>>, %arg4: memref<1x10xf32, #tpu.memory_space<vmem>>, %arg5: memref<2x10xf32, #tpu.memory_space<vmem>>) attributes {dimension_semantics = [#tpu.dimension_semantics<parallel>, #tpu.dimension_semantics<parallel>], iteration_bounds = array<i64: 1, 1>, scalar_prefetch = 0 : i64, scratch_operands = 0 : i64, tpu.core_type = #tpu.core_type<tc>, window_params = [{transform_indices = @transform_0, window_bounds = array<i64: 2, 1024>}, {transform_indices = @transform_1, window_bounds = array<i64: 1024, 10>}, {transform_indices = @transform_2, window_bounds = array<i64: 1, 10>}, {transform_indices = @transform_3, window_bounds = array<i64: 2, 10>}]} {
    %c0 = arith.constant 0 : index
    %c0_0 = arith.constant 0 : index
    %0 = vector.load %arg2[%c0, %c0_0] : memref<2x1024xbf16, #tpu.memory_space<vmem>>, vector<2x1024xbf16>
    %c0_1 = arith.constant 0 : index
    %c0_2 = arith.constant 0 : index
    %1 = vector.load %arg3[%c0_1, %c0_2] : memref<1024x10xbf16, #tpu.memory_space<vmem>>, vector<1024x10xbf16>
    %cst = arith.constant dense<0.000000e+00> : vector<2x10xf32>
    %2 = tpu.matmul %0, %1, %cst {dimension_numbers = #tpu.dot_dimension_numbers<[1], [0], [0], [1], [0, 0, 1, 1], [], []>} : vector<2x1024xbf16>, vector<1024x10xbf16>, vector<2x10xf32> -> vector<2x10xf32>
    %c0_3 = arith.constant 0 : index
    %c0_4 = arith.constant 0 : index
    %3 = vector.load %arg4[%c0_3, %c0_4] : memref<1x10xf32, #tpu.memory_space<vmem>>, vector<1x10xf32>
    %4 = vector.broadcast %3 : vector<1x10xf32> to vector<2x10xf32>
    %5 = arith.addf %2, %4 : vector<2x10xf32>
    %c0_5 = arith.constant 0 : index
    %c0_6 = arith.constant 0 : index
    %6 = vector.load %arg5[%c0_5, %c0_6] : memref<2x10xf32, #tpu.memory_space<vmem>>, vector<2x10xf32>
    tpu.vector_store %arg5[%c0_5, %c0_6], %5 {strides = array<i32>} : memref<2x10xf32, #tpu.memory_space<vmem>>, vector<2x10xf32>,
    return
  }
  func.func @transform_0(%arg0: i32, %arg1: i32) -> (i32, i32) {
    %c0_i32 = arith.constant 0 : i32
    %c0_i32_0 = arith.constant 0 : i32
    return %arg1, %c0_i32 : i32, i32
  }
  func.func @transform_1(%arg0: i32, %arg1: i32) -> (i32, i32) {
    %c0_i32 = arith.constant 0 : i32
    %c0_i32_0 = arith.constant 0 : i32
    return %c0_i32, %arg0 : i32, i32
  }
  func.func @transform_2(%arg0: i32, %arg1: i32) -> (i32, i32) {
    %c0_i32 = arith.constant 0 : i32
    %c0_i32_0 = arith.constant 0 : i32
    return %c0_i32, %arg0 : i32, i32
  }
  func.func @transform_3(%arg0: i32, %arg1: i32) -> (i32, i32) {
    %c0_i32 = arith.constant 0 : i32
    return %arg1, %arg0 : i32, i32
  }
}

</mosaic_0001>

<bundles_post_ra>
// kernel: complex_cnn_forward.4
= control target key start
LH: loop header
LB: loop body
LE: loop exit
PB: predicated region body
PF: predicated region fallthrough
CT: control target
= control target key end

     0   :  { %8 = vsyncpa [#allocation3], 0  ;;  %s1392_s0 = inlined_call_operand.vmem [shape: bf16[1568,9], index: 0, kind: input, shape index: {}]   ;;  %s1393_s1 = inlined_call_operand.hbm [shape: bf16[9,128], index: 1, kind: input, shape index: {}]   ;;  %s1394_s2 = inlined_call_operand.hbm [shape: f32[1,128], index: 2, kind: input, shape index: {}]   ;;  %s1395_s3 = inlined_call_operand.vmem [shape: f32[1568,128], index: 3, kind: output, shape index: {}]  }
   0x1   :  { %9 = vsyncpa [#allocation5], 0  ;;  %s1169_s12 = smov 0   ;;  %s1171_s13 = smov 0  }
   0x2   :  { %s1173_s14 = smov 0  }
   0x3 LB: > { %s837_s15 = sadd.s32 4294967295, %s1142_s14   ;;  %s24_s16 = sadd.s32 1, %s1138_s13  ;;  %s1142_s14 = sphi %s1173_s14, %s15_s14   ;;  %s1138_s13 = sphi %s1171_s13, %s1399_s13   ;;  %s1134_s12 = sphi %s1169_s12, %s1398_s12  }
   0x4   : > { %p25_p0 = scmp.ge.s32.totalorder %s24_s16, 4  ;;  %p839_p1 = scmp.ge.s32.totalorder %s1142_s14, 1 }
   0x5   : > { %p138_p2 = scmp.lt.s32.totalorder %s1142_s14, 5  ;;  %p1194_p4 = scmp.eq.s32.totalorder %s837_s15, 0 }
   0x6   : > { %s1401_s16 = smov (%p25_p0, %s24_s16), 0  ;;  %s151_s21 = sshll.u32 %s1393_s1, 4  ;;  %s152_s21 = int_to_ptr.hbm [resolvable:$true] %s151_s21 }
   0x7   : > { %p1190_p3 = pnand %p839_p1, %p138_p2  ;;  %s1144_s22 = smov [#allocation2]  }
   0x8   : > { %s153_s23 = sshll.u32 %s1144_s22, 4  ;;  %s167_s26 = sshll.u32 %s1394_s2, 4  ;;  %s154_s23 = int_to_ptr.vmem [resolvable:$true] %s153_s23  ;;  %s168_s26 = int_to_ptr.hbm [resolvable:$true] %s167_s26 }
   0x9   : > { %p1011_p5 = pneg %p1190_p3  ;;  %s1145_s27 = smov 64  }
   0xa   : > { %s1146_s28 = smov 4   ;;  %s1147_s29 = smov [#allocation4]  }
   0xb   : > { %p1012_p6 = pnand %p1194_p4, %p1011_p5  ;;  %s169_s30 = sshll.u32 %s1147_s29, 4  ;;  %s170_s30 = int_to_ptr.vmem [resolvable:$true] %s169_s30 }
   0xc   : > { %191 = sbr.rel (%p1190_p3) target bundleno = 271 (0x10f), region = 32 }
   0xd   : > { %1014 = dma.hbm_to_vmem [thread:$0]  (!%p1012_p6), %s152_s21, 128, %s154_s23, [#allocation3], %s1145_s27, %s1145_s27, %s1146_s28  }
   0xe   : > { %1017 = dma.hbm_to_vmem [thread:$0]  (!%p1012_p6), %s168_s26, 16, %s170_s30, [#allocation5]  }
  0x11   : > { %1125 = dma.done.wait (%p1194_p4), [#allocation3], 128  }
  0x12   : > { %1127 = vsyncadd (%p1194_p4), [#allocation3], 4294967168 }
  0x13   : > { %1129 = dma.done.wait (%p1194_p4), [#allocation5], 16  }
  0x14   : > { %1131 = vsyncadd (%p1194_p4), [#allocation5], 4294967280  ;;  %vm499_vm0 = vcmask 1043456   ;;  %s224_s4 = smul.u32 49, %s1134_s12  ;;  %vm500_vm1 = vcmask 1044480   ;;  %v1148_v0 = vmov 65535  }
  0x15   : > { %v501_v1 = vsel %vm499_vm0, 4294967295, %v1148_v0  ;;  %v946_v3 = vld [vmem:[#allocation2] sm:$0xf]  ;;  %v999_v4 = vld [vmem:[#allocation2] sm:$0x10]  ;;  %vm423_vm2 = vcmask 72704  }
  0x16   : > { %p225_p7 = scmp.lt.s32.totalorder %s224_s4, 195  ;;  %v502_v2 = vsel %vm500_vm1, %v501_v1, 0  ;;  %v947_v5 = vor.u32 %v999_v4, %v946_v3  ;;  %v1277_v34 = vld [vmem:[#allocation4] ss:$0 sm:$0xff] }
  0x18   : > { %s1403_s4 = smov (!%p225_p7, %s224_s4), 195  ;;  %v504_v6 = vand.u32 %v947_v5, %v502_v2 }
  0x19   : > { %s846_s5 = sshll.u32 %s1403_s4, 2  ;;  %s847_s9 = sshll.u32 %s1403_s4, 3 }
  0x1a   : > { %s1225_s8 = scalar_lea.vmem %s1392_s0, %s846_s5  ;;  %513 = vmatpush.bf16.msra.mxu0 %v504_v6  ;;  %1000 = vmatpush.bf16.msra.mxu1 %v504_v6  ;;  %s1285_s12 = scalar_lea.vmem %s1395_s3, %s847_s9 }
  0x1b   : > { %v975_v7 = vld [vmem:[%s1225_s8] sm:$0xff]  ;;  %v982_v8 = vld [vmem:[%s1225_s8 + $0x38] sm:$0xff]  ;;  %v989_v9 = vld [vmem:[%s1225_s8 + $0x70] sm:$0xff]  ;;  %1001 = vmatpush.bf16.msra.mxu2 %v504_v6  ;;  %1002 = vmatpush.bf16.msra.mxu3 %v504_v6 }
  0x1c   : > { %v996_v10 = vld [vmem:[%s1225_s8 + $0xa8] sm:$0xff]  ;;  %v983_v12 = vld [vmem:[%s1225_s8 + $0x40] sm:$0xff]  ;;  %v990_v13 = vld [vmem:[%s1225_s8 + $0x78] sm:$0xff] }
  0x1d   : > { %948 = vmatmul.msk.bf16.vlgmr.msra.gmra.mxu0 %vm423_vm2, %v975_v7  ;;  %955 = vmatmul.msk.bf16.vlgmr.msra.gmra.mxu1 %vm423_vm2, %v982_v8  ;;  %v976_v11 = vld [vmem:[%s1225_s8 + $0x8] sm:$0xff]  ;;  %v997_v14 = vld [vmem:[%s1225_s8 + $0xb0] sm:$0xff]  ;;  %v991_v17 = vld [vmem:[%s1225_s8 + $0x80] sm:$0xff] }
  0x1e   : > { %962 = vmatmul.msk.bf16.vlgmr.msra.gmra.mxu2 %vm423_vm2, %v989_v9  ;;  %969 = vmatmul.msk.bf16.vlgmr.msra.gmra.mxu3 %vm423_vm2, %v996_v10  ;;  %v977_v15 = vld [vmem:[%s1225_s8 + $0x10] sm:$0xff]  ;;  %v984_v16 = vld [vmem:[%s1225_s8 + $0x48] sm:$0xff]  ;;  %v998_v18 = vld [vmem:[%s1225_s8 + $0xb8] sm:$0xff] }
  0x1f   : > { %v978_v19 = vld [vmem:[%s1225_s8 + $0x18] sm:$0xff]  ;;  %v985_v20 = vld [vmem:[%s1225_s8 + $0x50] sm:$0xff]  ;;  %v992_v21 = vld [vmem:[%s1225_s8 + $0x88] sm:$0xff] }
  0x20   : > { %v288_v22 = vld [vmem:[%s1225_s8 + $0xc0] sm:$0xf]  ;;  %v986_v26 = vld [vmem:[%s1225_s8 + $0x58] sm:$0xff]  ;;  %v993_v27 = vld [vmem:[%s1225_s8 + $0x90] sm:$0xff] }
  0x21   : > { %v392_v23 = vunpack.c.l.b16 %v288_v22  ;;  %v979_v25 = vld [vmem:[%s1225_s8 + $0x20] sm:$0xff]  ;;  %v980_v28 = vld [vmem:[%s1225_s8 + $0x28] sm:$0xff]  ;;  %v994_v30 = vld [vmem:[%s1225_s8 + $0x98] sm:$0xff] }
  0x22   : > { %v987_v29 = vld [vmem:[%s1225_s8 + $0x60] sm:$0xff]  ;;  %v981_v31 = vld [vmem:[%s1225_s8 + $0x30] sm:$0xff]  ;;  %v988_v32 = vld [vmem:[%s1225_s8 + $0x68] sm:$0xff] }
  0x23   : > { %v417_v24 = vpack.c.b16 %v392_v23, %v392_v23  ;;  %v995_v33 = vld [vmem:[%s1225_s8 + $0xa0] sm:$0xff] }
  0x2d   : > { %949 = vmatmul.msk.bf16.gmra.mxu0 %vm423_vm2, %v976_v11  ;;  %956 = vmatmul.msk.bf16.gmra.mxu1 %vm423_vm2, %v983_v12 }
  0x2e   : > { %963 = vmatmul.msk.bf16.gmra.mxu2 %vm423_vm2, %v990_v13  ;;  %970 = vmatmul.msk.bf16.gmra.mxu3 %vm423_vm2, %v997_v14 }
  0x3d   : > { %950 = vmatmul.msk.bf16.gmra.mxu0 %vm423_vm2, %v977_v15  ;;  %957 = vmatmul.msk.bf16.gmra.mxu1 %vm423_vm2, %v984_v16 }
  0x3e   : > { %964 = vmatmul.msk.bf16.gmra.mxu2 %vm423_vm2, %v991_v17  ;;  %971 = vmatmul.msk.bf16.gmra.mxu3 %vm423_vm2, %v998_v18 }
  0x4d   : > { %951 = vmatmul.msk.bf16.gmra.mxu0 %vm423_vm2, %v978_v19  ;;  %958 = vmatmul.msk.bf16.gmra.mxu1 %vm423_vm2, %v985_v20 }
  0x4e   : > { %965 = vmatmul.msk.bf16.gmra.mxu2 %vm423_vm2, %v992_v21  ;;  %972 = vmatmul.msk.bf16.gmra.mxu3 %vm423_vm2, %v417_v24 }
  0x5d   : > { %952 = vmatmul.msk.bf16.gmra.mxu0 %vm423_vm2, %v979_v25  ;;  %959 = vmatmul.msk.bf16.gmra.mxu1 %vm423_vm2, %v986_v26 }
  0x5e   : > { %966 = vmatmul.msk.bf16.gmra.mxu2 %vm423_vm2, %v993_v27 }
  0x6d   : > { %953 = vmatmul.msk.bf16.gmra.mxu0 %vm423_vm2, %v980_v28  ;;  %960 = vmatmul.msk.bf16.gmra.mxu1 %vm423_vm2, %v987_v29 }
  0x6e   : > { %967 = vmatmul.msk.bf16.gmra.mxu2 %vm423_vm2, %v994_v30 }
  0x7d   : > { %954 = vmatmul.msk.bf16.gmra.mxu0 %vm423_vm2, %v981_v31  ;;  %961 = vmatmul.msk.bf16.gmra.mxu1 %vm423_vm2, %v988_v32 }
  0x7e   : > { %968 = vmatmul.msk.bf16.gmra.mxu2 %vm423_vm2, %v995_v33 }
  0x9a   : > { %v515_v35 = vpop.f32.mrf.mxu0  ;;  %v550_v36 = vpop.f32.mrf.mxu1 }
  0x9b   : > { %v516_v37 = vadd.f32 %v1277_v34, %v515_v35  ;;  %v551_v38 = vadd.f32 %v1277_v34, %v550_v36 }
  0x9d   : > { %v639_v39 = vmax.f32 %v516_v37, 0.0  ;;  %v653_v40 = vmax.f32 %v551_v38, 0.0 }
  0x9f   : > { %688 = vst [vmem:[%s1285_s12] sm:$0xff] %v639_v39 }
  0xa0   : > { %702 = vst [vmem:[%s1285_s12 + $0x70] sm:$0xff] %v653_v40 }
  0xa1   : > { %v585_v41 = vpop.f32.mrf.mxu2  ;;  %v620_v59 = vpop.f32.mrf.mxu3 }
  0xa2   : > { %v586_v42 = vadd.f32 %v1277_v34, %v585_v41  ;;  %v517_v43 = vpop.f32.mrf.mxu0  ;;  %v552_v44 = vpop.f32.mrf.mxu1  ;;  %v621_v60 = vadd.f32 %v1277_v34, %v620_v59 }
  0xa3   : > { %v518_v45 = vadd.f32 %v1277_v34, %v517_v43  ;;  %v553_v46 = vadd.f32 %v1277_v34, %v552_v44 }
  0xa4   : > { %v667_v47 = vmax.f32 %v586_v42, 0.0  ;;  %v681_v1 = vmax.f32 %v621_v60, 0.0 }
  0xa5   : > { %v640_v48 = vmax.f32 %v518_v45, 0.0  ;;  %v654_v49 = vmax.f32 %v553_v46, 0.0 }
  0xa6   : > { %716 = vst [vmem:[%s1285_s12 + $0xe0] sm:$0xff] %v667_v47 }
  0xa7   : > { %689 = vst [vmem:[%s1285_s12 + $0x8] sm:$0xff] %v640_v48 }
  0xa8   : > { %703 = vst [vmem:[%s1285_s12 + $0x78] sm:$0xff] %v654_v49 }
  0xa9   : > { %v587_v50 = vpop.f32.mrf.mxu2  ;;  %730 = vst [vmem:[%s1285_s12 + $0x150] sm:$0xff] %v681_v1  ;;  %v622_v7 = vpop.f32.mrf.mxu3 }
  0xaa   : > { %v588_v51 = vadd.f32 %v1277_v34, %v587_v50  ;;  %v520_v52 = vpop.f32.mrf.mxu0  ;;  %v555_v53 = vpop.f32.mrf.mxu1  ;;  %v623_v8 = vadd.f32 %v1277_v34, %v622_v7 }
  0xab   : > { %v521_v54 = vadd.f32 %v1277_v34, %v520_v52  ;;  %v556_v55 = vadd.f32 %v1277_v34, %v555_v53 }
  0xac   : > { %v668_v56 = vmax.f32 %v588_v51, 0.0  ;;  %v682_v10 = vmax.f32 %v623_v8, 0.0 }
  0xad   : > { %v641_v57 = vmax.f32 %v521_v54, 0.0  ;;  %v655_v58 = vmax.f32 %v556_v55, 0.0 }
  0xae   : > { %717 = vst [vmem:[%s1285_s12 + $0xe8] sm:$0xff] %v668_v56 }
  0xaf   : > { %690 = vst [vmem:[%s1285_s12 + $0x10] sm:$0xff] %v641_v57 }
  0xb0   : > { %704 = vst [vmem:[%s1285_s12 + $0x80] sm:$0xff] %v655_v58 }
  0xb1   : > { %v590_v61 = vpop.f32.mrf.mxu2  ;;  %731 = vst [vmem:[%s1285_s12 + $0x158] sm:$0xff] %v682_v10  ;;  %v625_v19 = vpop.f32.mrf.mxu3 }
  0xb2   : > { %v591_v62 = vadd.f32 %v1277_v34, %v590_v61  ;;  %v522_v63 = vpop.f32.mrf.mxu0  ;;  %v557_v0 = vpop.f32.mrf.mxu1  ;;  %v626_v20 = vadd.f32 %v1277_v34, %v625_v19 }
  0xb3   : > { %v523_v2 = vadd.f32 %v1277_v34, %v522_v63  ;;  %v558_v3 = vadd.f32 %v1277_v34, %v557_v0 }
  0xb4   : > { %v669_v4 = vmax.f32 %v591_v62, 0.0  ;;  %v683_v25 = vmax.f32 %v626_v20, 0.0 }
  0xb5   : > { %v642_v5 = vmax.f32 %v523_v2, 0.0  ;;  %v656_v6 = vmax.f32 %v558_v3, 0.0 }
  0xb6   : > { %718 = vst [vmem:[%s1285_s12 + $0xf0] sm:$0xff] %v669_v4 }
  0xb7   : > { %691 = vst [vmem:[%s1285_s12 + $0x18] sm:$0xff] %v642_v5 }
  0xb8   : > { %705 = vst [vmem:[%s1285_s12 + $0x88] sm:$0xff] %v656_v6 }
  0xb9   : > { %v592_v9 = vpop.f32.mrf.mxu2  ;;  %732 = vst [vmem:[%s1285_s12 + $0x160] sm:$0xff] %v683_v25  ;;  %v627_v31 = vpop.f32.mrf.mxu3 }
  0xba   : > { %v593_v11 = vadd.f32 %v1277_v34, %v592_v9  ;;  %v525_v12 = vpop.f32.mrf.mxu0  ;;  %v560_v13 = vpop.f32.mrf.mxu1  ;;  %v628_v32 = vadd.f32 %v1277_v34, %v627_v31 }
  0xbb   : > { %v526_v14 = vadd.f32 %v1277_v34, %v525_v12  ;;  %v561_v15 = vadd.f32 %v1277_v34, %v560_v13 }
  0xbc   : > { %v670_v16 = vmax.f32 %v593_v11, 0.0  ;;  %v684_v35 = vmax.f32 %v628_v32, 0.0 }
  0xbd   : > { %v643_v17 = vmax.f32 %v526_v14, 0.0  ;;  %v657_v18 = vmax.f32 %v561_v15, 0.0 }
  0xbe   : > { %719 = vst [vmem:[%s1285_s12 + $0xf8] sm:$0xff] %v670_v16 }
  0xbf   : > { %692 = vst [vmem:[%s1285_s12 + $0x20] sm:$0xff] %v643_v17 }
  0xc0   : > { %706 = vst [vmem:[%s1285_s12 + $0x90] sm:$0xff] %v657_v18 }
  0xc1   : > { %v595_v21 = vpop.f32.mrf.mxu2  ;;  %733 = vst [vmem:[%s1285_s12 + $0x168] sm:$0xff] %v684_v35  ;;  %v630_v44 = vpop.f32.mrf.mxu3 }
  0xc2   : > { %v596_v22 = vadd.f32 %v1277_v34, %v595_v21  ;;  %v527_v23 = vpop.f32.mrf.mxu0  ;;  %v562_v24 = vpop.f32.mrf.mxu1  ;;  %v631_v45 = vadd.f32 %v1277_v34, %v630_v44 }
  0xc3   : > { %v528_v26 = vadd.f32 %v1277_v34, %v527_v23  ;;  %v563_v27 = vadd.f32 %v1277_v34, %v562_v24 }
  0xc4   : > { %v671_v28 = vmax.f32 %v596_v22, 0.0  ;;  %v685_v50 = vmax.f32 %v631_v45, 0.0 }
  0xc5   : > { %v644_v29 = vmax.f32 %v528_v26, 0.0  ;;  %v658_v30 = vmax.f32 %v563_v27, 0.0 }
  0xc6   : > { %720 = vst [vmem:[%s1285_s12 + $0x100] sm:$0xff] %v671_v28 }
  0xc7   : > { %693 = vst [vmem:[%s1285_s12 + $0x28] sm:$0xff] %v644_v29 }
  0xc8   : > { %707 = vst [vmem:[%s1285_s12 + $0x98] sm:$0xff] %v658_v30 }
  0xc9   : > { %v597_v33 = vpop.f32.mrf.mxu2  ;;  %734 = vst [vmem:[%s1285_s12 + $0x170] sm:$0xff] %v685_v50  ;;  %v632_v56 = vpop.f32.mrf.mxu3 }
  0xca   : > { %v598_v36 = vadd.f32 %v1277_v34, %v597_v33  ;;  %v530_v37 = vpop.f32.mrf.mxu0  ;;  %v565_v38 = vpop.f32.mrf.mxu1  ;;  %v633_v57 = vadd.f32 %v1277_v34, %v632_v56 }
  0xcb   : > { %v531_v39 = vadd.f32 %v1277_v34, %v530_v37  ;;  %v566_v40 = vadd.f32 %v1277_v34, %v565_v38 }
  0xcc   : > { %v672_v41 = vmax.f32 %v598_v36, 0.0  ;;  %v686_v59 = vmax.f32 %v633_v57, 0.0 }
  0xcd   : > { %v645_v42 = vmax.f32 %v531_v39, 0.0  ;;  %v659_v43 = vmax.f32 %v566_v40, 0.0 }
  0xce   : > { %721 = vst [vmem:[%s1285_s12 + $0x108] sm:$0xff] %v672_v41 }
  0xcf   : > { %694 = vst [vmem:[%s1285_s12 + $0x30] sm:$0xff] %v645_v42 }
  0xd0   : > { %708 = vst [vmem:[%s1285_s12 + $0xa0] sm:$0xff] %v659_v43 }
  0xd1   : > { %v600_v46 = vpop.f32.mrf.mxu2  ;;  %735 = vst [vmem:[%s1285_s12 + $0x178] sm:$0xff] %v686_v59  ;;  %v635_v4 = vpop.f32.mrf.mxu3 }
  0xd2   : > { %v601_v47 = vadd.f32 %v1277_v34, %v600_v46  ;;  %v532_v48 = vpop.f32.mrf.mxu0  ;;  %v567_v49 = vpop.f32.mrf.mxu1  ;;  %v636_v5 = vadd.f32 %v1277_v34, %v635_v4 }
  0xd3   : > { %v533_v51 = vadd.f32 %v1277_v34, %v532_v48  ;;  %v568_v52 = vadd.f32 %v1277_v34, %v567_v49 }
  0xd4   : > { %v673_v53 = vmax.f32 %v601_v47, 0.0  ;;  %v687_v10 = vmax.f32 %v636_v5, 0.0 }
  0xd5   : > { %v646_v54 = vmax.f32 %v533_v51, 0.0  ;;  %v660_v55 = vmax.f32 %v568_v52, 0.0 }
  0xd6   : > { %722 = vst [vmem:[%s1285_s12 + $0x110] sm:$0xff] %v673_v53 }
  0xd7   : > { %695 = vst [vmem:[%s1285_s12 + $0x38] sm:$0xff] %v646_v54 }
  0xd8   : > { %709 = vst [vmem:[%s1285_s12 + $0xa8] sm:$0xff] %v660_v55 }
  0xd9   : > { %v602_v58 = vpop.f32.mrf.mxu2  ;;  %736 = vst [vmem:[%s1285_s12 + $0x180] sm:$0xff] %v687_v10  ;;  %v637_v16 = vpop.f32.mrf.mxu3 }
  0xda   : > { %v603_v60 = vadd.f32 %v1277_v34, %v602_v58  ;;  %v535_v61 = vpop.f32.mrf.mxu0  ;;  %v570_v62 = vpop.f32.mrf.mxu1 }
  0xdb   : > { %v536_v63 = vadd.f32 %v1277_v34, %v535_v61  ;;  %v571_v0 = vadd.f32 %v1277_v34, %v570_v62 }
  0xdc   : > { %v674_v1 = vmax.f32 %v603_v60, 0.0 }
  0xdd   : > { %v647_v2 = vmax.f32 %v536_v63, 0.0  ;;  %v661_v3 = vmax.f32 %v571_v0, 0.0 }
  0xde   : > { %723 = vst [vmem:[%s1285_s12 + $0x118] sm:$0xff] %v674_v1 }
  0xdf   : > { %696 = vst [vmem:[%s1285_s12 + $0x40] sm:$0xff] %v647_v2 }
  0xe0   : > { %710 = vst [vmem:[%s1285_s12 + $0xb0] sm:$0xff] %v661_v3 }
  0xe1   : > { %v605_v6 = vpop.f32.mrf.mxu2 }
  0xe2   : > { %v606_v7 = vadd.f32 %v1277_v34, %v605_v6  ;;  %v537_v8 = vpop.f32.mrf.mxu0  ;;  %v572_v9 = vpop.f32.mrf.mxu1 }
  0xe3   : > { %v538_v11 = vadd.f32 %v1277_v34, %v537_v8  ;;  %v573_v12 = vadd.f32 %v1277_v34, %v572_v9 }
  0xe4   : > { %v675_v13 = vmax.f32 %v606_v7, 0.0 }
  0xe5   : > { %v648_v14 = vmax.f32 %v538_v11, 0.0  ;;  %v662_v15 = vmax.f32 %v573_v12, 0.0 }
  0xe6   : > { %724 = vst [vmem:[%s1285_s12 + $0x120] sm:$0xff] %v675_v13 }
  0xe7   : > { %697 = vst [vmem:[%s1285_s12 + $0x48] sm:$0xff] %v648_v14 }
  0xe8   : > { %711 = vst [vmem:[%s1285_s12 + $0xb8] sm:$0xff] %v662_v15 }
  0xe9   : > { %v607_v17 = vpop.f32.mrf.mxu2 }
  0xea   : > { %v608_v18 = vadd.f32 %v1277_v34, %v607_v17  ;;  %v540_v19 = vpop.f32.mrf.mxu0  ;;  %v575_v20 = vpop.f32.mrf.mxu1 }
  0xeb   : > { %v541_v21 = vadd.f32 %v1277_v34, %v540_v19  ;;  %v576_v22 = vadd.f32 %v1277_v34, %v575_v20 }
  0xec   : > { %v676_v23 = vmax.f32 %v608_v18, 0.0 }
  0xed   : > { %v649_v24 = vmax.f32 %v541_v21, 0.0  ;;  %v663_v25 = vmax.f32 %v576_v22, 0.0 }
  0xee   : > { %725 = vst [vmem:[%s1285_s12 + $0x128] sm:$0xff] %v676_v23 }
  0xef   : > { %698 = vst [vmem:[%s1285_s12 + $0x50] sm:$0xff] %v649_v24 }
  0xf0   : > { %712 = vst [vmem:[%s1285_s12 + $0xc0] sm:$0xff] %v663_v25 }
  0xf1   : > { %v610_v26 = vpop.f32.mrf.mxu2 }
  0xf2   : > { %v611_v27 = vadd.f32 %v1277_v34, %v610_v26  ;;  %v542_v28 = vpop.f32.mrf.mxu0  ;;  %v577_v29 = vpop.f32.mrf.mxu1 }
  0xf3   : > { %v543_v30 = vadd.f32 %v1277_v34, %v542_v28  ;;  %v578_v31 = vadd.f32 %v1277_v34, %v577_v29 }
  0xf4   : > { %v677_v32 = vmax.f32 %v611_v27, 0.0 }
  0xf5   : > { %v650_v33 = vmax.f32 %v543_v30, 0.0  ;;  %v664_v35 = vmax.f32 %v578_v31, 0.0 }
  0xf6   : > { %726 = vst [vmem:[%s1285_s12 + $0x130] sm:$0xff] %v677_v32 }
  0xf7   : > { %699 = vst [vmem:[%s1285_s12 + $0x58] sm:$0xff] %v650_v33 }
  0xf8   : > { %713 = vst [vmem:[%s1285_s12 + $0xc8] sm:$0xff] %v664_v35 }
  0xf9   : > { %v612_v36 = vpop.f32.mrf.mxu2 }
  0xfa   : > { %v613_v37 = vadd.f32 %v1277_v34, %v612_v36  ;;  %v545_v38 = vpop.f32.mrf.mxu0  ;;  %v580_v39 = vpop.f32.mrf.mxu1 }
  0xfb   : > { %v546_v40 = vadd.f32 %v1277_v34, %v545_v38  ;;  %v581_v41 = vadd.f32 %v1277_v34, %v580_v39 }
  0xfc   : > { %v678_v42 = vmax.f32 %v613_v37, 0.0 }
  0xfd   : > { %v651_v43 = vmax.f32 %v546_v40, 0.0  ;;  %v665_v44 = vmax.f32 %v581_v41, 0.0 }
  0xfe   : > { %727 = vst [vmem:[%s1285_s12 + $0x138] sm:$0xff] %v678_v42 }
  0xff   : > { %700 = vst [vmem:[%s1285_s12 + $0x60] sm:$0xff] %v651_v43 }
 0x100   : > { %714 = vst [vmem:[%s1285_s12 + $0xd0] sm:$0xff] %v665_v44 }
 0x101   : > { %v615_v45 = vpop.f32.mrf.mxu2 }
 0x102   : > { %v616_v46 = vadd.f32 %v1277_v34, %v615_v45  ;;  %v547_v47 = vpop.f32.mrf.mxu0  ;;  %v582_v48 = vpop.f32.mrf.mxu1 }
 0x103   : > { %v548_v49 = vadd.f32 %v1277_v34, %v547_v47  ;;  %v583_v50 = vadd.f32 %v1277_v34, %v582_v48 }
 0x104   : > { %v679_v51 = vmax.f32 %v616_v46, 0.0 }
 0x105   : > { %v652_v52 = vmax.f32 %v548_v49, 0.0  ;;  %v666_v53 = vmax.f32 %v583_v50, 0.0 }
 0x106   : > { %728 = vst [vmem:[%s1285_s12 + $0x140] sm:$0xff] %v679_v51 }
 0x107   : > { %701 = vst [vmem:[%s1285_s12 + $0x68] sm:$0xff] %v652_v52 }
 0x108   : > { %715 = vst [vmem:[%s1285_s12 + $0xd8] sm:$0xff] %v666_v53 }
 0x109   : > { %v617_v54 = vpop.f32.mrf.mxu2 }
 0x10a   : > { %v618_v55 = vadd.f32 %v1277_v34, %v617_v54 }
 0x10c   : > { %v680_v56 = vmax.f32 %v618_v55, 0.0 }
 0x10e   : > { %729 = vst [vmem:[%s1285_s12 + $0x148] sm:$0xff] %v680_v56 }
 0x10f PF: > { %s15_s14 = sadd.s32 1, %s1142_s14   ;;  %s1398_s12 = smov %s1138_s13 }
 0x110   : > { %p12_p8 = scmp.ge.s32.totalorder %s15_s14, 6   ;;  %s1399_s13 = smov %s1401_s16 }
 0x112   :  { %14 = sbr.rel (!%p12_p8) target bundleno = 3 (0x3), region = 73 }
 0x117   :  { %765 = vsyncpa [#allocation3], 1 }
 0x118   :  { %767 = vsyncpa [#allocation3 + $0x1], 1 }
 0x119   :  { %768 = vsyncpa [#allocation5], 1 }

// kernel: complex_cnn_forward.5
= control target key start
LH: loop header
LB: loop body
LE: loop exit
PB: predicated region body
PF: predicated region fallthrough
CT: control target
= control target key end

     0   :  { %vm631_vm0 = vcmask 261120   ;;  %s2517_s1 = inlined_call_operand.vmem [shape: bf16[288,128], index: 1, kind: input, shape index: {}]   ;;  %s2518_s0 = inlined_call_operand.vmem [shape: bf16[392,288], index: 0, kind: input, shape index: {}]   ;;  %s2519_s2 = inlined_call_operand.vmem [shape: f32[1,128], index: 2, kind: input, shape index: {}]   ;;  %s2520_s3 = inlined_call_operand.vmem [shape: f32[392,128], index: 3, kind: output, shape index: {}]  }
   0x1   :  { %v1672_v0 = vld [vmem:[%s2517_s1 + $0x38] sm:$0xff]  ;;  %v1732_v2 = vld [vmem:[%s2517_s1 + $0x88] sm:$0xff]  ;;  %v1671_v3 = vld [vmem:[%s2517_s1 + $0x30] sm:$0xff] }
   0x2   :  { %v1680_v1 = vld [vmem:[%s2517_s1 + $0x78] sm:$0xff]  ;;  %707 = vmatpush.bf16.msra.mxu0 %v1672_v0  ;;  %1683 = vmatpush.bf16.msra.mxu3 %v1672_v0  ;;  %v1679_v4 = vld [vmem:[%s2517_s1 + $0x70] sm:$0xff]  ;;  %v1744_v5 = vld [vmem:[%s2517_s1 + $0x80] sm:$0xff] }
   0x3   :  { %840 = vmatpush.bf16.msra.mxu1 %v1680_v1  ;;  %979 = vmatpush.bf16.msra.mxu2 %v1732_v2  ;;  %v1218_v6 = vld [vmem:[%s2518_s0 + $0x8] sm:$0xf]  ;;  %v1595_v7 = vld [vmem:[%s2518_s0 + $0x10] sm:$0xf0]  ;;  %v1669_v11 = vld [vmem:[%s2517_s1 + $0x20] sm:$0xff] }
   0x4   :  { %v1219_v8 = vor.u32 %v1595_v7, %v1218_v6  ;;  %v1670_v9 = vld [vmem:[%s2517_s1 + $0x28] sm:$0xff]  ;;  %v1677_v12 = vld [vmem:[%s2517_s1 + $0x60] sm:$0xff]  ;;  %v1668_v13 = vld [vmem:[%s2517_s1 + $0x18] sm:$0xff] }
   0x5   :  { %v1678_v10 = vld [vmem:[%s2517_s1 + $0x68] sm:$0xff]  ;;  %v1676_v14 = vld [vmem:[%s2517_s1 + $0x58] sm:$0xff]  ;;  %v1667_v15 = vld [vmem:[%s2517_s1 + $0x10] sm:$0xff] }
   0x6   :  { %708 = vmatpush.bf16.msra.mxu0 %v1671_v3  ;;  %1684 = vmatpush.bf16.msra.mxu3 %v1671_v3  ;;  %v1675_v16 = vld [vmem:[%s2517_s1 + $0x50] sm:$0xff]  ;;  %v1230_v17 = vld [vmem:[%s2518_s0 + $0x20] sm:$0xf]  ;;  %v1598_v18 = vld [vmem:[%s2518_s0 + $0x28] sm:$0xf0] }
   0x7   :  { %841 = vmatpush.bf16.msra.mxu1 %v1679_v4  ;;  %980 = vmatpush.bf16.msra.mxu2 %v1744_v5  ;;  %v1231_v19 = vor.u32 %v1598_v18, %v1230_v17  ;;  %v1666_v20 = vld [vmem:[%s2517_s1 + $0x8] sm:$0xff]  ;;  %v1665_v22 = vld [vmem:[%s2517_s1] sm:$0xff]  ;;  %v1651_v27 = vld [vmem:[%s2518_s0 + $0x1d0] sm:$0xf0] }
   0x8   :  { %v1674_v21 = vld [vmem:[%s2517_s1 + $0x48] sm:$0xff]  ;;  %v1673_v23 = vld [vmem:[%s2517_s1 + $0x40] sm:$0xff]  ;;  %v1212_v29 = vld [vmem:[%s2518_s0 + $0xc] sm:$0xf0] }
   0x9   :  { %v1210_v24 = vld [vmem:[%s2518_s0] sm:$0xf]  ;;  %v1594_v25 = vld [vmem:[%s2518_s0 + $0x8] sm:$0xf0]  ;;  %v1438_v26 = vld [vmem:[%s2518_s0 + $0x1c8] sm:$0xf] }
   0xa   :  { %1568 = vmatmul.msk.bf16.vlgmr.msra.gmra.mxu2 %vm631_vm0, %v1219_v8  ;;  %709 = vmatpush.bf16.msra.mxu0 %v1670_v9  ;;  %v1593_v28 = vld [vmem:[%s2518_s0 + $0x4] sm:$0xf]  ;;  %v1211_v30 = vor.u32 %v1594_v25, %v1210_v24  ;;  %v1439_v31 = vor.u32 %v1651_v27, %v1438_v26  ;;  %v1242_v33 = vld [vmem:[%s2518_s0 + $0x38] sm:$0xf]  ;;  %v1450_v38 = vld [vmem:[%s2518_s0 + $0x1e0] sm:$0xf] }
   0xb   :  { %1685 = vmatpush.bf16.msra.mxu3 %v1670_v9  ;;  %842 = vmatpush.bf16.msra.mxu1 %v1678_v10  ;;  %v1215_v32 = vor.u32 %v1593_v28, %v1212_v29  ;;  %v1601_v34 = vld [vmem:[%s2518_s0 + $0x40] sm:$0xf0]  ;;  %v1222_v36 = vld [vmem:[%s2518_s0 + $0x18] sm:$0xf]  ;;  %v1654_v39 = vld [vmem:[%s2518_s0 + $0x1e8] sm:$0xf0] }
   0xc   :  { %v1243_v35 = vor.u32 %v1601_v34, %v1242_v33  ;;  %v1597_v37 = vld [vmem:[%s2518_s0 + $0x20] sm:$0xf0]  ;;  %v1596_v40 = vld [vmem:[%s2518_s0 + $0x1c] sm:$0xf]  ;;  %v1224_v41 = vld [vmem:[%s2518_s0 + $0x24] sm:$0xf0]  ;;  %v1451_v43 = vor.u32 %v1654_v39, %v1450_v38 }
   0xd   :  { %v1223_v42 = vor.u32 %v1597_v37, %v1222_v36  ;;  %v1227_v44 = vor.u32 %v1596_v40, %v1224_v41  ;;  %v1254_v45 = vld [vmem:[%s2518_s0 + $0x50] sm:$0xf]  ;;  %v1604_v46 = vld [vmem:[%s2518_s0 + $0x58] sm:$0xf0]  ;;  %v1462_v50 = vld [vmem:[%s2518_s0 + $0x1f8] sm:$0xf] }
   0xe   :  { %710 = vmatpush.bf16.msra.mxu0 %v1669_v11  ;;  %v1255_v47 = vor.u32 %v1604_v46, %v1254_v45  ;;  %v1234_v48 = vld [vmem:[%s2518_s0 + $0x30] sm:$0xf]  ;;  %v1600_v49 = vld [vmem:[%s2518_s0 + $0x38] sm:$0xf0]  ;;  %v1657_v51 = vld [vmem:[%s2518_s0 + $0x200] sm:$0xf0] }
   0xf   :  { %1686 = vmatpush.bf16.msra.mxu3 %v1669_v11  ;;  %843 = vmatpush.bf16.msra.mxu1 %v1677_v12  ;;  %v1599_v52 = vld [vmem:[%s2518_s0 + $0x34] sm:$0xf]  ;;  %v1236_v53 = vld [vmem:[%s2518_s0 + $0x3c] sm:$0xf0]  ;;  %v1235_v54 = vor.u32 %v1600_v49, %v1234_v48  ;;  %v1463_v55 = vor.u32 %v1657_v51, %v1462_v50  ;;  %v1266_v57 = vld [vmem:[%s2518_s0 + $0x68] sm:$0xf] }
  0x10   :  { %v1239_v56 = vor.u32 %v1599_v52, %v1236_v53  ;;  %v1607_v58 = vld [vmem:[%s2518_s0 + $0x70] sm:$0xf0]  ;;  %v1246_v60 = vld [vmem:[%s2518_s0 + $0x48] sm:$0xf]  ;;  %v1474_v62 = vld [vmem:[%s2518_s0 + $0x210] sm:$0xf] }
  0x11   :  { %v1267_v59 = vor.u32 %v1607_v58, %v1266_v57  ;;  %v1603_v61 = vld [vmem:[%s2518_s0 + $0x50] sm:$0xf0]  ;;  %v1660_v63 = vld [vmem:[%s2518_s0 + $0x218] sm:$0xf0]  ;;  %v1602_v0 = vld [vmem:[%s2518_s0 + $0x4c] sm:$0xf] }
  0x12   :  { %711 = vmatpush.bf16.msra.mxu0 %v1668_v13  ;;  %v1475_v3 = vor.u32 %v1660_v63, %v1474_v62  ;;  %v1610_v6 = vld [vmem:[%s2518_s0 + $0x88] sm:$0xf0]  ;;  %v1258_v8 = vld [vmem:[%s2518_s0 + $0x60] sm:$0xf]  ;;  %v1663_v11 = vld [vmem:[%s2518_s0 + $0x230] sm:$0xf0] }
  0x13   :  { %1687 = vmatpush.bf16.msra.mxu3 %v1668_v13  ;;  %844 = vmatpush.bf16.msra.mxu1 %v1676_v14  ;;  %v1606_v9 = vld [vmem:[%s2518_s0 + $0x68] sm:$0xf0]  ;;  %v1260_v13 = vld [vmem:[%s2518_s0 + $0x6c] sm:$0xf0]  ;;  %v1290_v17 = vld [vmem:[%s2518_s0 + $0x98] sm:$0xf] }
  0x14   :  { %v1613_v18 = vld [vmem:[%s2518_s0 + $0xa0] sm:$0xf0]  ;;  %v1608_v24 = vld [vmem:[%s2518_s0 + $0x7c] sm:$0xf]  ;;  %v1272_v25 = vld [vmem:[%s2518_s0 + $0x84] sm:$0xf0] }
  0x15   :  { %v1275_v28 = vor.u32 %v1608_v24, %v1272_v25  ;;  %v1302_v29 = vld [vmem:[%s2518_s0 + $0xb0] sm:$0xf]  ;;  %v1612_v33 = vld [vmem:[%s2518_s0 + $0x98] sm:$0xf0]  ;;  %v1611_v34 = vld [vmem:[%s2518_s0 + $0x94] sm:$0xf] }
  0x16   :  { %712 = vmatpush.bf16.msra.mxu0 %v1667_v15  ;;  %v1650_v36 = vld [vmem:[%s2518_s0 + $0x1cc] sm:$0xf]  ;;  %v1440_v37 = vld [vmem:[%s2518_s0 + $0x1d4] sm:$0xf0]  ;;  %v1314_v41 = vld [vmem:[%s2518_s0 + $0xc8] sm:$0xf] }
  0x17   :  { %1688 = vmatpush.bf16.msra.mxu3 %v1667_v15  ;;  %845 = vmatpush.bf16.msra.mxu1 %v1675_v16  ;;  %v1443_v40 = vor.u32 %v1650_v36, %v1440_v37  ;;  %v1615_v45 = vld [vmem:[%s2518_s0 + $0xb0] sm:$0xf0]  ;;  %v1614_v46 = vld [vmem:[%s2518_s0 + $0xac] sm:$0xf]  ;;  %v1653_v48 = vld [vmem:[%s2518_s0 + $0x1e4] sm:$0xf] }
  0x18   :  { %v1452_v49 = vld [vmem:[%s2518_s0 + $0x1ec] sm:$0xf0]  ;;  %v2001_v58 = vld [vmem:[%s2519_s2] ss:$0 sm:$0xff]  ;;  %v1656_v63 = vld [vmem:[%s2518_s0 + $0x1fc] sm:$0xf] }
  0x19   :  { %v1455_v53 = vor.u32 %v1653_v48, %v1452_v49  ;;  %v1308_v62 = vld [vmem:[%s2518_s0 + $0xcc] sm:$0xf0]  ;;  %v1320_v25 = vld [vmem:[%s2518_s0 + $0xe4] sm:$0xf0] }
  0x1a   :  { %1569 = vmatmul.msk.bf16.gmra.mxu2 %vm631_vm0, %v1231_v19  ;;  %713 = vmatpush.bf16.msra.mxu0 %v1666_v20  ;;  %v1291_v19 = vor.u32 %v1613_v18, %v1290_v17  ;;  %v1330_v49 = vld [vmem:[%s2518_s0 + $0xf0] sm:$0xf] }
  0x1b   :  { %1689 = vmatpush.bf16.msra.mxu3 %v1666_v20  ;;  %846 = vmatpush.bf16.msra.mxu1 %v1674_v21  ;;  %v1926_v20 = vld [vmem:[%s2518_s0 + $0x240] sm:$0xff] }
  0x1e   :  { %714 = vmatpush.bf16.msra.mxu0 %v1665_v22 }
  0x1f   :  { %1690 = vmatpush.bf16.msra.mxu3 %v1665_v22  ;;  %847 = vmatpush.bf16.msra.mxu1 %v1673_v23  ;;  %v1609_v22 = vld [vmem:[%s2518_s0 + $0x80] sm:$0xf0] }
  0x21   :  { %715 = vmatmul.bf16.vlgmr.msra.gmra.mxu0 %v1211_v30  ;;  %v1616_v30 = vld [vmem:[%s2518_s0 + $0xb8] sm:$0xf0] }
  0x22   :  { %810 = vmatmul.bf16.vlgmr.msra.gmra.mxu3 %v1439_v31  ;;  %848 = vmatmul.bf16.vlgmr.msra.gmra.mxu1 %v1215_v32  ;;  %v1303_v31 = vor.u32 %v1616_v30, %v1302_v29  ;;  %v1282_v32 = vld [vmem:[%s2518_s0 + $0x90] sm:$0xf] }
  0x23   :  { %1691 = vmatpush.bf16.msrb.mxu3 %v1680_v1  ;;  %v1248_v1 = vld [vmem:[%s2518_s0 + $0x54] sm:$0xf0]  ;;  %v1283_v38 = vor.u32 %v1612_v33, %v1282_v32 }
  0x27   :  { %1692 = vmatpush.bf16.msrb.mxu3 %v1679_v4  ;;  %v1251_v4 = vor.u32 %v1602_v0, %v1248_v1  ;;  %v1464_v0 = vld [vmem:[%s2518_s0 + $0x204] sm:$0xf0] }
  0x2a   :  { %1570 = vmatmul.msk.bf16.gmra.mxu2 %vm631_vm0, %v1243_v35  ;;  %v1284_v35 = vld [vmem:[%s2518_s0 + $0x9c] sm:$0xf0] }
  0x2b   :  { %1693 = vmatpush.bf16.msrb.mxu3 %v1678_v10  ;;  %v1486_v10 = vld [vmem:[%s2518_s0 + $0x228] sm:$0xf]  ;;  %v1287_v39 = vor.u32 %v1611_v34, %v1284_v35 }
  0x2c   :  { %v1487_v15 = vor.u32 %v1663_v11, %v1486_v10  ;;  %v1338_v10 = vld [vmem:[%s2518_s0 + $0xf8] sm:$0xf]  ;;  %v1625_v11 = vld [vmem:[%s2518_s0 + $0x100] sm:$0xf0] }
  0x2f   :  { %1694 = vmatpush.bf16.msrb.mxu3 %v1677_v12  ;;  %v1605_v12 = vld [vmem:[%s2518_s0 + $0x64] sm:$0xf] }
  0x31   :  { %720 = vmatmul.bf16.gmra.mxu0 %v1223_v42  ;;  %v1619_v42 = vld [vmem:[%s2518_s0 + $0xd0] sm:$0xf0] }
  0x32   :  { %815 = vmatmul.bf16.gmra.mxu3 %v1451_v43  ;;  %853 = vmatmul.bf16.gmra.mxu1 %v1227_v44  ;;  %v1315_v43 = vor.u32 %v1619_v42, %v1314_v41  ;;  %v1294_v44 = vld [vmem:[%s2518_s0 + $0xa8] sm:$0xf] }
  0x33   :  { %1695 = vmatpush.bf16.msrb.mxu3 %v1676_v14  ;;  %v1259_v14 = vor.u32 %v1606_v9, %v1258_v8  ;;  %v1295_v51 = vor.u32 %v1615_v45, %v1294_v44 }
  0x37   :  { %1696 = vmatpush.bf16.msrb.mxu3 %v1675_v16  ;;  %v1263_v16 = vor.u32 %v1605_v12, %v1260_v13 }
  0x3a   :  { %1571 = vmatmul.msk.bf16.gmra.mxu2 %vm631_vm0, %v1255_v47  ;;  %v1296_v47 = vld [vmem:[%s2518_s0 + $0xb4] sm:$0xf0] }
  0x3b   :  { %1697 = vmatpush.bf16.msrb.mxu3 %v1674_v21  ;;  %v1270_v21 = vld [vmem:[%s2518_s0 + $0x78] sm:$0xf]  ;;  %v1299_v52 = vor.u32 %v1614_v46, %v1296_v47 }
  0x3c   :  { %v1271_v26 = vor.u32 %v1609_v22, %v1270_v21  ;;  %v1318_v21 = vld [vmem:[%s2518_s0 + $0xd8] sm:$0xf]  ;;  %v1621_v22 = vld [vmem:[%s2518_s0 + $0xe0] sm:$0xf0] }
  0x3f   :  { %1698 = vmatpush.bf16.msrb.mxu3 %v1673_v23  ;;  %v395_v23 = vunpack.c.l.b16 %v1926_v20 }
  0x41   :  { %725 = vmatmul.bf16.gmra.mxu0 %v1235_v54  ;;  %v470_v27 = vpack.c.b16 %v395_v23, %v395_v23  ;;  %v1326_v54 = vld [vmem:[%s2518_s0 + $0xe0] sm:$0xf]  ;;  %v1620_v23 = vld [vmem:[%s2518_s0 + $0xdc] sm:$0xf] }
  0x42   :  { %820 = vmatmul.bf16.gmra.mxu3 %v1463_v55  ;;  %858 = vmatmul.bf16.gmra.mxu1 %v1239_v56  ;;  %v1622_v55 = vld [vmem:[%s2518_s0 + $0xe8] sm:$0xf0]  ;;  %v1323_v33 = vor.u32 %v1620_v23, %v1320_v25 }
  0x43   :  { %1699 = vmatpush.bf16.msra.mxu3 %v1732_v2  ;;  %v1247_v2 = vor.u32 %v1603_v61, %v1246_v60  ;;  %v1327_v57 = vor.u32 %v1622_v55, %v1326_v54  ;;  %v1618_v60 = vld [vmem:[%s2518_s0 + $0xc8] sm:$0xf0]  ;;  %v1617_v61 = vld [vmem:[%s2518_s0 + $0xc4] sm:$0xf]  ;;  %v1488_v55 = vld [vmem:[%s2518_s0 + $0x234] sm:$0xf0] }
  0x44   :  { %v1662_v54 = vld [vmem:[%s2518_s0 + $0x22c] sm:$0xf] }
  0x47   :  { %1700 = vmatpush.bf16.msra.mxu3 %v1744_v5  ;;  %v1278_v5 = vld [vmem:[%s2518_s0 + $0x80] sm:$0xf] }
  0x48   :  { %v1279_v7 = vor.u32 %v1610_v6, %v1278_v5  ;;  %v1467_v5 = vor.u32 %v1656_v63, %v1464_v0  ;;  %v1491_v63 = vor.u32 %v1662_v54, %v1488_v55 }
  0x4a   :  { %1572 = vmatmul.msk.bf16.gmra.mxu2 %vm631_vm0, %v1267_v59  ;;  %v1306_v59 = vld [vmem:[%s2518_s0 + $0xc0] sm:$0xf] }
  0x51   :  { %730 = vmatmul.bf16.gmra.mxu0 %v1247_v2  ;;  %v1307_v2 = vor.u32 %v1618_v60, %v1306_v59 }
  0x52   :  { %825 = vmatmul.bf16.gmra.mxu3 %v1475_v3  ;;  %863 = vmatmul.bf16.gmra.mxu1 %v1251_v4  ;;  %v1311_v4 = vor.u32 %v1617_v61, %v1308_v62 }
  0x5a   :  { %1573 = vmatmul.msk.bf16.gmra.mxu2 %vm631_vm0, %v1279_v7 }
  0x61   :  { %735 = vmatmul.bf16.gmra.mxu0 %v1259_v14 }
  0x62   :  { %830 = vmatmul.bf16.gmra.mxu3 %v1487_v15  ;;  %868 = vmatmul.bf16.gmra.mxu1 %v1263_v16  ;;  %v1339_v16 = vor.u32 %v1625_v11, %v1338_v10 }
  0x6a   :  { %1574 = vmatmul.msk.bf16.gmra.mxu2 %vm631_vm0, %v1291_v19 }
  0x71   :  { %740 = vmatmul.bf16.gmra.mxu0 %v1271_v26  ;;  %v1659_v26 = vld [vmem:[%s2518_s0 + $0x214] sm:$0xf] }
  0x72   :  { %835 = vmatmul.bf16.gmra.mxu3 %v470_v27  ;;  %873 = vmatmul.bf16.gmra.mxu1 %v1275_v28  ;;  %v1476_v27 = vld [vmem:[%s2518_s0 + $0x21c] sm:$0xf0] }
  0x73   :  { %v1479_v34 = vor.u32 %v1659_v26, %v1476_v27 }
  0x7a   :  { %1575 = vmatmul.msk.bf16.gmra.mxu2 %vm631_vm0, %v1303_v31  ;;  %v1319_v31 = vor.u32 %v1621_v22, %v1318_v21  ;;  %v1344_v21 = vld [vmem:[%s2518_s0 + $0x114] sm:$0xf0] }
  0x81   :  { %745 = vmatmul.bf16.gmra.mxu0 %v1283_v38 }
  0x82   :  { %878 = vmatmul.bf16.gmra.mxu1 %v1287_v39  ;;  %943 = vmatmul.bf16.vlgmr.msrb.gmra.mxu3 %v1443_v40  ;;  %v1350_v39 = vld [vmem:[%s2518_s0 + $0x110] sm:$0xf]  ;;  %v1628_v40 = vld [vmem:[%s2518_s0 + $0x118] sm:$0xf0] }
  0x83   :  { %v1351_v45 = vor.u32 %v1628_v40, %v1350_v39 }
  0x8a   :  { %1576 = vmatmul.msk.bf16.gmra.mxu2 %vm631_vm0, %v1315_v43 }
  0x8d   :  { %v982_v50 = vpop.f32.mrf.mxu2 }
  0x91   :  { %750 = vmatmul.bf16.gmra.mxu0 %v1295_v51  ;;  %v1623_v51 = vld [vmem:[%s2518_s0 + $0xf4] sm:$0xf] }
  0x92   :  { %883 = vmatmul.bf16.gmra.mxu1 %v1299_v52  ;;  %948 = vmatmul.bf16.gmra.mxu3 %v1455_v53  ;;  %v1332_v53 = vld [vmem:[%s2518_s0 + $0xfc] sm:$0xf0] }
  0x93   :  { %v1335_v62 = vor.u32 %v1623_v51, %v1332_v53 }
  0x95   :  { %v984_v56 = vpop.f32.mrf.mxu2 }
  0x9a   :  { %1577 = vmatmul.msk.bf16.gmra.mxu2 %vm631_vm0, %v1327_v57 }
  0x9d   :  { %v987_v1 = vpop.f32.mrf.mxu2 }
  0x9e   :  { %v716_v3 = vpop.f32.mrf.mxu0 }
  0x9f   :  { %v717_v6 = vadd.f32 %v2001_v58, %v716_v3  ;;  %v849_v7 = vpop.f32.mrf.mxu1 }
  0xa1   :  { %v850_v8 = vadd.f32 %v849_v7, %v717_v6  ;;  %755 = vmatmul.bf16.gmra.mxu0 %v1307_v2 }
  0xa2   :  { %888 = vmatmul.bf16.gmra.mxu1 %v1311_v4  ;;  %953 = vmatmul.bf16.gmra.mxu3 %v1467_v5  ;;  %v1362_v4 = vld [vmem:[%s2518_s0 + $0x128] sm:$0xf]  ;;  %v1631_v5 = vld [vmem:[%s2518_s0 + $0x130] sm:$0xf0] }
  0xa3   :  { %v983_v9 = vadd.f32 %v982_v50, %v850_v8  ;;  %v1624_v50 = vld [vmem:[%s2518_s0 + $0xf8] sm:$0xf0]  ;;  %v1363_v10 = vor.u32 %v1631_v5, %v1362_v4 }
  0xa4   :  { %v1331_v60 = vor.u32 %v1624_v50, %v1330_v49  ;;  %v1458_v49 = vld [vmem:[%s2518_s0 + $0x1e8] sm:$0xf]  ;;  %v1655_v50 = vld [vmem:[%s2518_s0 + $0x1f0] sm:$0xf0] }
  0xa5   :  { %v1106_v12 = vmax.f32 %v983_v9, 0.0  ;;  %v2029_v13 = vpop.f32.mrf.mxu3  ;;  %v989_v14 = vpop.f32.mrf.mxu2 }
  0xa6   :  { %v718_v15 = vpop.f32.mrf.mxu0 }
  0xa7   :  { %1155 = vst [vmem:[%s2520_s3] sm:$0xff] %v1106_v12  ;;  %v719_v17 = vadd.f32 %v2001_v58, %v718_v15  ;;  %v851_v18 = vpop.f32.mrf.mxu1  ;;  %v1342_v15 = vld [vmem:[%s2518_s0 + $0x108] sm:$0xf] }
  0xa9   :  { %v852_v19 = vadd.f32 %v851_v18, %v719_v17  ;;  %v396_v17 = vunpack.c.h.b16 %v1926_v20 }
  0xaa   :  { %1578 = vmatmul.msk.bf16.gmra.mxu2 %vm631_vm0, %v1339_v16  ;;  %v1627_v16 = vld [vmem:[%s2518_s0 + $0x110] sm:$0xf0] }
  0xab   :  { %v985_v24 = vadd.f32 %v984_v56, %v852_v19  ;;  %v1626_v19 = vld [vmem:[%s2518_s0 + $0x10c] sm:$0xf]  ;;  %v1343_v25 = vor.u32 %v1627_v16, %v1342_v15  ;;  %v1368_v16 = vld [vmem:[%s2518_s0 + $0x144] sm:$0xf0] }
  0xac   :  { %v1347_v27 = vor.u32 %v1626_v19, %v1344_v21 }
  0xad   :  { %v1107_v28 = vmax.f32 %v985_v24, 0.0  ;;  %v2054_v29 = vpop.f32.mrf.mxu3  ;;  %v992_v30 = vpop.f32.mrf.mxu2 }
  0xae   :  { %v721_v32 = vpop.f32.mrf.mxu0 }
  0xaf   :  { %1156 = vst [vmem:[%s2520_s3 + $0x8] sm:$0xff] %v1107_v28  ;;  %v722_v35 = vadd.f32 %v2001_v58, %v721_v32  ;;  %v854_v36 = vpop.f32.mrf.mxu1  ;;  %v471_v28 = vpack.c.b16 %v396_v17, %v396_v17  ;;  %v1470_v17 = vld [vmem:[%s2518_s0 + $0x200] sm:$0xf] }
  0xb1   :  { %v855_v37 = vadd.f32 %v854_v36, %v722_v35  ;;  %760 = vmatmul.bf16.gmra.mxu0 %v1319_v31 }
  0xb2   :  { %893 = vmatmul.bf16.gmra.mxu1 %v1323_v33  ;;  %958 = vmatmul.bf16.gmra.mxu3 %v1479_v34  ;;  %v1374_v33 = vld [vmem:[%s2518_s0 + $0x140] sm:$0xf]  ;;  %v1634_v34 = vld [vmem:[%s2518_s0 + $0x148] sm:$0xf0] }
  0xb3   :  { %v988_v38 = vadd.f32 %v987_v1, %v855_v37  ;;  %v1375_v39 = vor.u32 %v1634_v34, %v1374_v33  ;;  %v1640_v33 = vld [vmem:[%s2518_s0 + $0x178] sm:$0xf0] }
  0xb5   :  { %v1108_v41 = vmax.f32 %v988_v38, 0.0  ;;  %v2066_v42 = vpop.f32.mrf.mxu3  ;;  %v994_v43 = vpop.f32.mrf.mxu2 }
  0xb6   :  { %v723_v44 = vpop.f32.mrf.mxu0 }
  0xb7   :  { %1157 = vst [vmem:[%s2520_s3 + $0x10] sm:$0xff] %v1108_v41  ;;  %v724_v46 = vadd.f32 %v2001_v58, %v723_v44  ;;  %v856_v47 = vpop.f32.mrf.mxu1  ;;  %v1354_v44 = vld [vmem:[%s2518_s0 + $0x120] sm:$0xf] }
  0xb9   :  { %v857_v48 = vadd.f32 %v856_v47, %v724_v46  ;;  %v1629_v46 = vld [vmem:[%s2518_s0 + $0x124] sm:$0xf] }
  0xba   :  { %1579 = vmatmul.msk.bf16.gmra.mxu2 %vm631_vm0, %v1351_v45  ;;  %v1630_v45 = vld [vmem:[%s2518_s0 + $0x128] sm:$0xf0] }
  0xbb   :  { %v990_v52 = vadd.f32 %v989_v14, %v857_v48  ;;  %v1356_v48 = vld [vmem:[%s2518_s0 + $0x12c] sm:$0xf0]  ;;  %v1355_v54 = vor.u32 %v1630_v45, %v1354_v44  ;;  %v1636_v45 = vld [vmem:[%s2518_s0 + $0x158] sm:$0xf0] }
  0xbc   :  { %v1378_v44 = vld [vmem:[%s2518_s0 + $0x150] sm:$0xf] }
  0xbd   :  { %v1109_v56 = vmax.f32 %v990_v52, 0.0  ;;  %v2091_v57 = vpop.f32.mrf.mxu3  ;;  %v997_v59 = vpop.f32.mrf.mxu2 }
  0xbe   :  { %v726_v61 = vpop.f32.mrf.mxu0 }
  0xbf   :  { %1158 = vst [vmem:[%s2520_s3 + $0x18] sm:$0xff] %v1109_v56  ;;  %v727_v0 = vadd.f32 %v2001_v58, %v726_v61  ;;  %v859_v1 = vpop.f32.mrf.mxu1  ;;  %v1359_v56 = vor.u32 %v1629_v46, %v1356_v48  ;;  %v1635_v46 = vld [vmem:[%s2518_s0 + $0x154] sm:$0xf]  ;;  %v1380_v48 = vld [vmem:[%s2518_s0 + $0x15c] sm:$0xf0] }
  0xc1   :  { %v860_v2 = vadd.f32 %v859_v1, %v727_v0  ;;  %765 = vmatmul.bf16.gmra.mxu0 %v1331_v60  ;;  %v1386_v0 = vld [vmem:[%s2518_s0 + $0x158] sm:$0xf]  ;;  %v1637_v1 = vld [vmem:[%s2518_s0 + $0x160] sm:$0xf0] }
  0xc2   :  { %898 = vmatmul.bf16.gmra.mxu1 %v1335_v62  ;;  %963 = vmatmul.bf16.gmra.mxu3 %v1491_v63 }
  0xc3   :  { %v993_v3 = vadd.f32 %v992_v30, %v860_v2 }
  0xc5   :  { %v1110_v6 = vmax.f32 %v993_v3, 0.0  ;;  %v2103_v7 = vpop.f32.mrf.mxu3  ;;  %v999_v8 = vpop.f32.mrf.mxu2 }
  0xc6   :  { %v728_v9 = vpop.f32.mrf.mxu0 }
  0xc7   :  { %1159 = vst [vmem:[%s2520_s3 + $0x20] sm:$0xff] %v1110_v6  ;;  %v729_v11 = vadd.f32 %v2001_v58, %v728_v9  ;;  %v861_v12 = vpop.f32.mrf.mxu1  ;;  %v1387_v6 = vor.u32 %v1637_v1, %v1386_v0  ;;  %v1410_v1 = vld [vmem:[%s2518_s0 + $0x188] sm:$0xf] }
  0xc9   :  { %v862_v14 = vadd.f32 %v861_v12, %v729_v11  ;;  %v1366_v11 = vld [vmem:[%s2518_s0 + $0x138] sm:$0xf]  ;;  %v1633_v12 = vld [vmem:[%s2518_s0 + $0x140] sm:$0xf0] }
  0xca   :  { %1580 = vmatmul.msk.bf16.gmra.mxu2 %vm631_vm0, %v1363_v10 }
  0xcb   :  { %v995_v18 = vadd.f32 %v994_v43, %v862_v14  ;;  %v1632_v14 = vld [vmem:[%s2518_s0 + $0x13c] sm:$0xf] }
  0xcd   :  { %v1111_v22 = vmax.f32 %v995_v18, 0.0  ;;  %v2123_v23 = vpop.f32.mrf.mxu3  ;;  %v1002_v24 = vpop.f32.mrf.mxu2  ;;  %v1658_v18 = vld [vmem:[%s2518_s0 + $0x208] sm:$0xf0] }
  0xce   :  { %v731_v26 = vpop.f32.mrf.mxu0 }
  0xcf   :  { %1160 = vst [vmem:[%s2520_s3 + $0x28] sm:$0xff] %v1111_v22  ;;  %v732_v20 = vadd.f32 %v2001_v58, %v731_v26  ;;  %v864_v30 = vpop.f32.mrf.mxu1  ;;  %v1371_v26 = vor.u32 %v1632_v14, %v1368_v16  ;;  %v1639_v16 = vld [vmem:[%s2518_s0 + $0x170] sm:$0xf0] }
  0xd1   :  { %v865_v31 = vadd.f32 %v864_v30, %v732_v20  ;;  %770 = vmatmul.bf16.gmra.mxu0 %v1343_v25 }
  0xd2   :  { %903 = vmatmul.bf16.gmra.mxu1 %v1347_v27  ;;  %968 = vmatmul.bf16.gmra.mxu3 %v471_v28  ;;  %v1471_v27 = vor.u32 %v1658_v18, %v1470_v17  ;;  %v1638_v17 = vld [vmem:[%s2518_s0 + $0x16c] sm:$0xf] }
  0xd3   :  { %v998_v32 = vadd.f32 %v997_v59, %v865_v31  ;;  %v1459_v59 = vor.u32 %v1655_v50, %v1458_v49  ;;  %v1482_v49 = vld [vmem:[%s2518_s0 + $0x218] sm:$0xf]  ;;  %v1661_v50 = vld [vmem:[%s2518_s0 + $0x220] sm:$0xf0] }
  0xd5   :  { %v1112_v35 = vmax.f32 %v998_v32, 0.0  ;;  %v2135_v36 = vpop.f32.mrf.mxu3  ;;  %v1004_v37 = vpop.f32.mrf.mxu2  ;;  %v1398_v32 = vld [vmem:[%s2518_s0 + $0x170] sm:$0xf] }
  0xd6   :  { %v733_v38 = vpop.f32.mrf.mxu0 }
  0xd7   :  { %1161 = vst [vmem:[%s2520_s3 + $0x30] sm:$0xff] %v1112_v35  ;;  %v734_v40 = vadd.f32 %v2001_v58, %v733_v38  ;;  %v866_v41 = vpop.f32.mrf.mxu1 }
  0xd9   :  { %v867_v43 = vadd.f32 %v866_v41, %v734_v40 }
  0xda   :  { %1581 = vmatmul.msk.bf16.gmra.mxu2 %vm631_vm0, %v1375_v39  ;;  %v1399_v39 = vor.u32 %v1640_v33, %v1398_v32 }
  0xdb   :  { %v1000_v47 = vadd.f32 %v999_v8, %v867_v43 }
  0xdd   :  { %v1113_v51 = vmax.f32 %v1000_v47, 0.0  ;;  %v2160_v52 = vpop.f32.mrf.mxu3  ;;  %v1007_v53 = vpop.f32.mrf.mxu2 }
  0xde   :  { %v736_v55 = vpop.f32.mrf.mxu0 }
  0xdf   :  { %1162 = vst [vmem:[%s2520_s3 + $0x38] sm:$0xff] %v1113_v51  ;;  %v737_v60 = vadd.f32 %v2001_v58, %v736_v55  ;;  %v869_v61 = vpop.f32.mrf.mxu1  ;;  %v1379_v55 = vor.u32 %v1636_v45, %v1378_v44 }
  0xe1   :  { %v870_v62 = vadd.f32 %v869_v61, %v737_v60  ;;  %775 = vmatmul.bf16.gmra.mxu0 %v1355_v54  ;;  %v1483_v60 = vor.u32 %v1661_v50, %v1482_v49 }
  0xe2   :  { %908 = vmatmul.bf16.gmra.mxu1 %v1359_v56  ;;  %1588 = vmatmul.msk.bf16.vlgmr.msra.gmra.mxu3 %vm631_vm0, %v1459_v59  ;;  %v1383_v59 = vor.u32 %v1635_v46, %v1380_v48 }
  0xe3   :  { %v1003_v63 = vadd.f32 %v1002_v24, %v870_v62  ;;  %v1367_v24 = vor.u32 %v1633_v12, %v1366_v11 }
  0xe5   :  { %v1114_v2 = vmax.f32 %v1003_v63, 0.0  ;;  %v2173_v3 = vpop.f32.mrf.mxu3  ;;  %v1009_v4 = vpop.f32.mrf.mxu2 }
  0xe6   :  { %v738_v5 = vpop.f32.mrf.mxu0 }
  0xe7   :  { %1163 = vst [vmem:[%s2520_s3 + $0x40] sm:$0xff] %v1114_v2  ;;  %v739_v8 = vadd.f32 %v2001_v58, %v738_v5  ;;  %v871_v9 = vpop.f32.mrf.mxu1  ;;  %v1643_v2 = vld [vmem:[%s2518_s0 + $0x190] sm:$0xf0] }
  0xe8   :  { %v1411_v11 = vor.u32 %v1643_v2, %v1410_v1 }
  0xe9   :  { %v872_v10 = vadd.f32 %v871_v9, %v739_v8 }
  0xea   :  { %1582 = vmatmul.msk.bf16.gmra.mxu2 %vm631_vm0, %v1387_v6 }
  0xeb   :  { %v1005_v15 = vadd.f32 %v1004_v37, %v872_v10 }
  0xed   :  { %v1115_v19 = vmax.f32 %v1005_v15, 0.0  ;;  %v2198_v21 = vpop.f32.mrf.mxu3  ;;  %v1012_v22 = vpop.f32.mrf.mxu2 }
  0xee   :  { %v741_v25 = vpop.f32.mrf.mxu0 }
  0xef   :  { %1164 = vst [vmem:[%s2520_s3 + $0x48] sm:$0xff] %v1115_v19  ;;  %v742_v28 = vadd.f32 %v2001_v58, %v741_v25  ;;  %v874_v20 = vpop.f32.mrf.mxu1  ;;  %v1392_v19 = vld [vmem:[%s2518_s0 + $0x174] sm:$0xf0]  ;;  %v814_v25 = vadd.f32 %v2001_v58, %v2054_v29 }
  0xf0   :  { %v1395_v32 = vor.u32 %v1638_v17, %v1392_v19 }
  0xf1   :  { %v875_v30 = vadd.f32 %v874_v20, %v742_v28  ;;  %780 = vmatmul.bf16.gmra.mxu0 %v1367_v24  ;;  %v1664_v24 = vld [vmem:[%s2518_s0 + $0x238] sm:$0xf0] }
  0xf2   :  { %913 = vmatmul.bf16.gmra.mxu1 %v1371_v26  ;;  %1589 = vmatmul.msk.bf16.gmra.mxu3 %vm631_vm0, %v1471_v27 }
  0xf3   :  { %v1008_v31 = vadd.f32 %v1007_v53, %v875_v30 }
  0xf5   :  { %v1116_v34 = vmax.f32 %v1008_v31, 0.0  ;;  %v2211_v35 = vpop.f32.mrf.mxu3  ;;  %v1014_v37 = vpop.f32.mrf.mxu2 }
  0xf6   :  { %v743_v38 = vpop.f32.mrf.mxu0 }
  0xf7   :  { %1165 = vst [vmem:[%s2520_s3 + $0x50] sm:$0xff] %v1116_v34  ;;  %v744_v40 = vadd.f32 %v2001_v58, %v743_v38  ;;  %v876_v41 = vpop.f32.mrf.mxu1 }
  0xf9   :  { %v877_v43 = vadd.f32 %v876_v41, %v744_v40  ;;  %v1646_v40 = vld [vmem:[%s2518_s0 + $0x1a8] sm:$0xf0]  ;;  %v817_v41 = vadd.f32 %v2001_v58, %v2066_v42  ;;  %v1402_v42 = vld [vmem:[%s2518_s0 + $0x180] sm:$0xf] }
  0xfa   :  { %1583 = vmatmul.msk.bf16.gmra.mxu2 %vm631_vm0, %v1399_v39  ;;  %v1422_v39 = vld [vmem:[%s2518_s0 + $0x1a0] sm:$0xf] }
  0xfb   :  { %v1010_v47 = vadd.f32 %v1009_v4, %v877_v43  ;;  %v812_v4 = vadd.f32 %v2001_v58, %v2029_v13  ;;  %v1390_v13 = vld [vmem:[%s2518_s0 + $0x168] sm:$0xf]  ;;  %v1423_v48 = vor.u32 %v1646_v40, %v1422_v39 }
  0xfc   :  { %v1391_v20 = vor.u32 %v1639_v16, %v1390_v13 }
  0xfd   :  { %v1117_v51 = vmax.f32 %v1010_v47, 0.0  ;;  %v838_v53 = vpop.f32.mrf.mxu3  ;;  %v1017_v54 = vpop.f32.mrf.mxu2 }
  0xfe   :  { %v746_v56 = vpop.f32.mrf.mxu0 }
  0xff   :  { %1166 = vst [vmem:[%s2520_s3 + $0x58] sm:$0xff] %v1117_v51  ;;  %v747_v61 = vadd.f32 %v2001_v58, %v746_v56  ;;  %v879_v62 = vpop.f32.mrf.mxu1  ;;  %v112_v51 = vld [vmem:[%s2518_s0 + $0x248] sm:$0xf] }
 0x101   :  { %v880_v63 = vadd.f32 %v879_v62, %v747_v61  ;;  %785 = vmatmul.bf16.gmra.mxu0 %v1379_v55  ;;  %v397_v55 = vunpack.c.l.b16 %v112_v51  ;;  %v819_v61 = vadd.f32 %v2001_v58, %v2091_v57 }
 0x102   :  { %918 = vmatmul.bf16.gmra.mxu1 %v1383_v59  ;;  %1590 = vmatmul.msk.bf16.gmra.mxu3 %vm631_vm0, %v1483_v60  ;;  %v1641_v59 = vld [vmem:[%s2518_s0 + $0x184] sm:$0xf]  ;;  %v1404_v60 = vld [vmem:[%s2518_s0 + $0x18c] sm:$0xf0] }
 0x103   :  { %v1013_v0 = vadd.f32 %v1012_v22, %v880_v63  ;;  %v1494_v22 = vld [vmem:[%s2518_s0 + $0x230] sm:$0xf] }
 0x104   :  { %v1495_v33 = vor.u32 %v1664_v24, %v1494_v22 }
 0x105   :  { %v1118_v5 = vmax.f32 %v1013_v0, 0.0  ;;  %v944_v6 = vpop.f32.mrf.mxu3  ;;  %v1019_v8 = vpop.f32.mrf.mxu2 }
 0x106   :  { %v2249_v9 = vadd.f32 %v944_v6, %v812_v4  ;;  %v748_v10 = vpop.f32.mrf.mxu0  ;;  %v472_v6 = vpack.c.b16 %v397_v55, %v397_v55 }
 0x107   :  { %1167 = vst [vmem:[%s2520_s3 + $0x60] sm:$0xff] %v1118_v5  ;;  %v749_v12 = vadd.f32 %v2001_v58, %v748_v10  ;;  %v881_v14 = vpop.f32.mrf.mxu1  ;;  %v1407_v5 = vor.u32 %v1641_v59, %v1404_v60  ;;  %v1648_v60 = vld [vmem:[%s2518_s0 + $0x1b8] sm:$0xf0] }
 0x109   :  { %v882_v15 = vadd.f32 %v881_v14, %v749_v12  ;;  %v1434_v12 = vld [vmem:[%s2518_s0 + $0x1b8] sm:$0xf]  ;;  %v1649_v14 = vld [vmem:[%s2518_s0 + $0x1c0] sm:$0xf0] }
 0x10a   :  { %1584 = vmatmul.msk.bf16.gmra.mxu2 %vm631_vm0, %v1411_v11  ;;  %v1435_v22 = vor.u32 %v1649_v14, %v1434_v12 }
 0x10b   :  { %v1015_v18 = vadd.f32 %v1014_v37, %v882_v15  ;;  %v822_v15 = vadd.f32 %v2001_v58, %v2103_v7  ;;  %v1414_v7 = vld [vmem:[%s2518_s0 + $0x198] sm:$0xf] }
 0x10d   :  { %v1119_v26 = vmax.f32 %v1015_v18, 0.0  ;;  %v946_v27 = vpop.f32.mrf.mxu3  ;;  %v1022_v28 = vpop.f32.mrf.mxu2 }
 0x10e   :  { %v2276_v30 = vadd.f32 %v946_v27, %v814_v25  ;;  %v751_v31 = vpop.f32.mrf.mxu0  ;;  %v1645_v27 = vld [vmem:[%s2518_s0 + $0x1a0] sm:$0xf0] }
 0x10f   :  { %1168 = vst [vmem:[%s2520_s3 + $0x68] sm:$0xff] %v1119_v26  ;;  %v752_v34 = vadd.f32 %v2001_v58, %v751_v31  ;;  %v884_v37 = vpop.f32.mrf.mxu1  ;;  %v1416_v31 = vld [vmem:[%s2518_s0 + $0x1a4] sm:$0xf0] }
 0x111   :  { %v885_v38 = vadd.f32 %v884_v37, %v752_v34  ;;  %790 = vmatmul.bf16.gmra.mxu0 %v1391_v20  ;;  %v1644_v20 = vld [vmem:[%s2518_s0 + $0x19c] sm:$0xf] }
 0x112   :  { %923 = vmatmul.bf16.gmra.mxu1 %v1395_v32  ;;  %1591 = vmatmul.msk.bf16.gmra.mxu3 %vm631_vm0, %v1495_v33  ;;  %v824_v32 = vadd.f32 %v2001_v58, %v2123_v23  ;;  %v1419_v40 = vor.u32 %v1644_v20, %v1416_v31  ;;  %v1446_v23 = vld [vmem:[%s2518_s0 + $0x1d0] sm:$0xf] }
 0x113   :  { %v1018_v29 = vadd.f32 %v1017_v54, %v885_v38  ;;  %v1642_v54 = vld [vmem:[%s2518_s0 + $0x188] sm:$0xf0]  ;;  %v1415_v38 = vor.u32 %v1645_v27, %v1414_v7  ;;  %v834_v27 = vadd.f32 %v2001_v58, %v2198_v21 }
 0x114   :  { %v1403_v1 = vor.u32 %v1642_v54, %v1402_v42 }
 0x115   :  { %v1120_v43 = vmax.f32 %v1018_v29, 0.0  ;;  %v949_v44 = vpop.f32.mrf.mxu3  ;;  %v1024_v45 = vpop.f32.mrf.mxu2 }
 0x116   :  { %v2291_v46 = vadd.f32 %v949_v44, %v817_v41  ;;  %v753_v47 = vpop.f32.mrf.mxu0 }
 0x117   :  { %1169 = vst [vmem:[%s2520_s3 + $0x70] sm:$0xff] %v1120_v43  ;;  %v754_v49 = vadd.f32 %v2001_v58, %v753_v47  ;;  %v886_v50 = vpop.f32.mrf.mxu1  ;;  %v1652_v47 = vld [vmem:[%s2518_s0 + $0x1d8] sm:$0xf0] }
 0x118   :  { %v1447_v54 = vor.u32 %v1652_v47, %v1446_v23 }
 0x119   :  { %v887_v53 = vadd.f32 %v886_v50, %v754_v49 }
 0x11a   :  { %1585 = vmatmul.msk.bf16.gmra.mxu2 %vm631_vm0, %v1423_v48  ;;  %v827_v48 = vadd.f32 %v2001_v58, %v2135_v36  ;;  %v1426_v36 = vld [vmem:[%s2518_s0 + $0x1b0] sm:$0xf] }
 0x11b   :  { %v1020_v56 = vadd.f32 %v1019_v8, %v887_v53 }
 0x11d   :  { %v1121_v62 = vmax.f32 %v1020_v56, 0.0  ;;  %v951_v63 = vpop.f32.mrf.mxu3  ;;  %v1027_v0 = vpop.f32.mrf.mxu2 }
 0x11e   :  { %v2315_v2 = vadd.f32 %v951_v63, %v819_v61  ;;  %v756_v4 = vpop.f32.mrf.mxu0  ;;  %v1428_v63 = vld [vmem:[%s2518_s0 + $0x1bc] sm:$0xf0] }
 0x11f   :  { %1170 = vst [vmem:[%s2520_s3 + $0x78] sm:$0xff] %v1121_v62  ;;  %v757_v8 = vadd.f32 %v2001_v58, %v756_v4  ;;  %v889_v10 = vpop.f32.mrf.mxu1  ;;  %v1647_v62 = vld [vmem:[%s2518_s0 + $0x1b4] sm:$0xf] }
 0x121   :  { %v890_v11 = vadd.f32 %v889_v10, %v757_v8  ;;  %795 = vmatmul.bf16.gmra.mxu0 %v1403_v1 }
 0x122   :  { %928 = vmatmul.bf16.gmra.mxu1 %v1407_v5  ;;  %1592 = vmatmul.msk.bf16.gmra.mxu3 %vm631_vm0, %v472_v6  ;;  %v1427_v6 = vor.u32 %v1648_v60, %v1426_v36 }
 0x123   :  { %v1023_v57 = vadd.f32 %v1022_v28, %v890_v11  ;;  %v1431_v11 = vor.u32 %v1647_v62, %v1428_v63 }
 0x125   :  { %v1122_v13 = vmax.f32 %v1023_v57, 0.0  ;;  %v954_v16 = vpop.f32.mrf.mxu3  ;;  %v1029_v17 = vpop.f32.mrf.mxu2 }
 0x126   :  { %v2330_v18 = vadd.f32 %v954_v16, %v822_v15  ;;  %v758_v19 = vpop.f32.mrf.mxu0 }
 0x127   :  { %1171 = vst [vmem:[%s2520_s3 + $0x80] sm:$0xff] %v1122_v13  ;;  %v759_v24 = vadd.f32 %v2001_v58, %v758_v19  ;;  %v891_v25 = vpop.f32.mrf.mxu1 }
 0x129   :  { %v892_v26 = vadd.f32 %v891_v25, %v759_v24 }
 0x12a   :  { %1586 = vmatmul.msk.bf16.gmra.mxu2 %vm631_vm0, %v1435_v22 }
 0x12b   :  { %v1025_v28 = vadd.f32 %v1024_v45, %v892_v26 }
 0x12d   :  { %v1123_v33 = vmax.f32 %v1025_v28, 0.0  ;;  %v956_v34 = vpop.f32.mrf.mxu3  ;;  %v1032_v37 = vpop.f32.mrf.mxu2 }
 0x12e   :  { %v2351_v29 = vadd.f32 %v956_v34, %v824_v32  ;;  %v761_v39 = vpop.f32.mrf.mxu0 }
 0x12f   :  { %1172 = vst [vmem:[%s2520_s3 + $0x88] sm:$0xff] %v1123_v33  ;;  %v762_v41 = vadd.f32 %v2001_v58, %v761_v39  ;;  %v894_v43 = vpop.f32.mrf.mxu1  ;;  %v837_v39 = vadd.f32 %v2001_v58, %v2211_v35 }
 0x131   :  { %v895_v44 = vadd.f32 %v894_v43, %v762_v41  ;;  %800 = vmatmul.bf16.gmra.mxu0 %v1415_v38 }
 0x132   :  { %933 = vmatmul.bf16.gmra.mxu1 %v1419_v40 }
 0x133   :  { %v1028_v45 = vadd.f32 %v1027_v0, %v895_v44  ;;  %v829_v0 = vadd.f32 %v2001_v58, %v2160_v52  ;;  %v832_v52 = vadd.f32 %v2001_v58, %v2173_v3 }
 0x135   :  { %v1124_v49 = vmax.f32 %v1028_v45, 0.0  ;;  %v959_v50 = vpop.f32.mrf.mxu3  ;;  %v1034_v51 = vpop.f32.mrf.mxu2 }
 0x136   :  { %v2365_v53 = vadd.f32 %v959_v50, %v827_v48  ;;  %v763_v42 = vpop.f32.mrf.mxu0 }
 0x137   :  { %1173 = vst [vmem:[%s2520_s3 + $0x90] sm:$0xff] %v1124_v49  ;;  %v764_v55 = vadd.f32 %v2001_v58, %v763_v42  ;;  %v896_v56 = vpop.f32.mrf.mxu1 }
 0x139   :  { %v897_v59 = vadd.f32 %v896_v56, %v764_v55 }
 0x13a   :  { %1587 = vmatmul.msk.bf16.gmra.mxu2 %vm631_vm0, %v1447_v54 }
 0x13b   :  { %v1030_v61 = vadd.f32 %v1029_v17, %v897_v59 }
 0x13d   :  { %v1125_v1 = vmax.f32 %v1030_v61, 0.0  ;;  %v961_v4 = vpop.f32.mrf.mxu3  ;;  %v1037_v5 = vpop.f32.mrf.mxu2 }
 0x13e   :  { %v2386_v8 = vadd.f32 %v961_v4, %v829_v0  ;;  %v766_v10 = vpop.f32.mrf.mxu0 }
 0x13f   :  { %1174 = vst [vmem:[%s2520_s3 + $0x98] sm:$0xff] %v1125_v1  ;;  %v767_v57 = vadd.f32 %v2001_v58, %v766_v10  ;;  %v899_v12 = vpop.f32.mrf.mxu1 }
 0x141   :  { %v900_v14 = vadd.f32 %v899_v12, %v767_v57  ;;  %805 = vmatmul.bf16.gmra.mxu0 %v1427_v6 }
 0x142   :  { %938 = vmatmul.bf16.gmra.mxu1 %v1431_v11 }
 0x143   :  { %v1033_v15 = vadd.f32 %v1032_v37, %v900_v14 }
 0x145   :  { %v1126_v13 = vmax.f32 %v1033_v15, 0.0  ;;  %v964_v16 = vpop.f32.mrf.mxu3  ;;  %v1039_v17 = vpop.f32.mrf.mxu2 }
 0x146   :  { %v2394_v19 = vadd.f32 %v964_v16, %v832_v52  ;;  %v768_v22 = vpop.f32.mrf.mxu0 }
 0x147   :  { %1175 = vst [vmem:[%s2520_s3 + $0xa0] sm:$0xff] %v1126_v13  ;;  %v769_v24 = vadd.f32 %v2001_v58, %v768_v22  ;;  %v901_v25 = vpop.f32.mrf.mxu1 }
 0x149   :  { %v902_v26 = vadd.f32 %v901_v25, %v769_v24 }
 0x14b   :  { %v1035_v7 = vadd.f32 %v1034_v51, %v902_v26 }
 0x14d   :  { %v1127_v28 = vmax.f32 %v1035_v7, 0.0  ;;  %v966_v3 = vpop.f32.mrf.mxu3  ;;  %v1042_v20 = vpop.f32.mrf.mxu2 }
 0x14e   :  { %v2402_v31 = vadd.f32 %v966_v3, %v834_v27  ;;  %v771_v32 = vpop.f32.mrf.mxu0 }
 0x14f   :  { %1176 = vst [vmem:[%s2520_s3 + $0xa8] sm:$0xff] %v1127_v28  ;;  %v772_v33 = vadd.f32 %v2001_v58, %v771_v32  ;;  %v904_v34 = vpop.f32.mrf.mxu1 }
 0x151   :  { %v905_v37 = vadd.f32 %v904_v34, %v772_v33 }
 0x153   :  { %v1038_v38 = vadd.f32 %v1037_v5, %v905_v37 }
 0x155   :  { %v1128_v40 = vmax.f32 %v1038_v38, 0.0  ;;  %v969_v21 = vpop.f32.mrf.mxu3  ;;  %v1044_v41 = vpop.f32.mrf.mxu2 }
 0x156   :  { %v2410_v43 = vadd.f32 %v969_v21, %v837_v39  ;;  %v773_v44 = vpop.f32.mrf.mxu0 }
 0x157   :  { %1177 = vst [vmem:[%s2520_s3 + $0xb0] sm:$0xff] %v1128_v40  ;;  %v774_v45 = vadd.f32 %v2001_v58, %v773_v44  ;;  %v906_v23 = vpop.f32.mrf.mxu1 }
 0x159   :  { %v907_v47 = vadd.f32 %v906_v23, %v774_v45 }
 0x15b   :  { %v1040_v48 = vadd.f32 %v1039_v17, %v907_v47 }
 0x15d   :  { %v1129_v49 = vmax.f32 %v1040_v48, 0.0  ;;  %v971_v50 = vpop.f32.mrf.mxu3  ;;  %v1047_v51 = vpop.f32.mrf.mxu2 }
 0x15e   :  { %v776_v42 = vpop.f32.mrf.mxu0 }
 0x15f   :  { %1178 = vst [vmem:[%s2520_s3 + $0xb8] sm:$0xff] %v1129_v49  ;;  %v777_v35 = vadd.f32 %v2001_v58, %v776_v42  ;;  %v909_v54 = vpop.f32.mrf.mxu1 }
 0x161   :  { %v910_v55 = vadd.f32 %v909_v54, %v777_v35 }
 0x163   :  { %v1043_v56 = vadd.f32 %v1042_v20, %v910_v55 }
 0x165   :  { %v1130_v59 = vmax.f32 %v1043_v56, 0.0  ;;  %v1049_v36 = vpop.f32.mrf.mxu2  ;;  %v1082_v60 = vpop.f32.mrf.mxu3 }
 0x166   :  { %v1083_v61 = vadd.f32 %v1082_v60, %v2291_v46  ;;  %v778_v62 = vpop.f32.mrf.mxu0 }
 0x167   :  { %1179 = vst [vmem:[%s2520_s3 + $0xc0] sm:$0xff] %v1130_v59  ;;  %v779_v63 = vadd.f32 %v2001_v58, %v778_v62  ;;  %v911_v0 = vpop.f32.mrf.mxu1 }
 0x168   :  { %v1146_v1 = vmax.f32 %v1083_v61, 0.0 }
 0x169   :  { %v912_v4 = vadd.f32 %v911_v0, %v779_v63 }
 0x16a   :  { %1195 = vst [vmem:[%s2520_s3 + $0x140] sm:$0xff] %v1146_v1 }
 0x16b   :  { %v1045_v5 = vadd.f32 %v1044_v41, %v912_v4 }
 0x16d   :  { %v1131_v6 = vmax.f32 %v1045_v5, 0.0  ;;  %v1052_v10 = vpop.f32.mrf.mxu2  ;;  %v1084_v11 = vpop.f32.mrf.mxu3 }
 0x16e   :  { %v1085_v46 = vadd.f32 %v1084_v11, %v2315_v2  ;;  %v781_v57 = vpop.f32.mrf.mxu0 }
 0x16f   :  { %1180 = vst [vmem:[%s2520_s3 + $0xc8] sm:$0xff] %v1131_v6  ;;  %v782_v12 = vadd.f32 %v2001_v58, %v781_v57  ;;  %v914_v14 = vpop.f32.mrf.mxu1 }
 0x170   :  { %v1147_v15 = vmax.f32 %v1085_v46, 0.0 }
 0x171   :  { %v915_v52 = vadd.f32 %v914_v14, %v782_v12 }
 0x172   :  { %1196 = vst [vmem:[%s2520_s3 + $0x148] sm:$0xff] %v1147_v15 }
 0x173   :  { %v1048_v13 = vadd.f32 %v1047_v51, %v915_v52 }
 0x175   :  { %v1132_v16 = vmax.f32 %v1048_v13, 0.0  ;;  %v1054_v17 = vpop.f32.mrf.mxu2  ;;  %v1087_v22 = vpop.f32.mrf.mxu3 }
 0x176   :  { %v1088_v2 = vadd.f32 %v1087_v22, %v2330_v18  ;;  %v783_v24 = vpop.f32.mrf.mxu0 }
 0x177   :  { %1181 = vst [vmem:[%s2520_s3 + $0xd0] sm:$0xff] %v1132_v16  ;;  %v784_v25 = vadd.f32 %v2001_v58, %v783_v24  ;;  %v916_v26 = vpop.f32.mrf.mxu1 }
 0x178   :  { %v1148_v7 = vmax.f32 %v1088_v2, 0.0 }
 0x179   :  { %v917_v27 = vadd.f32 %v916_v26, %v784_v25 }
 0x17a   :  { %1197 = vst [vmem:[%s2520_s3 + $0x150] sm:$0xff] %v1148_v7 }
 0x17b   :  { %v1050_v28 = vadd.f32 %v1049_v36, %v917_v27 }
 0x17d   :  { %v1133_v3 = vmax.f32 %v1050_v28, 0.0  ;;  %v1057_v20 = vpop.f32.mrf.mxu2  ;;  %v1089_v32 = vpop.f32.mrf.mxu3 }
 0x17e   :  { %v1090_v18 = vadd.f32 %v1089_v32, %v2351_v29  ;;  %v786_v33 = vpop.f32.mrf.mxu0 }
 0x17f   :  { %1182 = vst [vmem:[%s2520_s3 + $0xd8] sm:$0xff] %v1133_v3  ;;  %v787_v34 = vadd.f32 %v2001_v58, %v786_v33  ;;  %v919_v37 = vpop.f32.mrf.mxu1 }
 0x180   :  { %v1149_v38 = vmax.f32 %v1090_v18, 0.0 }
 0x181   :  { %v920_v39 = vadd.f32 %v919_v37, %v787_v34 }
 0x182   :  { %1198 = vst [vmem:[%s2520_s3 + $0x158] sm:$0xff] %v1149_v38 }
 0x183   :  { %v1053_v40 = vadd.f32 %v1052_v10, %v920_v39 }
 0x185   :  { %v1134_v21 = vmax.f32 %v1053_v40, 0.0  ;;  %v1059_v41 = vpop.f32.mrf.mxu2  ;;  %v1092_v44 = vpop.f32.mrf.mxu3 }
 0x186   :  { %v1093_v29 = vadd.f32 %v1092_v44, %v2365_v53  ;;  %v788_v45 = vpop.f32.mrf.mxu0 }
 0x187   :  { %1183 = vst [vmem:[%s2520_s3 + $0xe0] sm:$0xff] %v1134_v21  ;;  %v789_v23 = vadd.f32 %v2001_v58, %v788_v45  ;;  %v921_v47 = vpop.f32.mrf.mxu1 }
 0x188   :  { %v1150_v48 = vmax.f32 %v1093_v29, 0.0 }
 0x189   :  { %v922_v49 = vadd.f32 %v921_v47, %v789_v23 }
 0x18a   :  { %1199 = vst [vmem:[%s2520_s3 + $0x160] sm:$0xff] %v1150_v48 }
 0x18b   :  { %v1055_v50 = vadd.f32 %v1054_v17, %v922_v49 }
 0x18d   :  { %v1135_v51 = vmax.f32 %v1055_v50, 0.0  ;;  %v1062_v42 = vpop.f32.mrf.mxu2  ;;  %v1094_v35 = vpop.f32.mrf.mxu3 }
 0x18e   :  { %v1095_v53 = vadd.f32 %v1094_v35, %v2386_v8  ;;  %v791_v54 = vpop.f32.mrf.mxu0 }
 0x18f   :  { %1184 = vst [vmem:[%s2520_s3 + $0xe8] sm:$0xff] %v1135_v51  ;;  %v792_v55 = vadd.f32 %v2001_v58, %v791_v54  ;;  %v924_v56 = vpop.f32.mrf.mxu1 }
 0x190   :  { %v1151_v59 = vmax.f32 %v1095_v53, 0.0 }
 0x191   :  { %v925_v36 = vadd.f32 %v924_v56, %v792_v55 }
 0x192   :  { %1200 = vst [vmem:[%s2520_s3 + $0x168] sm:$0xff] %v1151_v59 }
 0x193   :  { %v1058_v60 = vadd.f32 %v1057_v20, %v925_v36 }
 0x195   :  { %v1136_v61 = vmax.f32 %v1058_v60, 0.0  ;;  %v1064_v62 = vpop.f32.mrf.mxu2  ;;  %v1097_v63 = vpop.f32.mrf.mxu3 }
 0x196   :  { %v1098_v8 = vadd.f32 %v1097_v63, %v2394_v19  ;;  %v793_v0 = vpop.f32.mrf.mxu0 }
 0x197   :  { %1185 = vst [vmem:[%s2520_s3 + $0xf0] sm:$0xff] %v1136_v61  ;;  %v794_v1 = vadd.f32 %v2001_v58, %v793_v0  ;;  %v926_v4 = vpop.f32.mrf.mxu1 }
 0x198   :  { %v1152_v5 = vmax.f32 %v1098_v8, 0.0 }
 0x199   :  { %v927_v6 = vadd.f32 %v926_v4, %v794_v1 }
 0x19a   :  { %1201 = vst [vmem:[%s2520_s3 + $0x170] sm:$0xff] %v1152_v5 }
 0x19b   :  { %v1060_v10 = vadd.f32 %v1059_v41, %v927_v6 }
 0x19d   :  { %v1137_v11 = vmax.f32 %v1060_v10, 0.0  ;;  %v1067_v46 = vpop.f32.mrf.mxu2  ;;  %v1099_v57 = vpop.f32.mrf.mxu3 }
 0x19e   :  { %v1100_v19 = vadd.f32 %v1099_v57, %v2402_v31  ;;  %v796_v12 = vpop.f32.mrf.mxu0 }
 0x19f   :  { %1186 = vst [vmem:[%s2520_s3 + $0xf8] sm:$0xff] %v1137_v11  ;;  %v797_v14 = vadd.f32 %v2001_v58, %v796_v12  ;;  %v929_v15 = vpop.f32.mrf.mxu1  ;;  %v1702_v58 = vld [vmem:[%s2519_s2] ss:$0 sm:$0xff] }
 0x1a0   :  { %v1153_v52 = vmax.f32 %v1100_v19, 0.0 }
 0x1a1   :  { %v930_v13 = vadd.f32 %v929_v15, %v797_v14 }
 0x1a2   :  { %1202 = vst [vmem:[%s2520_s3 + $0x178] sm:$0xff] %v1153_v52 }
 0x1a3   :  { %v1063_v16 = vadd.f32 %v1062_v42, %v930_v13 }
 0x1a5   :  { %v1138_v17 = vmax.f32 %v1063_v16, 0.0  ;;  %v1069_v22 = vpop.f32.mrf.mxu2  ;;  %v1102_v2 = vpop.f32.mrf.mxu3 }
 0x1a6   :  { %v1103_v31 = vadd.f32 %v1102_v2, %v2410_v43  ;;  %v798_v24 = vpop.f32.mrf.mxu0 }
 0x1a7   :  { %1187 = vst [vmem:[%s2520_s3 + $0x100] sm:$0xff] %v1138_v17  ;;  %v799_v25 = vadd.f32 %v1702_v58, %v798_v24  ;;  %v931_v26 = vpop.f32.mrf.mxu1 }
 0x1a8   :  { %v1154_v7 = vmax.f32 %v1103_v31, 0.0 }
 0x1a9   :  { %v932_v27 = vadd.f32 %v931_v26, %v799_v25 }
 0x1aa   :  { %1203 = vst [vmem:[%s2520_s3 + $0x180] sm:$0xff] %v1154_v7 }
 0x1ab   :  { %v1065_v28 = vadd.f32 %v1064_v62, %v932_v27 }
 0x1ad   :  { %v1139_v3 = vmax.f32 %v1065_v28, 0.0  ;;  %v1072_v43 = vpop.f32.mrf.mxu2  ;;  %v1104_v20 = vpop.f32.mrf.mxu3 }
 0x1ae   :  { %v801_v32 = vpop.f32.mrf.mxu0 }
 0x1af   :  { %1188 = vst [vmem:[%s2520_s3 + $0x108] sm:$0xff] %v1139_v3  ;;  %v802_v18 = vadd.f32 %v1702_v58, %v801_v32  ;;  %v934_v33 = vpop.f32.mrf.mxu1 }
 0x1b1   :  { %v935_v34 = vadd.f32 %v934_v33, %v802_v18 }
 0x1b3   :  { %v1068_v37 = vadd.f32 %v1067_v46, %v935_v34 }
 0x1b5   :  { %v1140_v38 = vmax.f32 %v1068_v37, 0.0  ;;  %v1074_v39 = vpop.f32.mrf.mxu2 }
 0x1b6   :  { %v803_v40 = vpop.f32.mrf.mxu0 }
 0x1b7   :  { %1189 = vst [vmem:[%s2520_s3 + $0x110] sm:$0xff] %v1140_v38  ;;  %v804_v21 = vadd.f32 %v1702_v58, %v803_v40  ;;  %v936_v41 = vpop.f32.mrf.mxu1 }
 0x1b9   :  { %v937_v44 = vadd.f32 %v936_v41, %v804_v21 }
 0x1bb   :  { %v1070_v29 = vadd.f32 %v1069_v22, %v937_v44 }
 0x1bd   :  { %v1141_v45 = vmax.f32 %v1070_v29, 0.0  ;;  %v1077_v23 = vpop.f32.mrf.mxu2 }
 0x1be   :  { %v1078_v47 = vadd.f32 %v1077_v23, %v2249_v9  ;;  %v806_v48 = vpop.f32.mrf.mxu0 }
 0x1bf   :  { %1190 = vst [vmem:[%s2520_s3 + $0x118] sm:$0xff] %v1141_v45  ;;  %v807_v49 = vadd.f32 %v1702_v58, %v806_v48  ;;  %v939_v50 = vpop.f32.mrf.mxu1 }
 0x1c0   :  { %v1144_v51 = vmax.f32 %v1078_v47, 0.0 }
 0x1c1   :  { %v940_v42 = vadd.f32 %v939_v50, %v807_v49 }
 0x1c2   :  { %1193 = vst [vmem:[%s2520_s3 + $0x130] sm:$0xff] %v1144_v51 }
 0x1c3   :  { %v1073_v35 = vadd.f32 %v1072_v43, %v940_v42 }
 0x1c5   :  { %v1142_v53 = vmax.f32 %v1073_v35, 0.0  ;;  %v1079_v54 = vpop.f32.mrf.mxu2 }
 0x1c6   :  { %v1080_v55 = vadd.f32 %v1079_v54, %v2276_v30  ;;  %v808_v56 = vpop.f32.mrf.mxu0 }
 0x1c7   :  { %1191 = vst [vmem:[%s2520_s3 + $0x120] sm:$0xff] %v1142_v53  ;;  %v809_v9 = vadd.f32 %v1702_v58, %v808_v56  ;;  %v941_v36 = vpop.f32.mrf.mxu1 }
 0x1c8   :  { %v1145_v59 = vmax.f32 %v1080_v55, 0.0 }
 0x1c9   :  { %v942_v60 = vadd.f32 %v941_v36, %v809_v9 }
 0x1ca   :  { %1194 = vst [vmem:[%s2520_s3 + $0x138] sm:$0xff] %v1145_v59 }
 0x1cb   :  { %v1075_v61 = vadd.f32 %v1074_v39, %v942_v60 }
 0x1cd   :  { %v1143_v62 = vmax.f32 %v1075_v61, 0.0 }
 0x1cf   :  { %1192 = vst [vmem:[%s2520_s3 + $0x128] sm:$0xff] %v1143_v62 }

// kernel: complex_cnn_forward.7
= control target key start
LH: loop header
LB: loop body
LE: loop exit
PB: predicated region body
PF: predicated region fallthrough
CT: control target
= control target key end

     0   :  { %s1242_s0 = inlined_call_operand.vmem [shape: bf16[2,1024], index: 0, kind: input, shape index: {}]   ;;  %s1243_s1 = inlined_call_operand.vmem [shape: bf16[1024,10], index: 1, kind: input, shape index: {}]   ;;  %s1244_s2 = inlined_call_operand.vmem [shape: f32[1,10], index: 2, kind: input, shape index: {}]   ;;  %s1245_s3 = inlined_call_operand.hbm [shape: f32[2,10], index: 3, kind: output, shape index: {}]  }
   0x1   :  { %v935_v0 = vld [vmem:[%s1243_s1 + $0x38] sm:$0xff]  ;;  %v934_v4 = vld [vmem:[%s1243_s1 + $0x30] sm:$0xff]  ;;  %v933_v8 = vld [vmem:[%s1243_s1 + $0x28] sm:$0xff] }
   0x2   :  { %v943_v1 = vld [vmem:[%s1243_s1 + $0x78] sm:$0xff]  ;;  %550 = vmatpush.bf16.msra.mxu0 %v935_v0  ;;  %v942_v5 = vld [vmem:[%s1243_s1 + $0x70] sm:$0xff]  ;;  %v941_v9 = vld [vmem:[%s1243_s1 + $0x68] sm:$0xff] }
   0x3   :  { %v951_v2 = vld [vmem:[%s1243_s1 + $0xb8] sm:$0xff]  ;;  %563 = vmatpush.bf16.msra.mxu1 %v943_v1  ;;  %v950_v6 = vld [vmem:[%s1243_s1 + $0xb0] sm:$0xff]  ;;  %v949_v10 = vld [vmem:[%s1243_s1 + $0xa8] sm:$0xff] }
   0x4   :  { %v959_v3 = vld [vmem:[%s1243_s1 + $0xf8] sm:$0xff]  ;;  %576 = vmatpush.bf16.msra.mxu2 %v951_v2  ;;  %v958_v7 = vld [vmem:[%s1243_s1 + $0xf0] sm:$0xff]  ;;  %v957_v11 = vld [vmem:[%s1243_s1 + $0xe8] sm:$0xff] }
   0x5   :  { %589 = vmatpush.bf16.msra.mxu3 %v959_v3  ;;  %v932_v12 = vld [vmem:[%s1243_s1 + $0x20] sm:$0xff]  ;;  %v931_v17 = vld [vmem:[%s1243_s1 + $0x18] sm:$0xff]  ;;  %v930_v21 = vld [vmem:[%s1243_s1 + $0x10] sm:$0xff] }
   0x6   :  { %551 = vmatpush.bf16.msra.mxu0 %v934_v4  ;;  %v940_v13 = vld [vmem:[%s1243_s1 + $0x60] sm:$0xff]  ;;  %v939_v18 = vld [vmem:[%s1243_s1 + $0x58] sm:$0xff]  ;;  %v938_v22 = vld [vmem:[%s1243_s1 + $0x50] sm:$0xff] }
   0x7   :  { %564 = vmatpush.bf16.msra.mxu1 %v942_v5  ;;  %v948_v14 = vld [vmem:[%s1243_s1 + $0xa0] sm:$0xff]  ;;  %v947_v19 = vld [vmem:[%s1243_s1 + $0x98] sm:$0xff] }
   0x8   :  { %577 = vmatpush.bf16.msra.mxu2 %v950_v6  ;;  %v956_v15 = vld [vmem:[%s1243_s1 + $0xe0] sm:$0xff]  ;;  %v955_v20 = vld [vmem:[%s1243_s1 + $0xd8] sm:$0xff] }
   0x9   :  { %590 = vmatpush.bf16.msra.mxu3 %v958_v7  ;;  %v15_v16 = vld [vmem:[%s1242_s0] sm:$0xff] }
   0xa   :  { %552 = vmatpush.bf16.msra.mxu0 %v933_v8  ;;  %149 = vst [vmem:[#allocation1] ss:$9 sm:$0xff] %v15_v16 }
   0xb   :  { %565 = vmatpush.bf16.msra.mxu1 %v941_v9 }
   0xc   :  { %578 = vmatpush.bf16.msra.mxu2 %v949_v10 }
   0xd   :  { %591 = vmatpush.bf16.msra.mxu3 %v957_v11 }
   0xe   :  { %553 = vmatpush.bf16.msra.mxu0 %v932_v12 }
   0xf   :  { %566 = vmatpush.bf16.msra.mxu1 %v940_v13 }
  0x10   :  { %579 = vmatpush.bf16.msra.mxu2 %v948_v14 }
  0x11   :  { %592 = vmatpush.bf16.msra.mxu3 %v956_v15 }
  0x12   :  { %554 = vmatpush.bf16.msra.mxu0 %v931_v17 }
  0x13   :  { %567 = vmatpush.bf16.msra.mxu1 %v939_v18 }
  0x14   :  { %8 = vsyncpa [#allocation3], 0  ;;  %580 = vmatpush.bf16.msra.mxu2 %v947_v19  ;;  %v946_v23 = vld [vmem:[%s1243_s1 + $0x90] sm:$0xff]  ;;  %v929_v25 = vld [vmem:[%s1243_s1 + $0x8] sm:$0xff]  ;;  %s1020_s4 = smov [#allocation2]   ;;  %s663_s8 = sshll.u32 %s1245_s3, 4  ;;  %s664_s8 = int_to_ptr.hbm [resolvable:$true] %s663_s8 }
  0x15   :  { %593 = vmatpush.bf16.msra.mxu3 %v955_v20  ;;  %v954_v24 = vld [vmem:[%s1243_s1 + $0xd0] sm:$0xff]  ;;  %v937_v26 = vld [vmem:[%s1243_s1 + $0x48] sm:$0xff]  ;;  %v928_v29 = vld [vmem:[%s1243_s1] sm:$0xff]  ;;  %s661_s5 = sshll.u32 %s1020_s4, 4  ;;  %vm654_vm0 = vcmask 74752   ;;  %s662_s5 = int_to_ptr.vmem [resolvable:$true] %s661_s5 }
  0x16   :  { %555 = vmatpush.bf16.msra.mxu0 %v930_v21  ;;  %v945_v27 = vld [vmem:[%s1243_s1 + $0x88] sm:$0xff]  ;;  %v936_v30 = vld [vmem:[%s1243_s1 + $0x40] sm:$0xff]  ;;  %v967_v33 = vld [vmem:[%s1243_s1 + $0x138] sm:$0xff] }
  0x17   :  { %568 = vmatpush.bf16.msra.mxu1 %v938_v22  ;;  %v953_v28 = vld [vmem:[%s1243_s1 + $0xc8] sm:$0xff]  ;;  %v944_v31 = vld [vmem:[%s1243_s1 + $0x80] sm:$0xff]  ;;  %v975_v34 = vld [vmem:[%s1243_s1 + $0x178] sm:$0xff] }
  0x18   :  { %581 = vmatpush.bf16.msra.mxu2 %v946_v23  ;;  %v952_v32 = vld [vmem:[%s1243_s1 + $0xc0] sm:$0xff]  ;;  %v983_v35 = vld [vmem:[%s1243_s1 + $0x1b8] sm:$0xff]  ;;  %v966_v37 = vld [vmem:[%s1243_s1 + $0x130] sm:$0xff] }
  0x19   :  { %594 = vmatpush.bf16.msra.mxu3 %v954_v24  ;;  %v991_v36 = vld [vmem:[%s1243_s1 + $0x1f8] sm:$0xff]  ;;  %v974_v40 = vld [vmem:[%s1243_s1 + $0x170] sm:$0xff]  ;;  %v150_v41 = vld [vmem:[#allocation1] sm:$0xff] }
  0x1a   :  { %556 = vmatpush.bf16.msra.mxu0 %v929_v25  ;;  %v152_v38 = vld [vmem:[#allocation1 + $0x12] sm:$0xff]  ;;  %v153_v39 = vld [vmem:[#allocation1 + $0x1b] sm:$0xff]  ;;  %v151_v42 = vld [vmem:[#allocation1 + $0x9] sm:$0xff] }
  0x1b   :  { %569 = vmatpush.bf16.msra.mxu1 %v937_v26  ;;  %v982_v43 = vld [vmem:[%s1243_s1 + $0x1b0] sm:$0xff]  ;;  %v965_v45 = vld [vmem:[%s1243_s1 + $0x128] sm:$0xff]  ;;  %v964_v49 = vld [vmem:[%s1243_s1 + $0x120] sm:$0xff] }
  0x1c   :  { %582 = vmatpush.bf16.msra.mxu2 %v945_v27  ;;  %v990_v44 = vld [vmem:[%s1243_s1 + $0x1f0] sm:$0xff]  ;;  %v973_v46 = vld [vmem:[%s1243_s1 + $0x168] sm:$0xff]  ;;  %v972_v50 = vld [vmem:[%s1243_s1 + $0x160] sm:$0xff] }
  0x1d   :  { %595 = vmatpush.bf16.msra.mxu3 %v953_v28  ;;  %v981_v47 = vld [vmem:[%s1243_s1 + $0x1a8] sm:$0xff]  ;;  %v980_v51 = vld [vmem:[%s1243_s1 + $0x1a0] sm:$0xff]  ;;  %v963_v53 = vld [vmem:[%s1243_s1 + $0x118] sm:$0xff] }
  0x1e   :  { %557 = vmatpush.bf16.msra.mxu0 %v928_v29  ;;  %v989_v48 = vld [vmem:[%s1243_s1 + $0x1e8] sm:$0xff]  ;;  %v988_v52 = vld [vmem:[%s1243_s1 + $0x1e0] sm:$0xff]  ;;  %v971_v54 = vld [vmem:[%s1243_s1 + $0x158] sm:$0xff] }
  0x1f   :  { %570 = vmatpush.bf16.msra.mxu1 %v936_v30  ;;  %v979_v55 = vld [vmem:[%s1243_s1 + $0x198] sm:$0xff]  ;;  %v962_v57 = vld [vmem:[%s1243_s1 + $0x110] sm:$0xff]  ;;  %v961_v61 = vld [vmem:[%s1243_s1 + $0x108] sm:$0xff] }
  0x20   :  { %583 = vmatpush.bf16.msra.mxu2 %v944_v31  ;;  %v987_v56 = vld [vmem:[%s1243_s1 + $0x1d8] sm:$0xff]  ;;  %v970_v58 = vld [vmem:[%s1243_s1 + $0x150] sm:$0xff]  ;;  %v969_v62 = vld [vmem:[%s1243_s1 + $0x148] sm:$0xff] }
  0x21   :  { %596 = vmatpush.bf16.msra.mxu3 %v952_v32  ;;  %558 = vmatmul.bf16.vlgmr.msra.gmra.mxu0 %v150_v41  ;;  %v978_v59 = vld [vmem:[%s1243_s1 + $0x190] sm:$0xff]  ;;  %v977_v63 = vld [vmem:[%s1243_s1 + $0x188] sm:$0xff]  ;;  %v960_v1 = vld [vmem:[%s1243_s1 + $0x100] sm:$0xff] }
  0x22   :  { %602 = vmatpush.bf16.msrb.mxu0 %v967_v33  ;;  %571 = vmatmul.bf16.vlgmr.msra.gmra.mxu1 %v151_v42  ;;  %v986_v60 = vld [vmem:[%s1243_s1 + $0x1d0] sm:$0xff]  ;;  %v985_v0 = vld [vmem:[%s1243_s1 + $0x1c8] sm:$0xff]  ;;  %v968_v2 = vld [vmem:[%s1243_s1 + $0x140] sm:$0xff] }
  0x23   :  { %615 = vmatpush.bf16.msrb.mxu1 %v975_v34  ;;  %584 = vmatmul.bf16.vlgmr.msra.gmra.mxu2 %v152_v38  ;;  %v976_v3 = vld [vmem:[%s1243_s1 + $0x180] sm:$0xff]  ;;  %v155_v6 = vld [vmem:[#allocation1 + $0x2d] sm:$0xff]  ;;  %v156_v7 = vld [vmem:[#allocation1 + $0x36] sm:$0xff] }
  0x24   :  { %628 = vmatpush.bf16.msrb.mxu2 %v983_v35  ;;  %597 = vmatmul.bf16.vlgmr.msra.gmra.mxu3 %v153_v39  ;;  %v984_v4 = vld [vmem:[%s1243_s1 + $0x1c0] sm:$0xff] }
  0x25   :  { %641 = vmatpush.bf16.msrb.mxu3 %v991_v36  ;;  %v154_v5 = vld [vmem:[#allocation1 + $0x24] sm:$0xff]  ;;  %v993_v15 = vld [vmem:[%s1244_s2] ss:$0 sm:$0xff] }
  0x26   :  { %603 = vmatpush.bf16.msrb.mxu0 %v966_v37  ;;  %v157_v8 = vld [vmem:[#allocation1 + $0x3f] sm:$0xff] }
  0x27   :  { %616 = vmatpush.bf16.msrb.mxu1 %v974_v40 }
  0x28   :  { %629 = vmatpush.bf16.msrb.mxu2 %v982_v43 }
  0x29   :  { %642 = vmatpush.bf16.msrb.mxu3 %v990_v44 }
  0x2a   :  { %604 = vmatpush.bf16.msrb.mxu0 %v965_v45 }
  0x2b   :  { %617 = vmatpush.bf16.msrb.mxu1 %v973_v46 }
  0x2c   :  { %630 = vmatpush.bf16.msrb.mxu2 %v981_v47 }
  0x2d   :  { %643 = vmatpush.bf16.msrb.mxu3 %v989_v48 }
  0x2e   :  { %605 = vmatpush.bf16.msrb.mxu0 %v964_v49 }
  0x2f   :  { %618 = vmatpush.bf16.msrb.mxu1 %v972_v50 }
  0x30   :  { %631 = vmatpush.bf16.msrb.mxu2 %v980_v51 }
  0x31   :  { %644 = vmatpush.bf16.msrb.mxu3 %v988_v52 }
  0x32   :  { %606 = vmatpush.bf16.msrb.mxu0 %v963_v53 }
  0x33   :  { %619 = vmatpush.bf16.msrb.mxu1 %v971_v54 }
  0x34   :  { %632 = vmatpush.bf16.msrb.mxu2 %v979_v55 }
  0x35   :  { %645 = vmatpush.bf16.msrb.mxu3 %v987_v56 }
  0x36   :  { %607 = vmatpush.bf16.msrb.mxu0 %v962_v57 }
  0x37   :  { %620 = vmatpush.bf16.msrb.mxu1 %v970_v58 }
  0x38   :  { %633 = vmatpush.bf16.msrb.mxu2 %v978_v59 }
  0x39   :  { %646 = vmatpush.bf16.msrb.mxu3 %v986_v60 }
  0x3a   :  { %608 = vmatpush.bf16.msrb.mxu0 %v961_v61 }
  0x3b   :  { %621 = vmatpush.bf16.msrb.mxu1 %v969_v62 }
  0x3c   :  { %634 = vmatpush.bf16.msrb.mxu2 %v977_v63 }
  0x3d   :  { %647 = vmatpush.bf16.msrb.mxu3 %v985_v0 }
  0x3e   :  { %609 = vmatpush.bf16.msrb.mxu0 %v960_v1 }
  0x3f   :  { %622 = vmatpush.bf16.msrb.mxu1 %v968_v2 }
  0x40   :  { %635 = vmatpush.bf16.msrb.mxu2 %v976_v3 }
  0x41   :  { %648 = vmatpush.bf16.msrb.mxu3 %v984_v4  ;;  %610 = vmatmul.bf16.vlgmr.msrb.gmra.mxu0 %v154_v5 }
  0x42   :  { %623 = vmatmul.bf16.vlgmr.msrb.gmra.mxu1 %v155_v6 }
  0x43   :  { %636 = vmatmul.bf16.vlgmr.msrb.gmra.mxu2 %v156_v7 }
  0x44   :  { %649 = vmatmul.bf16.vlgmr.msrb.gmra.mxu3 %v157_v8 }
  0x9e   :  { %v559_v9 = vpop.f32.mrf.mxu0 }
  0x9f   :  { %v572_v10 = vpop.f32.mrf.mxu1  ;;  %v560_v18 = vadd.f32 %v993_v15, %v559_v9 }
  0xa1   :  { %v573_v19 = vadd.f32 %v572_v10, %v560_v18 }
  0xa6   :  { %v585_v11 = vpop.f32.mrf.mxu2  ;;  %v561_v13 = vpop.f32.mrf.mxu0 }
  0xa7   :  { %v598_v12 = vpop.f32.mrf.mxu3  ;;  %v574_v14 = vpop.f32.mrf.mxu1  ;;  %v586_v20 = vadd.f32 %v585_v11, %v573_v19 }
  0xa9   :  { %v599_v21 = vadd.f32 %v598_v12, %v586_v20 }
  0xae   :  { %v587_v16 = vpop.f32.mrf.mxu2 }
  0xaf   :  { %v600_v17 = vpop.f32.mrf.mxu3 }
  0xbe   :  { %v611_v22 = vpop.f32.mrf.mxu0 }
  0xbf   :  { %v624_v23 = vpop.f32.mrf.mxu1  ;;  %v612_v24 = vadd.f32 %v611_v22, %v599_v21 }
  0xc1   :  { %v625_v25 = vadd.f32 %v624_v23, %v612_v24 }
  0xc6   :  { %v637_v26 = vpop.f32.mrf.mxu2  ;;  %v613_v29 = vpop.f32.mrf.mxu0 }
  0xc7   :  { %v650_v27 = vpop.f32.mrf.mxu3  ;;  %v638_v28 = vadd.f32 %v637_v26, %v625_v25  ;;  %v626_v30 = vpop.f32.mrf.mxu1 }
  0xc9   :  { %v651_v31 = vadd.f32 %v650_v27, %v638_v28 }
  0xcb   :  { %655 = vst.msk [vmem:[#allocation2] sm:$0x3] %vm654_vm0, %v651_v31 }
  0xcc   :  { %666 = dma.vmem_to_hbm [thread:$0]  %s662_s5, 32, %s664_s8, [#allocation3]  }
  0xce   :  { %v639_v32 = vpop.f32.mrf.mxu2 }
  0xcf   :  { %v652_v33 = vpop.f32.mrf.mxu3 }
  0xd0   :  { %1018 = dma.done.wait [#allocation3], 32  }
  0xd1   :  { %1019 = vsyncadd [#allocation3], 4294967264 }
  0xd2   :  { %671 = vsyncpa [#allocation3], 1 }

// kernel: complex_cnn_forward.6
= control target key start
LH: loop header
LB: loop body
LE: loop exit
PB: predicated region body
PF: predicated region fallthrough
CT: control target
= control target key end

     0   :  { %s12976_s12 = smov 0   ;;  %s12978_s13 = smov 0   ;;  %s15684_s0 = inlined_call_operand.vmem [shape: bf16[2,3136], index: 0, kind: input, shape index: {}]   ;;  %s15685_s1 = inlined_call_operand.vmem [shape: bf16[3136,1024], index: 1, kind: input, shape index: {}]   ;;  %s15686_s2 = inlined_call_operand.vmem [shape: f32[1,1024], index: 2, kind: input, shape index: {}]   ;;  %s15687_s3 = inlined_call_operand.vmem [shape: f32[2,1024], index: 3, kind: output, shape index: {}]  }
   0x1   :  { %s12980_s14 = smov 0   ;;  %s12982_s15 = smov 0  }
   0x2   :  { %s12984_s16 = smov 0  }
   0x3 LB: > { %s25_s17 = sadd.s32 1, %s12934_s15  ;;  %p65_p1 = scmp.ne.s32.totalorder %s12926_s13, %s12922_s12  ;;  %s12938_s16 = sphi %s12984_s16, %s13_s16   ;;  %s12934_s15 = sphi %s12982_s15, %s15697_s15   ;;  %s12930_s14 = sphi %s12980_s14, %s15696_s14   ;;  %s12926_s13 = sphi %s12978_s13, %s15695_s13   ;;  %s12922_s12 = sphi %s12976_s12, %s15694_s12  }
   0x4   : > { %p27_p0 = scmp.ge.s32.totalorder %s25_s17, 2  ;;  %p66_p2 = scmp.eq.s32.totalorder %s12938_s16, 0 }
   0x5   : > { %s58_s19 = sadd.s32 1, %s12926_s13  ;;  %p8868_p5 = scmp.ge.s32.totalorder %s12938_s16, 2 }
   0x6   : > { %s15699_s17 = smov (%p27_p0, %s25_s17), 0  ;;  %p67_p3 = por %p66_p2, %p65_p1 }
   0x7   : > { %s55_s18 = ssub.s32 %s12934_s15, %s15699_s17  ;;  %152 = sbr.rel (%p8868_p5) target bundleno = 410 (0x19a), region = 20 }
   0x8   : > { %p56_p4 = scmp.eq.s32.totalorder %s55_s18, 0 }
   0xa   : > { %s13011_s20 = scalar_select %p56_p4, %s12926_s13, %s58_s19  }
   0xc   : > { %155 = sbr.rel (!%p67_p3) target bundleno = 410 (0x19a), region = 24  ;;  %s157_s21 = sand.u32 (%p67_p3), 1, %s12926_s13  }
   0xd   : > { %s12019_s22 = sshll.u32 (%p67_p3), %s12934_s15, 4  ;;  %s13016_s23 = smul.u32 (%p67_p3), 6272, %s157_s21 }
   0xe   : > { %s13021_s26 = scalar_lea.vmem (%p67_p3), %s15685_s1, %s12019_s22   ;;  %s13031_s30 = smov (%p67_p3), 0  }
   0xf   : > { %s159_s27 = scalar_lea.vmem (%p67_p3), [#allocation2], %s13016_s23   ;;  %s15689_s29 = smov (%p67_p3), %s13021_s26 }
  0x10   : > { %s15688_s28 = smov (%p67_p3), %s159_s27  ;;  %s13033_s4 = smov (%p67_p3), 0  }
  0x11 LB: >> { %v176_v0 = vld [vmem:[%s12946_s29] sm:$0xff]  ;;  %s960_s5 = sadd.s32 1, %s12950_s30  ;;  %s172_s4 = sadd.s32 1, %s12954_s4   ;;  %s12954_s4 = sphi %s13033_s4, %s172_s4   ;;  %s12950_s30 = sphi %s13031_s30, %s15692_s30   ;;  %s12946_s29 = sphi %s15689_s29, %s15691_s29   ;;  %s12942_s28 = sphi %s15688_s28, %s15690_s28  }
  0x12   : >> { %v178_v1 = vld [vmem:[%s12946_s29 + $0x20] sm:$0xff]  ;;  %177 = vst [vmem:[%s12942_s28] sm:$0xff] %v176_v0  ;;  %p961_p6 = scmp.ge.s32.totalorder %s960_s5, 2  ;;  %p169_p7 = scmp.ge.s32.totalorder %s172_s4, 2  }
  0x13   : >> { %v180_v2 = vld [vmem:[%s12946_s29 + $0x40] sm:$0xff]  ;;  %179 = vst [vmem:[%s12942_s28 + $0x10] sm:$0xff] %v178_v1 }
  0x14   : >> { %v182_v3 = vld [vmem:[%s12946_s29 + $0x60] sm:$0xff]  ;;  %181 = vst [vmem:[%s12942_s28 + $0x20] sm:$0xff] %v180_v2  ;;  %s15701_s5 = smov (%p961_p6, %s960_s5), 0 }
  0x15   : >> { %v184_v4 = vld [vmem:[%s12946_s29 + $0x80] sm:$0xff]  ;;  %183 = vst [vmem:[%s12942_s28 + $0x30] sm:$0xff] %v182_v3  ;;  %s8871_s6 = sshll.u32 %s15701_s5, 3  ;;  %s15692_s30 = smov %s15701_s5 }
  0x16   : >> { %v186_v5 = vld [vmem:[%s12946_s29 + $0xa0] sm:$0xff]  ;;  %185 = vst [vmem:[%s12942_s28 + $0x40] sm:$0xff] %v184_v4  ;;  %s13583_s7 = scalar_lea.vmem %s13021_s26, %s8871_s6   ;;  %s13587_s8 = scalar_lea.vmem %s159_s27, %s8871_s6 [#allocation2]  }
  0x17   : >> { %v188_v6 = vld [vmem:[%s12946_s29 + $0xc0] sm:$0xff]  ;;  %187 = vst [vmem:[%s12942_s28 + $0x50] sm:$0xff] %v186_v5 }
  0x18   : >> { %v190_v7 = vld [vmem:[%s12946_s29 + $0xe0] sm:$0xff]  ;;  %189 = vst [vmem:[%s12942_s28 + $0x60] sm:$0xff] %v188_v6 }
  0x19   : >> { %v192_v8 = vld [vmem:[%s12946_s29 + $0x100] sm:$0xff]  ;;  %191 = vst [vmem:[%s12942_s28 + $0x70] sm:$0xff] %v190_v7 }
  0x1a   : >> { %v194_v9 = vld [vmem:[%s12946_s29 + $0x120] sm:$0xff]  ;;  %193 = vst [vmem:[%s12942_s28 + $0x80] sm:$0xff] %v192_v8 }
  0x1b   : >> { %v196_v10 = vld [vmem:[%s12946_s29 + $0x140] sm:$0xff]  ;;  %195 = vst [vmem:[%s12942_s28 + $0x90] sm:$0xff] %v194_v9 }
  0x1c   : >> { %v198_v11 = vld [vmem:[%s12946_s29 + $0x160] sm:$0xff]  ;;  %197 = vst [vmem:[%s12942_s28 + $0xa0] sm:$0xff] %v196_v10 }
  0x1d   : >> { %v200_v12 = vld [vmem:[%s12946_s29 + $0x180] sm:$0xff]  ;;  %199 = vst [vmem:[%s12942_s28 + $0xb0] sm:$0xff] %v198_v11 }
  0x1e   : >> { %v202_v13 = vld [vmem:[%s12946_s29 + $0x1a0] sm:$0xff]  ;;  %201 = vst [vmem:[%s12942_s28 + $0xc0] sm:$0xff] %v200_v12 }
  0x1f   : >> { %v204_v14 = vld [vmem:[%s12946_s29 + $0x1c0] sm:$0xff]  ;;  %203 = vst [vmem:[%s12942_s28 + $0xd0] sm:$0xff] %v202_v13 }
  0x20   : >> { %v206_v15 = vld [vmem:[%s12946_s29 + $0x1e0] sm:$0xff]  ;;  %205 = vst [vmem:[%s12942_s28 + $0xe0] sm:$0xff] %v204_v14 }
  0x21   : >> { %v208_v16 = vld [vmem:[%s12946_s29 + $0x200] sm:$0xff]  ;;  %207 = vst [vmem:[%s12942_s28 + $0xf0] sm:$0xff] %v206_v15 }
  0x22   : >> { %v210_v17 = vld [vmem:[%s12946_s29 + $0x220] sm:$0xff]  ;;  %209 = vst [vmem:[%s12942_s28 + $0x100] sm:$0xff] %v208_v16 }
  0x23   : >> { %v212_v18 = vld [vmem:[%s12946_s29 + $0x240] sm:$0xff]  ;;  %211 = vst [vmem:[%s12942_s28 + $0x110] sm:$0xff] %v210_v17 }
  0x24   : >> { %v214_v19 = vld [vmem:[%s12946_s29 + $0x260] sm:$0xff]  ;;  %213 = vst [vmem:[%s12942_s28 + $0x120] sm:$0xff] %v212_v18 }
  0x25   : >> { %v216_v20 = vld [vmem:[%s12946_s29 + $0x280] sm:$0xff]  ;;  %215 = vst [vmem:[%s12942_s28 + $0x130] sm:$0xff] %v214_v19 }
  0x26   : >> { %v218_v21 = vld [vmem:[%s12946_s29 + $0x2a0] sm:$0xff]  ;;  %217 = vst [vmem:[%s12942_s28 + $0x140] sm:$0xff] %v216_v20 }
  0x27   : >> { %v220_v22 = vld [vmem:[%s12946_s29 + $0x2c0] sm:$0xff]  ;;  %219 = vst [vmem:[%s12942_s28 + $0x150] sm:$0xff] %v218_v21 }
  0x28   : >> { %v222_v23 = vld [vmem:[%s12946_s29 + $0x2e0] sm:$0xff]  ;;  %221 = vst [vmem:[%s12942_s28 + $0x160] sm:$0xff] %v220_v22 }
  0x29   : >> { %v224_v24 = vld [vmem:[%s12946_s29 + $0x300] sm:$0xff]  ;;  %223 = vst [vmem:[%s12942_s28 + $0x170] sm:$0xff] %v222_v23 }
  0x2a   : >> { %v226_v25 = vld [vmem:[%s12946_s29 + $0x320] sm:$0xff]  ;;  %225 = vst [vmem:[%s12942_s28 + $0x180] sm:$0xff] %v224_v24 }
  0x2b   : >> { %v228_v26 = vld [vmem:[%s12946_s29 + $0x340] sm:$0xff]  ;;  %227 = vst [vmem:[%s12942_s28 + $0x190] sm:$0xff] %v226_v25 }
  0x2c   : >> { %v230_v27 = vld [vmem:[%s12946_s29 + $0x360] sm:$0xff]  ;;  %229 = vst [vmem:[%s12942_s28 + $0x1a0] sm:$0xff] %v228_v26 }
  0x2d   : >> { %v232_v28 = vld [vmem:[%s12946_s29 + $0x380] sm:$0xff]  ;;  %231 = vst [vmem:[%s12942_s28 + $0x1b0] sm:$0xff] %v230_v27 }
  0x2e   : >> { %v234_v29 = vld [vmem:[%s12946_s29 + $0x3a0] sm:$0xff]  ;;  %233 = vst [vmem:[%s12942_s28 + $0x1c0] sm:$0xff] %v232_v28 }
  0x2f   : >> { %v236_v30 = vld [vmem:[%s12946_s29 + $0x3c0] sm:$0xff]  ;;  %235 = vst [vmem:[%s12942_s28 + $0x1d0] sm:$0xff] %v234_v29 }
  0x30   : >> { %v238_v31 = vld [vmem:[%s12946_s29 + $0x3e0] sm:$0xff]  ;;  %237 = vst [vmem:[%s12942_s28 + $0x1e0] sm:$0xff] %v236_v30 }
  0x31   : >> { %v240_v32 = vld [vmem:[%s12946_s29 + $0x400] sm:$0xff]  ;;  %239 = vst [vmem:[%s12942_s28 + $0x1f0] sm:$0xff] %v238_v31 }
  0x32   : >> { %v242_v33 = vld [vmem:[%s12946_s29 + $0x420] sm:$0xff]  ;;  %241 = vst [vmem:[%s12942_s28 + $0x200] sm:$0xff] %v240_v32 }
  0x33   : >> { %v244_v34 = vld [vmem:[%s12946_s29 + $0x440] sm:$0xff]  ;;  %243 = vst [vmem:[%s12942_s28 + $0x210] sm:$0xff] %v242_v33 }
  0x34   : >> { %v246_v35 = vld [vmem:[%s12946_s29 + $0x460] sm:$0xff]  ;;  %245 = vst [vmem:[%s12942_s28 + $0x220] sm:$0xff] %v244_v34 }
  0x35   : >> { %v248_v36 = vld [vmem:[%s12946_s29 + $0x480] sm:$0xff]  ;;  %247 = vst [vmem:[%s12942_s28 + $0x230] sm:$0xff] %v246_v35 }
  0x36   : >> { %v250_v37 = vld [vmem:[%s12946_s29 + $0x4a0] sm:$0xff]  ;;  %249 = vst [vmem:[%s12942_s28 + $0x240] sm:$0xff] %v248_v36 }
  0x37   : >> { %v252_v38 = vld [vmem:[%s12946_s29 + $0x4c0] sm:$0xff]  ;;  %251 = vst [vmem:[%s12942_s28 + $0x250] sm:$0xff] %v250_v37 }
  0x38   : >> { %v254_v39 = vld [vmem:[%s12946_s29 + $0x4e0] sm:$0xff]  ;;  %253 = vst [vmem:[%s12942_s28 + $0x260] sm:$0xff] %v252_v38 }
  0x39   : >> { %v256_v40 = vld [vmem:[%s12946_s29 + $0x500] sm:$0xff]  ;;  %255 = vst [vmem:[%s12942_s28 + $0x270] sm:$0xff] %v254_v39 }
  0x3a   : >> { %v258_v41 = vld [vmem:[%s12946_s29 + $0x520] sm:$0xff]  ;;  %257 = vst [vmem:[%s12942_s28 + $0x280] sm:$0xff] %v256_v40 }
  0x3b   : >> { %v260_v42 = vld [vmem:[%s12946_s29 + $0x540] sm:$0xff]  ;;  %259 = vst [vmem:[%s12942_s28 + $0x290] sm:$0xff] %v258_v41 }
  0x3c   : >> { %v262_v43 = vld [vmem:[%s12946_s29 + $0x560] sm:$0xff]  ;;  %261 = vst [vmem:[%s12942_s28 + $0x2a0] sm:$0xff] %v260_v42 }
  0x3d   : >> { %v264_v44 = vld [vmem:[%s12946_s29 + $0x580] sm:$0xff]  ;;  %263 = vst [vmem:[%s12942_s28 + $0x2b0] sm:$0xff] %v262_v43 }
  0x3e   : >> { %v266_v45 = vld [vmem:[%s12946_s29 + $0x5a0] sm:$0xff]  ;;  %265 = vst [vmem:[%s12942_s28 + $0x2c0] sm:$0xff] %v264_v44 }
  0x3f   : >> { %v268_v46 = vld [vmem:[%s12946_s29 + $0x5c0] sm:$0xff]  ;;  %267 = vst [vmem:[%s12942_s28 + $0x2d0] sm:$0xff] %v266_v45 }
  0x40   : >> { %v270_v47 = vld [vmem:[%s12946_s29 + $0x5e0] sm:$0xff]  ;;  %269 = vst [vmem:[%s12942_s28 + $0x2e0] sm:$0xff] %v268_v46 }
  0x41   : >> { %v272_v48 = vld [vmem:[%s12946_s29 + $0x600] sm:$0xff]  ;;  %271 = vst [vmem:[%s12942_s28 + $0x2f0] sm:$0xff] %v270_v47 }
  0x42   : >> { %v274_v49 = vld [vmem:[%s12946_s29 + $0x620] sm:$0xff]  ;;  %273 = vst [vmem:[%s12942_s28 + $0x300] sm:$0xff] %v272_v48 }
  0x43   : >> { %v276_v50 = vld [vmem:[%s12946_s29 + $0x640] sm:$0xff]  ;;  %275 = vst [vmem:[%s12942_s28 + $0x310] sm:$0xff] %v274_v49 }
  0x44   : >> { %v278_v51 = vld [vmem:[%s12946_s29 + $0x660] sm:$0xff]  ;;  %277 = vst [vmem:[%s12942_s28 + $0x320] sm:$0xff] %v276_v50 }
  0x45   : >> { %v280_v52 = vld [vmem:[%s12946_s29 + $0x680] sm:$0xff]  ;;  %279 = vst [vmem:[%s12942_s28 + $0x330] sm:$0xff] %v278_v51 }
  0x46   : >> { %v282_v53 = vld [vmem:[%s12946_s29 + $0x6a0] sm:$0xff]  ;;  %281 = vst [vmem:[%s12942_s28 + $0x340] sm:$0xff] %v280_v52 }
  0x47   : >> { %v284_v54 = vld [vmem:[%s12946_s29 + $0x6c0] sm:$0xff]  ;;  %283 = vst [vmem:[%s12942_s28 + $0x350] sm:$0xff] %v282_v53 }
  0x48   : >> { %v286_v55 = vld [vmem:[%s12946_s29 + $0x6e0] sm:$0xff]  ;;  %285 = vst [vmem:[%s12942_s28 + $0x360] sm:$0xff] %v284_v54 }
  0x49   : >> { %v288_v56 = vld [vmem:[%s12946_s29 + $0x700] sm:$0xff]  ;;  %287 = vst [vmem:[%s12942_s28 + $0x370] sm:$0xff] %v286_v55 }
  0x4a   : >> { %v290_v57 = vld [vmem:[%s12946_s29 + $0x720] sm:$0xff]  ;;  %289 = vst [vmem:[%s12942_s28 + $0x380] sm:$0xff] %v288_v56 }
  0x4b   : >> { %v292_v58 = vld [vmem:[%s12946_s29 + $0x740] sm:$0xff]  ;;  %291 = vst [vmem:[%s12942_s28 + $0x390] sm:$0xff] %v290_v57 }
  0x4c   : >> { %v294_v59 = vld [vmem:[%s12946_s29 + $0x760] sm:$0xff]  ;;  %293 = vst [vmem:[%s12942_s28 + $0x3a0] sm:$0xff] %v292_v58 }
  0x4d   : >> { %v296_v60 = vld [vmem:[%s12946_s29 + $0x780] sm:$0xff]  ;;  %295 = vst [vmem:[%s12942_s28 + $0x3b0] sm:$0xff] %v294_v59 }
  0x4e   : >> { %v298_v61 = vld [vmem:[%s12946_s29 + $0x7a0] sm:$0xff]  ;;  %297 = vst [vmem:[%s12942_s28 + $0x3c0] sm:$0xff] %v296_v60 }
  0x4f   : >> { %v300_v62 = vld [vmem:[%s12946_s29 + $0x7c0] sm:$0xff]  ;;  %299 = vst [vmem:[%s12942_s28 + $0x3d0] sm:$0xff] %v298_v61 }
  0x50   : >> { %v302_v63 = vld [vmem:[%s12946_s29 + $0x7e0] sm:$0xff]  ;;  %301 = vst [vmem:[%s12942_s28 + $0x3e0] sm:$0xff] %v300_v62 }
  0x51   : >> { %v304_v0 = vld [vmem:[%s12946_s29 + $0x800] sm:$0xff]  ;;  %303 = vst [vmem:[%s12942_s28 + $0x3f0] sm:$0xff] %v302_v63 }
  0x52   : >> { %v306_v1 = vld [vmem:[%s12946_s29 + $0x820] sm:$0xff]  ;;  %305 = vst [vmem:[%s12942_s28 + $0x400] sm:$0xff] %v304_v0 }
  0x53   : >> { %v308_v2 = vld [vmem:[%s12946_s29 + $0x840] sm:$0xff]  ;;  %307 = vst [vmem:[%s12942_s28 + $0x410] sm:$0xff] %v306_v1 }
  0x54   : >> { %v310_v3 = vld [vmem:[%s12946_s29 + $0x860] sm:$0xff]  ;;  %309 = vst [vmem:[%s12942_s28 + $0x420] sm:$0xff] %v308_v2 }
  0x55   : >> { %v312_v4 = vld [vmem:[%s12946_s29 + $0x880] sm:$0xff]  ;;  %311 = vst [vmem:[%s12942_s28 + $0x430] sm:$0xff] %v310_v3 }
  0x56   : >> { %v314_v5 = vld [vmem:[%s12946_s29 + $0x8a0] sm:$0xff]  ;;  %313 = vst [vmem:[%s12942_s28 + $0x440] sm:$0xff] %v312_v4 }
  0x57   : >> { %v316_v6 = vld [vmem:[%s12946_s29 + $0x8c0] sm:$0xff]  ;;  %315 = vst [vmem:[%s12942_s28 + $0x450] sm:$0xff] %v314_v5 }
  0x58   : >> { %v318_v7 = vld [vmem:[%s12946_s29 + $0x8e0] sm:$0xff]  ;;  %317 = vst [vmem:[%s12942_s28 + $0x460] sm:$0xff] %v316_v6 }
  0x59   : >> { %v320_v8 = vld [vmem:[%s12946_s29 + $0x900] sm:$0xff]  ;;  %319 = vst [vmem:[%s12942_s28 + $0x470] sm:$0xff] %v318_v7 }
  0x5a   : >> { %v322_v9 = vld [vmem:[%s12946_s29 + $0x920] sm:$0xff]  ;;  %321 = vst [vmem:[%s12942_s28 + $0x480] sm:$0xff] %v320_v8 }
  0x5b   : >> { %v324_v10 = vld [vmem:[%s12946_s29 + $0x940] sm:$0xff]  ;;  %323 = vst [vmem:[%s12942_s28 + $0x490] sm:$0xff] %v322_v9 }
  0x5c   : >> { %v326_v11 = vld [vmem:[%s12946_s29 + $0x960] sm:$0xff]  ;;  %325 = vst [vmem:[%s12942_s28 + $0x4a0] sm:$0xff] %v324_v10 }
  0x5d   : >> { %v328_v12 = vld [vmem:[%s12946_s29 + $0x980] sm:$0xff]  ;;  %327 = vst [vmem:[%s12942_s28 + $0x4b0] sm:$0xff] %v326_v11 }
  0x5e   : >> { %v330_v13 = vld [vmem:[%s12946_s29 + $0x9a0] sm:$0xff]  ;;  %329 = vst [vmem:[%s12942_s28 + $0x4c0] sm:$0xff] %v328_v12 }
  0x5f   : >> { %v332_v14 = vld [vmem:[%s12946_s29 + $0x9c0] sm:$0xff]  ;;  %331 = vst [vmem:[%s12942_s28 + $0x4d0] sm:$0xff] %v330_v13 }
  0x60   : >> { %v334_v15 = vld [vmem:[%s12946_s29 + $0x9e0] sm:$0xff]  ;;  %333 = vst [vmem:[%s12942_s28 + $0x4e0] sm:$0xff] %v332_v14 }
  0x61   : >> { %v336_v16 = vld [vmem:[%s12946_s29 + $0xa00] sm:$0xff]  ;;  %335 = vst [vmem:[%s12942_s28 + $0x4f0] sm:$0xff] %v334_v15 }
  0x62   : >> { %v338_v17 = vld [vmem:[%s12946_s29 + $0xa20] sm:$0xff]  ;;  %337 = vst [vmem:[%s12942_s28 + $0x500] sm:$0xff] %v336_v16 }
  0x63   : >> { %v340_v18 = vld [vmem:[%s12946_s29 + $0xa40] sm:$0xff]  ;;  %339 = vst [vmem:[%s12942_s28 + $0x510] sm:$0xff] %v338_v17 }
  0x64   : >> { %v342_v19 = vld [vmem:[%s12946_s29 + $0xa60] sm:$0xff]  ;;  %341 = vst [vmem:[%s12942_s28 + $0x520] sm:$0xff] %v340_v18 }
  0x65   : >> { %v344_v20 = vld [vmem:[%s12946_s29 + $0xa80] sm:$0xff]  ;;  %343 = vst [vmem:[%s12942_s28 + $0x530] sm:$0xff] %v342_v19 }
  0x66   : >> { %v346_v21 = vld [vmem:[%s12946_s29 + $0xaa0] sm:$0xff]  ;;  %345 = vst [vmem:[%s12942_s28 + $0x540] sm:$0xff] %v344_v20 }
  0x67   : >> { %v348_v22 = vld [vmem:[%s12946_s29 + $0xac0] sm:$0xff]  ;;  %347 = vst [vmem:[%s12942_s28 + $0x550] sm:$0xff] %v346_v21 }
  0x68   : >> { %v350_v23 = vld [vmem:[%s12946_s29 + $0xae0] sm:$0xff]  ;;  %349 = vst [vmem:[%s12942_s28 + $0x560] sm:$0xff] %v348_v22 }
  0x69   : >> { %v352_v24 = vld [vmem:[%s12946_s29 + $0xb00] sm:$0xff]  ;;  %351 = vst [vmem:[%s12942_s28 + $0x570] sm:$0xff] %v350_v23 }
  0x6a   : >> { %v354_v25 = vld [vmem:[%s12946_s29 + $0xb20] sm:$0xff]  ;;  %353 = vst [vmem:[%s12942_s28 + $0x580] sm:$0xff] %v352_v24 }
  0x6b   : >> { %v356_v26 = vld [vmem:[%s12946_s29 + $0xb40] sm:$0xff]  ;;  %355 = vst [vmem:[%s12942_s28 + $0x590] sm:$0xff] %v354_v25 }
  0x6c   : >> { %v358_v27 = vld [vmem:[%s12946_s29 + $0xb60] sm:$0xff]  ;;  %357 = vst [vmem:[%s12942_s28 + $0x5a0] sm:$0xff] %v356_v26 }
  0x6d   : >> { %v360_v28 = vld [vmem:[%s12946_s29 + $0xb80] sm:$0xff]  ;;  %359 = vst [vmem:[%s12942_s28 + $0x5b0] sm:$0xff] %v358_v27 }
  0x6e   : >> { %v362_v29 = vld [vmem:[%s12946_s29 + $0xba0] sm:$0xff]  ;;  %361 = vst [vmem:[%s12942_s28 + $0x5c0] sm:$0xff] %v360_v28 }
  0x6f   : >> { %v364_v30 = vld [vmem:[%s12946_s29 + $0xbc0] sm:$0xff]  ;;  %363 = vst [vmem:[%s12942_s28 + $0x5d0] sm:$0xff] %v362_v29 }
  0x70   : >> { %v366_v31 = vld [vmem:[%s12946_s29 + $0xbe0] sm:$0xff]  ;;  %365 = vst [vmem:[%s12942_s28 + $0x5e0] sm:$0xff] %v364_v30 }
  0x71   : >> { %v368_v32 = vld [vmem:[%s12946_s29 + $0xc00] sm:$0xff]  ;;  %367 = vst [vmem:[%s12942_s28 + $0x5f0] sm:$0xff] %v366_v31 }
  0x72   : >> { %v370_v33 = vld [vmem:[%s12946_s29 + $0xc20] sm:$0xff]  ;;  %369 = vst [vmem:[%s12942_s28 + $0x600] sm:$0xff] %v368_v32 }
  0x73   : >> { %v372_v34 = vld [vmem:[%s12946_s29 + $0xc40] sm:$0xff]  ;;  %371 = vst [vmem:[%s12942_s28 + $0x610] sm:$0xff] %v370_v33 }
  0x74   : >> { %v374_v35 = vld [vmem:[%s12946_s29 + $0xc60] sm:$0xff]  ;;  %373 = vst [vmem:[%s12942_s28 + $0x620] sm:$0xff] %v372_v34 }
  0x75   : >> { %v376_v36 = vld [vmem:[%s12946_s29 + $0xc80] sm:$0xff]  ;;  %375 = vst [vmem:[%s12942_s28 + $0x630] sm:$0xff] %v374_v35 }
  0x76   : >> { %v378_v37 = vld [vmem:[%s12946_s29 + $0xca0] sm:$0xff]  ;;  %377 = vst [vmem:[%s12942_s28 + $0x640] sm:$0xff] %v376_v36 }
  0x77   : >> { %v380_v38 = vld [vmem:[%s12946_s29 + $0xcc0] sm:$0xff]  ;;  %379 = vst [vmem:[%s12942_s28 + $0x650] sm:$0xff] %v378_v37 }
  0x78   : >> { %v382_v39 = vld [vmem:[%s12946_s29 + $0xce0] sm:$0xff]  ;;  %381 = vst [vmem:[%s12942_s28 + $0x660] sm:$0xff] %v380_v38 }
  0x79   : >> { %v384_v40 = vld [vmem:[%s12946_s29 + $0xd00] sm:$0xff]  ;;  %383 = vst [vmem:[%s12942_s28 + $0x670] sm:$0xff] %v382_v39 }
  0x7a   : >> { %v386_v41 = vld [vmem:[%s12946_s29 + $0xd20] sm:$0xff]  ;;  %385 = vst [vmem:[%s12942_s28 + $0x680] sm:$0xff] %v384_v40 }
  0x7b   : >> { %v388_v42 = vld [vmem:[%s12946_s29 + $0xd40] sm:$0xff]  ;;  %387 = vst [vmem:[%s12942_s28 + $0x690] sm:$0xff] %v386_v41 }
  0x7c   : >> { %v390_v43 = vld [vmem:[%s12946_s29 + $0xd60] sm:$0xff]  ;;  %389 = vst [vmem:[%s12942_s28 + $0x6a0] sm:$0xff] %v388_v42 }
  0x7d   : >> { %v392_v44 = vld [vmem:[%s12946_s29 + $0xd80] sm:$0xff]  ;;  %391 = vst [vmem:[%s12942_s28 + $0x6b0] sm:$0xff] %v390_v43 }
  0x7e   : >> { %v394_v45 = vld [vmem:[%s12946_s29 + $0xda0] sm:$0xff]  ;;  %393 = vst [vmem:[%s12942_s28 + $0x6c0] sm:$0xff] %v392_v44 }
  0x7f   : >> { %v396_v46 = vld [vmem:[%s12946_s29 + $0xdc0] sm:$0xff]  ;;  %395 = vst [vmem:[%s12942_s28 + $0x6d0] sm:$0xff] %v394_v45 }
  0x80   : >> { %v398_v47 = vld [vmem:[%s12946_s29 + $0xde0] sm:$0xff]  ;;  %397 = vst [vmem:[%s12942_s28 + $0x6e0] sm:$0xff] %v396_v46 }
  0x81   : >> { %v400_v48 = vld [vmem:[%s12946_s29 + $0xe00] sm:$0xff]  ;;  %399 = vst [vmem:[%s12942_s28 + $0x6f0] sm:$0xff] %v398_v47 }
  0x82   : >> { %v402_v49 = vld [vmem:[%s12946_s29 + $0xe20] sm:$0xff]  ;;  %401 = vst [vmem:[%s12942_s28 + $0x700] sm:$0xff] %v400_v48 }
  0x83   : >> { %v404_v50 = vld [vmem:[%s12946_s29 + $0xe40] sm:$0xff]  ;;  %403 = vst [vmem:[%s12942_s28 + $0x710] sm:$0xff] %v402_v49 }
  0x84   : >> { %v406_v51 = vld [vmem:[%s12946_s29 + $0xe60] sm:$0xff]  ;;  %405 = vst [vmem:[%s12942_s28 + $0x720] sm:$0xff] %v404_v50 }
  0x85   : >> { %v408_v52 = vld [vmem:[%s12946_s29 + $0xe80] sm:$0xff]  ;;  %407 = vst [vmem:[%s12942_s28 + $0x730] sm:$0xff] %v406_v51 }
  0x86   : >> { %v410_v53 = vld [vmem:[%s12946_s29 + $0xea0] sm:$0xff]  ;;  %409 = vst [vmem:[%s12942_s28 + $0x740] sm:$0xff] %v408_v52 }
  0x87   : >> { %v412_v54 = vld [vmem:[%s12946_s29 + $0xec0] sm:$0xff]  ;;  %411 = vst [vmem:[%s12942_s28 + $0x750] sm:$0xff] %v410_v53 }
  0x88   : >> { %v414_v55 = vld [vmem:[%s12946_s29 + $0xee0] sm:$0xff]  ;;  %413 = vst [vmem:[%s12942_s28 + $0x760] sm:$0xff] %v412_v54 }
  0x89   : >> { %v416_v56 = vld [vmem:[%s12946_s29 + $0xf00] sm:$0xff]  ;;  %415 = vst [vmem:[%s12942_s28 + $0x770] sm:$0xff] %v414_v55 }
  0x8a   : >> { %v418_v57 = vld [vmem:[%s12946_s29 + $0xf20] sm:$0xff]  ;;  %417 = vst [vmem:[%s12942_s28 + $0x780] sm:$0xff] %v416_v56 }
  0x8b   : >> { %v420_v58 = vld [vmem:[%s12946_s29 + $0xf40] sm:$0xff]  ;;  %419 = vst [vmem:[%s12942_s28 + $0x790] sm:$0xff] %v418_v57 }
  0x8c   : >> { %v422_v59 = vld [vmem:[%s12946_s29 + $0xf60] sm:$0xff]  ;;  %421 = vst [vmem:[%s12942_s28 + $0x7a0] sm:$0xff] %v420_v58 }
  0x8d   : >> { %v424_v60 = vld [vmem:[%s12946_s29 + $0xf80] sm:$0xff]  ;;  %423 = vst [vmem:[%s12942_s28 + $0x7b0] sm:$0xff] %v422_v59 }
  0x8e   : >> { %v426_v61 = vld [vmem:[%s12946_s29 + $0xfa0] sm:$0xff]  ;;  %425 = vst [vmem:[%s12942_s28 + $0x7c0] sm:$0xff] %v424_v60 }
  0x8f   : >> { %v428_v62 = vld [vmem:[%s12946_s29 + $0xfc0] sm:$0xff]  ;;  %427 = vst [vmem:[%s12942_s28 + $0x7d0] sm:$0xff] %v426_v61 }
  0x90   : >> { %v430_v63 = vld [vmem:[%s12946_s29 + $0xfe0] sm:$0xff]  ;;  %429 = vst [vmem:[%s12942_s28 + $0x7e0] sm:$0xff] %v428_v62 }
  0x91   : >> { %v432_v0 = vld [vmem:[%s12946_s29 + $0x1000] sm:$0xff]  ;;  %431 = vst [vmem:[%s12942_s28 + $0x7f0] sm:$0xff] %v430_v63 }
  0x92   : >> { %v434_v1 = vld [vmem:[%s12946_s29 + $0x1020] sm:$0xff]  ;;  %433 = vst [vmem:[%s12942_s28 + $0x800] sm:$0xff] %v432_v0 }
  0x93   : >> { %v436_v2 = vld [vmem:[%s12946_s29 + $0x1040] sm:$0xff]  ;;  %435 = vst [vmem:[%s12942_s28 + $0x810] sm:$0xff] %v434_v1 }
  0x94   : >> { %v438_v3 = vld [vmem:[%s12946_s29 + $0x1060] sm:$0xff]  ;;  %437 = vst [vmem:[%s12942_s28 + $0x820] sm:$0xff] %v436_v2 }
  0x95   : >> { %v440_v4 = vld [vmem:[%s12946_s29 + $0x1080] sm:$0xff]  ;;  %439 = vst [vmem:[%s12942_s28 + $0x830] sm:$0xff] %v438_v3 }
  0x96   : >> { %v442_v5 = vld [vmem:[%s12946_s29 + $0x10a0] sm:$0xff]  ;;  %441 = vst [vmem:[%s12942_s28 + $0x840] sm:$0xff] %v440_v4 }
  0x97   : >> { %v444_v6 = vld [vmem:[%s12946_s29 + $0x10c0] sm:$0xff]  ;;  %443 = vst [vmem:[%s12942_s28 + $0x850] sm:$0xff] %v442_v5 }
  0x98   : >> { %v446_v7 = vld [vmem:[%s12946_s29 + $0x10e0] sm:$0xff]  ;;  %445 = vst [vmem:[%s12942_s28 + $0x860] sm:$0xff] %v444_v6 }
  0x99   : >> { %v448_v8 = vld [vmem:[%s12946_s29 + $0x1100] sm:$0xff]  ;;  %447 = vst [vmem:[%s12942_s28 + $0x870] sm:$0xff] %v446_v7 }
  0x9a   : >> { %v450_v9 = vld [vmem:[%s12946_s29 + $0x1120] sm:$0xff]  ;;  %449 = vst [vmem:[%s12942_s28 + $0x880] sm:$0xff] %v448_v8 }
  0x9b   : >> { %v452_v10 = vld [vmem:[%s12946_s29 + $0x1140] sm:$0xff]  ;;  %451 = vst [vmem:[%s12942_s28 + $0x890] sm:$0xff] %v450_v9 }
  0x9c   : >> { %v454_v11 = vld [vmem:[%s12946_s29 + $0x1160] sm:$0xff]  ;;  %453 = vst [vmem:[%s12942_s28 + $0x8a0] sm:$0xff] %v452_v10 }
  0x9d   : >> { %v456_v12 = vld [vmem:[%s12946_s29 + $0x1180] sm:$0xff]  ;;  %455 = vst [vmem:[%s12942_s28 + $0x8b0] sm:$0xff] %v454_v11 }
  0x9e   : >> { %v458_v13 = vld [vmem:[%s12946_s29 + $0x11a0] sm:$0xff]  ;;  %457 = vst [vmem:[%s12942_s28 + $0x8c0] sm:$0xff] %v456_v12 }
  0x9f   : >> { %v460_v14 = vld [vmem:[%s12946_s29 + $0x11c0] sm:$0xff]  ;;  %459 = vst [vmem:[%s12942_s28 + $0x8d0] sm:$0xff] %v458_v13 }
  0xa0   : >> { %v462_v15 = vld [vmem:[%s12946_s29 + $0x11e0] sm:$0xff]  ;;  %461 = vst [vmem:[%s12942_s28 + $0x8e0] sm:$0xff] %v460_v14 }
  0xa1   : >> { %v464_v16 = vld [vmem:[%s12946_s29 + $0x1200] sm:$0xff]  ;;  %463 = vst [vmem:[%s12942_s28 + $0x8f0] sm:$0xff] %v462_v15 }
  0xa2   : >> { %v466_v17 = vld [vmem:[%s12946_s29 + $0x1220] sm:$0xff]  ;;  %465 = vst [vmem:[%s12942_s28 + $0x900] sm:$0xff] %v464_v16 }
  0xa3   : >> { %v468_v18 = vld [vmem:[%s12946_s29 + $0x1240] sm:$0xff]  ;;  %467 = vst [vmem:[%s12942_s28 + $0x910] sm:$0xff] %v466_v17 }
  0xa4   : >> { %v470_v19 = vld [vmem:[%s12946_s29 + $0x1260] sm:$0xff]  ;;  %469 = vst [vmem:[%s12942_s28 + $0x920] sm:$0xff] %v468_v18 }
  0xa5   : >> { %v472_v20 = vld [vmem:[%s12946_s29 + $0x1280] sm:$0xff]  ;;  %471 = vst [vmem:[%s12942_s28 + $0x930] sm:$0xff] %v470_v19 }
  0xa6   : >> { %v474_v21 = vld [vmem:[%s12946_s29 + $0x12a0] sm:$0xff]  ;;  %473 = vst [vmem:[%s12942_s28 + $0x940] sm:$0xff] %v472_v20 }
  0xa7   : >> { %v476_v22 = vld [vmem:[%s12946_s29 + $0x12c0] sm:$0xff]  ;;  %475 = vst [vmem:[%s12942_s28 + $0x950] sm:$0xff] %v474_v21 }
  0xa8   : >> { %v478_v23 = vld [vmem:[%s12946_s29 + $0x12e0] sm:$0xff]  ;;  %477 = vst [vmem:[%s12942_s28 + $0x960] sm:$0xff] %v476_v22 }
  0xa9   : >> { %v480_v24 = vld [vmem:[%s12946_s29 + $0x1300] sm:$0xff]  ;;  %479 = vst [vmem:[%s12942_s28 + $0x970] sm:$0xff] %v478_v23 }
  0xaa   : >> { %v482_v25 = vld [vmem:[%s12946_s29 + $0x1320] sm:$0xff]  ;;  %481 = vst [vmem:[%s12942_s28 + $0x980] sm:$0xff] %v480_v24 }
  0xab   : >> { %v484_v26 = vld [vmem:[%s12946_s29 + $0x1340] sm:$0xff]  ;;  %483 = vst [vmem:[%s12942_s28 + $0x990] sm:$0xff] %v482_v25 }
  0xac   : >> { %v486_v27 = vld [vmem:[%s12946_s29 + $0x1360] sm:$0xff]  ;;  %485 = vst [vmem:[%s12942_s28 + $0x9a0] sm:$0xff] %v484_v26 }
  0xad   : >> { %v488_v28 = vld [vmem:[%s12946_s29 + $0x1380] sm:$0xff]  ;;  %487 = vst [vmem:[%s12942_s28 + $0x9b0] sm:$0xff] %v486_v27 }
  0xae   : >> { %v490_v29 = vld [vmem:[%s12946_s29 + $0x13a0] sm:$0xff]  ;;  %489 = vst [vmem:[%s12942_s28 + $0x9c0] sm:$0xff] %v488_v28 }
  0xaf   : >> { %v492_v30 = vld [vmem:[%s12946_s29 + $0x13c0] sm:$0xff]  ;;  %491 = vst [vmem:[%s12942_s28 + $0x9d0] sm:$0xff] %v490_v29 }
  0xb0   : >> { %v494_v31 = vld [vmem:[%s12946_s29 + $0x13e0] sm:$0xff]  ;;  %493 = vst [vmem:[%s12942_s28 + $0x9e0] sm:$0xff] %v492_v30 }
  0xb1   : >> { %v496_v32 = vld [vmem:[%s12946_s29 + $0x1400] sm:$0xff]  ;;  %495 = vst [vmem:[%s12942_s28 + $0x9f0] sm:$0xff] %v494_v31 }
  0xb2   : >> { %v498_v33 = vld [vmem:[%s12946_s29 + $0x1420] sm:$0xff]  ;;  %497 = vst [vmem:[%s12942_s28 + $0xa00] sm:$0xff] %v496_v32 }
  0xb3   : >> { %v500_v34 = vld [vmem:[%s12946_s29 + $0x1440] sm:$0xff]  ;;  %499 = vst [vmem:[%s12942_s28 + $0xa10] sm:$0xff] %v498_v33 }
  0xb4   : >> { %v502_v35 = vld [vmem:[%s12946_s29 + $0x1460] sm:$0xff]  ;;  %501 = vst [vmem:[%s12942_s28 + $0xa20] sm:$0xff] %v500_v34 }
  0xb5   : >> { %v504_v36 = vld [vmem:[%s12946_s29 + $0x1480] sm:$0xff]  ;;  %503 = vst [vmem:[%s12942_s28 + $0xa30] sm:$0xff] %v502_v35 }
  0xb6   : >> { %v506_v37 = vld [vmem:[%s12946_s29 + $0x14a0] sm:$0xff]  ;;  %505 = vst [vmem:[%s12942_s28 + $0xa40] sm:$0xff] %v504_v36 }
  0xb7   : >> { %v508_v38 = vld [vmem:[%s12946_s29 + $0x14c0] sm:$0xff]  ;;  %507 = vst [vmem:[%s12942_s28 + $0xa50] sm:$0xff] %v506_v37 }
  0xb8   : >> { %v510_v39 = vld [vmem:[%s12946_s29 + $0x14e0] sm:$0xff]  ;;  %509 = vst [vmem:[%s12942_s28 + $0xa60] sm:$0xff] %v508_v38 }
  0xb9   : >> { %v512_v40 = vld [vmem:[%s12946_s29 + $0x1500] sm:$0xff]  ;;  %511 = vst [vmem:[%s12942_s28 + $0xa70] sm:$0xff] %v510_v39 }
  0xba   : >> { %v514_v41 = vld [vmem:[%s12946_s29 + $0x1520] sm:$0xff]  ;;  %513 = vst [vmem:[%s12942_s28 + $0xa80] sm:$0xff] %v512_v40 }
  0xbb   : >> { %v516_v42 = vld [vmem:[%s12946_s29 + $0x1540] sm:$0xff]  ;;  %515 = vst [vmem:[%s12942_s28 + $0xa90] sm:$0xff] %v514_v41 }
  0xbc   : >> { %v518_v43 = vld [vmem:[%s12946_s29 + $0x1560] sm:$0xff]  ;;  %517 = vst [vmem:[%s12942_s28 + $0xaa0] sm:$0xff] %v516_v42 }
  0xbd   : >> { %v520_v44 = vld [vmem:[%s12946_s29 + $0x1580] sm:$0xff]  ;;  %519 = vst [vmem:[%s12942_s28 + $0xab0] sm:$0xff] %v518_v43 }
  0xbe   : >> { %v522_v45 = vld [vmem:[%s12946_s29 + $0x15a0] sm:$0xff]  ;;  %521 = vst [vmem:[%s12942_s28 + $0xac0] sm:$0xff] %v520_v44 }
  0xbf   : >> { %v524_v46 = vld [vmem:[%s12946_s29 + $0x15c0] sm:$0xff]  ;;  %523 = vst [vmem:[%s12942_s28 + $0xad0] sm:$0xff] %v522_v45 }
  0xc0   : >> { %v526_v47 = vld [vmem:[%s12946_s29 + $0x15e0] sm:$0xff]  ;;  %525 = vst [vmem:[%s12942_s28 + $0xae0] sm:$0xff] %v524_v46 }
  0xc1   : >> { %v528_v48 = vld [vmem:[%s12946_s29 + $0x1600] sm:$0xff]  ;;  %527 = vst [vmem:[%s12942_s28 + $0xaf0] sm:$0xff] %v526_v47 }
  0xc2   : >> { %v530_v49 = vld [vmem:[%s12946_s29 + $0x1620] sm:$0xff]  ;;  %529 = vst [vmem:[%s12942_s28 + $0xb00] sm:$0xff] %v528_v48 }
  0xc3   : >> { %v532_v50 = vld [vmem:[%s12946_s29 + $0x1640] sm:$0xff]  ;;  %531 = vst [vmem:[%s12942_s28 + $0xb10] sm:$0xff] %v530_v49 }
  0xc4   : >> { %v534_v51 = vld [vmem:[%s12946_s29 + $0x1660] sm:$0xff]  ;;  %533 = vst [vmem:[%s12942_s28 + $0xb20] sm:$0xff] %v532_v50 }
  0xc5   : >> { %v536_v52 = vld [vmem:[%s12946_s29 + $0x1680] sm:$0xff]  ;;  %535 = vst [vmem:[%s12942_s28 + $0xb30] sm:$0xff] %v534_v51 }
  0xc6   : >> { %v538_v53 = vld [vmem:[%s12946_s29 + $0x16a0] sm:$0xff]  ;;  %537 = vst [vmem:[%s12942_s28 + $0xb40] sm:$0xff] %v536_v52 }
  0xc7   : >> { %v540_v54 = vld [vmem:[%s12946_s29 + $0x16c0] sm:$0xff]  ;;  %539 = vst [vmem:[%s12942_s28 + $0xb50] sm:$0xff] %v538_v53 }
  0xc8   : >> { %v542_v55 = vld [vmem:[%s12946_s29 + $0x16e0] sm:$0xff]  ;;  %541 = vst [vmem:[%s12942_s28 + $0xb60] sm:$0xff] %v540_v54 }
  0xc9   : >> { %v544_v56 = vld [vmem:[%s12946_s29 + $0x1700] sm:$0xff]  ;;  %543 = vst [vmem:[%s12942_s28 + $0xb70] sm:$0xff] %v542_v55 }
  0xca   : >> { %v546_v57 = vld [vmem:[%s12946_s29 + $0x1720] sm:$0xff]  ;;  %545 = vst [vmem:[%s12942_s28 + $0xb80] sm:$0xff] %v544_v56 }
  0xcb   : >> { %v548_v58 = vld [vmem:[%s12946_s29 + $0x1740] sm:$0xff]  ;;  %547 = vst [vmem:[%s12942_s28 + $0xb90] sm:$0xff] %v546_v57 }
  0xcc   : >> { %v550_v59 = vld [vmem:[%s12946_s29 + $0x1760] sm:$0xff]  ;;  %549 = vst [vmem:[%s12942_s28 + $0xba0] sm:$0xff] %v548_v58 }
  0xcd   : >> { %v552_v60 = vld [vmem:[%s12946_s29 + $0x1780] sm:$0xff]  ;;  %551 = vst [vmem:[%s12942_s28 + $0xbb0] sm:$0xff] %v550_v59 }
  0xce   : >> { %v554_v61 = vld [vmem:[%s12946_s29 + $0x17a0] sm:$0xff]  ;;  %553 = vst [vmem:[%s12942_s28 + $0xbc0] sm:$0xff] %v552_v60 }
  0xcf   : >> { %v556_v62 = vld [vmem:[%s12946_s29 + $0x17c0] sm:$0xff]  ;;  %555 = vst [vmem:[%s12942_s28 + $0xbd0] sm:$0xff] %v554_v61 }
  0xd0   : >> { %v558_v63 = vld [vmem:[%s12946_s29 + $0x17e0] sm:$0xff]  ;;  %557 = vst [vmem:[%s12942_s28 + $0xbe0] sm:$0xff] %v556_v62 }
  0xd1   : >> { %v560_v0 = vld [vmem:[%s12946_s29 + $0x1800] sm:$0xff]  ;;  %559 = vst [vmem:[%s12942_s28 + $0xbf0] sm:$0xff] %v558_v63 }
  0xd2   : >> { %v562_v1 = vld [vmem:[%s12946_s29 + $0x1820] sm:$0xff]  ;;  %561 = vst [vmem:[%s12942_s28 + $0xc00] sm:$0xff] %v560_v0 }
  0xd3   : >> { %v564_v2 = vld [vmem:[%s12946_s29 + $0x1840] sm:$0xff]  ;;  %563 = vst [vmem:[%s12942_s28 + $0xc10] sm:$0xff] %v562_v1 }
  0xd4   : >> { %v566_v3 = vld [vmem:[%s12946_s29 + $0x1860] sm:$0xff]  ;;  %565 = vst [vmem:[%s12942_s28 + $0xc20] sm:$0xff] %v564_v2 }
  0xd5   : >> { %v568_v4 = vld [vmem:[%s12946_s29 + $0x1880] sm:$0xff]  ;;  %567 = vst [vmem:[%s12942_s28 + $0xc30] sm:$0xff] %v566_v3 }
  0xd6   : >> { %v570_v5 = vld [vmem:[%s12946_s29 + $0x18a0] sm:$0xff]  ;;  %569 = vst [vmem:[%s12942_s28 + $0xc40] sm:$0xff] %v568_v4 }
  0xd7   : >> { %v572_v6 = vld [vmem:[%s12946_s29 + $0x18c0] sm:$0xff]  ;;  %571 = vst [vmem:[%s12942_s28 + $0xc50] sm:$0xff] %v570_v5 }
  0xd8   : >> { %v574_v7 = vld [vmem:[%s12946_s29 + $0x18e0] sm:$0xff]  ;;  %573 = vst [vmem:[%s12942_s28 + $0xc60] sm:$0xff] %v572_v6 }
  0xd9   : >> { %v576_v8 = vld [vmem:[%s12946_s29 + $0x1900] sm:$0xff]  ;;  %575 = vst [vmem:[%s12942_s28 + $0xc70] sm:$0xff] %v574_v7 }
  0xda   : >> { %v578_v9 = vld [vmem:[%s12946_s29 + $0x1920] sm:$0xff]  ;;  %577 = vst [vmem:[%s12942_s28 + $0xc80] sm:$0xff] %v576_v8 }
  0xdb   : >> { %v580_v10 = vld [vmem:[%s12946_s29 + $0x1940] sm:$0xff]  ;;  %579 = vst [vmem:[%s12942_s28 + $0xc90] sm:$0xff] %v578_v9 }
  0xdc   : >> { %v582_v11 = vld [vmem:[%s12946_s29 + $0x1960] sm:$0xff]  ;;  %581 = vst [vmem:[%s12942_s28 + $0xca0] sm:$0xff] %v580_v10 }
  0xdd   : >> { %v584_v12 = vld [vmem:[%s12946_s29 + $0x1980] sm:$0xff]  ;;  %583 = vst [vmem:[%s12942_s28 + $0xcb0] sm:$0xff] %v582_v11 }
  0xde   : >> { %v586_v13 = vld [vmem:[%s12946_s29 + $0x19a0] sm:$0xff]  ;;  %585 = vst [vmem:[%s12942_s28 + $0xcc0] sm:$0xff] %v584_v12 }
  0xdf   : >> { %v588_v14 = vld [vmem:[%s12946_s29 + $0x19c0] sm:$0xff]  ;;  %587 = vst [vmem:[%s12942_s28 + $0xcd0] sm:$0xff] %v586_v13 }
  0xe0   : >> { %v590_v15 = vld [vmem:[%s12946_s29 + $0x19e0] sm:$0xff]  ;;  %589 = vst [vmem:[%s12942_s28 + $0xce0] sm:$0xff] %v588_v14 }
  0xe1   : >> { %v592_v16 = vld [vmem:[%s12946_s29 + $0x1a00] sm:$0xff]  ;;  %591 = vst [vmem:[%s12942_s28 + $0xcf0] sm:$0xff] %v590_v15 }
  0xe2   : >> { %v594_v17 = vld [vmem:[%s12946_s29 + $0x1a20] sm:$0xff]  ;;  %593 = vst [vmem:[%s12942_s28 + $0xd00] sm:$0xff] %v592_v16 }
  0xe3   : >> { %v596_v18 = vld [vmem:[%s12946_s29 + $0x1a40] sm:$0xff]  ;;  %595 = vst [vmem:[%s12942_s28 + $0xd10] sm:$0xff] %v594_v17 }
  0xe4   : >> { %v598_v19 = vld [vmem:[%s12946_s29 + $0x1a60] sm:$0xff]  ;;  %597 = vst [vmem:[%s12942_s28 + $0xd20] sm:$0xff] %v596_v18 }
  0xe5   : >> { %v600_v20 = vld [vmem:[%s12946_s29 + $0x1a80] sm:$0xff]  ;;  %599 = vst [vmem:[%s12942_s28 + $0xd30] sm:$0xff] %v598_v19 }
  0xe6   : >> { %v602_v21 = vld [vmem:[%s12946_s29 + $0x1aa0] sm:$0xff]  ;;  %601 = vst [vmem:[%s12942_s28 + $0xd40] sm:$0xff] %v600_v20 }
  0xe7   : >> { %v604_v22 = vld [vmem:[%s12946_s29 + $0x1ac0] sm:$0xff]  ;;  %603 = vst [vmem:[%s12942_s28 + $0xd50] sm:$0xff] %v602_v21 }
  0xe8   : >> { %v606_v23 = vld [vmem:[%s12946_s29 + $0x1ae0] sm:$0xff]  ;;  %605 = vst [vmem:[%s12942_s28 + $0xd60] sm:$0xff] %v604_v22 }
  0xe9   : >> { %v608_v24 = vld [vmem:[%s12946_s29 + $0x1b00] sm:$0xff]  ;;  %607 = vst [vmem:[%s12942_s28 + $0xd70] sm:$0xff] %v606_v23 }
  0xea   : >> { %v610_v25 = vld [vmem:[%s12946_s29 + $0x1b20] sm:$0xff]  ;;  %609 = vst [vmem:[%s12942_s28 + $0xd80] sm:$0xff] %v608_v24 }
  0xeb   : >> { %v612_v26 = vld [vmem:[%s12946_s29 + $0x1b40] sm:$0xff]  ;;  %611 = vst [vmem:[%s12942_s28 + $0xd90] sm:$0xff] %v610_v25 }
  0xec   : >> { %v614_v27 = vld [vmem:[%s12946_s29 + $0x1b60] sm:$0xff]  ;;  %613 = vst [vmem:[%s12942_s28 + $0xda0] sm:$0xff] %v612_v26 }
  0xed   : >> { %v616_v28 = vld [vmem:[%s12946_s29 + $0x1b80] sm:$0xff]  ;;  %615 = vst [vmem:[%s12942_s28 + $0xdb0] sm:$0xff] %v614_v27 }
  0xee   : >> { %v618_v29 = vld [vmem:[%s12946_s29 + $0x1ba0] sm:$0xff]  ;;  %617 = vst [vmem:[%s12942_s28 + $0xdc0] sm:$0xff] %v616_v28 }
  0xef   : >> { %v620_v30 = vld [vmem:[%s12946_s29 + $0x1bc0] sm:$0xff]  ;;  %619 = vst [vmem:[%s12942_s28 + $0xdd0] sm:$0xff] %v618_v29 }
  0xf0   : >> { %v622_v31 = vld [vmem:[%s12946_s29 + $0x1be0] sm:$0xff]  ;;  %621 = vst [vmem:[%s12942_s28 + $0xde0] sm:$0xff] %v620_v30 }
  0xf1   : >> { %v624_v32 = vld [vmem:[%s12946_s29 + $0x1c00] sm:$0xff]  ;;  %623 = vst [vmem:[%s12942_s28 + $0xdf0] sm:$0xff] %v622_v31 }
  0xf2   : >> { %v626_v33 = vld [vmem:[%s12946_s29 + $0x1c20] sm:$0xff]  ;;  %625 = vst [vmem:[%s12942_s28 + $0xe00] sm:$0xff] %v624_v32 }
  0xf3   : >> { %v628_v34 = vld [vmem:[%s12946_s29 + $0x1c40] sm:$0xff]  ;;  %627 = vst [vmem:[%s12942_s28 + $0xe10] sm:$0xff] %v626_v33 }
  0xf4   : >> { %v630_v35 = vld [vmem:[%s12946_s29 + $0x1c60] sm:$0xff]  ;;  %629 = vst [vmem:[%s12942_s28 + $0xe20] sm:$0xff] %v628_v34 }
  0xf5   : >> { %v632_v36 = vld [vmem:[%s12946_s29 + $0x1c80] sm:$0xff]  ;;  %631 = vst [vmem:[%s12942_s28 + $0xe30] sm:$0xff] %v630_v35 }
  0xf6   : >> { %v634_v37 = vld [vmem:[%s12946_s29 + $0x1ca0] sm:$0xff]  ;;  %633 = vst [vmem:[%s12942_s28 + $0xe40] sm:$0xff] %v632_v36 }
  0xf7   : >> { %v636_v38 = vld [vmem:[%s12946_s29 + $0x1cc0] sm:$0xff]  ;;  %635 = vst [vmem:[%s12942_s28 + $0xe50] sm:$0xff] %v634_v37 }
  0xf8   : >> { %v638_v39 = vld [vmem:[%s12946_s29 + $0x1ce0] sm:$0xff]  ;;  %637 = vst [vmem:[%s12942_s28 + $0xe60] sm:$0xff] %v636_v38 }
  0xf9   : >> { %v640_v40 = vld [vmem:[%s12946_s29 + $0x1d00] sm:$0xff]  ;;  %639 = vst [vmem:[%s12942_s28 + $0xe70] sm:$0xff] %v638_v39 }
  0xfa   : >> { %v642_v41 = vld [vmem:[%s12946_s29 + $0x1d20] sm:$0xff]  ;;  %641 = vst [vmem:[%s12942_s28 + $0xe80] sm:$0xff] %v640_v40 }
  0xfb   : >> { %v644_v42 = vld [vmem:[%s12946_s29 + $0x1d40] sm:$0xff]  ;;  %643 = vst [vmem:[%s12942_s28 + $0xe90] sm:$0xff] %v642_v41 }
  0xfc   : >> { %v646_v43 = vld [vmem:[%s12946_s29 + $0x1d60] sm:$0xff]  ;;  %645 = vst [vmem:[%s12942_s28 + $0xea0] sm:$0xff] %v644_v42 }
  0xfd   : >> { %v648_v44 = vld [vmem:[%s12946_s29 + $0x1d80] sm:$0xff]  ;;  %647 = vst [vmem:[%s12942_s28 + $0xeb0] sm:$0xff] %v646_v43 }
  0xfe   : >> { %v650_v45 = vld [vmem:[%s12946_s29 + $0x1da0] sm:$0xff]  ;;  %649 = vst [vmem:[%s12942_s28 + $0xec0] sm:$0xff] %v648_v44 }
  0xff   : >> { %v652_v46 = vld [vmem:[%s12946_s29 + $0x1dc0] sm:$0xff]  ;;  %651 = vst [vmem:[%s12942_s28 + $0xed0] sm:$0xff] %v650_v45 }
 0x100   : >> { %v654_v47 = vld [vmem:[%s12946_s29 + $0x1de0] sm:$0xff]  ;;  %653 = vst [vmem:[%s12942_s28 + $0xee0] sm:$0xff] %v652_v46 }
 0x101   : >> { %v656_v48 = vld [vmem:[%s12946_s29 + $0x1e00] sm:$0xff]  ;;  %655 = vst [vmem:[%s12942_s28 + $0xef0] sm:$0xff] %v654_v47 }
 0x102   : >> { %v658_v49 = vld [vmem:[%s12946_s29 + $0x1e20] sm:$0xff]  ;;  %657 = vst [vmem:[%s12942_s28 + $0xf00] sm:$0xff] %v656_v48 }
 0x103   : >> { %v660_v50 = vld [vmem:[%s12946_s29 + $0x1e40] sm:$0xff]  ;;  %659 = vst [vmem:[%s12942_s28 + $0xf10] sm:$0xff] %v658_v49 }
 0x104   : >> { %v662_v51 = vld [vmem:[%s12946_s29 + $0x1e60] sm:$0xff]  ;;  %661 = vst [vmem:[%s12942_s28 + $0xf20] sm:$0xff] %v660_v50 }
 0x105   : >> { %v664_v52 = vld [vmem:[%s12946_s29 + $0x1e80] sm:$0xff]  ;;  %663 = vst [vmem:[%s12942_s28 + $0xf30] sm:$0xff] %v662_v51 }
 0x106   : >> { %v666_v53 = vld [vmem:[%s12946_s29 + $0x1ea0] sm:$0xff]  ;;  %665 = vst [vmem:[%s12942_s28 + $0xf40] sm:$0xff] %v664_v52 }
 0x107   : >> { %v668_v54 = vld [vmem:[%s12946_s29 + $0x1ec0] sm:$0xff]  ;;  %667 = vst [vmem:[%s12942_s28 + $0xf50] sm:$0xff] %v666_v53 }
 0x108   : >> { %v670_v55 = vld [vmem:[%s12946_s29 + $0x1ee0] sm:$0xff]  ;;  %669 = vst [vmem:[%s12942_s28 + $0xf60] sm:$0xff] %v668_v54 }
 0x109   : >> { %v672_v56 = vld [vmem:[%s12946_s29 + $0x1f00] sm:$0xff]  ;;  %671 = vst [vmem:[%s12942_s28 + $0xf70] sm:$0xff] %v670_v55 }
 0x10a   : >> { %v674_v57 = vld [vmem:[%s12946_s29 + $0x1f20] sm:$0xff]  ;;  %673 = vst [vmem:[%s12942_s28 + $0xf80] sm:$0xff] %v672_v56 }
 0x10b   : >> { %v676_v58 = vld [vmem:[%s12946_s29 + $0x1f40] sm:$0xff]  ;;  %675 = vst [vmem:[%s12942_s28 + $0xf90] sm:$0xff] %v674_v57 }
 0x10c   : >> { %v678_v59 = vld [vmem:[%s12946_s29 + $0x1f60] sm:$0xff]  ;;  %677 = vst [vmem:[%s12942_s28 + $0xfa0] sm:$0xff] %v676_v58 }
 0x10d   : >> { %v680_v60 = vld [vmem:[%s12946_s29 + $0x1f80] sm:$0xff]  ;;  %679 = vst [vmem:[%s12942_s28 + $0xfb0] sm:$0xff] %v678_v59 }
 0x10e   : >> { %v682_v61 = vld [vmem:[%s12946_s29 + $0x1fa0] sm:$0xff]  ;;  %681 = vst [vmem:[%s12942_s28 + $0xfc0] sm:$0xff] %v680_v60 }
 0x10f   : >> { %v684_v62 = vld [vmem:[%s12946_s29 + $0x1fc0] sm:$0xff]  ;;  %683 = vst [vmem:[%s12942_s28 + $0xfd0] sm:$0xff] %v682_v61 }
 0x110   : >> { %v686_v63 = vld [vmem:[%s12946_s29 + $0x1fe0] sm:$0xff]  ;;  %685 = vst [vmem:[%s12942_s28 + $0xfe0] sm:$0xff] %v684_v62 }
 0x111   : >> { %v688_v0 = vld [vmem:[%s12946_s29 + $0x2000] sm:$0xff]  ;;  %687 = vst [vmem:[%s12942_s28 + $0xff0] sm:$0xff] %v686_v63 }
 0x112   : >> { %v690_v1 = vld [vmem:[%s12946_s29 + $0x2020] sm:$0xff]  ;;  %689 = vst [vmem:[%s12942_s28 + $0x1000] sm:$0xff] %v688_v0 }
 0x113   : >> { %v692_v2 = vld [vmem:[%s12946_s29 + $0x2040] sm:$0xff]  ;;  %691 = vst [vmem:[%s12942_s28 + $0x1010] sm:$0xff] %v690_v1 }
 0x114   : >> { %v694_v3 = vld [vmem:[%s12946_s29 + $0x2060] sm:$0xff]  ;;  %693 = vst [vmem:[%s12942_s28 + $0x1020] sm:$0xff] %v692_v2 }
 0x115   : >> { %v696_v4 = vld [vmem:[%s12946_s29 + $0x2080] sm:$0xff]  ;;  %695 = vst [vmem:[%s12942_s28 + $0x1030] sm:$0xff] %v694_v3 }
 0x116   : >> { %v698_v5 = vld [vmem:[%s12946_s29 + $0x20a0] sm:$0xff]  ;;  %697 = vst [vmem:[%s12942_s28 + $0x1040] sm:$0xff] %v696_v4 }
 0x117   : >> { %v700_v6 = vld [vmem:[%s12946_s29 + $0x20c0] sm:$0xff]  ;;  %699 = vst [vmem:[%s12942_s28 + $0x1050] sm:$0xff] %v698_v5 }
 0x118   : >> { %v702_v7 = vld [vmem:[%s12946_s29 + $0x20e0] sm:$0xff]  ;;  %701 = vst [vmem:[%s12942_s28 + $0x1060] sm:$0xff] %v700_v6 }
 0x119   : >> { %v704_v8 = vld [vmem:[%s12946_s29 + $0x2100] sm:$0xff]  ;;  %703 = vst [vmem:[%s12942_s28 + $0x1070] sm:$0xff] %v702_v7 }
 0x11a   : >> { %v706_v9 = vld [vmem:[%s12946_s29 + $0x2120] sm:$0xff]  ;;  %705 = vst [vmem:[%s12942_s28 + $0x1080] sm:$0xff] %v704_v8 }
 0x11b   : >> { %v708_v10 = vld [vmem:[%s12946_s29 + $0x2140] sm:$0xff]  ;;  %707 = vst [vmem:[%s12942_s28 + $0x1090] sm:$0xff] %v706_v9 }
 0x11c   : >> { %v710_v11 = vld [vmem:[%s12946_s29 + $0x2160] sm:$0xff]  ;;  %709 = vst [vmem:[%s12942_s28 + $0x10a0] sm:$0xff] %v708_v10 }
 0x11d   : >> { %v712_v12 = vld [vmem:[%s12946_s29 + $0x2180] sm:$0xff]  ;;  %711 = vst [vmem:[%s12942_s28 + $0x10b0] sm:$0xff] %v710_v11 }
 0x11e   : >> { %v714_v13 = vld [vmem:[%s12946_s29 + $0x21a0] sm:$0xff]  ;;  %713 = vst [vmem:[%s12942_s28 + $0x10c0] sm:$0xff] %v712_v12 }
 0x11f   : >> { %v716_v14 = vld [vmem:[%s12946_s29 + $0x21c0] sm:$0xff]  ;;  %715 = vst [vmem:[%s12942_s28 + $0x10d0] sm:$0xff] %v714_v13 }
 0x120   : >> { %v718_v15 = vld [vmem:[%s12946_s29 + $0x21e0] sm:$0xff]  ;;  %717 = vst [vmem:[%s12942_s28 + $0x10e0] sm:$0xff] %v716_v14 }
 0x121   : >> { %v720_v16 = vld [vmem:[%s12946_s29 + $0x2200] sm:$0xff]  ;;  %719 = vst [vmem:[%s12942_s28 + $0x10f0] sm:$0xff] %v718_v15 }
 0x122   : >> { %v722_v17 = vld [vmem:[%s12946_s29 + $0x2220] sm:$0xff]  ;;  %721 = vst [vmem:[%s12942_s28 + $0x1100] sm:$0xff] %v720_v16 }
 0x123   : >> { %v724_v18 = vld [vmem:[%s12946_s29 + $0x2240] sm:$0xff]  ;;  %723 = vst [vmem:[%s12942_s28 + $0x1110] sm:$0xff] %v722_v17 }
 0x124   : >> { %v726_v19 = vld [vmem:[%s12946_s29 + $0x2260] sm:$0xff]  ;;  %725 = vst [vmem:[%s12942_s28 + $0x1120] sm:$0xff] %v724_v18 }
 0x125   : >> { %v728_v20 = vld [vmem:[%s12946_s29 + $0x2280] sm:$0xff]  ;;  %727 = vst [vmem:[%s12942_s28 + $0x1130] sm:$0xff] %v726_v19 }
 0x126   : >> { %v730_v21 = vld [vmem:[%s12946_s29 + $0x22a0] sm:$0xff]  ;;  %729 = vst [vmem:[%s12942_s28 + $0x1140] sm:$0xff] %v728_v20 }
 0x127   : >> { %v732_v22 = vld [vmem:[%s12946_s29 + $0x22c0] sm:$0xff]  ;;  %731 = vst [vmem:[%s12942_s28 + $0x1150] sm:$0xff] %v730_v21 }
 0x128   : >> { %v734_v23 = vld [vmem:[%s12946_s29 + $0x22e0] sm:$0xff]  ;;  %733 = vst [vmem:[%s12942_s28 + $0x1160] sm:$0xff] %v732_v22 }
 0x129   : >> { %v736_v24 = vld [vmem:[%s12946_s29 + $0x2300] sm:$0xff]  ;;  %735 = vst [vmem:[%s12942_s28 + $0x1170] sm:$0xff] %v734_v23 }
 0x12a   : >> { %v738_v25 = vld [vmem:[%s12946_s29 + $0x2320] sm:$0xff]  ;;  %737 = vst [vmem:[%s12942_s28 + $0x1180] sm:$0xff] %v736_v24 }
 0x12b   : >> { %v740_v26 = vld [vmem:[%s12946_s29 + $0x2340] sm:$0xff]  ;;  %739 = vst [vmem:[%s12942_s28 + $0x1190] sm:$0xff] %v738_v25 }
 0x12c   : >> { %v742_v27 = vld [vmem:[%s12946_s29 + $0x2360] sm:$0xff]  ;;  %741 = vst [vmem:[%s12942_s28 + $0x11a0] sm:$0xff] %v740_v26 }
 0x12d   : >> { %v744_v28 = vld [vmem:[%s12946_s29 + $0x2380] sm:$0xff]  ;;  %743 = vst [vmem:[%s12942_s28 + $0x11b0] sm:$0xff] %v742_v27 }
 0x12e   : >> { %v746_v29 = vld [vmem:[%s12946_s29 + $0x23a0] sm:$0xff]  ;;  %745 = vst [vmem:[%s12942_s28 + $0x11c0] sm:$0xff] %v744_v28 }
 0x12f   : >> { %v748_v30 = vld [vmem:[%s12946_s29 + $0x23c0] sm:$0xff]  ;;  %747 = vst [vmem:[%s12942_s28 + $0x11d0] sm:$0xff] %v746_v29 }
 0x130   : >> { %v750_v31 = vld [vmem:[%s12946_s29 + $0x23e0] sm:$0xff]  ;;  %749 = vst [vmem:[%s12942_s28 + $0x11e0] sm:$0xff] %v748_v30 }
 0x131   : >> { %v752_v32 = vld [vmem:[%s12946_s29 + $0x2400] sm:$0xff]  ;;  %751 = vst [vmem:[%s12942_s28 + $0x11f0] sm:$0xff] %v750_v31 }
 0x132   : >> { %v754_v33 = vld [vmem:[%s12946_s29 + $0x2420] sm:$0xff]  ;;  %753 = vst [vmem:[%s12942_s28 + $0x1200] sm:$0xff] %v752_v32 }
 0x133   : >> { %v756_v34 = vld [vmem:[%s12946_s29 + $0x2440] sm:$0xff]  ;;  %755 = vst [vmem:[%s12942_s28 + $0x1210] sm:$0xff] %v754_v33 }
 0x134   : >> { %v758_v35 = vld [vmem:[%s12946_s29 + $0x2460] sm:$0xff]  ;;  %757 = vst [vmem:[%s12942_s28 + $0x1220] sm:$0xff] %v756_v34 }
 0x135   : >> { %v760_v36 = vld [vmem:[%s12946_s29 + $0x2480] sm:$0xff]  ;;  %759 = vst [vmem:[%s12942_s28 + $0x1230] sm:$0xff] %v758_v35 }
 0x136   : >> { %v762_v37 = vld [vmem:[%s12946_s29 + $0x24a0] sm:$0xff]  ;;  %761 = vst [vmem:[%s12942_s28 + $0x1240] sm:$0xff] %v760_v36 }
 0x137   : >> { %v764_v38 = vld [vmem:[%s12946_s29 + $0x24c0] sm:$0xff]  ;;  %763 = vst [vmem:[%s12942_s28 + $0x1250] sm:$0xff] %v762_v37 }
 0x138   : >> { %v766_v39 = vld [vmem:[%s12946_s29 + $0x24e0] sm:$0xff]  ;;  %765 = vst [vmem:[%s12942_s28 + $0x1260] sm:$0xff] %v764_v38 }
 0x139   : >> { %v768_v40 = vld [vmem:[%s12946_s29 + $0x2500] sm:$0xff]  ;;  %767 = vst [vmem:[%s12942_s28 + $0x1270] sm:$0xff] %v766_v39 }
 0x13a   : >> { %v770_v41 = vld [vmem:[%s12946_s29 + $0x2520] sm:$0xff]  ;;  %769 = vst [vmem:[%s12942_s28 + $0x1280] sm:$0xff] %v768_v40 }
 0x13b   : >> { %v772_v42 = vld [vmem:[%s12946_s29 + $0x2540] sm:$0xff]  ;;  %771 = vst [vmem:[%s12942_s28 + $0x1290] sm:$0xff] %v770_v41 }
 0x13c   : >> { %v774_v43 = vld [vmem:[%s12946_s29 + $0x2560] sm:$0xff]  ;;  %773 = vst [vmem:[%s12942_s28 + $0x12a0] sm:$0xff] %v772_v42 }
 0x13d   : >> { %v776_v44 = vld [vmem:[%s12946_s29 + $0x2580] sm:$0xff]  ;;  %775 = vst [vmem:[%s12942_s28 + $0x12b0] sm:$0xff] %v774_v43 }
 0x13e   : >> { %v778_v45 = vld [vmem:[%s12946_s29 + $0x25a0] sm:$0xff]  ;;  %777 = vst [vmem:[%s12942_s28 + $0x12c0] sm:$0xff] %v776_v44 }
 0x13f   : >> { %v780_v46 = vld [vmem:[%s12946_s29 + $0x25c0] sm:$0xff]  ;;  %779 = vst [vmem:[%s12942_s28 + $0x12d0] sm:$0xff] %v778_v45 }
 0x140   : >> { %v782_v47 = vld [vmem:[%s12946_s29 + $0x25e0] sm:$0xff]  ;;  %781 = vst [vmem:[%s12942_s28 + $0x12e0] sm:$0xff] %v780_v46 }
 0x141   : >> { %v784_v48 = vld [vmem:[%s12946_s29 + $0x2600] sm:$0xff]  ;;  %783 = vst [vmem:[%s12942_s28 + $0x12f0] sm:$0xff] %v782_v47 }
 0x142   : >> { %v786_v49 = vld [vmem:[%s12946_s29 + $0x2620] sm:$0xff]  ;;  %785 = vst [vmem:[%s12942_s28 + $0x1300] sm:$0xff] %v784_v48 }
 0x143   : >> { %v788_v50 = vld [vmem:[%s12946_s29 + $0x2640] sm:$0xff]  ;;  %787 = vst [vmem:[%s12942_s28 + $0x1310] sm:$0xff] %v786_v49 }
 0x144   : >> { %v790_v51 = vld [vmem:[%s12946_s29 + $0x2660] sm:$0xff]  ;;  %789 = vst [vmem:[%s12942_s28 + $0x1320] sm:$0xff] %v788_v50 }
 0x145   : >> { %v792_v52 = vld [vmem:[%s12946_s29 + $0x2680] sm:$0xff]  ;;  %791 = vst [vmem:[%s12942_s28 + $0x1330] sm:$0xff] %v790_v51 }
 0x146   : >> { %v794_v53 = vld [vmem:[%s12946_s29 + $0x26a0] sm:$0xff]  ;;  %793 = vst [vmem:[%s12942_s28 + $0x1340] sm:$0xff] %v792_v52 }
 0x147   : >> { %v796_v54 = vld [vmem:[%s12946_s29 + $0x26c0] sm:$0xff]  ;;  %795 = vst [vmem:[%s12942_s28 + $0x1350] sm:$0xff] %v794_v53 }
 0x148   : >> { %v798_v55 = vld [vmem:[%s12946_s29 + $0x26e0] sm:$0xff]  ;;  %797 = vst [vmem:[%s12942_s28 + $0x1360] sm:$0xff] %v796_v54 }
 0x149   : >> { %v800_v56 = vld [vmem:[%s12946_s29 + $0x2700] sm:$0xff]  ;;  %799 = vst [vmem:[%s12942_s28 + $0x1370] sm:$0xff] %v798_v55 }
 0x14a   : >> { %v802_v57 = vld [vmem:[%s12946_s29 + $0x2720] sm:$0xff]  ;;  %801 = vst [vmem:[%s12942_s28 + $0x1380] sm:$0xff] %v800_v56 }
 0x14b   : >> { %v804_v58 = vld [vmem:[%s12946_s29 + $0x2740] sm:$0xff]  ;;  %803 = vst [vmem:[%s12942_s28 + $0x1390] sm:$0xff] %v802_v57 }
 0x14c   : >> { %v806_v59 = vld [vmem:[%s12946_s29 + $0x2760] sm:$0xff]  ;;  %805 = vst [vmem:[%s12942_s28 + $0x13a0] sm:$0xff] %v804_v58 }
 0x14d   : >> { %v808_v60 = vld [vmem:[%s12946_s29 + $0x2780] sm:$0xff]  ;;  %807 = vst [vmem:[%s12942_s28 + $0x13b0] sm:$0xff] %v806_v59 }
 0x14e   : >> { %v810_v61 = vld [vmem:[%s12946_s29 + $0x27a0] sm:$0xff]  ;;  %809 = vst [vmem:[%s12942_s28 + $0x13c0] sm:$0xff] %v808_v60 }
 0x14f   : >> { %v812_v62 = vld [vmem:[%s12946_s29 + $0x27c0] sm:$0xff]  ;;  %811 = vst [vmem:[%s12942_s28 + $0x13d0] sm:$0xff] %v810_v61 }
 0x150   : >> { %v814_v63 = vld [vmem:[%s12946_s29 + $0x27e0] sm:$0xff]  ;;  %813 = vst [vmem:[%s12942_s28 + $0x13e0] sm:$0xff] %v812_v62 }
 0x151   : >> { %v816_v0 = vld [vmem:[%s12946_s29 + $0x2800] sm:$0xff]  ;;  %815 = vst [vmem:[%s12942_s28 + $0x13f0] sm:$0xff] %v814_v63 }
 0x152   : >> { %v818_v1 = vld [vmem:[%s12946_s29 + $0x2820] sm:$0xff]  ;;  %817 = vst [vmem:[%s12942_s28 + $0x1400] sm:$0xff] %v816_v0 }
 0x153   : >> { %v820_v2 = vld [vmem:[%s12946_s29 + $0x2840] sm:$0xff]  ;;  %819 = vst [vmem:[%s12942_s28 + $0x1410] sm:$0xff] %v818_v1 }
 0x154   : >> { %v822_v3 = vld [vmem:[%s12946_s29 + $0x2860] sm:$0xff]  ;;  %821 = vst [vmem:[%s12942_s28 + $0x1420] sm:$0xff] %v820_v2 }
 0x155   : >> { %v824_v4 = vld [vmem:[%s12946_s29 + $0x2880] sm:$0xff]  ;;  %823 = vst [vmem:[%s12942_s28 + $0x1430] sm:$0xff] %v822_v3 }
 0x156   : >> { %v826_v5 = vld [vmem:[%s12946_s29 + $0x28a0] sm:$0xff]  ;;  %825 = vst [vmem:[%s12942_s28 + $0x1440] sm:$0xff] %v824_v4 }
 0x157   : >> { %v828_v6 = vld [vmem:[%s12946_s29 + $0x28c0] sm:$0xff]  ;;  %827 = vst [vmem:[%s12942_s28 + $0x1450] sm:$0xff] %v826_v5 }
 0x158   : >> { %v830_v7 = vld [vmem:[%s12946_s29 + $0x28e0] sm:$0xff]  ;;  %829 = vst [vmem:[%s12942_s28 + $0x1460] sm:$0xff] %v828_v6 }
 0x159   : >> { %v832_v8 = vld [vmem:[%s12946_s29 + $0x2900] sm:$0xff]  ;;  %831 = vst [vmem:[%s12942_s28 + $0x1470] sm:$0xff] %v830_v7 }
 0x15a   : >> { %v834_v9 = vld [vmem:[%s12946_s29 + $0x2920] sm:$0xff]  ;;  %833 = vst [vmem:[%s12942_s28 + $0x1480] sm:$0xff] %v832_v8 }
 0x15b   : >> { %v836_v10 = vld [vmem:[%s12946_s29 + $0x2940] sm:$0xff]  ;;  %835 = vst [vmem:[%s12942_s28 + $0x1490] sm:$0xff] %v834_v9 }
 0x15c   : >> { %v838_v11 = vld [vmem:[%s12946_s29 + $0x2960] sm:$0xff]  ;;  %837 = vst [vmem:[%s12942_s28 + $0x14a0] sm:$0xff] %v836_v10 }
 0x15d   : >> { %v840_v12 = vld [vmem:[%s12946_s29 + $0x2980] sm:$0xff]  ;;  %839 = vst [vmem:[%s12942_s28 + $0x14b0] sm:$0xff] %v838_v11 }
 0x15e   : >> { %v842_v13 = vld [vmem:[%s12946_s29 + $0x29a0] sm:$0xff]  ;;  %841 = vst [vmem:[%s12942_s28 + $0x14c0] sm:$0xff] %v840_v12 }
 0x15f   : >> { %v844_v14 = vld [vmem:[%s12946_s29 + $0x29c0] sm:$0xff]  ;;  %843 = vst [vmem:[%s12942_s28 + $0x14d0] sm:$0xff] %v842_v13 }
 0x160   : >> { %v846_v15 = vld [vmem:[%s12946_s29 + $0x29e0] sm:$0xff]  ;;  %845 = vst [vmem:[%s12942_s28 + $0x14e0] sm:$0xff] %v844_v14 }
 0x161   : >> { %v848_v16 = vld [vmem:[%s12946_s29 + $0x2a00] sm:$0xff]  ;;  %847 = vst [vmem:[%s12942_s28 + $0x14f0] sm:$0xff] %v846_v15 }
 0x162   : >> { %v850_v17 = vld [vmem:[%s12946_s29 + $0x2a20] sm:$0xff]  ;;  %849 = vst [vmem:[%s12942_s28 + $0x1500] sm:$0xff] %v848_v16 }
 0x163   : >> { %v852_v18 = vld [vmem:[%s12946_s29 + $0x2a40] sm:$0xff]  ;;  %851 = vst [vmem:[%s12942_s28 + $0x1510] sm:$0xff] %v850_v17 }
 0x164   : >> { %v854_v19 = vld [vmem:[%s12946_s29 + $0x2a60] sm:$0xff]  ;;  %853 = vst [vmem:[%s12942_s28 + $0x1520] sm:$0xff] %v852_v18 }
 0x165   : >> { %v856_v20 = vld [vmem:[%s12946_s29 + $0x2a80] sm:$0xff]  ;;  %855 = vst [vmem:[%s12942_s28 + $0x1530] sm:$0xff] %v854_v19 }
 0x166   : >> { %v858_v21 = vld [vmem:[%s12946_s29 + $0x2aa0] sm:$0xff]  ;;  %857 = vst [vmem:[%s12942_s28 + $0x1540] sm:$0xff] %v856_v20 }
 0x167   : >> { %v860_v22 = vld [vmem:[%s12946_s29 + $0x2ac0] sm:$0xff]  ;;  %859 = vst [vmem:[%s12942_s28 + $0x1550] sm:$0xff] %v858_v21 }
 0x168   : >> { %v862_v23 = vld [vmem:[%s12946_s29 + $0x2ae0] sm:$0xff]  ;;  %861 = vst [vmem:[%s12942_s28 + $0x1560] sm:$0xff] %v860_v22 }
 0x169   : >> { %v864_v24 = vld [vmem:[%s12946_s29 + $0x2b00] sm:$0xff]  ;;  %863 = vst [vmem:[%s12942_s28 + $0x1570] sm:$0xff] %v862_v23 }
 0x16a   : >> { %v866_v25 = vld [vmem:[%s12946_s29 + $0x2b20] sm:$0xff]  ;;  %865 = vst [vmem:[%s12942_s28 + $0x1580] sm:$0xff] %v864_v24 }
 0x16b   : >> { %v868_v26 = vld [vmem:[%s12946_s29 + $0x2b40] sm:$0xff]  ;;  %867 = vst [vmem:[%s12942_s28 + $0x1590] sm:$0xff] %v866_v25 }
 0x16c   : >> { %v870_v27 = vld [vmem:[%s12946_s29 + $0x2b60] sm:$0xff]  ;;  %869 = vst [vmem:[%s12942_s28 + $0x15a0] sm:$0xff] %v868_v26 }
 0x16d   : >> { %v872_v28 = vld [vmem:[%s12946_s29 + $0x2b80] sm:$0xff]  ;;  %871 = vst [vmem:[%s12942_s28 + $0x15b0] sm:$0xff] %v870_v27 }
 0x16e   : >> { %v874_v29 = vld [vmem:[%s12946_s29 + $0x2ba0] sm:$0xff]  ;;  %873 = vst [vmem:[%s12942_s28 + $0x15c0] sm:$0xff] %v872_v28 }
 0x16f   : >> { %v876_v30 = vld [vmem:[%s12946_s29 + $0x2bc0] sm:$0xff]  ;;  %875 = vst [vmem:[%s12942_s28 + $0x15d0] sm:$0xff] %v874_v29 }
 0x170   : >> { %v878_v31 = vld [vmem:[%s12946_s29 + $0x2be0] sm:$0xff]  ;;  %877 = vst [vmem:[%s12942_s28 + $0x15e0] sm:$0xff] %v876_v30 }
 0x171   : >> { %v880_v32 = vld [vmem:[%s12946_s29 + $0x2c00] sm:$0xff]  ;;  %879 = vst [vmem:[%s12942_s28 + $0x15f0] sm:$0xff] %v878_v31 }
 0x172   : >> { %v882_v33 = vld [vmem:[%s12946_s29 + $0x2c20] sm:$0xff]  ;;  %881 = vst [vmem:[%s12942_s28 + $0x1600] sm:$0xff] %v880_v32 }
 0x173   : >> { %v884_v34 = vld [vmem:[%s12946_s29 + $0x2c40] sm:$0xff]  ;;  %883 = vst [vmem:[%s12942_s28 + $0x1610] sm:$0xff] %v882_v33 }
 0x174   : >> { %v886_v35 = vld [vmem:[%s12946_s29 + $0x2c60] sm:$0xff]  ;;  %885 = vst [vmem:[%s12942_s28 + $0x1620] sm:$0xff] %v884_v34 }
 0x175   : >> { %v888_v36 = vld [vmem:[%s12946_s29 + $0x2c80] sm:$0xff]  ;;  %887 = vst [vmem:[%s12942_s28 + $0x1630] sm:$0xff] %v886_v35 }
 0x176   : >> { %v890_v37 = vld [vmem:[%s12946_s29 + $0x2ca0] sm:$0xff]  ;;  %889 = vst [vmem:[%s12942_s28 + $0x1640] sm:$0xff] %v888_v36 }
 0x177   : >> { %v892_v38 = vld [vmem:[%s12946_s29 + $0x2cc0] sm:$0xff]  ;;  %891 = vst [vmem:[%s12942_s28 + $0x1650] sm:$0xff] %v890_v37 }
 0x178   : >> { %v894_v39 = vld [vmem:[%s12946_s29 + $0x2ce0] sm:$0xff]  ;;  %893 = vst [vmem:[%s12942_s28 + $0x1660] sm:$0xff] %v892_v38 }
 0x179   : >> { %v896_v40 = vld [vmem:[%s12946_s29 + $0x2d00] sm:$0xff]  ;;  %895 = vst [vmem:[%s12942_s28 + $0x1670] sm:$0xff] %v894_v39 }
 0x17a   : >> { %v898_v41 = vld [vmem:[%s12946_s29 + $0x2d20] sm:$0xff]  ;;  %897 = vst [vmem:[%s12942_s28 + $0x1680] sm:$0xff] %v896_v40 }
 0x17b   : >> { %v900_v42 = vld [vmem:[%s12946_s29 + $0x2d40] sm:$0xff]  ;;  %899 = vst [vmem:[%s12942_s28 + $0x1690] sm:$0xff] %v898_v41 }
 0x17c   : >> { %v902_v43 = vld [vmem:[%s12946_s29 + $0x2d60] sm:$0xff]  ;;  %901 = vst [vmem:[%s12942_s28 + $0x16a0] sm:$0xff] %v900_v42 }
 0x17d   : >> { %v904_v44 = vld [vmem:[%s12946_s29 + $0x2d80] sm:$0xff]  ;;  %903 = vst [vmem:[%s12942_s28 + $0x16b0] sm:$0xff] %v902_v43 }
 0x17e   : >> { %v906_v45 = vld [vmem:[%s12946_s29 + $0x2da0] sm:$0xff]  ;;  %905 = vst [vmem:[%s12942_s28 + $0x16c0] sm:$0xff] %v904_v44 }
 0x17f   : >> { %v908_v46 = vld [vmem:[%s12946_s29 + $0x2dc0] sm:$0xff]  ;;  %907 = vst [vmem:[%s12942_s28 + $0x16d0] sm:$0xff] %v906_v45 }
 0x180   : >> { %v910_v47 = vld [vmem:[%s12946_s29 + $0x2de0] sm:$0xff]  ;;  %909 = vst [vmem:[%s12942_s28 + $0x16e0] sm:$0xff] %v908_v46 }
 0x181   : >> { %v912_v48 = vld [vmem:[%s12946_s29 + $0x2e00] sm:$0xff]  ;;  %911 = vst [vmem:[%s12942_s28 + $0x16f0] sm:$0xff] %v910_v47 }
 0x182   : >> { %v914_v49 = vld [vmem:[%s12946_s29 + $0x2e20] sm:$0xff]  ;;  %913 = vst [vmem:[%s12942_s28 + $0x1700] sm:$0xff] %v912_v48 }
 0x183   : >> { %v916_v50 = vld [vmem:[%s12946_s29 + $0x2e40] sm:$0xff]  ;;  %915 = vst [vmem:[%s12942_s28 + $0x1710] sm:$0xff] %v914_v49 }
 0x184   : >> { %v918_v51 = vld [vmem:[%s12946_s29 + $0x2e60] sm:$0xff]  ;;  %917 = vst [vmem:[%s12942_s28 + $0x1720] sm:$0xff] %v916_v50 }
 0x185   : >> { %v920_v52 = vld [vmem:[%s12946_s29 + $0x2e80] sm:$0xff]  ;;  %919 = vst [vmem:[%s12942_s28 + $0x1730] sm:$0xff] %v918_v51 }
 0x186   : >> { %v922_v53 = vld [vmem:[%s12946_s29 + $0x2ea0] sm:$0xff]  ;;  %921 = vst [vmem:[%s12942_s28 + $0x1740] sm:$0xff] %v920_v52 }
 0x187   : >> { %v924_v54 = vld [vmem:[%s12946_s29 + $0x2ec0] sm:$0xff]  ;;  %923 = vst [vmem:[%s12942_s28 + $0x1750] sm:$0xff] %v922_v53 }
 0x188   : >> { %v926_v55 = vld [vmem:[%s12946_s29 + $0x2ee0] sm:$0xff]  ;;  %925 = vst [vmem:[%s12942_s28 + $0x1760] sm:$0xff] %v924_v54 }
 0x189   : >> { %v928_v56 = vld [vmem:[%s12946_s29 + $0x2f00] sm:$0xff]  ;;  %927 = vst [vmem:[%s12942_s28 + $0x1770] sm:$0xff] %v926_v55 }
 0x18a   : >> { %v930_v57 = vld [vmem:[%s12946_s29 + $0x2f20] sm:$0xff]  ;;  %929 = vst [vmem:[%s12942_s28 + $0x1780] sm:$0xff] %v928_v56 }
 0x18b   : >> { %v932_v58 = vld [vmem:[%s12946_s29 + $0x2f40] sm:$0xff]  ;;  %931 = vst [vmem:[%s12942_s28 + $0x1790] sm:$0xff] %v930_v57 }
 0x18c   : >> { %v934_v59 = vld [vmem:[%s12946_s29 + $0x2f60] sm:$0xff]  ;;  %933 = vst [vmem:[%s12942_s28 + $0x17a0] sm:$0xff] %v932_v58 }
 0x18d   : >> { %v936_v60 = vld [vmem:[%s12946_s29 + $0x2f80] sm:$0xff]  ;;  %935 = vst [vmem:[%s12942_s28 + $0x17b0] sm:$0xff] %v934_v59 }
 0x18e   : >> { %v938_v61 = vld [vmem:[%s12946_s29 + $0x2fa0] sm:$0xff]  ;;  %937 = vst [vmem:[%s12942_s28 + $0x17c0] sm:$0xff] %v936_v60 }
 0x18f   : >> { %v940_v62 = vld [vmem:[%s12946_s29 + $0x2fc0] sm:$0xff]  ;;  %939 = vst [vmem:[%s12942_s28 + $0x17d0] sm:$0xff] %v938_v61 }
 0x190   : >> { %v942_v63 = vld [vmem:[%s12946_s29 + $0x2fe0] sm:$0xff]  ;;  %941 = vst [vmem:[%s12942_s28 + $0x17e0] sm:$0xff] %v940_v62 }
 0x191   : >> { %v944_v0 = vld [vmem:[%s12946_s29 + $0x3000] sm:$0xff]  ;;  %943 = vst [vmem:[%s12942_s28 + $0x17f0] sm:$0xff] %v942_v63 }
 0x192   : >> { %v946_v1 = vld [vmem:[%s12946_s29 + $0x3020] sm:$0xff]  ;;  %945 = vst [vmem:[%s12942_s28 + $0x1800] sm:$0xff] %v944_v0 }
 0x193   : >> { %v948_v2 = vld [vmem:[%s12946_s29 + $0x3040] sm:$0xff]  ;;  %947 = vst [vmem:[%s12942_s28 + $0x1810] sm:$0xff] %v946_v1 }
 0x194   : >> { %v950_v3 = vld [vmem:[%s12946_s29 + $0x3060] sm:$0xff]  ;;  %949 = vst [vmem:[%s12942_s28 + $0x1820] sm:$0xff] %v948_v2 }
 0x195   : >> { %v952_v4 = vld [vmem:[%s12946_s29 + $0x3080] sm:$0xff]  ;;  %951 = vst [vmem:[%s12942_s28 + $0x1830] sm:$0xff] %v950_v3  ;;  %171 = sbr.rel (!%p169_p7) target bundleno = 17 (0x11), region = 112 }
 0x196   : >> { %v954_v5 = vld [vmem:[%s12946_s29 + $0x30a0] sm:$0xff]  ;;  %953 = vst [vmem:[%s12942_s28 + $0x1840] sm:$0xff] %v952_v4 }
 0x197   : >> { %v956_v6 = vld [vmem:[%s12946_s29 + $0x30c0] sm:$0xff]  ;;  %955 = vst [vmem:[%s12942_s28 + $0x1850] sm:$0xff] %v954_v5 }
 0x198   : >> { %v958_v7 = vld [vmem:[%s12946_s29 + $0x30e0] sm:$0xff]  ;;  %957 = vst [vmem:[%s12942_s28 + $0x1860] sm:$0xff] %v956_v6  ;;  %s15691_s29 = smov %s13583_s7 }
 0x199   : >> { %959 = vst [vmem:[%s12942_s28 + $0x1870] sm:$0xff] %v958_v7  ;;  %s15690_s28 = smov %s13587_s8 }
 0x19a PF: > { %p8873_p8 = scmp.ge.s32.totalorder %s12938_s16, 1  ;;  %p2575_p9 = scmp.lt.s32.totalorder %s12938_s16, 3 }
 0x19c   : > { %p2576_p10 = pnand %p8873_p8, %p2575_p9 }
 0x19d   : > { %s2582_s9 = sand.u32 (!%p2576_p10), 1, %s12922_s12   ;;  %s8874_s24 = sshll.u32 (!%p2576_p10), %s12930_s14, 2 }
 0x19e   : > { %2579 = sbr.rel (%p2576_p10) target bundleno = 1357 (0x54d), region = 65  ;;  %p14257_p11 = scmp.lt.s32.totalorder (!%p2576_p10), %s8874_s24, 7 }
 0x19f   : > { %s12805_s10 = smul.u32 (!%p2576_p10), 6272, %s2582_s9 }
 0x1a1   : > { %s13857_s11 = scalar_lea.vmem (!%p2576_p10), [#allocation2], %s12805_s10 }
 0x1a3   : > { %v8991_v8 = vld [vmem:[%s13857_s11 + $0xe0] sm:$0xf]  ;;  %v12050_v9 = vld [vmem:[%s13857_s11 + $0xec] sm:$0xf0]  ;;  %s15703_s24 = smov (!%p14257_p11, %s8874_s24), 7  ;;  %vm7413_vm0 = vcmask 523264  }
 0x1a4   : > { %v9119_v10 = vld [vmem:[%s13857_s11 + $0x1e0] sm:$0xf]  ;;  %v8992_v11 = vor.u32 %v12050_v9, %v8991_v8  ;;  %v12082_v12 = vld [vmem:[%s13857_s11 + $0x1ec] sm:$0xf0]  ;;  %s14299_s27 = scalar_lea.vmem %s15686_s2, %s15703_s24  ;;  %vm8727_vm1 = vcmask 1041408   ;;  %s8876_s30 = sshll.u32 %s15703_s24, 1 }
 0x1a5   : > { %v9247_v13 = vld [vmem:[%s13857_s11 + $0x2e0] sm:$0xf]  ;;  %v12114_v14 = vld [vmem:[%s13857_s11 + $0x2ec] sm:$0xf0]  ;;  %v9120_v15 = vor.u32 %v12082_v12, %v9119_v10  ;;  %vm8729_vm2 = vcmask 1045508   ;;  %vm8731_vm3 = vcmask 1043456   ;;  %s2635_s6 = scalar_lea.vmem %s15687_s3, %s8876_s30 }
 0x1a6   : > { %v9248_v16 = vor.u32 %v12114_v14, %v9247_v13  ;;  %v9375_v17 = vld [vmem:[%s13857_s11 + $0x3e0] sm:$0xf]  ;;  %v12146_v18 = vld [vmem:[%s13857_s11 + $0x3ec] sm:$0xf0]  ;;  %7416 = vmatpush.bf16.msra.mxu0 %v8992_v11 }
 0x1a7   : > { %v8975_v19 = vld [vmem:[%s13857_s11 + $0xc0] sm:$0xf]  ;;  %v9376_v20 = vor.u32 %v12146_v18, %v9375_v17  ;;  %v12046_v21 = vld [vmem:[%s13857_s11 + $0xcc] sm:$0xf0]  ;;  %7429 = vmatpush.bf16.msra.mxu1 %v9120_v15 }
 0x1a8   : > { %v9103_v22 = vld [vmem:[%s13857_s11 + $0x1c0] sm:$0xf]  ;;  %v12078_v23 = vld [vmem:[%s13857_s11 + $0x1cc] sm:$0xf0]  ;;  %7442 = vmatpush.bf16.msra.mxu2 %v9248_v16  ;;  %v8976_v24 = vor.u32 %v12046_v21, %v8975_v19 }
 0x1a9   : > { %v9104_v25 = vor.u32 %v12078_v23, %v9103_v22  ;;  %v9231_v26 = vld [vmem:[%s13857_s11 + $0x2c0] sm:$0xf]  ;;  %v12110_v27 = vld [vmem:[%s13857_s11 + $0x2cc] sm:$0xf0]  ;;  %7455 = vmatpush.bf16.msra.mxu3 %v9376_v20 }
 0x1aa   : > { %v9359_v28 = vld [vmem:[%s13857_s11 + $0x3c0] sm:$0xf]  ;;  %v9232_v29 = vor.u32 %v12110_v27, %v9231_v26  ;;  %v12142_v30 = vld [vmem:[%s13857_s11 + $0x3cc] sm:$0xf0]  ;;  %7417 = vmatpush.bf16.msra.mxu0 %v8976_v24 }
 0x1ab   : > { %v8959_v31 = vld [vmem:[%s13857_s11 + $0xa0] sm:$0xf]  ;;  %v12042_v32 = vld [vmem:[%s13857_s11 + $0xac] sm:$0xf0]  ;;  %v9360_v33 = vor.u32 %v12142_v30, %v9359_v28  ;;  %7430 = vmatpush.bf16.msra.mxu1 %v9104_v25 }
 0x1ac   : > { %v9087_v34 = vld [vmem:[%s13857_s11 + $0x1a0] sm:$0xf]  ;;  %v12074_v35 = vld [vmem:[%s13857_s11 + $0x1ac] sm:$0xf0]  ;;  %v8960_v37 = vor.u32 %v12042_v32, %v8959_v31  ;;  %7443 = vmatpush.bf16.msra.mxu2 %v9232_v29 }
 0x1ad   : > { %v9215_v36 = vld [vmem:[%s13857_s11 + $0x2a0] sm:$0xf]  ;;  %v12106_v38 = vld [vmem:[%s13857_s11 + $0x2ac] sm:$0xf0]  ;;  %v9088_v41 = vor.u32 %v12074_v35, %v9087_v34  ;;  %7456 = vmatpush.bf16.msra.mxu3 %v9360_v33 }
 0x1ae   : > { %v9343_v39 = vld [vmem:[%s13857_s11 + $0x3a0] sm:$0xf]  ;;  %v12138_v40 = vld [vmem:[%s13857_s11 + $0x3ac] sm:$0xf0]  ;;  %v9216_v42 = vor.u32 %v12106_v38, %v9215_v36  ;;  %7418 = vmatpush.bf16.msra.mxu0 %v8960_v37 }
 0x1af   : > { %v8943_v43 = vld [vmem:[%s13857_s11 + $0x80] sm:$0xf]  ;;  %v12038_v44 = vld [vmem:[%s13857_s11 + $0x8c] sm:$0xf0]  ;;  %v9344_v46 = vor.u32 %v12138_v40, %v9343_v39  ;;  %7431 = vmatpush.bf16.msra.mxu1 %v9088_v41 }
 0x1b0   : > { %v9071_v45 = vld [vmem:[%s13857_s11 + $0x180] sm:$0xf]  ;;  %v12070_v47 = vld [vmem:[%s13857_s11 + $0x18c] sm:$0xf0]  ;;  %v8944_v52 = vor.u32 %v12038_v44, %v8943_v43  ;;  %7444 = vmatpush.bf16.msra.mxu2 %v9216_v42 }
 0x1b1   : > { %v9199_v48 = vld [vmem:[%s13857_s11 + $0x280] sm:$0xf]  ;;  %v12102_v49 = vld [vmem:[%s13857_s11 + $0x28c] sm:$0xf0]  ;;  %v9072_v53 = vor.u32 %v12070_v47, %v9071_v45  ;;  %7457 = vmatpush.bf16.msra.mxu3 %v9344_v46 }
 0x1b2   : > { %v9327_v50 = vld [vmem:[%s13857_s11 + $0x380] sm:$0xf]  ;;  %v12134_v51 = vld [vmem:[%s13857_s11 + $0x38c] sm:$0xf0]  ;;  %v9200_v54 = vor.u32 %v12102_v49, %v9199_v48  ;;  %7419 = vmatpush.bf16.msra.mxu0 %v8944_v52 }
 0x1b3   : > { %v8927_v55 = vld [vmem:[%s13857_s11 + $0x60] sm:$0xf]  ;;  %v12034_v56 = vld [vmem:[%s13857_s11 + $0x6c] sm:$0xf0]  ;;  %v9328_v58 = vor.u32 %v12134_v51, %v9327_v50  ;;  %7432 = vmatpush.bf16.msra.mxu1 %v9072_v53 }
 0x1b4   : > { %v9055_v57 = vld [vmem:[%s13857_s11 + $0x160] sm:$0xf]  ;;  %v12066_v59 = vld [vmem:[%s13857_s11 + $0x16c] sm:$0xf0]  ;;  %v8928_v0 = vor.u32 %v12034_v56, %v8927_v55  ;;  %7445 = vmatpush.bf16.msra.mxu2 %v9200_v54 }
 0x1b5   : > { %v9183_v60 = vld [vmem:[%s13857_s11 + $0x260] sm:$0xf]  ;;  %v12098_v61 = vld [vmem:[%s13857_s11 + $0x26c] sm:$0xf0]  ;;  %v9056_v1 = vor.u32 %v12066_v59, %v9055_v57  ;;  %7458 = vmatpush.bf16.msra.mxu3 %v9328_v58 }
 0x1b6   : > { %v9311_v62 = vld [vmem:[%s13857_s11 + $0x360] sm:$0xf]  ;;  %v12130_v63 = vld [vmem:[%s13857_s11 + $0x36c] sm:$0xf0]  ;;  %v9184_v2 = vor.u32 %v12098_v61, %v9183_v60  ;;  %7420 = vmatpush.bf16.msra.mxu0 %v8928_v0 }
 0x1b7   : > { %v8911_v3 = vld [vmem:[%s13857_s11 + $0x40] sm:$0xf]  ;;  %v12030_v4 = vld [vmem:[%s13857_s11 + $0x4c] sm:$0xf0]  ;;  %v9312_v6 = vor.u32 %v12130_v63, %v9311_v62  ;;  %7433 = vmatpush.bf16.msra.mxu1 %v9056_v1 }
 0x1b8   : > { %v9039_v5 = vld [vmem:[%s13857_s11 + $0x140] sm:$0xf]  ;;  %v12062_v7 = vld [vmem:[%s13857_s11 + $0x14c] sm:$0xf0]  ;;  %v8912_v12 = vor.u32 %v12030_v4, %v8911_v3  ;;  %7446 = vmatpush.bf16.msra.mxu2 %v9184_v2  ;;  %v2638_v3 = vld [vmem:[%s15684_s0] sm:$0xff] }
 0x1b9   : > { %v9167_v8 = vld [vmem:[%s13857_s11 + $0x240] sm:$0xf]  ;;  %v12094_v9 = vld [vmem:[%s13857_s11 + $0x24c] sm:$0xf0]  ;;  %v9040_v13 = vor.u32 %v12062_v7, %v9039_v5  ;;  %7459 = vmatpush.bf16.msra.mxu3 %v9312_v6  ;;  %3437 = vst [vmem:[#allocation1] ss:$9 sm:$0xff] %v2638_v3 }
 0x1ba   : > { %v9295_v10 = vld [vmem:[%s13857_s11 + $0x340] sm:$0xf]  ;;  %v12126_v11 = vld [vmem:[%s13857_s11 + $0x34c] sm:$0xf0]  ;;  %v9168_v14 = vor.u32 %v12094_v9, %v9167_v8  ;;  %7421 = vmatpush.bf16.msra.mxu0 %v8912_v12 }
 0x1bb   : > { %v8895_v15 = vld [vmem:[%s13857_s11 + $0x20] sm:$0xf]  ;;  %v12026_v16 = vld [vmem:[%s13857_s11 + $0x2c] sm:$0xf0]  ;;  %v9296_v18 = vor.u32 %v12126_v11, %v9295_v10  ;;  %7434 = vmatpush.bf16.msra.mxu1 %v9040_v13 }
 0x1bc   : > { %v9023_v17 = vld [vmem:[%s13857_s11 + $0x120] sm:$0xf]  ;;  %v12058_v19 = vld [vmem:[%s13857_s11 + $0x12c] sm:$0xf0]  ;;  %v8896_v24 = vor.u32 %v12026_v16, %v8895_v15  ;;  %7447 = vmatpush.bf16.msra.mxu2 %v9168_v14 }
 0x1bd   : > { %v9151_v20 = vld [vmem:[%s13857_s11 + $0x220] sm:$0xf]  ;;  %v12090_v21 = vld [vmem:[%s13857_s11 + $0x22c] sm:$0xf0]  ;;  %v9024_v27 = vor.u32 %v12058_v19, %v9023_v17  ;;  %7460 = vmatpush.bf16.msra.mxu3 %v9296_v18 }
 0x1be   : > { %v9279_v22 = vld [vmem:[%s13857_s11 + $0x320] sm:$0xf]  ;;  %v12122_v23 = vld [vmem:[%s13857_s11 + $0x32c] sm:$0xf0]  ;;  %v9152_v28 = vor.u32 %v12090_v21, %v9151_v20  ;;  %7422 = vmatpush.bf16.msra.mxu0 %v8896_v24 }
 0x1bf   : > { %v8879_v25 = vld [vmem:[%s13857_s11] sm:$0xf]  ;;  %v12022_v26 = vld [vmem:[%s13857_s11 + $0xc] sm:$0xf0]  ;;  %v9280_v32 = vor.u32 %v12122_v23, %v9279_v22  ;;  %7435 = vmatpush.bf16.msra.mxu1 %v9024_v27 }
 0x1c0   : > { %v9007_v29 = vld [vmem:[%s13857_s11 + $0x100] sm:$0xf]  ;;  %v12054_v30 = vld [vmem:[%s13857_s11 + $0x10c] sm:$0xf0]  ;;  %v8880_v39 = vor.u32 %v12022_v26, %v8879_v25  ;;  %7448 = vmatpush.bf16.msra.mxu2 %v9152_v28 }
 0x1c1   : > { %v9135_v31 = vld [vmem:[%s13857_s11 + $0x200] sm:$0xf]  ;;  %v12086_v33 = vld [vmem:[%s13857_s11 + $0x20c] sm:$0xf0]  ;;  %v9008_v43 = vor.u32 %v12054_v30, %v9007_v29  ;;  %7461 = vmatpush.bf16.msra.mxu3 %v9280_v32  ;;  %v13964_v29 = vld [vmem:[#allocation1] sm:$0xff] }
 0x1c2   : > { %v9263_v34 = vld [vmem:[%s13857_s11 + $0x300] sm:$0xf]  ;;  %v12118_v35 = vld [vmem:[%s13857_s11 + $0x30c] sm:$0xf0]  ;;  %v9136_v44 = vor.u32 %v12086_v33, %v9135_v31  ;;  %7423 = vmatpush.bf16.msra.mxu0 %v8880_v39 }
 0x1c3   : > { %v9503_v36 = vld [vmem:[%s13857_s11 + $0x4e0] sm:$0xf]  ;;  %v12178_v37 = vld [vmem:[%s13857_s11 + $0x4ec] sm:$0xf0]  ;;  %v9264_v47 = vor.u32 %v12118_v35, %v9263_v34  ;;  %7436 = vmatpush.bf16.msra.mxu1 %v9008_v43 }
 0x1c4   : > { %v9631_v38 = vld [vmem:[%s13857_s11 + $0x5e0] sm:$0xf]  ;;  %v12210_v40 = vld [vmem:[%s13857_s11 + $0x5ec] sm:$0xf0]  ;;  %v9504_v48 = vor.u32 %v12178_v37, %v9503_v36  ;;  %7449 = vmatpush.bf16.msra.mxu2 %v9136_v44 }
 0x1c5   : > { %v9759_v41 = vld [vmem:[%s13857_s11 + $0x6e0] sm:$0xf]  ;;  %v12242_v42 = vld [vmem:[%s13857_s11 + $0x6ec] sm:$0xf0]  ;;  %v9632_v49 = vor.u32 %v12210_v40, %v9631_v38  ;;  %7462 = vmatpush.bf16.msra.mxu3 %v9264_v47  ;;  %7424 = vmatmul.bf16.vlgmr.msra.gmra.mxu0 %v13964_v29 }
 0x1c6   : > { %v9887_v45 = vld [vmem:[%s13857_s11 + $0x7e0] sm:$0xf]  ;;  %v12274_v46 = vld [vmem:[%s13857_s11 + $0x7ec] sm:$0xf0]  ;;  %v9760_v50 = vor.u32 %v12242_v42, %v9759_v41  ;;  %7468 = vmatpush.bf16.msrb.mxu0 %v9504_v48 }
 0x1c7   : > { %v9487_v51 = vld [vmem:[%s13857_s11 + $0x4c0] sm:$0xf]  ;;  %v12174_v52 = vld [vmem:[%s13857_s11 + $0x4cc] sm:$0xf0]  ;;  %v9888_v54 = vor.u32 %v12274_v46, %v9887_v45  ;;  %7481 = vmatpush.bf16.msrb.mxu1 %v9632_v49 }
 0x1c8   : > { %v9615_v53 = vld [vmem:[%s13857_s11 + $0x5c0] sm:$0xf]  ;;  %v12206_v55 = vld [vmem:[%s13857_s11 + $0x5cc] sm:$0xf0]  ;;  %v9488_v60 = vor.u32 %v12174_v52, %v9487_v51  ;;  %7494 = vmatpush.bf16.msrb.mxu2 %v9760_v50 }
 0x1c9   : > { %v9743_v56 = vld [vmem:[%s13857_s11 + $0x6c0] sm:$0xf]  ;;  %v12238_v57 = vld [vmem:[%s13857_s11 + $0x6cc] sm:$0xf0]  ;;  %v9616_v63 = vor.u32 %v12206_v55, %v9615_v53  ;;  %7507 = vmatpush.bf16.msrb.mxu3 %v9888_v54 }
 0x1ca   : > { %v9871_v58 = vld [vmem:[%s13857_s11 + $0x7c0] sm:$0xf]  ;;  %v12270_v59 = vld [vmem:[%s13857_s11 + $0x7cc] sm:$0xf0]  ;;  %v9744_v0 = vor.u32 %v12238_v57, %v9743_v56  ;;  %7469 = vmatpush.bf16.msrb.mxu0 %v9488_v60 }
 0x1cb   : > { %v9471_v61 = vld [vmem:[%s13857_s11 + $0x4a0] sm:$0xf]  ;;  %v12170_v62 = vld [vmem:[%s13857_s11 + $0x4ac] sm:$0xf0]  ;;  %v9872_v4 = vor.u32 %v12270_v59, %v9871_v58  ;;  %7482 = vmatpush.bf16.msrb.mxu1 %v9616_v63 }
 0x1cc   : > { %v9599_v1 = vld [vmem:[%s13857_s11 + $0x5a0] sm:$0xf]  ;;  %v12202_v2 = vld [vmem:[%s13857_s11 + $0x5ac] sm:$0xf0]  ;;  %v9472_v9 = vor.u32 %v12170_v62, %v9471_v61  ;;  %7495 = vmatpush.bf16.msrb.mxu2 %v9744_v0 }
 0x1cd   : > { %v9727_v5 = vld [vmem:[%s13857_s11 + $0x6a0] sm:$0xf]  ;;  %v12234_v6 = vld [vmem:[%s13857_s11 + $0x6ac] sm:$0xf0]  ;;  %v9600_v10 = vor.u32 %v12202_v2, %v9599_v1  ;;  %7508 = vmatpush.bf16.msrb.mxu3 %v9872_v4 }
 0x1ce   : > { %v9855_v7 = vld [vmem:[%s13857_s11 + $0x7a0] sm:$0xf]  ;;  %v12266_v8 = vld [vmem:[%s13857_s11 + $0x7ac] sm:$0xf0]  ;;  %v9728_v11 = vor.u32 %v12234_v6, %v9727_v5  ;;  %7470 = vmatpush.bf16.msrb.mxu0 %v9472_v9  ;;  %v14007_v9 = vld [vmem:[#allocation1 + $0x3f] sm:$0xff] }
 0x1cf   : > { %v9455_v12 = vld [vmem:[%s13857_s11 + $0x480] sm:$0xf]  ;;  %v12166_v13 = vld [vmem:[%s13857_s11 + $0x48c] sm:$0xf0]  ;;  %v9856_v15 = vor.u32 %v12266_v8, %v9855_v7  ;;  %7483 = vmatpush.bf16.msrb.mxu1 %v9600_v10  ;;  %v14009_v10 = vld [vmem:[#allocation1 + $0x2d] sm:$0xff] }
 0x1d0   : > { %v9583_v14 = vld [vmem:[%s13857_s11 + $0x580] sm:$0xf]  ;;  %v12198_v16 = vld [vmem:[%s13857_s11 + $0x58c] sm:$0xf0]  ;;  %v9456_v22 = vor.u32 %v12166_v13, %v9455_v12  ;;  %7496 = vmatpush.bf16.msrb.mxu2 %v9728_v11 }
 0x1d1   : > { %v9711_v17 = vld [vmem:[%s13857_s11 + $0x680] sm:$0xf]  ;;  %v12230_v18 = vld [vmem:[%s13857_s11 + $0x68c] sm:$0xf0]  ;;  %v9584_v26 = vor.u32 %v12198_v16, %v9583_v14  ;;  %7509 = vmatpush.bf16.msrb.mxu3 %v9856_v15 }
 0x1d2   : > { %v9839_v19 = vld [vmem:[%s13857_s11 + $0x780] sm:$0xf]  ;;  %v12262_v20 = vld [vmem:[%s13857_s11 + $0x78c] sm:$0xf0]  ;;  %v9712_v27 = vor.u32 %v12230_v18, %v9711_v17  ;;  %7471 = vmatpush.bf16.msrb.mxu0 %v9456_v22 }
 0x1d3   : > { %v9439_v21 = vld [vmem:[%s13857_s11 + $0x460] sm:$0xf]  ;;  %v12162_v23 = vld [vmem:[%s13857_s11 + $0x46c] sm:$0xf0]  ;;  %v9840_v31 = vor.u32 %v12262_v20, %v9839_v19  ;;  %7484 = vmatpush.bf16.msrb.mxu1 %v9584_v26 }
 0x1d4   : > { %v9567_v24 = vld [vmem:[%s13857_s11 + $0x560] sm:$0xf]  ;;  %v12194_v25 = vld [vmem:[%s13857_s11 + $0x56c] sm:$0xf0]  ;;  %v9440_v37 = vor.u32 %v12162_v23, %v9439_v21  ;;  %7497 = vmatpush.bf16.msrb.mxu2 %v9712_v27 }
 0x1d5   : > { %v13962_v28 = vld [vmem:[#allocation1 + $0x12] sm:$0xff]  ;;  %v13966_v30 = vld [vmem:[#allocation1 + $0x1b] sm:$0xff]  ;;  %v9695_v32 = vld [vmem:[%s13857_s11 + $0x660] sm:$0xf]  ;;  %v9568_v38 = vor.u32 %v12194_v25, %v9567_v24  ;;  %7510 = vmatpush.bf16.msrb.mxu3 %v9840_v31 }
 0x1d6   : > { %v12226_v33 = vld [vmem:[%s13857_s11 + $0x66c] sm:$0xf0]  ;;  %7450 = vmatmul.bf16.vlgmr.msra.gmra.mxu2 %v13962_v28  ;;  %v13971_v34 = vld [vmem:[#allocation1 + $0x9] sm:$0xff]  ;;  %7463 = vmatmul.bf16.vlgmr.msra.gmra.mxu3 %v13966_v30 }
 0x1d7   : > { %v9823_v35 = vld [vmem:[%s13857_s11 + $0x760] sm:$0xf]  ;;  %v12258_v36 = vld [vmem:[%s13857_s11 + $0x76c] sm:$0xf0]  ;;  %7437 = vmatmul.bf16.vlgmr.msra.gmra.mxu1 %v13971_v34  ;;  %v9696_v39 = vor.u32 %v12226_v33, %v9695_v32  ;;  %7472 = vmatpush.bf16.msrb.mxu0 %v9440_v37 }
 0x1d8   : > { %v9423_v40 = vld [vmem:[%s13857_s11 + $0x440] sm:$0xf]  ;;  %v12158_v41 = vld [vmem:[%s13857_s11 + $0x44c] sm:$0xf0]  ;;  %v9824_v43 = vor.u32 %v12258_v36, %v9823_v35  ;;  %7485 = vmatpush.bf16.msrb.mxu1 %v9568_v38 }
 0x1d9   : > { %v9551_v42 = vld [vmem:[%s13857_s11 + $0x540] sm:$0xf]  ;;  %v12190_v44 = vld [vmem:[%s13857_s11 + $0x54c] sm:$0xf0]  ;;  %v9424_v49 = vor.u32 %v12158_v41, %v9423_v40  ;;  %7498 = vmatpush.bf16.msrb.mxu2 %v9696_v39 }
 0x1da   : > { %v9679_v45 = vld [vmem:[%s13857_s11 + $0x640] sm:$0xf]  ;;  %v12222_v46 = vld [vmem:[%s13857_s11 + $0x64c] sm:$0xf0]  ;;  %v9552_v51 = vor.u32 %v12190_v44, %v9551_v42  ;;  %7511 = vmatpush.bf16.msrb.mxu3 %v9824_v43 }
 0x1db   : > { %v9807_v47 = vld [vmem:[%s13857_s11 + $0x740] sm:$0xf]  ;;  %v12254_v48 = vld [vmem:[%s13857_s11 + $0x74c] sm:$0xf0]  ;;  %v9680_v52 = vor.u32 %v12222_v46, %v9679_v45  ;;  %7473 = vmatpush.bf16.msrb.mxu0 %v9424_v49 }
 0x1dc   : > { %v9407_v50 = vld [vmem:[%s13857_s11 + $0x420] sm:$0xf]  ;;  %v12154_v53 = vld [vmem:[%s13857_s11 + $0x42c] sm:$0xf0]  ;;  %v9808_v56 = vor.u32 %v12254_v48, %v9807_v47  ;;  %7486 = vmatpush.bf16.msrb.mxu1 %v9552_v51 }
 0x1dd   : > { %v9535_v54 = vld [vmem:[%s13857_s11 + $0x520] sm:$0xf]  ;;  %v12186_v55 = vld [vmem:[%s13857_s11 + $0x52c] sm:$0xf0]  ;;  %v9408_v63 = vor.u32 %v12154_v53, %v9407_v50  ;;  %7499 = vmatpush.bf16.msrb.mxu2 %v9680_v52 }
 0x1de   : > { %v9663_v57 = vld [vmem:[%s13857_s11 + $0x620] sm:$0xf]  ;;  %v12218_v58 = vld [vmem:[%s13857_s11 + $0x62c] sm:$0xf0]  ;;  %v9536_v6 = vor.u32 %v12186_v55, %v9535_v54  ;;  %7512 = vmatpush.bf16.msrb.mxu3 %v9808_v56 }
 0x1df   : > { %v9791_v59 = vld [vmem:[%s13857_s11 + $0x720] sm:$0xf]  ;;  %v12250_v60 = vld [vmem:[%s13857_s11 + $0x72c] sm:$0xf0]  ;;  %v9664_v7 = vor.u32 %v12218_v58, %v9663_v57  ;;  %7474 = vmatpush.bf16.msrb.mxu0 %v9408_v63 }
 0x1e0   : > { %v9391_v61 = vld [vmem:[%s13857_s11 + $0x400] sm:$0xf]  ;;  %v12150_v62 = vld [vmem:[%s13857_s11 + $0x40c] sm:$0xf0]  ;;  %v9792_v11 = vor.u32 %v12250_v60, %v9791_v59  ;;  %7487 = vmatpush.bf16.msrb.mxu1 %v9536_v6 }
 0x1e1   : > { %v9519_v0 = vld [vmem:[%s13857_s11 + $0x500] sm:$0xf]  ;;  %v12182_v1 = vld [vmem:[%s13857_s11 + $0x50c] sm:$0xf0]  ;;  %v9392_v17 = vor.u32 %v12150_v62, %v9391_v61  ;;  %7500 = vmatpush.bf16.msrb.mxu2 %v9664_v7 }
 0x1e2   : > { %v9647_v2 = vld [vmem:[%s13857_s11 + $0x600] sm:$0xf]  ;;  %v12214_v3 = vld [vmem:[%s13857_s11 + $0x60c] sm:$0xf0]  ;;  %v9520_v21 = vor.u32 %v12182_v1, %v9519_v0  ;;  %7513 = vmatpush.bf16.msrb.mxu3 %v9792_v11 }
 0x1e3   : > { %v14000_v4 = vld [vmem:[#allocation1 + $0x36] sm:$0xff]  ;;  %v2639_v5 = vld [vmem:[%s15684_s0 + $0x8] sm:$0xff]  ;;  %v9648_v22 = vor.u32 %v12214_v3, %v9647_v2  ;;  %7475 = vmatpush.bf16.msrb.mxu0 %v9392_v17 }
 0x1e4   : > { %v14005_v8 = vld [vmem:[#allocation1 + $0x24] sm:$0xff]  ;;  %v12246_v13 = vld [vmem:[%s13857_s11 + $0x70c] sm:$0xf0]  ;;  %7488 = vmatpush.bf16.msrb.mxu1 %v9520_v21 }
 0x1e5   : > { %v9775_v12 = vld [vmem:[%s13857_s11 + $0x700] sm:$0xf]  ;;  %3447 = vst [vmem:[#allocation1] ss:$9 sm:$0xff] %v2639_v5  ;;  %v12306_v15 = vld [vmem:[%s13857_s11 + $0x8ec] sm:$0xf0]  ;;  %7501 = vmatpush.bf16.msrb.mxu2 %v9648_v22 }
 0x1e6   : > { %v10015_v14 = vld [vmem:[%s13857_s11 + $0x8e0] sm:$0xf]  ;;  %v12338_v18 = vld [vmem:[%s13857_s11 + $0x9ec] sm:$0xf0]  ;;  %v9776_v25 = vor.u32 %v12246_v13, %v9775_v12  ;;  %7476 = vmatmul.bf16.vlgmr.msrb.gmra.mxu0 %v14005_v8 }
 0x1e7   : > { %v10143_v16 = vld [vmem:[%s13857_s11 + $0x9e0] sm:$0xf]  ;;  %v12370_v20 = vld [vmem:[%s13857_s11 + $0xaec] sm:$0xf0]  ;;  %v10016_v26 = vor.u32 %v12306_v15, %v10015_v14  ;;  %7489 = vmatmul.bf16.vlgmr.msrb.gmra.mxu1 %v14009_v10 }
 0x1e8   : > { %v10271_v19 = vld [vmem:[%s13857_s11 + $0xae0] sm:$0xf]  ;;  %v12402_v24 = vld [vmem:[%s13857_s11 + $0xbec] sm:$0xf0]  ;;  %v10144_v27 = vor.u32 %v12338_v18, %v10143_v16  ;;  %7514 = vmatpush.bf16.msrb.mxu3 %v9776_v25  ;;  %7502 = vmatmul.bf16.vlgmr.msrb.gmra.mxu2 %v14000_v4 }
 0x1e9   : > { %v10399_v23 = vld [vmem:[%s13857_s11 + $0xbe0] sm:$0xf]  ;;  %v10272_v31 = vor.u32 %v12370_v20, %v10271_v19  ;;  %v12302_v33 = vld [vmem:[%s13857_s11 + $0x8cc] sm:$0xf0]  ;;  %7520 = vmatpush.bf16.msra.mxu0 %v10016_v26 }
 0x1ea   : > { %v9999_v32 = vld [vmem:[%s13857_s11 + $0x8c0] sm:$0xf]  ;;  %v10400_v36 = vor.u32 %v12402_v24, %v10399_v23  ;;  %v12334_v37 = vld [vmem:[%s13857_s11 + $0x9cc] sm:$0xf0]  ;;  %7533 = vmatpush.bf16.msra.mxu1 %v10144_v27 }
 0x1eb   : > { %v10127_v35 = vld [vmem:[%s13857_s11 + $0x9c0] sm:$0xf]  ;;  %v12366_v39 = vld [vmem:[%s13857_s11 + $0xacc] sm:$0xf0]  ;;  %v10000_v42 = vor.u32 %v12302_v33, %v9999_v32  ;;  %7546 = vmatpush.bf16.msra.mxu2 %v10272_v31  ;;  %7515 = vmatmul.bf16.vlgmr.msrb.gmra.mxu3 %v14007_v9 }
 0x1ec   : > { %v10255_v38 = vld [vmem:[%s13857_s11 + $0xac0] sm:$0xf]  ;;  %v12398_v41 = vld [vmem:[%s13857_s11 + $0xbcc] sm:$0xf0]  ;;  %v10128_v43 = vor.u32 %v12334_v37, %v10127_v35  ;;  %7559 = vmatpush.bf16.msra.mxu3 %v10400_v36 }
 0x1ed   : > { %v10383_v40 = vld [vmem:[%s13857_s11 + $0xbc0] sm:$0xf]  ;;  %v10256_v44 = vor.u32 %v12366_v39, %v10255_v38  ;;  %v12298_v46 = vld [vmem:[%s13857_s11 + $0x8ac] sm:$0xf0]  ;;  %7521 = vmatpush.bf16.msra.mxu0 %v10000_v42 }
 0x1ee   : > { %v9983_v45 = vld [vmem:[%s13857_s11 + $0x8a0] sm:$0xf]  ;;  %v10384_v48 = vor.u32 %v12398_v41, %v10383_v40  ;;  %v12330_v49 = vld [vmem:[%s13857_s11 + $0x9ac] sm:$0xf0]  ;;  %7534 = vmatpush.bf16.msra.mxu1 %v10128_v43 }
 0x1ef   : > { %v10111_v47 = vld [vmem:[%s13857_s11 + $0x9a0] sm:$0xf]  ;;  %v12362_v51 = vld [vmem:[%s13857_s11 + $0xaac] sm:$0xf0]  ;;  %v9984_v54 = vor.u32 %v12298_v46, %v9983_v45  ;;  %7547 = vmatpush.bf16.msra.mxu2 %v10256_v44 }
 0x1f0   : > { %v10239_v50 = vld [vmem:[%s13857_s11 + $0xaa0] sm:$0xf]  ;;  %v12394_v53 = vld [vmem:[%s13857_s11 + $0xbac] sm:$0xf0]  ;;  %v10112_v55 = vor.u32 %v12330_v49, %v10111_v47  ;;  %7560 = vmatpush.bf16.msra.mxu3 %v10384_v48 }
 0x1f1   : > { %v10367_v52 = vld [vmem:[%s13857_s11 + $0xba0] sm:$0xf]  ;;  %v10240_v56 = vor.u32 %v12362_v51, %v10239_v50  ;;  %v12294_v58 = vld [vmem:[%s13857_s11 + $0x88c] sm:$0xf0]  ;;  %7522 = vmatpush.bf16.msra.mxu0 %v9984_v54 }
 0x1f2   : > { %v9967_v57 = vld [vmem:[%s13857_s11 + $0x880] sm:$0xf]  ;;  %v10368_v60 = vor.u32 %v12394_v53, %v10367_v52  ;;  %v12326_v61 = vld [vmem:[%s13857_s11 + $0x98c] sm:$0xf0]  ;;  %7535 = vmatpush.bf16.msra.mxu1 %v10112_v55 }
 0x1f3   : > { %v10095_v59 = vld [vmem:[%s13857_s11 + $0x980] sm:$0xf]  ;;  %v12358_v63 = vld [vmem:[%s13857_s11 + $0xa8c] sm:$0xf0]  ;;  %v9968_v2 = vor.u32 %v12294_v58, %v9967_v57  ;;  %7548 = vmatpush.bf16.msra.mxu2 %v10240_v56 }
 0x1f4   : > { %v10223_v62 = vld [vmem:[%s13857_s11 + $0xa80] sm:$0xf]  ;;  %v12390_v1 = vld [vmem:[%s13857_s11 + $0xb8c] sm:$0xf0]  ;;  %v10096_v3 = vor.u32 %v12326_v61, %v10095_v59  ;;  %7561 = vmatpush.bf16.msra.mxu3 %v10368_v60 }
 0x1f5   : > { %v10351_v0 = vld [vmem:[%s13857_s11 + $0xb80] sm:$0xf]  ;;  %v10224_v5 = vor.u32 %v12358_v63, %v10223_v62  ;;  %v12290_v7 = vld [vmem:[%s13857_s11 + $0x86c] sm:$0xf0]  ;;  %7523 = vmatpush.bf16.msra.mxu0 %v9968_v2 }
 0x1f6   : > { %v9951_v6 = vld [vmem:[%s13857_s11 + $0x860] sm:$0xf]  ;;  %v10352_v12 = vor.u32 %v12390_v1, %v10351_v0  ;;  %v12322_v13 = vld [vmem:[%s13857_s11 + $0x96c] sm:$0xf0]  ;;  %7536 = vmatpush.bf16.msra.mxu1 %v10096_v3 }
 0x1f7   : > { %v10079_v11 = vld [vmem:[%s13857_s11 + $0x960] sm:$0xf]  ;;  %v12354_v15 = vld [vmem:[%s13857_s11 + $0xa6c] sm:$0xf0]  ;;  %v9952_v18 = vor.u32 %v12290_v7, %v9951_v6  ;;  %7549 = vmatpush.bf16.msra.mxu2 %v10224_v5 }
 0x1f8   : > { %v10207_v14 = vld [vmem:[%s13857_s11 + $0xa60] sm:$0xf]  ;;  %v12386_v17 = vld [vmem:[%s13857_s11 + $0xb6c] sm:$0xf0]  ;;  %v10080_v19 = vor.u32 %v12322_v13, %v10079_v11  ;;  %7562 = vmatpush.bf16.msra.mxu3 %v10352_v12 }
 0x1f9   : > { %v10335_v16 = vld [vmem:[%s13857_s11 + $0xb60] sm:$0xf]  ;;  %v10208_v20 = vor.u32 %v12354_v15, %v10207_v14  ;;  %v12286_v22 = vld [vmem:[%s13857_s11 + $0x84c] sm:$0xf0]  ;;  %7524 = vmatpush.bf16.msra.mxu0 %v9952_v18 }
 0x1fa   : > { %v9935_v21 = vld [vmem:[%s13857_s11 + $0x840] sm:$0xf]  ;;  %v10336_v24 = vor.u32 %v12386_v17, %v10335_v16  ;;  %v12318_v25 = vld [vmem:[%s13857_s11 + $0x94c] sm:$0xf0]  ;;  %7537 = vmatpush.bf16.msra.mxu1 %v10080_v19 }
 0x1fb   : > { %v10063_v23 = vld [vmem:[%s13857_s11 + $0x940] sm:$0xf]  ;;  %v12350_v27 = vld [vmem:[%s13857_s11 + $0xa4c] sm:$0xf0]  ;;  %v9936_v33 = vor.u32 %v12286_v22, %v9935_v21  ;;  %7550 = vmatpush.bf16.msra.mxu2 %v10208_v20  ;;  %v14095_v20 = vld [vmem:[#allocation1] sm:$0xff] }
 0x1fc   : > { %v10191_v26 = vld [vmem:[%s13857_s11 + $0xa40] sm:$0xf]  ;;  %v12382_v32 = vld [vmem:[%s13857_s11 + $0xb4c] sm:$0xf0]  ;;  %v10064_v35 = vor.u32 %v12318_v25, %v10063_v23  ;;  %7563 = vmatpush.bf16.msra.mxu3 %v10336_v24 }
 0x1fd   : > { %v10319_v31 = vld [vmem:[%s13857_s11 + $0xb40] sm:$0xf]  ;;  %v10192_v36 = vor.u32 %v12350_v27, %v10191_v26  ;;  %v12282_v38 = vld [vmem:[%s13857_s11 + $0x82c] sm:$0xf0]  ;;  %7525 = vmatpush.bf16.msra.mxu0 %v9936_v33 }
 0x1fe   : > { %v9919_v37 = vld [vmem:[%s13857_s11 + $0x820] sm:$0xf]  ;;  %v10320_v40 = vor.u32 %v12382_v32, %v10319_v31  ;;  %v12314_v41 = vld [vmem:[%s13857_s11 + $0x92c] sm:$0xf0]  ;;  %7538 = vmatpush.bf16.msra.mxu1 %v10064_v35 }
 0x1ff   : > { %v10047_v39 = vld [vmem:[%s13857_s11 + $0x920] sm:$0xf]  ;;  %v12346_v43 = vld [vmem:[%s13857_s11 + $0xa2c] sm:$0xf0]  ;;  %v9920_v46 = vor.u32 %v12282_v38, %v9919_v37  ;;  %7551 = vmatpush.bf16.msra.mxu2 %v10192_v36 }
 0x200   : > { %v10175_v42 = vld [vmem:[%s13857_s11 + $0xa20] sm:$0xf]  ;;  %v12378_v45 = vld [vmem:[%s13857_s11 + $0xb2c] sm:$0xf0]  ;;  %v10048_v49 = vor.u32 %v12314_v41, %v10047_v39  ;;  %7564 = vmatpush.bf16.msra.mxu3 %v10320_v40 }
 0x201   : > { %v10303_v44 = vld [vmem:[%s13857_s11 + $0xb20] sm:$0xf]  ;;  %v12278_v48 = vld [vmem:[%s13857_s11 + $0x80c] sm:$0xf0]  ;;  %v10176_v50 = vor.u32 %v12346_v43, %v10175_v42  ;;  %7526 = vmatpush.bf16.msra.mxu0 %v9920_v46 }
 0x202   : > { %v9903_v47 = vld [vmem:[%s13857_s11 + $0x800] sm:$0xf]  ;;  %v12310_v52 = vld [vmem:[%s13857_s11 + $0x90c] sm:$0xf0]  ;;  %v10304_v54 = vor.u32 %v12378_v45, %v10303_v44  ;;  %7539 = vmatpush.bf16.msra.mxu1 %v10048_v49 }
 0x203   : > { %v10031_v51 = vld [vmem:[%s13857_s11 + $0x900] sm:$0xf]  ;;  %v12342_v55 = vld [vmem:[%s13857_s11 + $0xa0c] sm:$0xf0]  ;;  %v9904_v61 = vor.u32 %v12278_v48, %v9903_v47  ;;  %7552 = vmatpush.bf16.msra.mxu2 %v10176_v50 }
 0x204   : > { %v10159_v53 = vld [vmem:[%s13857_s11 + $0xa00] sm:$0xf]  ;;  %v12374_v57 = vld [vmem:[%s13857_s11 + $0xb0c] sm:$0xf0]  ;;  %v10032_v1 = vor.u32 %v12310_v52, %v10031_v51  ;;  %7565 = vmatpush.bf16.msra.mxu3 %v10304_v54 }
 0x205   : > { %v10287_v56 = vld [vmem:[%s13857_s11 + $0xb00] sm:$0xf]  ;;  %v12434_v59 = vld [vmem:[%s13857_s11 + $0xcec] sm:$0xf0]  ;;  %v10160_v2 = vor.u32 %v12342_v55, %v10159_v53  ;;  %7527 = vmatpush.bf16.msra.mxu0 %v9904_v61 }
 0x206   : > { %v10527_v58 = vld [vmem:[%s13857_s11 + $0xce0] sm:$0xf]  ;;  %v12466_v62 = vld [vmem:[%s13857_s11 + $0xdec] sm:$0xf0]  ;;  %v10288_v6 = vor.u32 %v12374_v57, %v10287_v56  ;;  %7540 = vmatpush.bf16.msra.mxu1 %v10032_v1 }
 0x207   : > { %v10655_v60 = vld [vmem:[%s13857_s11 + $0xde0] sm:$0xf]  ;;  %v12498_v0 = vld [vmem:[%s13857_s11 + $0xeec] sm:$0xf0]  ;;  %v10528_v7 = vor.u32 %v12434_v59, %v10527_v58  ;;  %7553 = vmatpush.bf16.msra.mxu2 %v10160_v2 }
 0x208   : > { %v10783_v63 = vld [vmem:[%s13857_s11 + $0xee0] sm:$0xf]  ;;  %v12530_v5 = vld [vmem:[%s13857_s11 + $0xfec] sm:$0xf0]  ;;  %v10656_v11 = vor.u32 %v12466_v62, %v10655_v60  ;;  %7566 = vmatpush.bf16.msra.mxu3 %v10288_v6  ;;  %7528 = vmatmul.bf16.vlgmr.msra.gmra.mxu0 %v14095_v20 }
 0x209   : > { %v10911_v3 = vld [vmem:[%s13857_s11 + $0xfe0] sm:$0xf]  ;;  %v10784_v12 = vor.u32 %v12498_v0, %v10783_v63  ;;  %v12430_v14 = vld [vmem:[%s13857_s11 + $0xccc] sm:$0xf0]  ;;  %7572 = vmatpush.bf16.msrb.mxu0 %v10528_v7 }
 0x20a   : > { %v10511_v13 = vld [vmem:[%s13857_s11 + $0xcc0] sm:$0xf]  ;;  %v10912_v16 = vor.u32 %v12530_v5, %v10911_v3  ;;  %v12462_v17 = vld [vmem:[%s13857_s11 + $0xdcc] sm:$0xf0]  ;;  %7585 = vmatpush.bf16.msrb.mxu1 %v10656_v11 }
 0x20b   : > { %v10639_v15 = vld [vmem:[%s13857_s11 + $0xdc0] sm:$0xf]  ;;  %v12494_v19 = vld [vmem:[%s13857_s11 + $0xecc] sm:$0xf0]  ;;  %v10512_v26 = vor.u32 %v12430_v14, %v10511_v13  ;;  %7598 = vmatpush.bf16.msrb.mxu2 %v10784_v12 }
 0x20c   : > { %v10767_v18 = vld [vmem:[%s13857_s11 + $0xec0] sm:$0xf]  ;;  %v12526_v22 = vld [vmem:[%s13857_s11 + $0xfcc] sm:$0xf0]  ;;  %v10640_v27 = vor.u32 %v12462_v17, %v10639_v15  ;;  %7611 = vmatpush.bf16.msrb.mxu3 %v10912_v16 }
 0x20d   : > { %v10895_v21 = vld [vmem:[%s13857_s11 + $0xfc0] sm:$0xf]  ;;  %v14099_v23 = vld [vmem:[#allocation1 + $0x12] sm:$0xff]  ;;  %v14103_v25 = vld [vmem:[#allocation1 + $0x1b] sm:$0xff]  ;;  %v10768_v31 = vor.u32 %v12494_v19, %v10767_v18  ;;  %7573 = vmatpush.bf16.msrb.mxu0 %v10512_v26 }
 0x20e   : > { %v14101_v24 = vld [vmem:[#allocation1 + $0x9] sm:$0xff]  ;;  %v12426_v33 = vld [vmem:[%s13857_s11 + $0xcac] sm:$0xf0]  ;;  %v10896_v36 = vor.u32 %v12526_v22, %v10895_v21  ;;  %7554 = vmatmul.bf16.vlgmr.msra.gmra.mxu2 %v14099_v23  ;;  %7567 = vmatmul.bf16.vlgmr.msra.gmra.mxu3 %v14103_v25 }
 0x20f   : > { %v10495_v32 = vld [vmem:[%s13857_s11 + $0xca0] sm:$0xf]  ;;  %v12458_v37 = vld [vmem:[%s13857_s11 + $0xdac] sm:$0xf0]  ;;  %7541 = vmatmul.bf16.vlgmr.msra.gmra.mxu1 %v14101_v24  ;;  %7599 = vmatpush.bf16.msrb.mxu2 %v10768_v31 }
 0x210   : > { %v10623_v35 = vld [vmem:[%s13857_s11 + $0xda0] sm:$0xf]  ;;  %v12490_v39 = vld [vmem:[%s13857_s11 + $0xeac] sm:$0xf0]  ;;  %v10496_v42 = vor.u32 %v12426_v33, %v10495_v32  ;;  %7586 = vmatpush.bf16.msrb.mxu1 %v10640_v27  ;;  %7612 = vmatpush.bf16.msrb.mxu3 %v10896_v36 }
 0x211   : > { %v10751_v38 = vld [vmem:[%s13857_s11 + $0xea0] sm:$0xf]  ;;  %v12522_v41 = vld [vmem:[%s13857_s11 + $0xfac] sm:$0xf0]  ;;  %v10624_v43 = vor.u32 %v12458_v37, %v10623_v35 }
 0x212   : > { %v10879_v40 = vld [vmem:[%s13857_s11 + $0xfa0] sm:$0xf]  ;;  %v10752_v44 = vor.u32 %v12490_v39, %v10751_v38  ;;  %v12422_v46 = vld [vmem:[%s13857_s11 + $0xc8c] sm:$0xf0]  ;;  %7574 = vmatpush.bf16.msrb.mxu0 %v10496_v42 }
 0x213   : > { %v10479_v45 = vld [vmem:[%s13857_s11 + $0xc80] sm:$0xf]  ;;  %v10880_v48 = vor.u32 %v12522_v41, %v10879_v40  ;;  %v12454_v49 = vld [vmem:[%s13857_s11 + $0xd8c] sm:$0xf0] }
 0x214   : > { %v10607_v47 = vld [vmem:[%s13857_s11 + $0xd80] sm:$0xf]  ;;  %v12486_v51 = vld [vmem:[%s13857_s11 + $0xe8c] sm:$0xf0]  ;;  %v10480_v54 = vor.u32 %v12422_v46, %v10479_v45  ;;  %7587 = vmatpush.bf16.msrb.mxu1 %v10624_v43  ;;  %7600 = vmatpush.bf16.msrb.mxu2 %v10752_v44 }
 0x215   : > { %v10735_v50 = vld [vmem:[%s13857_s11 + $0xe80] sm:$0xf]  ;;  %v12518_v53 = vld [vmem:[%s13857_s11 + $0xf8c] sm:$0xf0]  ;;  %v10608_v55 = vor.u32 %v12454_v49, %v10607_v47  ;;  %7613 = vmatpush.bf16.msrb.mxu3 %v10880_v48 }
 0x216   : > { %v10863_v52 = vld [vmem:[%s13857_s11 + $0xf80] sm:$0xf]  ;;  %v10736_v56 = vor.u32 %v12486_v51, %v10735_v50  ;;  %v12418_v58 = vld [vmem:[%s13857_s11 + $0xc6c] sm:$0xf0]  ;;  %7575 = vmatpush.bf16.msrb.mxu0 %v10480_v54 }
 0x217   : > { %v10463_v57 = vld [vmem:[%s13857_s11 + $0xc60] sm:$0xf]  ;;  %v10864_v60 = vor.u32 %v12518_v53, %v10863_v52  ;;  %v12450_v61 = vld [vmem:[%s13857_s11 + $0xd6c] sm:$0xf0] }
 0x218   : > { %v10591_v59 = vld [vmem:[%s13857_s11 + $0xd60] sm:$0xf]  ;;  %v12482_v63 = vld [vmem:[%s13857_s11 + $0xe6c] sm:$0xf0]  ;;  %v10464_v2 = vor.u32 %v12418_v58, %v10463_v57  ;;  %7588 = vmatpush.bf16.msrb.mxu1 %v10608_v55  ;;  %7601 = vmatpush.bf16.msrb.mxu2 %v10736_v56  ;;  %v14165_v56 = vld [vmem:[#allocation1 + $0x2d] sm:$0xff] }
 0x219   : > { %v10719_v62 = vld [vmem:[%s13857_s11 + $0xe60] sm:$0xf]  ;;  %v12514_v1 = vld [vmem:[%s13857_s11 + $0xf6c] sm:$0xf0]  ;;  %v10592_v3 = vor.u32 %v12450_v61, %v10591_v59  ;;  %7614 = vmatpush.bf16.msrb.mxu3 %v10864_v60  ;;  %v14167_v57 = vld [vmem:[#allocation1 + $0x3f] sm:$0xff] }
 0x21a   : > { %v10847_v0 = vld [vmem:[%s13857_s11 + $0xf60] sm:$0xf]  ;;  %v10720_v5 = vor.u32 %v12482_v63, %v10719_v62  ;;  %v12414_v7 = vld [vmem:[%s13857_s11 + $0xc4c] sm:$0xf0]  ;;  %7576 = vmatpush.bf16.msrb.mxu0 %v10464_v2  ;;  %v2640_v58 = vld [vmem:[%s15684_s0 + $0x10] sm:$0xff] }
 0x21b   : > { %v10447_v6 = vld [vmem:[%s13857_s11 + $0xc40] sm:$0xf]  ;;  %v10848_v12 = vor.u32 %v12514_v1, %v10847_v0  ;;  %v12446_v13 = vld [vmem:[%s13857_s11 + $0xd4c] sm:$0xf0] }
 0x21c   : > { %v10575_v11 = vld [vmem:[%s13857_s11 + $0xd40] sm:$0xf]  ;;  %v12478_v15 = vld [vmem:[%s13857_s11 + $0xe4c] sm:$0xf0]  ;;  %v10448_v18 = vor.u32 %v12414_v7, %v10447_v6  ;;  %7589 = vmatpush.bf16.msrb.mxu1 %v10592_v3  ;;  %7602 = vmatpush.bf16.msrb.mxu2 %v10720_v5 }
 0x21d   : > { %v10703_v14 = vld [vmem:[%s13857_s11 + $0xe40] sm:$0xf]  ;;  %v12510_v17 = vld [vmem:[%s13857_s11 + $0xf4c] sm:$0xf0]  ;;  %v10576_v21 = vor.u32 %v12446_v13, %v10575_v11  ;;  %7615 = vmatpush.bf16.msrb.mxu3 %v10848_v12 }
 0x21e   : > { %v10831_v16 = vld [vmem:[%s13857_s11 + $0xf40] sm:$0xf]  ;;  %v10704_v22 = vor.u32 %v12478_v15, %v10703_v14  ;;  %v12410_v26 = vld [vmem:[%s13857_s11 + $0xc2c] sm:$0xf0]  ;;  %7577 = vmatpush.bf16.msrb.mxu0 %v10448_v18 }
 0x21f   : > { %v10431_v19 = vld [vmem:[%s13857_s11 + $0xc20] sm:$0xf]  ;;  %v12442_v31 = vld [vmem:[%s13857_s11 + $0xd2c] sm:$0xf0]  ;;  %v10832_v32 = vor.u32 %v12510_v17, %v10831_v16 }
 0x220   : > { %v10559_v27 = vld [vmem:[%s13857_s11 + $0xd20] sm:$0xf]  ;;  %v12474_v35 = vld [vmem:[%s13857_s11 + $0xe2c] sm:$0xf0]  ;;  %v10432_v40 = vor.u32 %v12410_v26, %v10431_v19  ;;  %7590 = vmatpush.bf16.msrb.mxu1 %v10576_v21  ;;  %7603 = vmatpush.bf16.msrb.mxu2 %v10704_v22 }
 0x221   : > { %v10687_v33 = vld [vmem:[%s13857_s11 + $0xe20] sm:$0xf]  ;;  %v12506_v37 = vld [vmem:[%s13857_s11 + $0xf2c] sm:$0xf0]  ;;  %v10560_v45 = vor.u32 %v12442_v31, %v10559_v27  ;;  %7616 = vmatpush.bf16.msrb.mxu3 %v10832_v32 }
 0x222   : > { %v10815_v36 = vld [vmem:[%s13857_s11 + $0xf20] sm:$0xf]  ;;  %v12406_v39 = vld [vmem:[%s13857_s11 + $0xc0c] sm:$0xf0]  ;;  %v10688_v46 = vor.u32 %v12474_v35, %v10687_v33  ;;  %7578 = vmatpush.bf16.msrb.mxu0 %v10432_v40 }
 0x223   : > { %v10415_v38 = vld [vmem:[%s13857_s11 + $0xc00] sm:$0xf]  ;;  %v12438_v42 = vld [vmem:[%s13857_s11 + $0xd0c] sm:$0xf0]  ;;  %v10816_v51 = vor.u32 %v12506_v37, %v10815_v36 }
 0x224   : > { %v10543_v41 = vld [vmem:[%s13857_s11 + $0xd00] sm:$0xf]  ;;  %v12470_v44 = vld [vmem:[%s13857_s11 + $0xe0c] sm:$0xf0]  ;;  %v10416_v59 = vor.u32 %v12406_v39, %v10415_v38  ;;  %7591 = vmatpush.bf16.msrb.mxu1 %v10560_v45  ;;  %7604 = vmatpush.bf16.msrb.mxu2 %v10688_v46 }
 0x225   : > { %v10671_v43 = vld [vmem:[%s13857_s11 + $0xe00] sm:$0xf]  ;;  %v12502_v48 = vld [vmem:[%s13857_s11 + $0xf0c] sm:$0xf0]  ;;  %v10544_v62 = vor.u32 %v12438_v42, %v10543_v41  ;;  %7617 = vmatpush.bf16.msrb.mxu3 %v10816_v51 }
 0x226   : > { %v10799_v47 = vld [vmem:[%s13857_s11 + $0xf00] sm:$0xf]  ;;  %v12562_v50 = vld [vmem:[%s13857_s11 + $0x10ec] sm:$0xf0]  ;;  %v10672_v63 = vor.u32 %v12470_v44, %v10671_v43  ;;  %7579 = vmatpush.bf16.msrb.mxu0 %v10416_v59 }
 0x227   : > { %v11039_v49 = vld [vmem:[%s13857_s11 + $0x10e0] sm:$0xf]  ;;  %v12594_v53 = vld [vmem:[%s13857_s11 + $0x11ec] sm:$0xf0]  ;;  %v10800_v2 = vor.u32 %v12502_v48, %v10799_v47 }
 0x228   : > { %v11167_v52 = vld [vmem:[%s13857_s11 + $0x11e0] sm:$0xf]  ;;  %v14163_v55 = vld [vmem:[#allocation1 + $0x36] sm:$0xff]  ;;  %v11040_v3 = vor.u32 %v12562_v50, %v11039_v49  ;;  %7592 = vmatpush.bf16.msrb.mxu1 %v10544_v62  ;;  %7605 = vmatpush.bf16.msrb.mxu2 %v10672_v63 }
 0x229   : > { %v14161_v54 = vld [vmem:[#allocation1 + $0x24] sm:$0xff]  ;;  %v12626_v61 = vld [vmem:[%s13857_s11 + $0x12ec] sm:$0xf0]  ;;  %v11168_v5 = vor.u32 %v12594_v53, %v11167_v52  ;;  %7618 = vmatpush.bf16.msrb.mxu3 %v10800_v2 }
 0x22a   : > { %v11295_v60 = vld [vmem:[%s13857_s11 + $0x12e0] sm:$0xf]  ;;  %3457 = vst [vmem:[#allocation1] ss:$9 sm:$0xff] %v2640_v58  ;;  %v12658_v1 = vld [vmem:[%s13857_s11 + $0x13ec] sm:$0xf0]  ;;  %7624 = vmatpush.bf16.msra.mxu0 %v11040_v3 }
 0x22b   : > { %v11423_v0 = vld [vmem:[%s13857_s11 + $0x13e0] sm:$0xf]  ;;  %v11296_v6 = vor.u32 %v12626_v61, %v11295_v60  ;;  %v12558_v11 = vld [vmem:[%s13857_s11 + $0x10cc] sm:$0xf0]  ;;  %7580 = vmatmul.bf16.vlgmr.msrb.gmra.mxu0 %v14161_v54  ;;  %7606 = vmatmul.bf16.vlgmr.msrb.gmra.mxu2 %v14163_v55 }
 0x22c   : > { %v11023_v7 = vld [vmem:[%s13857_s11 + $0x10c0] sm:$0xf]  ;;  %v11424_v13 = vor.u32 %v12658_v1, %v11423_v0  ;;  %v12590_v14 = vld [vmem:[%s13857_s11 + $0x11cc] sm:$0xf0]  ;;  %7637 = vmatpush.bf16.msra.mxu1 %v11168_v5  ;;  %7619 = vmatmul.bf16.vlgmr.msrb.gmra.mxu3 %v14167_v57 }
 0x22d   : > { %v11151_v12 = vld [vmem:[%s13857_s11 + $0x11c0] sm:$0xf]  ;;  %v12622_v16 = vld [vmem:[%s13857_s11 + $0x12cc] sm:$0xf0]  ;;  %v11024_v19 = vor.u32 %v12558_v11, %v11023_v7  ;;  %7650 = vmatpush.bf16.msra.mxu2 %v11296_v6  ;;  %7593 = vmatmul.bf16.vlgmr.msrb.gmra.mxu1 %v14165_v56 }
 0x22e   : > { %v11279_v15 = vld [vmem:[%s13857_s11 + $0x12c0] sm:$0xf]  ;;  %v12654_v18 = vld [vmem:[%s13857_s11 + $0x13cc] sm:$0xf0]  ;;  %v11152_v21 = vor.u32 %v12590_v14, %v11151_v12  ;;  %7663 = vmatpush.bf16.msra.mxu3 %v11424_v13 }
 0x22f   : > { %v11407_v17 = vld [vmem:[%s13857_s11 + $0x13c0] sm:$0xf]  ;;  %v11280_v22 = vor.u32 %v12622_v16, %v11279_v15  ;;  %v12554_v27 = vld [vmem:[%s13857_s11 + $0x10ac] sm:$0xf0]  ;;  %7625 = vmatpush.bf16.msra.mxu0 %v11024_v19 }
 0x230   : > { %v11007_v26 = vld [vmem:[%s13857_s11 + $0x10a0] sm:$0xf]  ;;  %v11408_v32 = vor.u32 %v12654_v18, %v11407_v17  ;;  %v12586_v33 = vld [vmem:[%s13857_s11 + $0x11ac] sm:$0xf0]  ;;  %7638 = vmatpush.bf16.msra.mxu1 %v11152_v21 }
 0x231   : > { %v11135_v31 = vld [vmem:[%s13857_s11 + $0x11a0] sm:$0xf]  ;;  %v12618_v36 = vld [vmem:[%s13857_s11 + $0x12ac] sm:$0xf0]  ;;  %v11008_v39 = vor.u32 %v12554_v27, %v11007_v26  ;;  %7651 = vmatpush.bf16.msra.mxu2 %v11280_v22 }
 0x232   : > { %v11263_v35 = vld [vmem:[%s13857_s11 + $0x12a0] sm:$0xf]  ;;  %v12650_v38 = vld [vmem:[%s13857_s11 + $0x13ac] sm:$0xf0]  ;;  %v11136_v40 = vor.u32 %v12586_v33, %v11135_v31  ;;  %7664 = vmatpush.bf16.msra.mxu3 %v11408_v32 }
 0x233   : > { %v11391_v37 = vld [vmem:[%s13857_s11 + $0x13a0] sm:$0xf]  ;;  %v11264_v41 = vor.u32 %v12618_v36, %v11263_v35  ;;  %v12550_v43 = vld [vmem:[%s13857_s11 + $0x108c] sm:$0xf0]  ;;  %7626 = vmatpush.bf16.msra.mxu0 %v11008_v39 }
 0x234   : > { %v10991_v42 = vld [vmem:[%s13857_s11 + $0x1080] sm:$0xf]  ;;  %v11392_v45 = vor.u32 %v12650_v38, %v11391_v37  ;;  %v12582_v46 = vld [vmem:[%s13857_s11 + $0x118c] sm:$0xf0]  ;;  %7639 = vmatpush.bf16.msra.mxu1 %v11136_v40 }
 0x235   : > { %v11119_v44 = vld [vmem:[%s13857_s11 + $0x1180] sm:$0xf]  ;;  %v12614_v48 = vld [vmem:[%s13857_s11 + $0x128c] sm:$0xf0]  ;;  %v10992_v51 = vor.u32 %v12550_v43, %v10991_v42  ;;  %7652 = vmatpush.bf16.msra.mxu2 %v11264_v41 }
 0x236   : > { %v11247_v47 = vld [vmem:[%s13857_s11 + $0x1280] sm:$0xf]  ;;  %v12646_v50 = vld [vmem:[%s13857_s11 + $0x138c] sm:$0xf0]  ;;  %v11120_v52 = vor.u32 %v12582_v46, %v11119_v44  ;;  %7665 = vmatpush.bf16.msra.mxu3 %v11392_v45 }
 0x237   : > { %v11375_v49 = vld [vmem:[%s13857_s11 + $0x1380] sm:$0xf]  ;;  %v11248_v53 = vor.u32 %v12614_v48, %v11247_v47  ;;  %v12546_v59 = vld [vmem:[%s13857_s11 + $0x106c] sm:$0xf0]  ;;  %7627 = vmatpush.bf16.msra.mxu0 %v10992_v51 }
 0x238   : > { %v10975_v58 = vld [vmem:[%s13857_s11 + $0x1060] sm:$0xf]  ;;  %v11376_v61 = vor.u32 %v12646_v50, %v11375_v49  ;;  %v12578_v62 = vld [vmem:[%s13857_s11 + $0x116c] sm:$0xf0]  ;;  %7640 = vmatpush.bf16.msra.mxu1 %v11120_v52 }
 0x239   : > { %v11103_v60 = vld [vmem:[%s13857_s11 + $0x1160] sm:$0xf]  ;;  %v12610_v0 = vld [vmem:[%s13857_s11 + $0x126c] sm:$0xf0]  ;;  %v10976_v3 = vor.u32 %v12546_v59, %v10975_v58  ;;  %7653 = vmatpush.bf16.msra.mxu2 %v11248_v53 }
 0x23a   : > { %v11231_v63 = vld [vmem:[%s13857_s11 + $0x1260] sm:$0xf]  ;;  %v12642_v2 = vld [vmem:[%s13857_s11 + $0x136c] sm:$0xf0]  ;;  %v11104_v5 = vor.u32 %v12578_v62, %v11103_v60  ;;  %7666 = vmatpush.bf16.msra.mxu3 %v11376_v61 }
 0x23b   : > { %v11359_v1 = vld [vmem:[%s13857_s11 + $0x1360] sm:$0xf]  ;;  %v11232_v6 = vor.u32 %v12610_v0, %v11231_v63  ;;  %v12542_v11 = vld [vmem:[%s13857_s11 + $0x104c] sm:$0xf0]  ;;  %7628 = vmatpush.bf16.msra.mxu0 %v10976_v3 }
 0x23c   : > { %v10959_v7 = vld [vmem:[%s13857_s11 + $0x1040] sm:$0xf]  ;;  %v11360_v13 = vor.u32 %v12642_v2, %v11359_v1  ;;  %v12574_v14 = vld [vmem:[%s13857_s11 + $0x114c] sm:$0xf0]  ;;  %7641 = vmatpush.bf16.msra.mxu1 %v11104_v5 }
 0x23d   : > { %v11087_v12 = vld [vmem:[%s13857_s11 + $0x1140] sm:$0xf]  ;;  %v12606_v16 = vld [vmem:[%s13857_s11 + $0x124c] sm:$0xf0]  ;;  %v10960_v19 = vor.u32 %v12542_v11, %v10959_v7  ;;  %7654 = vmatpush.bf16.msra.mxu2 %v11232_v6 }
 0x23e   : > { %v11215_v15 = vld [vmem:[%s13857_s11 + $0x1240] sm:$0xf]  ;;  %v12638_v18 = vld [vmem:[%s13857_s11 + $0x134c] sm:$0xf0]  ;;  %v11088_v21 = vor.u32 %v12574_v14, %v11087_v12  ;;  %7667 = vmatpush.bf16.msra.mxu3 %v11360_v13 }
 0x23f   : > { %v11343_v17 = vld [vmem:[%s13857_s11 + $0x1340] sm:$0xf]  ;;  %v11216_v22 = vor.u32 %v12606_v16, %v11215_v15  ;;  %v12538_v27 = vld [vmem:[%s13857_s11 + $0x102c] sm:$0xf0]  ;;  %7629 = vmatpush.bf16.msra.mxu0 %v10960_v19 }
 0x240   : > { %v10943_v26 = vld [vmem:[%s13857_s11 + $0x1020] sm:$0xf]  ;;  %v11344_v32 = vor.u32 %v12638_v18, %v11343_v17  ;;  %v12570_v33 = vld [vmem:[%s13857_s11 + $0x112c] sm:$0xf0]  ;;  %7642 = vmatpush.bf16.msra.mxu1 %v11088_v21  ;;  %v14251_v17 = vld [vmem:[#allocation1] sm:$0xff] }
 0x241   : > { %v11071_v31 = vld [vmem:[%s13857_s11 + $0x1120] sm:$0xf]  ;;  %v12602_v36 = vld [vmem:[%s13857_s11 + $0x122c] sm:$0xf0]  ;;  %v10944_v39 = vor.u32 %v12538_v27, %v10943_v26  ;;  %7655 = vmatpush.bf16.msra.mxu2 %v11216_v22 }
 0x242   : > { %v11199_v35 = vld [vmem:[%s13857_s11 + $0x1220] sm:$0xf]  ;;  %v12634_v38 = vld [vmem:[%s13857_s11 + $0x132c] sm:$0xf0]  ;;  %v11072_v42 = vor.u32 %v12570_v33, %v11071_v31  ;;  %7668 = vmatpush.bf16.msra.mxu3 %v11344_v32 }
 0x243   : > { %v11327_v37 = vld [vmem:[%s13857_s11 + $0x1320] sm:$0xf]  ;;  %v12534_v41 = vld [vmem:[%s13857_s11 + $0x100c] sm:$0xf0]  ;;  %v11200_v43 = vor.u32 %v12602_v36, %v11199_v35  ;;  %7630 = vmatpush.bf16.msra.mxu0 %v10944_v39 }
 0x244   : > { %v10927_v40 = vld [vmem:[%s13857_s11 + $0x1000] sm:$0xf]  ;;  %v12566_v45 = vld [vmem:[%s13857_s11 + $0x110c] sm:$0xf0]  ;;  %v11328_v47 = vor.u32 %v12634_v38, %v11327_v37  ;;  %7643 = vmatpush.bf16.msra.mxu1 %v11072_v42 }
 0x245   : > { %v11055_v44 = vld [vmem:[%s13857_s11 + $0x1100] sm:$0xf]  ;;  %v12598_v48 = vld [vmem:[%s13857_s11 + $0x120c] sm:$0xf0]  ;;  %v10928_v58 = vor.u32 %v12534_v41, %v10927_v40  ;;  %7656 = vmatpush.bf16.msra.mxu2 %v11200_v43 }
 0x246   : > { %v11183_v46 = vld [vmem:[%s13857_s11 + $0x1200] sm:$0xf]  ;;  %v12630_v50 = vld [vmem:[%s13857_s11 + $0x130c] sm:$0xf0]  ;;  %v11056_v62 = vor.u32 %v12566_v45, %v11055_v44  ;;  %7669 = vmatpush.bf16.msra.mxu3 %v11328_v47 }
 0x247   : > { %v11311_v49 = vld [vmem:[%s13857_s11 + $0x1300] sm:$0xf]  ;;  %v12690_v52 = vld [vmem:[%s13857_s11 + $0x14ec] sm:$0xf0]  ;;  %v11184_v63 = vor.u32 %v12598_v48, %v11183_v46  ;;  %7631 = vmatpush.bf16.msra.mxu0 %v10928_v58 }
 0x248   : > { %v11551_v51 = vld [vmem:[%s13857_s11 + $0x14e0] sm:$0xf]  ;;  %v12722_v59 = vld [vmem:[%s13857_s11 + $0x15ec] sm:$0xf0]  ;;  %v11312_v2 = vor.u32 %v12630_v50, %v11311_v49  ;;  %7644 = vmatpush.bf16.msra.mxu1 %v11056_v62 }
 0x249   : > { %v11679_v53 = vld [vmem:[%s13857_s11 + $0x15e0] sm:$0xf]  ;;  %v12754_v61 = vld [vmem:[%s13857_s11 + $0x16ec] sm:$0xf0]  ;;  %v11552_v3 = vor.u32 %v12690_v52, %v11551_v51  ;;  %7657 = vmatpush.bf16.msra.mxu2 %v11184_v63 }
 0x24a   : > { %v11807_v60 = vld [vmem:[%s13857_s11 + $0x16e0] sm:$0xf]  ;;  %v12786_v1 = vld [vmem:[%s13857_s11 + $0x17ec] sm:$0xf0]  ;;  %v11680_v5 = vor.u32 %v12722_v59, %v11679_v53  ;;  %7670 = vmatpush.bf16.msra.mxu3 %v11312_v2  ;;  %7632 = vmatmul.bf16.vlgmr.msra.gmra.mxu0 %v14251_v17 }
 0x24b   : > { %v11935_v0 = vld [vmem:[%s13857_s11 + $0x17e0] sm:$0xf]  ;;  %v11808_v6 = vor.u32 %v12754_v61, %v11807_v60  ;;  %v12686_v11 = vld [vmem:[%s13857_s11 + $0x14cc] sm:$0xf0]  ;;  %7676 = vmatpush.bf16.msrb.mxu0 %v11552_v3 }
 0x24c   : > { %v11535_v7 = vld [vmem:[%s13857_s11 + $0x14c0] sm:$0xf]  ;;  %v11936_v13 = vor.u32 %v12786_v1, %v11935_v0  ;;  %v12718_v14 = vld [vmem:[%s13857_s11 + $0x15cc] sm:$0xf0]  ;;  %7689 = vmatpush.bf16.msrb.mxu1 %v11680_v5 }
 0x24d   : > { %v11663_v12 = vld [vmem:[%s13857_s11 + $0x15c0] sm:$0xf]  ;;  %v12750_v16 = vld [vmem:[%s13857_s11 + $0x16cc] sm:$0xf0]  ;;  %v11536_v27 = vor.u32 %v12686_v11, %v11535_v7  ;;  %7702 = vmatpush.bf16.msrb.mxu2 %v11808_v6  ;;  %v3426_v11 = vld [vmem:[%s14299_s27] sm:$0xf] }
 0x24e   : > { %v11791_v15 = vld [vmem:[%s13857_s11 + $0x16c0] sm:$0xf]  ;;  %v12782_v19 = vld [vmem:[%s13857_s11 + $0x17cc] sm:$0xf0]  ;;  %v11664_v31 = vor.u32 %v12718_v14, %v11663_v12  ;;  %7715 = vmatpush.bf16.msrb.mxu3 %v11936_v13  ;;  %v14312_v14 = vld [vmem:[#allocation1 + $0x2d] sm:$0xff] }
 0x24f   : > { %v11919_v18 = vld [vmem:[%s13857_s11 + $0x17c0] sm:$0xf]  ;;  %v14261_v21 = vld [vmem:[#allocation1 + $0x12] sm:$0xff]  ;;  %v14265_v26 = vld [vmem:[#allocation1 + $0x1b] sm:$0xff]  ;;  %v11792_v32 = vor.u32 %v12750_v16, %v11791_v15  ;;  %7677 = vmatpush.bf16.msrb.mxu0 %v11536_v27 }
 0x250   : > { %v14263_v22 = vld [vmem:[#allocation1 + $0x9] sm:$0xff]  ;;  %v12682_v35 = vld [vmem:[%s13857_s11 + $0x14ac] sm:$0xf0]  ;;  %v11920_v37 = vor.u32 %v12782_v19, %v11919_v18  ;;  %7658 = vmatmul.bf16.vlgmr.msra.gmra.mxu2 %v14261_v21  ;;  %7671 = vmatmul.bf16.vlgmr.msra.gmra.mxu3 %v14265_v26  ;;  %v14314_v15 = vld [vmem:[#allocation1 + $0x3f] sm:$0xff] }
 0x251   : > { %v11519_v33 = vld [vmem:[%s13857_s11 + $0x14a0] sm:$0xf]  ;;  %v12714_v38 = vld [vmem:[%s13857_s11 + $0x15ac] sm:$0xf0]  ;;  %7645 = vmatmul.bf16.vlgmr.msra.gmra.mxu1 %v14263_v22  ;;  %7703 = vmatpush.bf16.msrb.mxu2 %v11792_v32 }
 0x252   : > { %v11647_v36 = vld [vmem:[%s13857_s11 + $0x15a0] sm:$0xf]  ;;  %v12746_v40 = vld [vmem:[%s13857_s11 + $0x16ac] sm:$0xf0]  ;;  %v11520_v43 = vor.u32 %v12682_v35, %v11519_v33  ;;  %7690 = vmatpush.bf16.msrb.mxu1 %v11664_v31  ;;  %7716 = vmatpush.bf16.msrb.mxu3 %v11920_v37  ;;  %v3428_v35 = vperm.slane %v3426_v11, 0 }
 0x253   : > { %v11775_v39 = vld [vmem:[%s13857_s11 + $0x16a0] sm:$0xf]  ;;  %v12778_v42 = vld [vmem:[%s13857_s11 + $0x17ac] sm:$0xf0]  ;;  %v11648_v45 = vor.u32 %v12714_v38, %v11647_v36 }
 0x254   : > { %v11903_v41 = vld [vmem:[%s13857_s11 + $0x17a0] sm:$0xf]  ;;  %v11776_v46 = vor.u32 %v12746_v40, %v11775_v39  ;;  %v12678_v47 = vld [vmem:[%s13857_s11 + $0x148c] sm:$0xf0]  ;;  %7678 = vmatpush.bf16.msrb.mxu0 %v11520_v43  ;;  %v7425_v43 = vpop.f32.mrf.mxu0 }
 0x255   : > { %v11503_v44 = vld [vmem:[%s13857_s11 + $0x1480] sm:$0xf]  ;;  %v12710_v49 = vld [vmem:[%s13857_s11 + $0x158c] sm:$0xf0]  ;;  %v11904_v50 = vor.u32 %v12778_v42, %v11903_v41 }
 0x256   : > { %v11631_v48 = vld [vmem:[%s13857_s11 + $0x1580] sm:$0xf]  ;;  %v12742_v52 = vld [vmem:[%s13857_s11 + $0x168c] sm:$0xf0]  ;;  %v11504_v61 = vor.u32 %v12678_v47, %v11503_v44  ;;  %7691 = vmatpush.bf16.msrb.mxu1 %v11648_v45  ;;  %7704 = vmatpush.bf16.msrb.mxu2 %v11776_v46 }
 0x257   : > { %v11759_v51 = vld [vmem:[%s13857_s11 + $0x1680] sm:$0xf]  ;;  %v12774_v58 = vld [vmem:[%s13857_s11 + $0x178c] sm:$0xf0]  ;;  %v11632_v1 = vor.u32 %v12710_v49, %v11631_v48  ;;  %7717 = vmatpush.bf16.msrb.mxu3 %v11904_v50  ;;  %v7426_v49 = vadd.f32 %v7425_v43, %v3428_v35  ;;  %v7438_v50 = vpop.f32.mrf.mxu1  ;;  %v12048_v35 = vld [vmem:[%s13857_s11 + $0xe4] sm:$0xf] }
 0x258   : > { %v11887_v53 = vld [vmem:[%s13857_s11 + $0x1780] sm:$0xf]  ;;  %v12674_v60 = vld [vmem:[%s13857_s11 + $0x146c] sm:$0xf0]  ;;  %v11760_v2 = vor.u32 %v12742_v52, %v11759_v51  ;;  %7679 = vmatpush.bf16.msrb.mxu0 %v11504_v61 }
 0x259   : > { %v11487_v59 = vld [vmem:[%s13857_s11 + $0x1460] sm:$0xf]  ;;  %v12706_v63 = vld [vmem:[%s13857_s11 + $0x156c] sm:$0xf0]  ;;  %v11888_v7 = vor.u32 %v12774_v58, %v11887_v53  ;;  %v7439_v61 = vadd.f32 %v7438_v50, %v7426_v49 }
 0x25a   : > { %v11615_v62 = vld [vmem:[%s13857_s11 + $0x1560] sm:$0xf]  ;;  %v12738_v3 = vld [vmem:[%s13857_s11 + $0x166c] sm:$0xf0]  ;;  %v11488_v18 = vor.u32 %v12674_v60, %v11487_v59  ;;  %7692 = vmatpush.bf16.msrb.mxu1 %v11632_v1  ;;  %7705 = vmatpush.bf16.msrb.mxu2 %v11760_v2 }
 0x25b   : > { %v11743_v0 = vld [vmem:[%s13857_s11 + $0x1660] sm:$0xf]  ;;  %v12770_v6 = vld [vmem:[%s13857_s11 + $0x176c] sm:$0xf0]  ;;  %v11616_v27 = vor.u32 %v12706_v63, %v11615_v62  ;;  %7718 = vmatpush.bf16.msrb.mxu3 %v11888_v7  ;;  %v7451_v7 = vpop.f32.mrf.mxu2 }
 0x25c   : > { %v11871_v5 = vld [vmem:[%s13857_s11 + $0x1760] sm:$0xf]  ;;  %v14310_v13 = vld [vmem:[#allocation1 + $0x36] sm:$0xff]  ;;  %v11744_v31 = vor.u32 %v12738_v3, %v11743_v0  ;;  %7680 = vmatpush.bf16.msrb.mxu0 %v11488_v18 }
 0x25d   : > { %v14308_v12 = vld [vmem:[#allocation1 + $0x24] sm:$0xff]  ;;  %v2641_v16 = vld [vmem:[%s15684_s0 + $0x18] sm:$0x1]  ;;  %v11872_v36 = vor.u32 %v12770_v6, %v11871_v5 }
 0x25e   : > { %v11471_v19 = vld [vmem:[%s13857_s11 + $0x1440] sm:$0xf]  ;;  %3467 = vst [vmem:[#allocation1] ss:$9 sm:$0xff] %v2641_v16  ;;  %v12670_v32 = vld [vmem:[%s13857_s11 + $0x144c] sm:$0xf0]  ;;  %7693 = vmatpush.bf16.msrb.mxu1 %v11616_v27  ;;  %7706 = vmatpush.bf16.msrb.mxu2 %v11744_v31  ;;  %v7452_v27 = vadd.f32 %v7451_v7, %v7439_v61  ;;  %v7464_v31 = vpop.f32.mrf.mxu3 }
 0x25f   : > { %v11599_v33 = vld [vmem:[%s13857_s11 + $0x1540] sm:$0xf]  ;;  %v12702_v37 = vld [vmem:[%s13857_s11 + $0x154c] sm:$0xf0]  ;;  %v11472_v42 = vor.u32 %v12670_v32, %v11471_v19  ;;  %7719 = vmatpush.bf16.msrb.mxu3 %v11872_v36  ;;  %v9105_v61 = vld [vmem:[%s13857_s11 + $0x1d0] sm:$0xf0] }
 0x260   : > { %v11727_v38 = vld [vmem:[%s13857_s11 + $0x1640] sm:$0xf]  ;;  %v12734_v39 = vld [vmem:[%s13857_s11 + $0x164c] sm:$0xf0]  ;;  %v11600_v44 = vor.u32 %v12702_v37, %v11599_v33  ;;  %v8993_v37 = vld [vmem:[%s13857_s11 + $0xf0] sm:$0xf0] }
 0x261   : > { %v11855_v40 = vld [vmem:[%s13857_s11 + $0x1740] sm:$0xf]  ;;  %v12766_v41 = vld [vmem:[%s13857_s11 + $0x174c] sm:$0xf0]  ;;  %v11728_v45 = vor.u32 %v12734_v39, %v11727_v38  ;;  %7681 = vmatpush.bf16.msrb.mxu0 %v11472_v42  ;;  %v12080_v38 = vld [vmem:[%s13857_s11 + $0x1e4] sm:$0xf]  ;;  %v8996_v49 = vor.u32 %v12048_v35, %v8993_v37 }
 0x262   : > { %v11455_v46 = vld [vmem:[%s13857_s11 + $0x1420] sm:$0xf]  ;;  %v12666_v47 = vld [vmem:[%s13857_s11 + $0x142c] sm:$0xf0]  ;;  %v11856_v51 = vor.u32 %v12766_v41, %v11855_v40  ;;  %7694 = vmatpush.bf16.msrb.mxu1 %v11600_v44  ;;  %v9121_v39 = vld [vmem:[%s13857_s11 + $0x1f0] sm:$0xf0]  ;;  %v14349_v40 = vadd.f32 %v7464_v31, %v7452_v27  ;;  %v7427_v41 = vpop.f32.mrf.mxu0 }
 0x263   : > { %v11583_v48 = vld [vmem:[%s13857_s11 + $0x1520] sm:$0xf]  ;;  %v12698_v52 = vld [vmem:[%s13857_s11 + $0x152c] sm:$0xf0]  ;;  %v11456_v62 = vor.u32 %v12666_v47, %v11455_v46  ;;  %7707 = vmatpush.bf16.msrb.mxu2 %v11728_v45  ;;  %v12112_v44 = vld [vmem:[%s13857_s11 + $0x2e4] sm:$0xf]  ;;  %v7440_v46 = vpop.f32.mrf.mxu1  ;;  %v9124_v50 = vor.u32 %v12080_v38, %v9121_v39 }
 0x264   : > { %v11711_v53 = vld [vmem:[%s13857_s11 + $0x1620] sm:$0xf]  ;;  %v12730_v58 = vld [vmem:[%s13857_s11 + $0x162c] sm:$0xf0]  ;;  %v11584_v1 = vor.u32 %v12698_v52, %v11583_v48  ;;  %7720 = vmatpush.bf16.msrb.mxu3 %v11856_v51  ;;  %v9249_v45 = vld [vmem:[%s13857_s11 + $0x2f0] sm:$0xf0] }
 0x265   : > { %v11839_v59 = vld [vmem:[%s13857_s11 + $0x1720] sm:$0xf]  ;;  %v12762_v60 = vld [vmem:[%s13857_s11 + $0x172c] sm:$0xf0]  ;;  %v11712_v2 = vor.u32 %v12730_v58, %v11711_v53  ;;  %7682 = vmatpush.bf16.msrb.mxu0 %v11456_v62  ;;  %v12044_v53 = vld [vmem:[%s13857_s11 + $0xc4] sm:$0xf]  ;;  %v9252_v58 = vor.u32 %v12112_v44, %v9249_v45 }
 0x266   : > { %v11439_v63 = vld [vmem:[%s13857_s11 + $0x1400] sm:$0xf]  ;;  %v12662_v0 = vld [vmem:[%s13857_s11 + $0x140c] sm:$0xf0]  ;;  %v11840_v11 = vor.u32 %v12762_v60, %v11839_v59  ;;  %7695 = vmatpush.bf16.msrb.mxu1 %v11584_v1  ;;  %v8977_v59 = vld [vmem:[%s13857_s11 + $0xd0] sm:$0xf0] }
 0x267   : > { %v11567_v3 = vld [vmem:[%s13857_s11 + $0x1500] sm:$0xf]  ;;  %v12694_v5 = vld [vmem:[%s13857_s11 + $0x150c] sm:$0xf0]  ;;  %v11440_v36 = vor.u32 %v12662_v0, %v11439_v63  ;;  %7708 = vmatpush.bf16.msrb.mxu2 %v11712_v2  ;;  %v12076_v60 = vld [vmem:[%s13857_s11 + $0x1c4] sm:$0xf]  ;;  %v7453_v0 = vpop.f32.mrf.mxu2  ;;  %v7466_v2 = vpop.f32.mrf.mxu3 }
 0x268   : > { %v11695_v6 = vld [vmem:[%s13857_s11 + $0x1600] sm:$0xf]  ;;  %v12726_v16 = vld [vmem:[%s13857_s11 + $0x160c] sm:$0xf0]  ;;  %v11568_v42 = vor.u32 %v12694_v5, %v11567_v3  ;;  %7721 = vmatpush.bf16.msrb.mxu3 %v11840_v11  ;;  %v12108_v62 = vld [vmem:[%s13857_s11 + $0x2c4] sm:$0xf]  ;;  %v8980_v3 = vor.u32 %v12044_v53, %v8977_v59  ;;  %v9108_v5 = vor.u32 %v12076_v60, %v9105_v61 }
 0x269   : > { %v11823_v18 = vld [vmem:[%s13857_s11 + $0x1700] sm:$0xf]  ;;  %v12758_v19 = vld [vmem:[%s13857_s11 + $0x170c] sm:$0xf0]  ;;  %v11696_v43 = vor.u32 %v12726_v16, %v11695_v6  ;;  %7683 = vmatpush.bf16.msrb.mxu0 %v11440_v36  ;;  %v9233_v63 = vld [vmem:[%s13857_s11 + $0x2d0] sm:$0xf0] }
 0x26a   : > { %v11999_v32 = vld [vmem:[%s13857_s11 + $0x1860] sm:$0xf]  ;;  %v12802_v33 = vld [vmem:[%s13857_s11 + $0x186c] sm:$0xf0]  ;;  %v11824_v47 = vor.u32 %v12758_v19, %v11823_v18  ;;  %7696 = vmatpush.bf16.msrb.mxu1 %v11568_v42  ;;  %v12040_v11 = vld [vmem:[%s13857_s11 + $0xa4] sm:$0xf]  ;;  %v9236_v16 = vor.u32 %v12108_v62, %v9233_v63 }
 0x26b   : > { %v12000_v48 = vor.u32 %v12802_v33, %v11999_v32  ;;  %v11983_v51 = vld [vmem:[%s13857_s11 + $0x1840] sm:$0xf]  ;;  %v12798_v52 = vld [vmem:[%s13857_s11 + $0x184c] sm:$0xf0]  ;;  %7709 = vmatpush.bf16.msrb.mxu2 %v11696_v43  ;;  %v8961_v18 = vld [vmem:[%s13857_s11 + $0xb0] sm:$0xf0]  ;;  %v7490_v60 = vpop.f32.mrf.mxu1 }
 0x26c   : > { %7722 = vmatpush.bf16.msrb.mxu3 %v11824_v47  ;;  %v11984_v1 = vor.u32 %v12798_v52, %v11983_v51  ;;  %v11967_v6 = vld [vmem:[%s13857_s11 + $0x1820] sm:$0xf]  ;;  %v12794_v7 = vld [vmem:[%s13857_s11 + $0x182c] sm:$0xf0]  ;;  %7684 = vmatmul.bf16.vlgmr.msrb.gmra.mxu0 %v14308_v12  ;;  %v12072_v19 = vld [vmem:[%s13857_s11 + $0x1a4] sm:$0xf]  ;;  %v8964_v36 = vor.u32 %v12040_v11, %v8961_v18 }
 0x26d   : > { %7732 = vmatpush.bf16.msra.mxu0 %v12000_v48  ;;  %v9089_v27 = vld [vmem:[%s13857_s11 + $0x1b0] sm:$0xf0]  ;;  %7697 = vmatmul.bf16.vlgmr.msrb.gmra.mxu1 %v14312_v14  ;;  %v12104_v31 = vld [vmem:[%s13857_s11 + $0x2a4] sm:$0xf]  ;;  %v11968_v33 = vor.u32 %v12794_v7, %v11967_v6  ;;  %v11951_v35 = vld [vmem:[%s13857_s11 + $0x1800] sm:$0xf] }
 0x26e   : > { %7741 = vmatpush.bf16.msra.mxu1 %v8996_v49  ;;  %7710 = vmatmul.bf16.vlgmr.msrb.gmra.mxu2 %v14310_v13  ;;  %v9217_v32 = vld [vmem:[%s13857_s11 + $0x2b0] sm:$0xf0]  ;;  %v9092_v37 = vor.u32 %v12072_v19, %v9089_v27  ;;  %v12790_v38 = vld [vmem:[%s13857_s11 + $0x180c] sm:$0xf0]  ;;  %v12036_v39 = vld [vmem:[%s13857_s11 + $0x84] sm:$0xf] }
 0x26f   : > { %7754 = vmatpush.bf16.msra.mxu2 %v9124_v50  ;;  %7723 = vmatmul.bf16.vlgmr.msrb.gmra.mxu3 %v14314_v15  ;;  %v8945_v41 = vld [vmem:[%s13857_s11 + $0x90] sm:$0xf0]  ;;  %v9220_v42 = vor.u32 %v12104_v31, %v9217_v32  ;;  %v12068_v43 = vld [vmem:[%s13857_s11 + $0x184] sm:$0xf]  ;;  %v11952_v49 = vor.u32 %v12790_v38, %v11951_v35  ;;  %v7477_v50 = vpop.f32.mrf.mxu0  ;;  %v7503_v18 = vpop.f32.mrf.mxu2 }
 0x270   : > { %7767 = vmatpush.bf16.msra.mxu3 %v9252_v58  ;;  %v9073_v44 = vld [vmem:[%s13857_s11 + $0x190] sm:$0xf0]  ;;  %v12100_v45 = vld [vmem:[%s13857_s11 + $0x284] sm:$0xf]  ;;  %v8948_v51 = vor.u32 %v12036_v39, %v8945_v41  ;;  %v7478_v59 = vadd.f32 %v7477_v50, %v14349_v40  ;;  %v3468_v41 = vld [vmem:[#allocation1] sm:$0xff] }
 0x271   : > { %7733 = vmatpush.bf16.msra.mxu0 %v11984_v1  ;;  %v9201_v46 = vld [vmem:[%s13857_s11 + $0x290] sm:$0xf0]  ;;  %v12144_v47 = vld [vmem:[%s13857_s11 + $0x3e4] sm:$0xf]  ;;  %v9076_v52 = vor.u32 %v12068_v43, %v9073_v44 }
 0x272   : > { %7742 = vmatpush.bf16.msra.mxu1 %v8980_v3  ;;  %v9377_v48 = vld [vmem:[%s13857_s11 + $0x3f0] sm:$0xf0]  ;;  %v12032_v53 = vld [vmem:[%s13857_s11 + $0x64] sm:$0xf]  ;;  %v9204_v61 = vor.u32 %v12100_v45, %v9201_v46  ;;  %v7491_v6 = vadd.f32 %v7490_v60, %v7478_v59 }
 0x273   : > { %7755 = vmatpush.bf16.msra.mxu2 %v9108_v5  ;;  %v8929_v58 = vld [vmem:[%s13857_s11 + $0x70] sm:$0xf0]  ;;  %v9380_v62 = vor.u32 %v12144_v47, %v9377_v48  ;;  %v12064_v63 = vld [vmem:[%s13857_s11 + $0x164] sm:$0xf]  ;;  %v7492_v48 = vpop.f32.mrf.mxu1 }
 0x274   : > { %7768 = vmatpush.bf16.msra.mxu3 %v9236_v16  ;;  %v9057_v0 = vld [vmem:[%s13857_s11 + $0x170] sm:$0xf0]  ;;  %v12096_v1 = vld [vmem:[%s13857_s11 + $0x264] sm:$0xf]  ;;  %v8932_v40 = vor.u32 %v12032_v53, %v8929_v58  ;;  %v7504_v35 = vadd.f32 %v7503_v18, %v7491_v6 }
 0x275   : > { %7734 = vmatpush.bf16.msra.mxu0 %v11968_v33  ;;  %v9185_v2 = vld [vmem:[%s13857_s11 + $0x270] sm:$0xf0]  ;;  %v12140_v3 = vld [vmem:[%s13857_s11 + $0x3c4] sm:$0xf]  ;;  %v9060_v7 = vor.u32 %v12064_v63, %v9057_v0 }
 0x276   : > { %7743 = vmatpush.bf16.msra.mxu1 %v8964_v36  ;;  %v9361_v5 = vld [vmem:[%s13857_s11 + $0x3d0] sm:$0xf0]  ;;  %v12028_v11 = vld [vmem:[%s13857_s11 + $0x44] sm:$0xf]  ;;  %v9188_v19 = vor.u32 %v12096_v1, %v9185_v2  ;;  %v7516_v36 = vpop.f32.mrf.mxu3 }
 0x277   : > { %7756 = vmatpush.bf16.msra.mxu2 %v9092_v37  ;;  %v8913_v16 = vld [vmem:[%s13857_s11 + $0x50] sm:$0xf0]  ;;  %v9364_v27 = vor.u32 %v12140_v3, %v9361_v5  ;;  %v12060_v31 = vld [vmem:[%s13857_s11 + $0x144] sm:$0xf]  ;;  %v7479_v43 = vpop.f32.mrf.mxu0  ;;  %v7505_v2 = vpop.f32.mrf.mxu2 }
 0x278   : > { %7769 = vmatpush.bf16.msra.mxu3 %v9220_v42  ;;  %v9041_v32 = vld [vmem:[%s13857_s11 + $0x150] sm:$0xf0]  ;;  %v12092_v33 = vld [vmem:[%s13857_s11 + $0x244] sm:$0xf]  ;;  %v14400_v42 = vadd.f32 %v7516_v36, %v7504_v35  ;;  %v8916_v44 = vor.u32 %v12028_v11, %v8913_v16 }
 0x279   : > { %7735 = vmatpush.bf16.msra.mxu0 %v11952_v49  ;;  %v9169_v37 = vld [vmem:[%s13857_s11 + $0x250] sm:$0xf0]  ;;  %v12136_v38 = vld [vmem:[%s13857_s11 + $0x3a4] sm:$0xf]  ;;  %v9044_v45 = vor.u32 %v12060_v31, %v9041_v32 }
 0x27a   : > { %7744 = vmatpush.bf16.msra.mxu1 %v8948_v51  ;;  %v9345_v39 = vld [vmem:[%s13857_s11 + $0x3b0] sm:$0xf0]  ;;  %v12024_v46 = vld [vmem:[%s13857_s11 + $0x24] sm:$0xf]  ;;  %v9172_v49 = vor.u32 %v12092_v33, %v9169_v37 }
 0x27b   : > { %7757 = vmatpush.bf16.msra.mxu2 %v9076_v52  ;;  %v8897_v47 = vld [vmem:[%s13857_s11 + $0x30] sm:$0xf0]  ;;  %v9348_v50 = vor.u32 %v12136_v38, %v9345_v39  ;;  %v12056_v51 = vld [vmem:[%s13857_s11 + $0x124] sm:$0xf] }
 0x27c   : > { %7770 = vmatpush.bf16.msra.mxu3 %v9204_v61  ;;  %v9025_v52 = vld [vmem:[%s13857_s11 + $0x130] sm:$0xf0]  ;;  %v12088_v53 = vld [vmem:[%s13857_s11 + $0x224] sm:$0xf]  ;;  %12013 = vmatmul.msk.bf16.vlgmr.msra.gmra.mxu0 %vm7413_vm0, %v3468_v41  ;;  %v8900_v61 = vor.u32 %v12024_v46, %v8897_v47 }
 0x27d   : > { %7780 = vmatpush.bf16.msrb.mxu0 %v9380_v62  ;;  %v9153_v58 = vld [vmem:[%s13857_s11 + $0x230] sm:$0xf0]  ;;  %v12132_v59 = vld [vmem:[%s13857_s11 + $0x384] sm:$0xf]  ;;  %v9028_v62 = vor.u32 %v12056_v51, %v9025_v52 }
 0x27e   : > { %7745 = vmatpush.bf16.msra.mxu1 %v8932_v40  ;;  %v9329_v60 = vld [vmem:[%s13857_s11 + $0x390] sm:$0xf0]  ;;  %v12020_v63 = vld [vmem:[%s13857_s11 + $0x4] sm:$0xf]  ;;  %v9156_v3 = vor.u32 %v12088_v53, %v9153_v58  ;;  %v7518_v11 = vpop.f32.mrf.mxu3 }
 0x27f   : > { %7758 = vmatpush.bf16.msra.mxu2 %v9060_v7  ;;  %v8881_v0 = vld [vmem:[%s13857_s11 + $0x10] sm:$0xf0]  ;;  %v12052_v1 = vld [vmem:[%s13857_s11 + $0x104] sm:$0xf]  ;;  %v9332_v5 = vor.u32 %v12132_v59, %v9329_v60 }
 0x280   : > { %7771 = vmatpush.bf16.msra.mxu3 %v9188_v19  ;;  %v9009_v6 = vld [vmem:[%s13857_s11 + $0x110] sm:$0xf0]  ;;  %v12084_v40 = vld [vmem:[%s13857_s11 + $0x204] sm:$0xf]  ;;  %v8884_v33 = vor.u32 %v12020_v63, %v8881_v0 }
 0x281   : > { %7781 = vmatpush.bf16.msrb.mxu0 %v9364_v27  ;;  %v9137_v7 = vld [vmem:[%s13857_s11 + $0x210] sm:$0xf0]  ;;  %v12128_v16 = vld [vmem:[%s13857_s11 + $0x364] sm:$0xf]  ;;  %v9012_v35 = vor.u32 %v12052_v1, %v9009_v6 }
 0x282   : > { %7746 = vmatpush.bf16.msra.mxu1 %v8916_v44  ;;  %v9313_v18 = vld [vmem:[%s13857_s11 + $0x370] sm:$0xf0]  ;;  %v12176_v19 = vld [vmem:[%s13857_s11 + $0x4e4] sm:$0xf]  ;;  %v9140_v38 = vor.u32 %v12084_v40, %v9137_v7 }
 0x283   : > { %7759 = vmatpush.bf16.msra.mxu2 %v9044_v45  ;;  %v9505_v27 = vld [vmem:[%s13857_s11 + $0x4f0] sm:$0xf0]  ;;  %v12208_v31 = vld [vmem:[%s13857_s11 + $0x5e4] sm:$0xf]  ;;  %v9316_v39 = vor.u32 %v12128_v16, %v9313_v18 }
 0x284   : > { %7772 = vmatpush.bf16.msra.mxu3 %v9172_v49  ;;  %v9633_v32 = vld [vmem:[%s13857_s11 + $0x5f0] sm:$0xf0]  ;;  %v12240_v36 = vld [vmem:[%s13857_s11 + $0x6e4] sm:$0xf]  ;;  %v9508_v41 = vor.u32 %v12176_v19, %v9505_v27 }
 0x285   : > { %7782 = vmatpush.bf16.msrb.mxu0 %v9348_v50  ;;  %v9761_v37 = vld [vmem:[%s13857_s11 + $0x6f0] sm:$0xf0]  ;;  %v9636_v43 = vor.u32 %v12208_v31, %v9633_v32  ;;  %v12124_v44 = vld [vmem:[%s13857_s11 + $0x344] sm:$0xf] }
 0x286   : > { %7747 = vmatpush.bf16.msra.mxu1 %v8900_v61  ;;  %v9297_v45 = vld [vmem:[%s13857_s11 + $0x350] sm:$0xf0]  ;;  %v12172_v46 = vld [vmem:[%s13857_s11 + $0x4c4] sm:$0xf]  ;;  %v9764_v47 = vor.u32 %v12240_v36, %v9761_v37 }
 0x287   : > { %7760 = vmatpush.bf16.msra.mxu2 %v9028_v62  ;;  %v9489_v48 = vld [vmem:[%s13857_s11 + $0x4d0] sm:$0xf0]  ;;  %v12204_v49 = vld [vmem:[%s13857_s11 + $0x5c4] sm:$0xf]  ;;  %v9300_v53 = vor.u32 %v12124_v44, %v9297_v45 }
 0x288   : > { %7773 = vmatpush.bf16.msra.mxu3 %v9156_v3  ;;  %v9617_v50 = vld [vmem:[%s13857_s11 + $0x5d0] sm:$0xf0]  ;;  %v12236_v51 = vld [vmem:[%s13857_s11 + $0x6c4] sm:$0xf]  ;;  %v9492_v58 = vor.u32 %v12172_v46, %v9489_v48 }
 0x289   : > { %7783 = vmatpush.bf16.msrb.mxu0 %v9332_v5  ;;  %v9745_v52 = vld [vmem:[%s13857_s11 + $0x6d0] sm:$0xf0]  ;;  %v9620_v59 = vor.u32 %v12204_v49, %v9617_v50  ;;  %v12120_v60 = vld [vmem:[%s13857_s11 + $0x324] sm:$0xf] }
 0x28a   : > { %7748 = vmatpush.bf16.msra.mxu1 %v8884_v33  ;;  %v9281_v61 = vld [vmem:[%s13857_s11 + $0x330] sm:$0xf0]  ;;  %v12168_v62 = vld [vmem:[%s13857_s11 + $0x4a4] sm:$0xf]  ;;  %v9748_v63 = vor.u32 %v12236_v51, %v9745_v52 }
 0x28b   : > { %7761 = vmatpush.bf16.msra.mxu2 %v9012_v35  ;;  %v9473_v0 = vld [vmem:[%s13857_s11 + $0x4b0] sm:$0xf0]  ;;  %v12200_v1 = vld [vmem:[%s13857_s11 + $0x5a4] sm:$0xf]  ;;  %v9284_v6 = vor.u32 %v12120_v60, %v9281_v61  ;;  %v7529_v35 = vpop.f32.mrf.mxu0 }
 0x28c   : > { %7774 = vmatpush.bf16.msra.mxu3 %v9140_v38  ;;  %v9601_v2 = vld [vmem:[%s13857_s11 + $0x5b0] sm:$0xf0]  ;;  %v12232_v3 = vld [vmem:[%s13857_s11 + $0x6a4] sm:$0xf]  ;;  %v9476_v7 = vor.u32 %v12168_v62, %v9473_v0 }
 0x28d   : > { %7784 = vmatpush.bf16.msrb.mxu0 %v9316_v39  ;;  %v9729_v5 = vld [vmem:[%s13857_s11 + $0x6b0] sm:$0xf0]  ;;  %7749 = vmatmul.bf16.vlgmr.msra.gmra.mxu1 %v13964_v29  ;;  %v12116_v40 = vld [vmem:[%s13857_s11 + $0x304] sm:$0xf]  ;;  %v9604_v11 = vor.u32 %v12200_v1, %v9601_v2  ;;  %v7530_v39 = vadd.f32 %v7529_v35, %v14400_v42 }
 0x28e   : > { %7793 = vmatpush.bf16.msrb.mxu1 %v9508_v41  ;;  %7762 = vmatmul.bf16.vlgmr.msra.gmra.mxu2 %v13971_v34  ;;  %v9265_v16 = vld [vmem:[%s13857_s11 + $0x310] sm:$0xf0]  ;;  %v12164_v18 = vld [vmem:[%s13857_s11 + $0x484] sm:$0xf]  ;;  %v9732_v27 = vor.u32 %v12232_v3, %v9729_v5 }
 0x28f   : > { %7806 = vmatpush.bf16.msrb.mxu2 %v9636_v43  ;;  %7775 = vmatmul.bf16.vlgmr.msra.gmra.mxu3 %v13962_v28  ;;  %v9457_v19 = vld [vmem:[%s13857_s11 + $0x490] sm:$0xf0]  ;;  %v12196_v31 = vld [vmem:[%s13857_s11 + $0x584] sm:$0xf]  ;;  %v9268_v41 = vor.u32 %v12116_v40, %v9265_v16  ;;  %v7542_v43 = vpop.f32.mrf.mxu1 }
 0x290   : > { %7819 = vmatpush.bf16.msrb.mxu3 %v9764_v47  ;;  %v9585_v32 = vld [vmem:[%s13857_s11 + $0x590] sm:$0xf0]  ;;  %v12228_v33 = vld [vmem:[%s13857_s11 + $0x684] sm:$0xf]  ;;  %v9460_v44 = vor.u32 %v12164_v18, %v9457_v19  ;;  %v7543_v49 = vadd.f32 %v7542_v43, %v7530_v39 }
 0x291   : > { %7785 = vmatpush.bf16.msrb.mxu0 %v9300_v53  ;;  %v9713_v36 = vld [vmem:[%s13857_s11 + $0x690] sm:$0xf0]  ;;  %v12272_v37 = vld [vmem:[%s13857_s11 + $0x7e4] sm:$0xf]  ;;  %v9588_v45 = vor.u32 %v12196_v31, %v9585_v32  ;;  %v7555_v1 = vpop.f32.mrf.mxu2 }
 0x292   : > { %7794 = vmatpush.bf16.msrb.mxu1 %v9492_v58  ;;  %v9889_v38 = vld [vmem:[%s13857_s11 + $0x7f0] sm:$0xf0]  ;;  %v12160_v46 = vld [vmem:[%s13857_s11 + $0x464] sm:$0xf]  ;;  %v9716_v48 = vor.u32 %v12228_v33, %v9713_v36  ;;  %v7556_v40 = vadd.f32 %v7555_v1, %v7543_v49 }
 0x293   : > { %7807 = vmatpush.bf16.msrb.mxu2 %v9620_v59  ;;  %v9441_v47 = vld [vmem:[%s13857_s11 + $0x470] sm:$0xf0]  ;;  %v9892_v50 = vor.u32 %v12272_v37, %v9889_v38  ;;  %v12192_v51 = vld [vmem:[%s13857_s11 + $0x564] sm:$0xf]  ;;  %v7531_v19 = vpop.f32.mrf.mxu0 }
 0x294   : > { %7820 = vmatpush.bf16.msrb.mxu3 %v9748_v63  ;;  %v9569_v52 = vld [vmem:[%s13857_s11 + $0x570] sm:$0xf0]  ;;  %v12224_v42 = vld [vmem:[%s13857_s11 + $0x664] sm:$0xf]  ;;  %v9444_v60 = vor.u32 %v12160_v46, %v9441_v47 }
 0x295   : > { %7786 = vmatpush.bf16.msrb.mxu0 %v9284_v6  ;;  %v9697_v53 = vld [vmem:[%s13857_s11 + $0x670] sm:$0xf0]  ;;  %v12268_v58 = vld [vmem:[%s13857_s11 + $0x7c4] sm:$0xf]  ;;  %v9572_v61 = vor.u32 %v12192_v51, %v9569_v52 }
 0x296   : > { %7795 = vmatpush.bf16.msrb.mxu1 %v9476_v7  ;;  %v9873_v59 = vld [vmem:[%s13857_s11 + $0x7d0] sm:$0xf0]  ;;  %v12156_v62 = vld [vmem:[%s13857_s11 + $0x444] sm:$0xf]  ;;  %v9700_v0 = vor.u32 %v12224_v42, %v9697_v53  ;;  %v7568_v7 = vpop.f32.mrf.mxu3 }
 0x297   : > { %7808 = vmatpush.bf16.msrb.mxu2 %v9604_v11  ;;  %v9425_v63 = vld [vmem:[%s13857_s11 + $0x450] sm:$0xf0]  ;;  %v9876_v2 = vor.u32 %v12268_v58, %v9873_v59  ;;  %v12188_v3 = vld [vmem:[%s13857_s11 + $0x544] sm:$0xf]  ;;  %v14472_v31 = vadd.f32 %v7568_v7, %v7556_v40 }
 0x298   : > { %7821 = vmatpush.bf16.msrb.mxu3 %v9732_v27  ;;  %v9553_v5 = vld [vmem:[%s13857_s11 + $0x550] sm:$0xf0]  ;;  %v12220_v6 = vld [vmem:[%s13857_s11 + $0x644] sm:$0xf]  ;;  %v7544_v27 = vpop.f32.mrf.mxu1  ;;  %v9428_v32 = vor.u32 %v12156_v62, %v9425_v63 }
 0x299   : > { %7787 = vmatpush.bf16.msrb.mxu0 %v9268_v41  ;;  %v9681_v11 = vld [vmem:[%s13857_s11 + $0x650] sm:$0xf0]  ;;  %v12264_v16 = vld [vmem:[%s13857_s11 + $0x7a4] sm:$0xf]  ;;  %v9556_v33 = vor.u32 %v12188_v3, %v9553_v5 }
 0x29a   : > { %7796 = vmatpush.bf16.msrb.mxu1 %v9460_v44  ;;  %v9857_v18 = vld [vmem:[%s13857_s11 + $0x7b0] sm:$0xf0]  ;;  %v12152_v35 = vld [vmem:[%s13857_s11 + $0x424] sm:$0xf]  ;;  %v9684_v37 = vor.u32 %v12220_v6, %v9681_v11 }
 0x29b   : > { %7809 = vmatpush.bf16.msrb.mxu2 %v9588_v45  ;;  %v9409_v36 = vld [vmem:[%s13857_s11 + $0x430] sm:$0xf0]  ;;  %v9860_v38 = vor.u32 %v12264_v16, %v9857_v18  ;;  %v12184_v39 = vld [vmem:[%s13857_s11 + $0x524] sm:$0xf] }
 0x29c   : > { %7822 = vmatpush.bf16.msrb.mxu3 %v9716_v48  ;;  %7788 = vmatmul.bf16.vlgmr.msrb.gmra.mxu0 %v13966_v30  ;;  %v9537_v41 = vld [vmem:[%s13857_s11 + $0x530] sm:$0xf0]  ;;  %v12216_v43 = vld [vmem:[%s13857_s11 + $0x624] sm:$0xf]  ;;  %v9412_v47 = vor.u32 %v12152_v35, %v9409_v36 }
 0x29d   : > { %7832 = vmatpush.bf16.msra.mxu0 %v9892_v50  ;;  %v9665_v44 = vld [vmem:[%s13857_s11 + $0x630] sm:$0xf0]  ;;  %v12260_v45 = vld [vmem:[%s13857_s11 + $0x784] sm:$0xf]  ;;  %v9540_v48 = vor.u32 %v12184_v39, %v9537_v41 }
 0x29e   : > { %7797 = vmatpush.bf16.msrb.mxu1 %v9444_v60  ;;  %v9841_v46 = vld [vmem:[%s13857_s11 + $0x790] sm:$0xf0]  ;;  %v12148_v49 = vld [vmem:[%s13857_s11 + $0x404] sm:$0xf]  ;;  %v9668_v52 = vor.u32 %v12216_v43, %v9665_v44  ;;  %v7557_v60 = vpop.f32.mrf.mxu2 }
 0x29f   : > { %7810 = vmatpush.bf16.msrb.mxu2 %v9572_v61  ;;  %v9393_v50 = vld [vmem:[%s13857_s11 + $0x410] sm:$0xf0]  ;;  %v12180_v51 = vld [vmem:[%s13857_s11 + $0x504] sm:$0xf]  ;;  %v9844_v42 = vor.u32 %v12260_v45, %v9841_v46 }
 0x2a0   : > { %7823 = vmatpush.bf16.msrb.mxu3 %v9700_v0  ;;  %v9521_v53 = vld [vmem:[%s13857_s11 + $0x510] sm:$0xf0]  ;;  %v12212_v58 = vld [vmem:[%s13857_s11 + $0x604] sm:$0xf]  ;;  %v7570_v0 = vpop.f32.mrf.mxu3  ;;  %v9396_v5 = vor.u32 %v12148_v49, %v9393_v50 }
 0x2a1   : > { %7833 = vmatpush.bf16.msra.mxu0 %v9876_v2  ;;  %v9649_v59 = vld [vmem:[%s13857_s11 + $0x610] sm:$0xf0]  ;;  %v12256_v61 = vld [vmem:[%s13857_s11 + $0x764] sm:$0xf]  ;;  %v9524_v6 = vor.u32 %v12180_v51, %v9521_v53 }
 0x2a2   : > { %7798 = vmatpush.bf16.msrb.mxu1 %v9428_v32  ;;  %v9825_v62 = vld [vmem:[%s13857_s11 + $0x770] sm:$0xf0]  ;;  %v12304_v63 = vld [vmem:[%s13857_s11 + $0x8e4] sm:$0xf]  ;;  %v9652_v11 = vor.u32 %v12212_v58, %v9649_v59 }
 0x2a3   : > { %7811 = vmatpush.bf16.msrb.mxu2 %v9556_v33  ;;  %v10017_v1 = vld [vmem:[%s13857_s11 + $0x8f0] sm:$0xf0]  ;;  %v12336_v2 = vld [vmem:[%s13857_s11 + $0x9e4] sm:$0xf]  ;;  %v9828_v16 = vor.u32 %v12256_v61, %v9825_v62 }
 0x2a4   : > { %7824 = vmatpush.bf16.msrb.mxu3 %v9684_v37  ;;  %v10145_v3 = vld [vmem:[%s13857_s11 + $0x9f0] sm:$0xf0]  ;;  %v12368_v40 = vld [vmem:[%s13857_s11 + $0xae4] sm:$0xf]  ;;  %v10020_v18 = vor.u32 %v12304_v63, %v10017_v1 }
 0x2a5   : > { %7834 = vmatpush.bf16.msra.mxu0 %v9860_v38  ;;  %v10273_v7 = vld [vmem:[%s13857_s11 + $0xaf0] sm:$0xf0]  ;;  %v10148_v19 = vor.u32 %v12336_v2, %v10145_v3  ;;  %v12252_v27 = vld [vmem:[%s13857_s11 + $0x744] sm:$0xf] }
 0x2a6   : > { %7799 = vmatpush.bf16.msrb.mxu1 %v9412_v47  ;;  %v9809_v32 = vld [vmem:[%s13857_s11 + $0x750] sm:$0xf0]  ;;  %v12300_v33 = vld [vmem:[%s13857_s11 + $0x8c4] sm:$0xf]  ;;  %v10276_v35 = vor.u32 %v12368_v40, %v10273_v7 }
 0x2a7   : > { %7812 = vmatpush.bf16.msrb.mxu2 %v9540_v48  ;;  %v10001_v36 = vld [vmem:[%s13857_s11 + $0x8d0] sm:$0xf0]  ;;  %v12332_v37 = vld [vmem:[%s13857_s11 + $0x9c4] sm:$0xf]  ;;  %v9812_v43 = vor.u32 %v12252_v27, %v9809_v32 }
 0x2a8   : > { %7825 = vmatpush.bf16.msrb.mxu3 %v9668_v52  ;;  %v10129_v38 = vld [vmem:[%s13857_s11 + $0x9d0] sm:$0xf0]  ;;  %v12364_v39 = vld [vmem:[%s13857_s11 + $0xac4] sm:$0xf]  ;;  %v10004_v44 = vor.u32 %v12300_v33, %v10001_v36 }
 0x2a9   : > { %7835 = vmatpush.bf16.msra.mxu0 %v9844_v42  ;;  %v10257_v41 = vld [vmem:[%s13857_s11 + $0xad0] sm:$0xf0]  ;;  %v10132_v45 = vor.u32 %v12332_v37, %v10129_v38  ;;  %v12248_v46 = vld [vmem:[%s13857_s11 + $0x724] sm:$0xf] }
 0x2aa   : > { %7800 = vmatpush.bf16.msrb.mxu1 %v9396_v5  ;;  %v9793_v47 = vld [vmem:[%s13857_s11 + $0x730] sm:$0xf0]  ;;  %v12296_v48 = vld [vmem:[%s13857_s11 + $0x8a4] sm:$0xf]  ;;  %v10260_v49 = vor.u32 %v12364_v39, %v10257_v41 }
 0x2ab   : > { %7813 = vmatpush.bf16.msrb.mxu2 %v9524_v6  ;;  %v9985_v50 = vld [vmem:[%s13857_s11 + $0x8b0] sm:$0xf0]  ;;  %v12328_v51 = vld [vmem:[%s13857_s11 + $0x9a4] sm:$0xf]  ;;  %v9796_v58 = vor.u32 %v12248_v46, %v9793_v47  ;;  %v7581_v6 = vpop.f32.mrf.mxu0 }
 0x2ac   : > { %7826 = vmatpush.bf16.msrb.mxu3 %v9652_v11  ;;  %v10113_v52 = vld [vmem:[%s13857_s11 + $0x9b0] sm:$0xf0]  ;;  %v12360_v42 = vld [vmem:[%s13857_s11 + $0xaa4] sm:$0xf]  ;;  %v9988_v60 = vor.u32 %v12296_v48, %v9985_v50 }
 0x2ad   : > { %7836 = vmatpush.bf16.msra.mxu0 %v9828_v16  ;;  %v10241_v53 = vld [vmem:[%s13857_s11 + $0xab0] sm:$0xf0]  ;;  %7801 = vmatmul.bf16.vlgmr.msrb.gmra.mxu1 %v14005_v8  ;;  %v12244_v59 = vld [vmem:[%s13857_s11 + $0x704] sm:$0xf]  ;;  %v10116_v61 = vor.u32 %v12328_v51, %v10113_v52  ;;  %v7582_v16 = vadd.f32 %v7581_v6, %v14472_v31 }
 0x2ae   : > { %7845 = vmatpush.bf16.msra.mxu1 %v10020_v18  ;;  %7814 = vmatmul.bf16.vlgmr.msrb.gmra.mxu2 %v14009_v10  ;;  %v9777_v62 = vld [vmem:[%s13857_s11 + $0x710] sm:$0xf0]  ;;  %v12292_v63 = vld [vmem:[%s13857_s11 + $0x884] sm:$0xf]  ;;  %v10244_v1 = vor.u32 %v12360_v42, %v10241_v53  ;;  %v7607_v51 = vpop.f32.mrf.mxu2 }
 0x2af   : > { %7858 = vmatpush.bf16.msra.mxu2 %v10148_v19  ;;  %7827 = vmatmul.bf16.vlgmr.msrb.gmra.mxu3 %v14000_v4  ;;  %v9969_v0 = vld [vmem:[%s13857_s11 + $0x890] sm:$0xf0]  ;;  %v12324_v2 = vld [vmem:[%s13857_s11 + $0x984] sm:$0xf]  ;;  %v9780_v18 = vor.u32 %v12244_v59, %v9777_v62  ;;  %v7594_v19 = vpop.f32.mrf.mxu1 }
 0x2b0   : > { %7871 = vmatpush.bf16.msra.mxu3 %v10276_v35  ;;  %v10097_v3 = vld [vmem:[%s13857_s11 + $0x990] sm:$0xf0]  ;;  %v12356_v5 = vld [vmem:[%s13857_s11 + $0xa84] sm:$0xf]  ;;  %v9972_v27 = vor.u32 %v12292_v63, %v9969_v0  ;;  %v7595_v37 = vadd.f32 %v7594_v19, %v7582_v16 }
 0x2b1   : > { %7837 = vmatpush.bf16.msra.mxu0 %v9812_v43  ;;  %v10225_v40 = vld [vmem:[%s13857_s11 + $0xa90] sm:$0xf0]  ;;  %v12400_v7 = vld [vmem:[%s13857_s11 + $0xbe4] sm:$0xf]  ;;  %v10100_v32 = vor.u32 %v12324_v2, %v10097_v3 }
 0x2b2   : > { %7846 = vmatpush.bf16.msra.mxu1 %v10004_v44  ;;  %v10401_v11 = vld [vmem:[%s13857_s11 + $0xbf0] sm:$0xf0]  ;;  %v12288_v33 = vld [vmem:[%s13857_s11 + $0x864] sm:$0xf]  ;;  %v10228_v36 = vor.u32 %v12356_v5, %v10225_v40  ;;  %v7608_v59 = vadd.f32 %v7607_v51, %v7595_v37 }
 0x2b3   : > { %7859 = vmatpush.bf16.msra.mxu2 %v10132_v45  ;;  %v9953_v35 = vld [vmem:[%s13857_s11 + $0x870] sm:$0xf0]  ;;  %v10404_v38 = vor.u32 %v12400_v7, %v10401_v11  ;;  %v12320_v39 = vld [vmem:[%s13857_s11 + $0x964] sm:$0xf]  ;;  %v7583_v0 = vpop.f32.mrf.mxu0 }
 0x2b4   : > { %7872 = vmatpush.bf16.msra.mxu3 %v10260_v49  ;;  %v10081_v41 = vld [vmem:[%s13857_s11 + $0x970] sm:$0xf0]  ;;  %v12352_v31 = vld [vmem:[%s13857_s11 + $0xa64] sm:$0xf]  ;;  %v9956_v46 = vor.u32 %v12288_v33, %v9953_v35 }
 0x2b5   : > { %7838 = vmatpush.bf16.msra.mxu0 %v9796_v58  ;;  %v10209_v43 = vld [vmem:[%s13857_s11 + $0xa70] sm:$0xf0]  ;;  %v12396_v44 = vld [vmem:[%s13857_s11 + $0xbc4] sm:$0xf]  ;;  %v10084_v47 = vor.u32 %v12320_v39, %v10081_v41 }
 0x2b6   : > { %7847 = vmatpush.bf16.msra.mxu1 %v9988_v60  ;;  %v10385_v45 = vld [vmem:[%s13857_s11 + $0xbd0] sm:$0xf0]  ;;  %v12284_v48 = vld [vmem:[%s13857_s11 + $0x844] sm:$0xf]  ;;  %v10212_v50 = vor.u32 %v12352_v31, %v10209_v43  ;;  %v7620_v60 = vpop.f32.mrf.mxu3 }
 0x2b7   : > { %7860 = vmatpush.bf16.msra.mxu2 %v10116_v61  ;;  %v9937_v49 = vld [vmem:[%s13857_s11 + $0x850] sm:$0xf0]  ;;  %v10388_v52 = vor.u32 %v12396_v44, %v10385_v45  ;;  %v12316_v42 = vld [vmem:[%s13857_s11 + $0x944] sm:$0xf]  ;;  %v14543_v2 = vadd.f32 %v7620_v60, %v7608_v59 }
 0x2b8   : > { %7873 = vmatpush.bf16.msra.mxu3 %v10244_v1  ;;  %v10065_v53 = vld [vmem:[%s13857_s11 + $0x950] sm:$0xf0]  ;;  %v12348_v58 = vld [vmem:[%s13857_s11 + $0xa44] sm:$0xf]  ;;  %v7596_v1 = vpop.f32.mrf.mxu1  ;;  %v9940_v3 = vor.u32 %v12284_v48, %v9937_v49 }
 0x2b9   : > { %7839 = vmatpush.bf16.msra.mxu0 %v9780_v18  ;;  %v10193_v61 = vld [vmem:[%s13857_s11 + $0xa50] sm:$0xf0]  ;;  %v12392_v62 = vld [vmem:[%s13857_s11 + $0xba4] sm:$0xf]  ;;  %v10068_v5 = vor.u32 %v12316_v42, %v10065_v53 }
 0x2ba   : > { %7848 = vmatpush.bf16.msra.mxu1 %v9972_v27  ;;  %v10369_v63 = vld [vmem:[%s13857_s11 + $0xbb0] sm:$0xf0]  ;;  %v12280_v6 = vld [vmem:[%s13857_s11 + $0x824] sm:$0xf]  ;;  %v10196_v7 = vor.u32 %v12348_v58, %v10193_v61 }
 0x2bb   : > { %7861 = vmatpush.bf16.msra.mxu2 %v10100_v32  ;;  %v9921_v40 = vld [vmem:[%s13857_s11 + $0x830] sm:$0xf0]  ;;  %v10372_v11 = vor.u32 %v12392_v62, %v10369_v63  ;;  %v12312_v16 = vld [vmem:[%s13857_s11 + $0x924] sm:$0xf] }
 0x2bc   : > { %7874 = vmatpush.bf16.msra.mxu3 %v10228_v36  ;;  %7840 = vmatmul.bf16.vlgmr.msra.gmra.mxu0 %v14007_v9  ;;  %v10049_v18 = vld [vmem:[%s13857_s11 + $0x930] sm:$0xf0]  ;;  %v12344_v19 = vld [vmem:[%s13857_s11 + $0xa24] sm:$0xf]  ;;  %v9924_v35 = vor.u32 %v12280_v6, %v9921_v40 }
 0x2bd   : > { %7884 = vmatpush.bf16.msrb.mxu0 %v10404_v38  ;;  %v10177_v27 = vld [vmem:[%s13857_s11 + $0xa30] sm:$0xf0]  ;;  %v12388_v32 = vld [vmem:[%s13857_s11 + $0xb84] sm:$0xf]  ;;  %v10052_v36 = vor.u32 %v12312_v16, %v10049_v18 }
 0x2be   : > { %7849 = vmatpush.bf16.msra.mxu1 %v9956_v46  ;;  %v10353_v33 = vld [vmem:[%s13857_s11 + $0xb90] sm:$0xf0]  ;;  %v12276_v37 = vld [vmem:[%s13857_s11 + $0x804] sm:$0xf]  ;;  %v10180_v41 = vor.u32 %v12344_v19, %v10177_v27  ;;  %v7609_v46 = vpop.f32.mrf.mxu2 }
 0x2bf   : > { %7862 = vmatpush.bf16.msra.mxu2 %v10084_v47  ;;  %v9905_v38 = vld [vmem:[%s13857_s11 + $0x810] sm:$0xf0]  ;;  %v12308_v39 = vld [vmem:[%s13857_s11 + $0x904] sm:$0xf]  ;;  %v10356_v31 = vor.u32 %v12388_v32, %v10353_v33 }
 0x2c0   : > { %7875 = vmatpush.bf16.msra.mxu3 %v10212_v50  ;;  %v10033_v43 = vld [vmem:[%s13857_s11 + $0x910] sm:$0xf0]  ;;  %v12340_v44 = vld [vmem:[%s13857_s11 + $0xa04] sm:$0xf]  ;;  %v7622_v50 = vpop.f32.mrf.mxu3  ;;  %v9908_v53 = vor.u32 %v12276_v37, %v9905_v38 }
 0x2c1   : > { %7885 = vmatpush.bf16.msrb.mxu0 %v10388_v52  ;;  %v10161_v45 = vld [vmem:[%s13857_s11 + $0xa10] sm:$0xf0]  ;;  %v12384_v47 = vld [vmem:[%s13857_s11 + $0xb64] sm:$0xf]  ;;  %v10036_v58 = vor.u32 %v12308_v39, %v10033_v43 }
 0x2c2   : > { %7850 = vmatpush.bf16.msra.mxu1 %v9940_v3  ;;  %v10337_v48 = vld [vmem:[%s13857_s11 + $0xb70] sm:$0xf0]  ;;  %v12432_v49 = vld [vmem:[%s13857_s11 + $0xce4] sm:$0xf]  ;;  %v10164_v61 = vor.u32 %v12340_v44, %v10161_v45 }
 0x2c3   : > { %7863 = vmatpush.bf16.msra.mxu2 %v10068_v5  ;;  %v10529_v51 = vld [vmem:[%s13857_s11 + $0xcf0] sm:$0xf0]  ;;  %v12464_v52 = vld [vmem:[%s13857_s11 + $0xde4] sm:$0xf]  ;;  %v10340_v62 = vor.u32 %v12384_v47, %v10337_v48 }
 0x2c4   : > { %7876 = vmatpush.bf16.msra.mxu3 %v10196_v7  ;;  %v10657_v42 = vld [vmem:[%s13857_s11 + $0xdf0] sm:$0xf0]  ;;  %v12496_v59 = vld [vmem:[%s13857_s11 + $0xee4] sm:$0xf]  ;;  %v10532_v63 = vor.u32 %v12432_v49, %v10529_v51 }
 0x2c5   : > { %7886 = vmatpush.bf16.msrb.mxu0 %v10372_v11  ;;  %v10785_v60 = vld [vmem:[%s13857_s11 + $0xef0] sm:$0xf0]  ;;  %v10660_v0 = vor.u32 %v12464_v52, %v10657_v42  ;;  %v12380_v1 = vld [vmem:[%s13857_s11 + $0xb44] sm:$0xf] }
 0x2c6   : > { %7851 = vmatpush.bf16.msra.mxu1 %v9924_v35  ;;  %v10321_v3 = vld [vmem:[%s13857_s11 + $0xb50] sm:$0xf0]  ;;  %v12428_v5 = vld [vmem:[%s13857_s11 + $0xcc4] sm:$0xf]  ;;  %v10788_v6 = vor.u32 %v12496_v59, %v10785_v60 }
 0x2c7   : > { %7864 = vmatpush.bf16.msra.mxu2 %v10052_v36  ;;  %v10513_v40 = vld [vmem:[%s13857_s11 + $0xcd0] sm:$0xf0]  ;;  %v12460_v7 = vld [vmem:[%s13857_s11 + $0xdc4] sm:$0xf]  ;;  %v10324_v19 = vor.u32 %v12380_v1, %v10321_v3 }
 0x2c8   : > { %7877 = vmatpush.bf16.msra.mxu3 %v10180_v41  ;;  %v10641_v11 = vld [vmem:[%s13857_s11 + $0xdd0] sm:$0xf0]  ;;  %v12492_v16 = vld [vmem:[%s13857_s11 + $0xec4] sm:$0xf]  ;;  %v10516_v27 = vor.u32 %v12428_v5, %v10513_v40 }
 0x2c9   : > { %7887 = vmatpush.bf16.msrb.mxu0 %v10356_v31  ;;  %v10769_v18 = vld [vmem:[%s13857_s11 + $0xed0] sm:$0xf0]  ;;  %v10644_v32 = vor.u32 %v12460_v7, %v10641_v11  ;;  %v12376_v33 = vld [vmem:[%s13857_s11 + $0xb24] sm:$0xf] }
 0x2ca   : > { %7852 = vmatpush.bf16.msra.mxu1 %v9908_v53  ;;  %v10305_v35 = vld [vmem:[%s13857_s11 + $0xb30] sm:$0xf0]  ;;  %v12424_v36 = vld [vmem:[%s13857_s11 + $0xca4] sm:$0xf]  ;;  %v10772_v37 = vor.u32 %v12492_v16, %v10769_v18 }
 0x2cb   : > { %7865 = vmatpush.bf16.msra.mxu2 %v10036_v58  ;;  %v10497_v38 = vld [vmem:[%s13857_s11 + $0xcb0] sm:$0xf0]  ;;  %v12456_v39 = vld [vmem:[%s13857_s11 + $0xda4] sm:$0xf]  ;;  %v10308_v44 = vor.u32 %v12376_v33, %v10305_v35  ;;  %v7633_v58 = vpop.f32.mrf.mxu0 }
 0x2cc   : > { %7878 = vmatpush.bf16.msra.mxu3 %v10164_v61  ;;  %v10625_v41 = vld [vmem:[%s13857_s11 + $0xdb0] sm:$0xf0]  ;;  %v12488_v31 = vld [vmem:[%s13857_s11 + $0xea4] sm:$0xf]  ;;  %v10500_v46 = vor.u32 %v12424_v36, %v10497_v38 }
 0x2cd   : > { %7888 = vmatpush.bf16.msrb.mxu0 %v10340_v62  ;;  %7853 = vmatmul.bf16.vlgmr.msra.gmra.mxu1 %v14095_v20  ;;  %v10753_v43 = vld [vmem:[%s13857_s11 + $0xeb0] sm:$0xf0]  ;;  %v12372_v45 = vld [vmem:[%s13857_s11 + $0xb04] sm:$0xf]  ;;  %v10628_v47 = vor.u32 %v12456_v39, %v10625_v41  ;;  %v7634_v62 = vadd.f32 %v7633_v58, %v14543_v2 }
 0x2ce   : > { %7897 = vmatpush.bf16.msrb.mxu1 %v10532_v63  ;;  %7866 = vmatmul.bf16.vlgmr.msra.gmra.mxu2 %v14101_v24  ;;  %v10289_v48 = vld [vmem:[%s13857_s11 + $0xb10] sm:$0xf0]  ;;  %v12420_v49 = vld [vmem:[%s13857_s11 + $0xc84] sm:$0xf]  ;;  %v10756_v51 = vor.u32 %v12488_v31, %v10753_v43 }
 0x2cf   : > { %7910 = vmatpush.bf16.msrb.mxu2 %v10660_v0  ;;  %7879 = vmatmul.bf16.vlgmr.msra.gmra.mxu3 %v14099_v23  ;;  %v10481_v50 = vld [vmem:[%s13857_s11 + $0xc90] sm:$0xf0]  ;;  %v12452_v52 = vld [vmem:[%s13857_s11 + $0xd84] sm:$0xf]  ;;  %v10292_v63 = vor.u32 %v12372_v45, %v10289_v48  ;;  %v7646_v0 = vpop.f32.mrf.mxu1 }
 0x2d0   : > { %7923 = vmatpush.bf16.msrb.mxu3 %v10788_v6  ;;  %v10609_v42 = vld [vmem:[%s13857_s11 + $0xd90] sm:$0xf0]  ;;  %v12484_v53 = vld [vmem:[%s13857_s11 + $0xe84] sm:$0xf]  ;;  %v10484_v1 = vor.u32 %v12420_v49, %v10481_v50  ;;  %v7647_v7 = vadd.f32 %v7646_v0, %v7634_v62 }
 0x2d1   : > { %7889 = vmatpush.bf16.msrb.mxu0 %v10324_v19  ;;  %v10737_v59 = vld [vmem:[%s13857_s11 + $0xe90] sm:$0xf0]  ;;  %v12528_v60 = vld [vmem:[%s13857_s11 + $0xfe4] sm:$0xf]  ;;  %v10612_v3 = vor.u32 %v12452_v52, %v10609_v42 }
 0x2d2   : > { %7898 = vmatpush.bf16.msrb.mxu1 %v10516_v27  ;;  %v10913_v61 = vld [vmem:[%s13857_s11 + $0xff0] sm:$0xf0]  ;;  %v12416_v5 = vld [vmem:[%s13857_s11 + $0xc64] sm:$0xf]  ;;  %v10740_v40 = vor.u32 %v12484_v53, %v10737_v59 }
 0x2d3   : > { %7911 = vmatpush.bf16.msrb.mxu2 %v10644_v32  ;;  %v10465_v6 = vld [vmem:[%s13857_s11 + $0xc70] sm:$0xf0]  ;;  %v10916_v11 = vor.u32 %v12528_v60, %v10913_v61  ;;  %v12448_v16 = vld [vmem:[%s13857_s11 + $0xd64] sm:$0xf]  ;;  %v7659_v39 = vpop.f32.mrf.mxu2  ;;  %v7635_v50 = vpop.f32.mrf.mxu0 }
 0x2d4   : > { %7924 = vmatpush.bf16.msrb.mxu3 %v10772_v37  ;;  %v10593_v18 = vld [vmem:[%s13857_s11 + $0xd70] sm:$0xf0]  ;;  %v12480_v2 = vld [vmem:[%s13857_s11 + $0xe64] sm:$0xf]  ;;  %v10468_v33 = vor.u32 %v12416_v5, %v10465_v6  ;;  %v7660_v45 = vadd.f32 %v7659_v39, %v7647_v7 }
 0x2d5   : > { %7890 = vmatpush.bf16.msrb.mxu0 %v10308_v44  ;;  %v10721_v19 = vld [vmem:[%s13857_s11 + $0xe70] sm:$0xf0]  ;;  %v12524_v27 = vld [vmem:[%s13857_s11 + $0xfc4] sm:$0xf]  ;;  %v10596_v35 = vor.u32 %v12448_v16, %v10593_v18 }
 0x2d6   : > { %7899 = vmatpush.bf16.msrb.mxu1 %v10500_v46  ;;  %v10897_v32 = vld [vmem:[%s13857_s11 + $0xfd0] sm:$0xf0]  ;;  %v12412_v36 = vld [vmem:[%s13857_s11 + $0xc44] sm:$0xf]  ;;  %v10724_v38 = vor.u32 %v12480_v2, %v10721_v19  ;;  %v7672_v46 = vpop.f32.mrf.mxu3 }
 0x2d7   : > { %7912 = vmatpush.bf16.msrb.mxu2 %v10628_v47  ;;  %v10449_v37 = vld [vmem:[%s13857_s11 + $0xc50] sm:$0xf0]  ;;  %v10900_v41 = vor.u32 %v12524_v27, %v10897_v32  ;;  %v12444_v31 = vld [vmem:[%s13857_s11 + $0xd44] sm:$0xf]  ;;  %v14614_v52 = vadd.f32 %v7672_v46, %v7660_v45 }
 0x2d8   : > { %7925 = vmatpush.bf16.msrb.mxu3 %v10756_v51  ;;  %v10577_v43 = vld [vmem:[%s13857_s11 + $0xd50] sm:$0xf0]  ;;  %v12476_v44 = vld [vmem:[%s13857_s11 + $0xe44] sm:$0xf]  ;;  %v7648_v51 = vpop.f32.mrf.mxu1  ;;  %v10452_v42 = vor.u32 %v12412_v36, %v10449_v37 }
 0x2d9   : > { %7891 = vmatpush.bf16.msrb.mxu0 %v10292_v63  ;;  %v10705_v47 = vld [vmem:[%s13857_s11 + $0xe50] sm:$0xf0]  ;;  %v12520_v48 = vld [vmem:[%s13857_s11 + $0xfa4] sm:$0xf]  ;;  %v10580_v53 = vor.u32 %v12444_v31, %v10577_v43 }
 0x2da   : > { %7900 = vmatpush.bf16.msrb.mxu1 %v10484_v1  ;;  %v10881_v49 = vld [vmem:[%s13857_s11 + $0xfb0] sm:$0xf0]  ;;  %v12408_v58 = vld [vmem:[%s13857_s11 + $0xc24] sm:$0xf]  ;;  %v10708_v60 = vor.u32 %v12476_v44, %v10705_v47 }
 0x2db   : > { %7913 = vmatpush.bf16.msrb.mxu2 %v10612_v3  ;;  %v10433_v59 = vld [vmem:[%s13857_s11 + $0xc30] sm:$0xf0]  ;;  %v10884_v61 = vor.u32 %v12520_v48, %v10881_v49  ;;  %v12440_v62 = vld [vmem:[%s13857_s11 + $0xd24] sm:$0xf] }
 0x2dc   : > { %7926 = vmatpush.bf16.msrb.mxu3 %v10740_v40  ;;  %7892 = vmatmul.bf16.vlgmr.msrb.gmra.mxu0 %v14103_v25  ;;  %v10561_v63 = vld [vmem:[%s13857_s11 + $0xd30] sm:$0xf0]  ;;  %v12472_v0 = vld [vmem:[%s13857_s11 + $0xe24] sm:$0xf]  ;;  %v10436_v6 = vor.u32 %v12408_v58, %v10433_v59 }
 0x2dd   : > { %7936 = vmatpush.bf16.msra.mxu0 %v10916_v11  ;;  %v10689_v1 = vld [vmem:[%s13857_s11 + $0xe30] sm:$0xf0]  ;;  %v12516_v3 = vld [vmem:[%s13857_s11 + $0xf84] sm:$0xf]  ;;  %v10564_v40 = vor.u32 %v12440_v62, %v10561_v63 }
 0x2de   : > { %7901 = vmatpush.bf16.msrb.mxu1 %v10468_v33  ;;  %v10865_v5 = vld [vmem:[%s13857_s11 + $0xf90] sm:$0xf0]  ;;  %v12404_v7 = vld [vmem:[%s13857_s11 + $0xc04] sm:$0xf]  ;;  %v10692_v18 = vor.u32 %v12472_v0, %v10689_v1  ;;  %v7661_v33 = vpop.f32.mrf.mxu2 }
 0x2df   : > { %7914 = vmatpush.bf16.msrb.mxu2 %v10596_v35  ;;  %v10417_v11 = vld [vmem:[%s13857_s11 + $0xc10] sm:$0xf0]  ;;  %v12436_v16 = vld [vmem:[%s13857_s11 + $0xd04] sm:$0xf]  ;;  %v10868_v2 = vor.u32 %v12516_v3, %v10865_v5 }
 0x2e0   : > { %7927 = vmatpush.bf16.msrb.mxu3 %v10724_v38  ;;  %v10545_v19 = vld [vmem:[%s13857_s11 + $0xd10] sm:$0xf0]  ;;  %v12468_v27 = vld [vmem:[%s13857_s11 + $0xe04] sm:$0xf]  ;;  %v7674_v38 = vpop.f32.mrf.mxu3  ;;  %v10420_v43 = vor.u32 %v12404_v7, %v10417_v11 }
 0x2e1   : > { %7937 = vmatpush.bf16.msra.mxu0 %v10900_v41  ;;  %v10673_v32 = vld [vmem:[%s13857_s11 + $0xe10] sm:$0xf0]  ;;  %v12512_v35 = vld [vmem:[%s13857_s11 + $0xf64] sm:$0xf]  ;;  %v10548_v44 = vor.u32 %v12436_v16, %v10545_v19 }
 0x2e2   : > { %7902 = vmatpush.bf16.msrb.mxu1 %v10452_v42  ;;  %v10849_v36 = vld [vmem:[%s13857_s11 + $0xf70] sm:$0xf0]  ;;  %v12560_v37 = vld [vmem:[%s13857_s11 + $0x10e4] sm:$0xf]  ;;  %v10676_v47 = vor.u32 %v12468_v27, %v10673_v32 }
 0x2e3   : > { %7915 = vmatpush.bf16.msrb.mxu2 %v10580_v53  ;;  %v11041_v39 = vld [vmem:[%s13857_s11 + $0x10f0] sm:$0xf0]  ;;  %v12592_v41 = vld [vmem:[%s13857_s11 + $0x11e4] sm:$0xf]  ;;  %v10852_v48 = vor.u32 %v12512_v35, %v10849_v36 }
 0x2e4   : > { %7928 = vmatpush.bf16.msrb.mxu3 %v10708_v60  ;;  %v11169_v31 = vld [vmem:[%s13857_s11 + $0x11f0] sm:$0xf0]  ;;  %v12624_v45 = vld [vmem:[%s13857_s11 + $0x12e4] sm:$0xf]  ;;  %v11044_v49 = vor.u32 %v12560_v37, %v11041_v39 }
 0x2e5   : > { %7938 = vmatpush.bf16.msra.mxu0 %v10884_v61  ;;  %v11297_v46 = vld [vmem:[%s13857_s11 + $0x12f0] sm:$0xf0]  ;;  %v11172_v50 = vor.u32 %v12592_v41, %v11169_v31  ;;  %v12508_v51 = vld [vmem:[%s13857_s11 + $0xf44] sm:$0xf] }
 0x2e6   : > { %7903 = vmatpush.bf16.msrb.mxu1 %v10436_v6  ;;  %v10833_v42 = vld [vmem:[%s13857_s11 + $0xf50] sm:$0xf0]  ;;  %v12556_v53 = vld [vmem:[%s13857_s11 + $0x10c4] sm:$0xf]  ;;  %v11300_v58 = vor.u32 %v12624_v45, %v11297_v46 }
 0x2e7   : > { %7916 = vmatpush.bf16.msrb.mxu2 %v10564_v40  ;;  %v11025_v59 = vld [vmem:[%s13857_s11 + $0x10d0] sm:$0xf0]  ;;  %v12588_v60 = vld [vmem:[%s13857_s11 + $0x11c4] sm:$0xf]  ;;  %v10836_v0 = vor.u32 %v12508_v51, %v10833_v42 }
 0x2e8   : > { %7929 = vmatpush.bf16.msrb.mxu3 %v10692_v18  ;;  %v11153_v61 = vld [vmem:[%s13857_s11 + $0x11d0] sm:$0xf0]  ;;  %v12620_v62 = vld [vmem:[%s13857_s11 + $0x12c4] sm:$0xf]  ;;  %v11028_v1 = vor.u32 %v12556_v53, %v11025_v59 }
 0x2e9   : > { %7939 = vmatpush.bf16.msra.mxu0 %v10868_v2  ;;  %v11281_v63 = vld [vmem:[%s13857_s11 + $0x12d0] sm:$0xf0]  ;;  %v11156_v3 = vor.u32 %v12588_v60, %v11153_v61  ;;  %v12504_v5 = vld [vmem:[%s13857_s11 + $0xf24] sm:$0xf] }
 0x2ea   : > { %7904 = vmatpush.bf16.msrb.mxu1 %v10420_v43  ;;  %v10817_v6 = vld [vmem:[%s13857_s11 + $0xf30] sm:$0xf0]  ;;  %v12552_v40 = vld [vmem:[%s13857_s11 + $0x10a4] sm:$0xf]  ;;  %v11284_v7 = vor.u32 %v12620_v62, %v11281_v63 }
 0x2eb   : > { %7917 = vmatpush.bf16.msrb.mxu2 %v10548_v44  ;;  %v11009_v11 = vld [vmem:[%s13857_s11 + $0x10b0] sm:$0xf0]  ;;  %v12584_v16 = vld [vmem:[%s13857_s11 + $0x11a4] sm:$0xf]  ;;  %v10820_v27 = vor.u32 %v12504_v5, %v10817_v6  ;;  %v7685_v44 = vpop.f32.mrf.mxu0 }
 0x2ec   : > { %7930 = vmatpush.bf16.msrb.mxu3 %v10676_v47  ;;  %v11137_v18 = vld [vmem:[%s13857_s11 + $0x11b0] sm:$0xf0]  ;;  %v12616_v2 = vld [vmem:[%s13857_s11 + $0x12a4] sm:$0xf]  ;;  %v11012_v33 = vor.u32 %v12552_v40, %v11009_v11 }
 0x2ed   : > { %7940 = vmatpush.bf16.msra.mxu0 %v10852_v48  ;;  %7905 = vmatmul.bf16.vlgmr.msrb.gmra.mxu1 %v14161_v54  ;;  %v11265_v19 = vld [vmem:[%s13857_s11 + $0x12b0] sm:$0xf0]  ;;  %v12500_v32 = vld [vmem:[%s13857_s11 + $0xf04] sm:$0xf]  ;;  %v11140_v35 = vor.u32 %v12584_v16, %v11137_v18  ;;  %v7686_v48 = vadd.f32 %v7685_v44, %v14614_v52 }
 0x2ee   : > { %7949 = vmatpush.bf16.msra.mxu1 %v11044_v49  ;;  %7918 = vmatmul.bf16.vlgmr.msrb.gmra.mxu2 %v14165_v56  ;;  %v10801_v36 = vld [vmem:[%s13857_s11 + $0xf10] sm:$0xf0]  ;;  %v12548_v37 = vld [vmem:[%s13857_s11 + $0x1084] sm:$0xf]  ;;  %v11268_v39 = vor.u32 %v12616_v2, %v11265_v19 }
 0x2ef   : > { %7962 = vmatpush.bf16.msra.mxu2 %v11172_v50  ;;  %7931 = vmatmul.bf16.vlgmr.msrb.gmra.mxu3 %v14163_v55  ;;  %v10993_v38 = vld [vmem:[%s13857_s11 + $0x1090] sm:$0xf0]  ;;  %v12580_v41 = vld [vmem:[%s13857_s11 + $0x1184] sm:$0xf]  ;;  %v10804_v49 = vor.u32 %v12500_v32, %v10801_v36  ;;  %v7698_v50 = vpop.f32.mrf.mxu1 }
 0x2f0   : > { %7975 = vmatpush.bf16.msra.mxu3 %v11300_v58  ;;  %v11121_v31 = vld [vmem:[%s13857_s11 + $0x1190] sm:$0xf0]  ;;  %v12612_v43 = vld [vmem:[%s13857_s11 + $0x1284] sm:$0xf]  ;;  %v10996_v51 = vor.u32 %v12548_v37, %v10993_v38  ;;  %v7699_v60 = vadd.f32 %v7698_v50, %v7686_v48 }
 0x2f1   : > { %7941 = vmatpush.bf16.msra.mxu0 %v10836_v0  ;;  %v11249_v45 = vld [vmem:[%s13857_s11 + $0x1290] sm:$0xf0]  ;;  %v12656_v46 = vld [vmem:[%s13857_s11 + $0x13e4] sm:$0xf]  ;;  %v11124_v42 = vor.u32 %v12580_v41, %v11121_v31  ;;  %v7711_v16 = vpop.f32.mrf.mxu2 }
 0x2f2   : > { %7950 = vmatpush.bf16.msra.mxu1 %v11028_v1  ;;  %v11425_v47 = vld [vmem:[%s13857_s11 + $0x13f0] sm:$0xf0]  ;;  %v12544_v53 = vld [vmem:[%s13857_s11 + $0x1064] sm:$0xf]  ;;  %v11252_v59 = vor.u32 %v12612_v43, %v11249_v45  ;;  %v7712_v32 = vadd.f32 %v7711_v16, %v7699_v60 }
 0x2f3   : > { %7963 = vmatpush.bf16.msra.mxu2 %v11156_v3  ;;  %v10977_v58 = vld [vmem:[%s13857_s11 + $0x1070] sm:$0xf0]  ;;  %v11428_v61 = vor.u32 %v12656_v46, %v11425_v47  ;;  %v12576_v62 = vld [vmem:[%s13857_s11 + $0x1164] sm:$0xf] }
 0x2f4   : > { %7976 = vmatpush.bf16.msra.mxu3 %v11284_v7  ;;  %v11105_v63 = vld [vmem:[%s13857_s11 + $0x1170] sm:$0xf0]  ;;  %v12608_v52 = vld [vmem:[%s13857_s11 + $0x1264] sm:$0xf]  ;;  %v10980_v5 = vor.u32 %v12544_v53, %v10977_v58 }
 0x2f5   : > { %7942 = vmatpush.bf16.msra.mxu0 %v10820_v27  ;;  %v11233_v0 = vld [vmem:[%s13857_s11 + $0x1270] sm:$0xf0]  ;;  %v12652_v1 = vld [vmem:[%s13857_s11 + $0x13c4] sm:$0xf]  ;;  %v11108_v6 = vor.u32 %v12576_v62, %v11105_v63 }
 0x2f6   : > { %7951 = vmatpush.bf16.msra.mxu1 %v11012_v33  ;;  %v11409_v3 = vld [vmem:[%s13857_s11 + $0x13d0] sm:$0xf0]  ;;  %v12540_v40 = vld [vmem:[%s13857_s11 + $0x1044] sm:$0xf]  ;;  %v11236_v11 = vor.u32 %v12608_v52, %v11233_v0  ;;  %v7687_v33 = vpop.f32.mrf.mxu0 }
 0x2f7   : > { %7964 = vmatpush.bf16.msra.mxu2 %v11140_v35  ;;  %v10961_v7 = vld [vmem:[%s13857_s11 + $0x1050] sm:$0xf0]  ;;  %v11412_v18 = vor.u32 %v12652_v1, %v11409_v3  ;;  %v12572_v2 = vld [vmem:[%s13857_s11 + $0x1144] sm:$0xf]  ;;  %v7724_v35 = vpop.f32.mrf.mxu3 }
 0x2f8   : > { %7977 = vmatpush.bf16.msra.mxu3 %v11268_v39  ;;  %v11089_v19 = vld [vmem:[%s13857_s11 + $0x1150] sm:$0xf0]  ;;  %v12604_v27 = vld [vmem:[%s13857_s11 + $0x1244] sm:$0xf]  ;;  %v7700_v39 = vpop.f32.mrf.mxu1  ;;  %v7725_v41 = vadd.f32 %v7724_v35, %v7712_v32  ;;  %v10964_v31 = vor.u32 %v12540_v40, %v10961_v7 }
 0x2f9   : > { %7943 = vmatpush.bf16.msra.mxu0 %v10804_v49  ;;  %v11217_v36 = vld [vmem:[%s13857_s11 + $0x1250] sm:$0xf0]  ;;  %v12648_v37 = vld [vmem:[%s13857_s11 + $0x13a4] sm:$0xf]  ;;  %v11092_v43 = vor.u32 %v12572_v2, %v11089_v19 }
 0x2fa   : > { %7952 = vmatpush.bf16.msra.mxu1 %v10996_v51  ;;  %v11393_v38 = vld [vmem:[%s13857_s11 + $0x13b0] sm:$0xf0]  ;;  %v12536_v44 = vld [vmem:[%s13857_s11 + $0x1024] sm:$0xf]  ;;  %v11220_v46 = vor.u32 %v12604_v27, %v11217_v36 }
 0x2fb   : > { %7965 = vmatpush.bf16.msra.mxu2 %v11124_v42  ;;  %v10945_v45 = vld [vmem:[%s13857_s11 + $0x1030] sm:$0xf0]  ;;  %v11396_v47 = vor.u32 %v12648_v37, %v11393_v38  ;;  %v12568_v48 = vld [vmem:[%s13857_s11 + $0x1124] sm:$0xf] }
 0x2fc   : > { %7978 = vmatpush.bf16.msra.mxu3 %v11252_v59  ;;  %7944 = vmatmul.bf16.vlgmr.msra.gmra.mxu0 %v14167_v57  ;;  %v11073_v49 = vld [vmem:[%s13857_s11 + $0x1130] sm:$0xf0]  ;;  %v12600_v50 = vld [vmem:[%s13857_s11 + $0x1224] sm:$0xf]  ;;  %v10948_v58 = vor.u32 %v12536_v44, %v10945_v45 }
 0x2fd   : > { %7988 = vmatpush.bf16.msrb.mxu0 %v11428_v61  ;;  %v11201_v51 = vld [vmem:[%s13857_s11 + $0x1230] sm:$0xf0]  ;;  %v12644_v42 = vld [vmem:[%s13857_s11 + $0x1384] sm:$0xf]  ;;  %v11076_v59 = vor.u32 %v12568_v48, %v11073_v49 }
 0x2fe   : > { %7953 = vmatpush.bf16.msra.mxu1 %v10980_v5  ;;  %v11377_v53 = vld [vmem:[%s13857_s11 + $0x1390] sm:$0xf0]  ;;  %v12532_v60 = vld [vmem:[%s13857_s11 + $0x1004] sm:$0xf]  ;;  %v11204_v63 = vor.u32 %v12600_v50, %v11201_v51  ;;  %v7713_v5 = vpop.f32.mrf.mxu2  ;;  %v7737_v16 = vpop.f32.mrf.mxu0 }
 0x2ff   : > { %7966 = vmatpush.bf16.msra.mxu2 %v11108_v6  ;;  %v10929_v61 = vld [vmem:[%s13857_s11 + $0x1010] sm:$0xf0]  ;;  %v12564_v62 = vld [vmem:[%s13857_s11 + $0x1104] sm:$0xf]  ;;  %v11380_v52 = vor.u32 %v12644_v42, %v11377_v53  ;;  %v14705_v27 = vadd.f32 %v7737_v16, %v7725_v41 }
 0x300   : > { %7979 = vmatpush.bf16.msra.mxu3 %v11236_v11  ;;  %v11057_v0 = vld [vmem:[%s13857_s11 + $0x1110] sm:$0xf0]  ;;  %v12596_v1 = vld [vmem:[%s13857_s11 + $0x1204] sm:$0xf]  ;;  %v7726_v11 = vpop.f32.mrf.mxu3  ;;  %v10932_v32 = vor.u32 %v12532_v60, %v10929_v61 }
 0x301   : > { %7989 = vmatpush.bf16.msrb.mxu0 %v11412_v18  ;;  %v11185_v3 = vld [vmem:[%s13857_s11 + $0x1210] sm:$0xf0]  ;;  %v12640_v6 = vld [vmem:[%s13857_s11 + $0x1364] sm:$0xf]  ;;  %v11060_v33 = vor.u32 %v12564_v62, %v11057_v0 }
 0x302   : > { %7954 = vmatpush.bf16.msra.mxu1 %v10964_v31  ;;  %v11361_v40 = vld [vmem:[%s13857_s11 + $0x1370] sm:$0xf0]  ;;  %v12688_v7 = vld [vmem:[%s13857_s11 + $0x14e4] sm:$0xf]  ;;  %v11188_v37 = vor.u32 %v12596_v1, %v11185_v3 }
 0x303   : > { %7967 = vmatpush.bf16.msra.mxu2 %v11092_v43  ;;  %v11553_v18 = vld [vmem:[%s13857_s11 + $0x14f0] sm:$0xf0]  ;;  %v12720_v2 = vld [vmem:[%s13857_s11 + $0x15e4] sm:$0xf]  ;;  %v11364_v38 = vor.u32 %v12640_v6, %v11361_v40 }
 0x304   : > { %7980 = vmatpush.bf16.msra.mxu3 %v11220_v46  ;;  %v11681_v19 = vld [vmem:[%s13857_s11 + $0x15f0] sm:$0xf0]  ;;  %v12752_v35 = vld [vmem:[%s13857_s11 + $0x16e4] sm:$0xf]  ;;  %v11556_v39 = vor.u32 %v12688_v7, %v11553_v18 }
 0x305   : > { %7990 = vmatpush.bf16.msrb.mxu0 %v11396_v47  ;;  %v11809_v36 = vld [vmem:[%s13857_s11 + $0x16f0] sm:$0xf0]  ;;  %v11684_v31 = vor.u32 %v12720_v2, %v11681_v19  ;;  %v12636_v43 = vld [vmem:[%s13857_s11 + $0x1344] sm:$0xf] }
 0x306   : > { %7955 = vmatpush.bf16.msra.mxu1 %v10948_v58  ;;  %v11345_v44 = vld [vmem:[%s13857_s11 + $0x1350] sm:$0xf0]  ;;  %v12684_v45 = vld [vmem:[%s13857_s11 + $0x14c4] sm:$0xf]  ;;  %v11812_v41 = vor.u32 %v12752_v35, %v11809_v36  ;;  %v7739_v0 = vpop.f32.mrf.mxu0  ;;  %v12878_v35 = vld [vmem:[%s14299_s27] sm:$0xf] }
 0x307   : > { %7968 = vmatpush.bf16.msra.mxu2 %v11076_v59  ;;  %v11537_v46 = vld [vmem:[%s13857_s11 + $0x14d0] sm:$0xf0]  ;;  %v12716_v47 = vld [vmem:[%s13857_s11 + $0x15c4] sm:$0xf]  ;;  %v11348_v51 = vor.u32 %v12636_v43, %v11345_v44  ;;  %v3429_v36 = vperm.slane %v12878_v35, 1 }
 0x308   : > { %7981 = vmatpush.bf16.msra.mxu3 %v11204_v63  ;;  %v11665_v48 = vld [vmem:[%s13857_s11 + $0x15d0] sm:$0xf0]  ;;  %v12748_v49 = vld [vmem:[%s13857_s11 + $0x16c4] sm:$0xf]  ;;  %v11540_v42 = vor.u32 %v12684_v45, %v11537_v46 }
 0x309   : > { %7991 = vmatpush.bf16.msrb.mxu0 %v11380_v52  ;;  %v11793_v50 = vld [vmem:[%s13857_s11 + $0x16d0] sm:$0xf0]  ;;  %v11668_v53 = vor.u32 %v12716_v47, %v11665_v48  ;;  %v12632_v58 = vld [vmem:[%s13857_s11 + $0x1324] sm:$0xf] }
 0x30a   : > { %7956 = vmatpush.bf16.msra.mxu1 %v10932_v32  ;;  %v11329_v59 = vld [vmem:[%s13857_s11 + $0x1330] sm:$0xf0]  ;;  %v12680_v60 = vld [vmem:[%s13857_s11 + $0x14a4] sm:$0xf]  ;;  %v11796_v61 = vor.u32 %v12748_v49, %v11793_v50  ;;  %v7750_v43 = vpop.f32.mrf.mxu1 }
 0x30b   : > { %7969 = vmatpush.bf16.msra.mxu2 %v11060_v33  ;;  %v11521_v62 = vld [vmem:[%s13857_s11 + $0x14b0] sm:$0xf0]  ;;  %v12712_v63 = vld [vmem:[%s13857_s11 + $0x15a4] sm:$0xf]  ;;  %v11332_v5 = vor.u32 %v12632_v58, %v11329_v59 }
 0x30c   : > { %7982 = vmatpush.bf16.msra.mxu3 %v11188_v37  ;;  %v11649_v52 = vld [vmem:[%s13857_s11 + $0x15b0] sm:$0xf0]  ;;  %v12744_v1 = vld [vmem:[%s13857_s11 + $0x16a4] sm:$0xf]  ;;  %v11524_v7 = vor.u32 %v12680_v60, %v11521_v62 }
 0x30d   : > { %7992 = vmatpush.bf16.msrb.mxu0 %v11364_v38  ;;  %7957 = vmatmul.bf16.vlgmr.msra.gmra.mxu1 %v14251_v17  ;;  %v11777_v3 = vld [vmem:[%s13857_s11 + $0x16b0] sm:$0xf0]  ;;  %v12628_v6 = vld [vmem:[%s13857_s11 + $0x1304] sm:$0xf]  ;;  %v11652_v11 = vor.u32 %v12712_v63, %v11649_v52 }
 0x30e   : > { %8001 = vmatpush.bf16.msrb.mxu1 %v11556_v39  ;;  %7970 = vmatmul.bf16.vlgmr.msra.gmra.mxu2 %v14263_v22  ;;  %v11313_v40 = vld [vmem:[%s13857_s11 + $0x1310] sm:$0xf0]  ;;  %v12676_v16 = vld [vmem:[%s13857_s11 + $0x1484] sm:$0xf]  ;;  %v11780_v19 = vor.u32 %v12744_v1, %v11777_v3 }
 0x30f   : > { %8014 = vmatpush.bf16.msrb.mxu2 %v11684_v31  ;;  %7983 = vmatmul.bf16.vlgmr.msra.gmra.mxu3 %v14261_v21  ;;  %v11505_v18 = vld [vmem:[%s13857_s11 + $0x1490] sm:$0xf0]  ;;  %v12708_v2 = vld [vmem:[%s13857_s11 + $0x1584] sm:$0xf]  ;;  %v11316_v31 = vor.u32 %v12628_v6, %v11313_v40 }
 0x310   : > { %8027 = vmatpush.bf16.msrb.mxu3 %v11812_v41  ;;  %v11633_v32 = vld [vmem:[%s13857_s11 + $0x1590] sm:$0xf0]  ;;  %v12740_v33 = vld [vmem:[%s13857_s11 + $0x1684] sm:$0xf]  ;;  %v11508_v44 = vor.u32 %v12676_v16, %v11505_v18 }
 0x311   : > { %7993 = vmatpush.bf16.msrb.mxu0 %v11348_v51  ;;  %v11761_v37 = vld [vmem:[%s13857_s11 + $0x1690] sm:$0xf0]  ;;  %v12784_v38 = vld [vmem:[%s13857_s11 + $0x17e4] sm:$0xf]  ;;  %v11636_v45 = vor.u32 %v12708_v2, %v11633_v32  ;;  %v7763_v52 = vpop.f32.mrf.mxu2 }
 0x312   : > { %8002 = vmatpush.bf16.msrb.mxu1 %v11540_v42  ;;  %v11937_v39 = vld [vmem:[%s13857_s11 + $0x17f0] sm:$0xf0]  ;;  %v12672_v41 = vld [vmem:[%s13857_s11 + $0x1464] sm:$0xf]  ;;  %v11764_v47 = vor.u32 %v12740_v33, %v11761_v37  ;;  %v7751_v42 = vadd.f32 %v7750_v43, %v3429_v36 }
 0x313   : > { %8015 = vmatpush.bf16.msrb.mxu2 %v11668_v53  ;;  %v11489_v46 = vld [vmem:[%s13857_s11 + $0x1470] sm:$0xf0]  ;;  %v11940_v48 = vor.u32 %v12784_v38, %v11937_v39  ;;  %v12704_v49 = vld [vmem:[%s13857_s11 + $0x1564] sm:$0xf] }
 0x314   : > { %8028 = vmatpush.bf16.msrb.mxu3 %v11796_v61  ;;  %v11617_v50 = vld [vmem:[%s13857_s11 + $0x1570] sm:$0xf0]  ;;  %v12736_v51 = vld [vmem:[%s13857_s11 + $0x1664] sm:$0xf]  ;;  %v11492_v60 = vor.u32 %v12672_v41, %v11489_v46  ;;  %v7764_v40 = vadd.f32 %v7763_v52, %v7751_v42 }
 0x315   : > { %7994 = vmatpush.bf16.msrb.mxu0 %v11332_v5  ;;  %v11745_v53 = vld [vmem:[%s13857_s11 + $0x1670] sm:$0xf0]  ;;  %v12780_v58 = vld [vmem:[%s13857_s11 + $0x17c4] sm:$0xf]  ;;  %v11620_v61 = vor.u32 %v12704_v49, %v11617_v50 }
 0x316   : > { %8003 = vmatpush.bf16.msrb.mxu1 %v11524_v7  ;;  %v11921_v59 = vld [vmem:[%s13857_s11 + $0x17d0] sm:$0xf0]  ;;  %v12668_v62 = vld [vmem:[%s13857_s11 + $0x1444] sm:$0xf]  ;;  %v11748_v0 = vor.u32 %v12736_v51, %v11745_v53  ;;  %v7776_v7 = vpop.f32.mrf.mxu3 }
 0x317   : > { %8016 = vmatpush.bf16.msrb.mxu2 %v11652_v11  ;;  %v11473_v63 = vld [vmem:[%s13857_s11 + $0x1450] sm:$0xf0]  ;;  %v11924_v1 = vor.u32 %v12780_v58, %v11921_v59  ;;  %v12700_v3 = vld [vmem:[%s13857_s11 + $0x1544] sm:$0xf]  ;;  %v7777_v2 = vadd.f32 %v7776_v7, %v7764_v40 }
 0x318   : > { %8029 = vmatpush.bf16.msrb.mxu3 %v11780_v19  ;;  %v11601_v5 = vld [vmem:[%s13857_s11 + $0x1550] sm:$0xf0]  ;;  %v12732_v6 = vld [vmem:[%s13857_s11 + $0x1644] sm:$0xf]  ;;  %v7752_v19 = vpop.f32.mrf.mxu1  ;;  %v11476_v32 = vor.u32 %v12668_v62, %v11473_v63 }
 0x319   : > { %7995 = vmatpush.bf16.msrb.mxu0 %v11316_v31  ;;  %v11729_v11 = vld [vmem:[%s13857_s11 + $0x1650] sm:$0xf0]  ;;  %v12776_v16 = vld [vmem:[%s13857_s11 + $0x17a4] sm:$0xf]  ;;  %v11604_v33 = vor.u32 %v12700_v3, %v11601_v5  ;;  %v7789_v46 = vpop.f32.mrf.mxu0  ;;  %v7765_v53 = vpop.f32.mrf.mxu2  ;;  %v8999_v5 = vld [vmem:[%s13857_s11 + $0xe8] sm:$0xf] }
 0x31a   : > { %8004 = vmatpush.bf16.msrb.mxu1 %v11508_v44  ;;  %v11905_v18 = vld [vmem:[%s13857_s11 + $0x17b0] sm:$0xf0]  ;;  %v12664_v35 = vld [vmem:[%s13857_s11 + $0x1424] sm:$0xf]  ;;  %v11732_v37 = vor.u32 %v12732_v6, %v11729_v11  ;;  %v14767_v42 = vadd.f32 %v7789_v46, %v7777_v2  ;;  %v12051_v6 = vld [vmem:[%s13857_s11 + $0xf4] sm:$0xf0] }
 0x31b   : > { %8017 = vmatpush.bf16.msrb.mxu2 %v11636_v45  ;;  %v11457_v36 = vld [vmem:[%s13857_s11 + $0x1430] sm:$0xf0]  ;;  %v11908_v38 = vor.u32 %v12776_v16, %v11905_v18  ;;  %v12696_v39 = vld [vmem:[%s13857_s11 + $0x1524] sm:$0xf]  ;;  %v9127_v11 = vld [vmem:[%s13857_s11 + $0x1e8] sm:$0xf] }
 0x31c   : > { %8030 = vmatpush.bf16.msrb.mxu3 %v11764_v47  ;;  %7996 = vmatmul.bf16.vlgmr.msrb.gmra.mxu0 %v14265_v26  ;;  %v11585_v31 = vld [vmem:[%s13857_s11 + $0x1530] sm:$0xf0]  ;;  %v12728_v43 = vld [vmem:[%s13857_s11 + $0x1624] sm:$0xf]  ;;  %v11460_v47 = vor.u32 %v12664_v35, %v11457_v36  ;;  %v12083_v16 = vld [vmem:[%s13857_s11 + $0x1f4] sm:$0xf0] }
 0x31d   : > { %8040 = vmatpush.bf16.msra.mxu0 %v11940_v48  ;;  %v11713_v44 = vld [vmem:[%s13857_s11 + $0x1630] sm:$0xf0]  ;;  %v12772_v45 = vld [vmem:[%s13857_s11 + $0x1784] sm:$0xf]  ;;  %v11588_v48 = vor.u32 %v12696_v39, %v11585_v31  ;;  %v8983_v39 = vld [vmem:[%s13857_s11 + $0xc8] sm:$0xf] }
 0x31e   : > { %8005 = vmatpush.bf16.msrb.mxu1 %v11492_v60  ;;  %v11889_v41 = vld [vmem:[%s13857_s11 + $0x1790] sm:$0xf0]  ;;  %v12660_v49 = vld [vmem:[%s13857_s11 + $0x1404] sm:$0xf]  ;;  %v11716_v58 = vor.u32 %v12728_v43, %v11713_v44  ;;  %v7778_v63 = vpop.f32.mrf.mxu3  ;;  %v12047_v31 = vld [vmem:[%s13857_s11 + $0xd4] sm:$0xf0] }
 0x31f   : > { %8018 = vmatpush.bf16.msrb.mxu2 %v11620_v61  ;;  %v11441_v50 = vld [vmem:[%s13857_s11 + $0x1410] sm:$0xf0]  ;;  %v12692_v51 = vld [vmem:[%s13857_s11 + $0x1504] sm:$0xf]  ;;  %v11892_v59 = vor.u32 %v12772_v45, %v11889_v41  ;;  %v9111_v44 = vld [vmem:[%s13857_s11 + $0x1c8] sm:$0xf] }
 0x320   : > { %8031 = vmatpush.bf16.msrb.mxu3 %v11748_v0  ;;  %v11569_v60 = vld [vmem:[%s13857_s11 + $0x1510] sm:$0xf0]  ;;  %v12724_v61 = vld [vmem:[%s13857_s11 + $0x1604] sm:$0xf]  ;;  %v11444_v40 = vor.u32 %v12660_v49, %v11441_v50  ;;  %v12079_v45 = vld [vmem:[%s13857_s11 + $0x1d4] sm:$0xf0] }
 0x321   : > { %8041 = vmatpush.bf16.msra.mxu0 %v11924_v1  ;;  %v11697_v62 = vld [vmem:[%s13857_s11 + $0x1610] sm:$0xf0]  ;;  %v12768_v52 = vld [vmem:[%s13857_s11 + $0x1764] sm:$0xf]  ;;  %v11572_v7 = vor.u32 %v12692_v51, %v11569_v60  ;;  %v7791_v43 = vpop.f32.mrf.mxu0  ;;  %v9112_v51 = vor.u32 %v12079_v45, %v9111_v44  ;;  %v9095_v60 = vld [vmem:[%s13857_s11 + $0x1a8] sm:$0xf] }
 0x322   : > { %8006 = vmatpush.bf16.msrb.mxu1 %v11476_v32  ;;  %v11873_v0 = vld [vmem:[%s13857_s11 + $0x1770] sm:$0xf0]  ;;  %v12800_v1 = vld [vmem:[%s13857_s11 + $0x1864] sm:$0xf]  ;;  %v11700_v18 = vor.u32 %v12724_v61, %v11697_v62  ;;  %v9000_v32 = vor.u32 %v12051_v6, %v8999_v5  ;;  %v12075_v61 = vld [vmem:[%s13857_s11 + $0x1b4] sm:$0xf0] }
 0x323   : > { %8019 = vmatpush.bf16.msrb.mxu2 %v11604_v33  ;;  %v12001_v3 = vld [vmem:[%s13857_s11 + $0x1870] sm:$0xf0]  ;;  %v11876_v2 = vor.u32 %v12768_v52, %v11873_v0  ;;  %v12764_v33 = vld [vmem:[%s13857_s11 + $0x1744] sm:$0xf]  ;;  %v9096_v6 = vor.u32 %v12075_v61, %v9095_v60  ;;  %v8935_v43 = vld [vmem:[%s13857_s11 + $0x68] sm:$0xf] }
 0x324   : > { %8032 = vmatpush.bf16.msrb.mxu3 %v11732_v37  ;;  %v12004_v19 = vor.u32 %v12800_v1, %v12001_v3  ;;  %v11857_v35 = vld [vmem:[%s13857_s11 + $0x1750] sm:$0xf0]  ;;  %v12796_v36 = vld [vmem:[%s13857_s11 + $0x1844] sm:$0xf]  ;;  %v9128_v37 = vor.u32 %v12083_v16, %v9127_v11  ;;  %v9079_v11 = vld [vmem:[%s13857_s11 + $0x188] sm:$0xf] }
 0x325   : > { %8042 = vmatpush.bf16.msra.mxu0 %v11908_v38  ;;  %v11985_v38 = vld [vmem:[%s13857_s11 + $0x1850] sm:$0xf0]  ;;  %v11860_v41 = vor.u32 %v12764_v33, %v11857_v35  ;;  %v12792_v50 = vld [vmem:[%s13857_s11 + $0x1824] sm:$0xf]  ;;  %v12071_v16 = vld [vmem:[%s13857_s11 + $0x194] sm:$0xf0] }
 0x326   : > { %8007 = vmatpush.bf16.msrb.mxu1 %v11460_v47  ;;  %v11988_v46 = vor.u32 %v12796_v36, %v11985_v38  ;;  %v8984_v47 = vor.u32 %v12047_v31, %v8983_v39  ;;  %v11841_v49 = vld [vmem:[%s13857_s11 + $0x1730] sm:$0xf0]  ;;  %v12756_v63 = vld [vmem:[%s13857_s11 + $0x1704] sm:$0xf]  ;;  %v12147_v33 = vld [vmem:[%s13857_s11 + $0x3f4] sm:$0xf0]  ;;  %v9080_v39 = vor.u32 %v12071_v16, %v9079_v11 }
 0x327   : > { %8020 = vmatpush.bf16.msrb.mxu2 %v11588_v48  ;;  %v12760_v48 = vld [vmem:[%s13857_s11 + $0x1724] sm:$0xf]  ;;  %v11969_v53 = vld [vmem:[%s13857_s11 + $0x1830] sm:$0xf0]  ;;  %v12035_v44 = vld [vmem:[%s13857_s11 + $0x74] sm:$0xf0] }
 0x328   : > { %8033 = vmatpush.bf16.msrb.mxu3 %v11716_v58  ;;  %v8967_v58 = vld [vmem:[%s13857_s11 + $0xa8] sm:$0xf]  ;;  %v11844_v62 = vor.u32 %v12760_v48, %v11841_v49  ;;  %v11972_v52 = vor.u32 %v12792_v50, %v11969_v53  ;;  %v11825_v1 = vld [vmem:[%s13857_s11 + $0x1710] sm:$0xf0]  ;;  %v12788_v3 = vld [vmem:[%s13857_s11 + $0x1804] sm:$0xf] }
 0x329   : > { %8043 = vmatpush.bf16.msra.mxu0 %v11892_v59  ;;  %v12043_v59 = vld [vmem:[%s13857_s11 + $0xb4] sm:$0xf0]  ;;  %v11953_v5 = vld [vmem:[%s13857_s11 + $0x1810] sm:$0xf0]  ;;  %v9063_v45 = vld [vmem:[%s13857_s11 + $0x168] sm:$0xf] }
 0x32a   : > { %8008 = vmatpush.bf16.msrb.mxu1 %v11444_v40  ;;  %v8968_v0 = vor.u32 %v12043_v59, %v8967_v58  ;;  %v8951_v40 = vld [vmem:[%s13857_s11 + $0x88] sm:$0xf]  ;;  %v7802_v35 = vpop.f32.mrf.mxu1  ;;  %v11956_v36 = vor.u32 %v12788_v3, %v11953_v5  ;;  %v12111_v48 = vld [vmem:[%s13857_s11 + $0x2d4] sm:$0xf0] }
 0x32b   : > { %8021 = vmatpush.bf16.msrb.mxu2 %v11572_v7  ;;  %v12039_v7 = vld [vmem:[%s13857_s11 + $0x94] sm:$0xf0]  ;;  %v7803_v38 = vadd.f32 %v7802_v35, %v14767_v42  ;;  %v9367_v49 = vld [vmem:[%s13857_s11 + $0x3c8] sm:$0xf]  ;;  %v8936_v42 = vor.u32 %v12035_v44, %v8935_v43 }
 0x32c   : > { %8034 = vmatpush.bf16.msrb.mxu3 %v11700_v18  ;;  %v9255_v18 = vld [vmem:[%s13857_s11 + $0x2e8] sm:$0xf]  ;;  %v12143_v50 = vld [vmem:[%s13857_s11 + $0x3d4] sm:$0xf0] }
 0x32d   : > { %8044 = vmatpush.bf16.msra.mxu0 %v11876_v2  ;;  %8009 = vmatmul.bf16.vlgmr.msrb.gmra.mxu1 %v14308_v12  ;;  %v12115_v2 = vld [vmem:[%s13857_s11 + $0x2f4] sm:$0xf0]  ;;  %v8919_v59 = vld [vmem:[%s13857_s11 + $0x48] sm:$0xf] }
 0x32e   : > { %8057 = vmatpush.bf16.msra.mxu1 %v12004_v19  ;;  %8022 = vmatmul.bf16.vlgmr.msrb.gmra.mxu2 %v14312_v14  ;;  %v11828_v19 = vor.u32 %v12756_v63, %v11825_v1  ;;  %v9256_v31 = vor.u32 %v12115_v2, %v9255_v18  ;;  %v12031_v60 = vld [vmem:[%s13857_s11 + $0x54] sm:$0xf0]  ;;  %v9047_v61 = vld [vmem:[%s13857_s11 + $0x148] sm:$0xf] }
 0x32f   : > { %8066 = vmatpush.bf16.msra.mxu2 %v9000_v32  ;;  %8035 = vmatmul.bf16.vlgmr.msrb.gmra.mxu3 %v14310_v13  ;;  %v9383_v32 = vld [vmem:[%s13857_s11 + $0x3e8] sm:$0xf]  ;;  %v12107_v3 = vld [vmem:[%s13857_s11 + $0x2b4] sm:$0xf0]  ;;  %v8920_v11 = vor.u32 %v12031_v60, %v8919_v59 }
 0x330   : > { %8079 = vmatpush.bf16.msra.mxu3 %v9128_v37  ;;  %v8952_v37 = vor.u32 %v12039_v7, %v8951_v40  ;;  %v9223_v1 = vld [vmem:[%s13857_s11 + $0x2a8] sm:$0xf]  ;;  %v12059_v35 = vld [vmem:[%s13857_s11 + $0x134] sm:$0xf0] }
 0x331   : > { %8045 = vmatpush.bf16.msra.mxu0 %v11860_v41  ;;  %v9384_v41 = vor.u32 %v12147_v33, %v9383_v32  ;;  %v9351_v5 = vld [vmem:[%s13857_s11 + $0x3a8] sm:$0xf]  ;;  %v9224_v18 = vor.u32 %v12107_v3, %v9223_v1  ;;  %v12135_v43 = vld [vmem:[%s13857_s11 + $0x394] sm:$0xf0] }
 0x332   : > { %8058 = vmatpush.bf16.msra.mxu1 %v11988_v46  ;;  %v12067_v46 = vld [vmem:[%s13857_s11 + $0x174] sm:$0xf0]  ;;  %v7828_v63 = vpop.f32.mrf.mxu3  ;;  %v7804_v7 = vpop.f32.mrf.mxu1  ;;  %v8903_v2 = vld [vmem:[%s13857_s11 + $0x28] sm:$0xf] }
 0x333   : > { %8067 = vmatpush.bf16.msra.mxu2 %v8984_v47  ;;  %v9239_v47 = vld [vmem:[%s13857_s11 + $0x2c8] sm:$0xf]  ;;  %v9064_v53 = vor.u32 %v12067_v46, %v9063_v45  ;;  %v12099_v59 = vld [vmem:[%s13857_s11 + $0x274] sm:$0xf0] }
 0x334   : > { %8080 = vmatpush.bf16.msra.mxu3 %v9112_v51  ;;  %v7815_v51 = vpop.f32.mrf.mxu2  ;;  %v9240_v58 = vor.u32 %v12111_v48, %v9239_v47  ;;  %v9031_v32 = vld [vmem:[%s13857_s11 + $0x128] sm:$0xf]  ;;  %v12211_v1 = vld [vmem:[%s13857_s11 + $0x5f4] sm:$0xf0] }
 0x335   : > { %8046 = vmatpush.bf16.msra.mxu0 %v11844_v62  ;;  %v7816_v62 = vadd.f32 %v7815_v51, %v7803_v38  ;;  %v12879_v38 = vld [vmem:[#allocation1] sm:$0xff]  ;;  %v9032_v47 = vor.u32 %v12059_v35, %v9031_v32  ;;  %v9319_v60 = vld [vmem:[%s13857_s11 + $0x368] sm:$0xf] }
 0x336   : > { %8059 = vmatpush.bf16.msra.mxu1 %v11972_v52  ;;  %v9368_v52 = vor.u32 %v12143_v50, %v9367_v49  ;;  %v12023_v49 = vld [vmem:[%s13857_s11 + $0x14] sm:$0xf0]  ;;  %v9015_v50 = vld [vmem:[%s13857_s11 + $0x108] sm:$0xf] }
 0x337   : > { %8068 = vmatpush.bf16.msra.mxu2 %v8968_v0  ;;  %v12063_v0 = vld [vmem:[%s13857_s11 + $0x154] sm:$0xf0]  ;;  %v7829_v40 = vadd.f32 %v7828_v63, %v7816_v62  ;;  %v9511_v62 = vld [vmem:[%s13857_s11 + $0x4e8] sm:$0xf] }
 0x338   : > { %8081 = vmatpush.bf16.msra.mxu3 %v9096_v6  ;;  %v12139_v6 = vld [vmem:[%s13857_s11 + $0x3b4] sm:$0xf0]  ;;  %v9048_v16 = vor.u32 %v12063_v0, %v9047_v61  ;;  %v9639_v0 = vld [vmem:[%s13857_s11 + $0x5e8] sm:$0xf] }
 0x339   : > { %8047 = vmatpush.bf16.msra.mxu0 %v11828_v19  ;;  %v12027_v19 = vld [vmem:[%s13857_s11 + $0x34] sm:$0xf0]  ;;  %v9352_v33 = vor.u32 %v12139_v6, %v9351_v5  ;;  %v9175_v7 = vld [vmem:[%s13857_s11 + $0x248] sm:$0xf] }
 0x33a   : > { %8060 = vmatpush.bf16.msra.mxu1 %v11956_v36  ;;  %v9207_v36 = vld [vmem:[%s13857_s11 + $0x288] sm:$0xf]  ;;  %v8904_v44 = vor.u32 %v12027_v19, %v8903_v2  ;;  %v7830_v51 = vpop.f32.mrf.mxu3  ;;  %v12131_v61 = vld [vmem:[%s13857_s11 + $0x374] sm:$0xf0] }
 0x33b   : > { %8069 = vmatpush.bf16.msra.mxu2 %v8952_v37  ;;  %v12103_v37 = vld [vmem:[%s13857_s11 + $0x294] sm:$0xf0]  ;;  %v9320_v6 = vor.u32 %v12131_v61, %v9319_v60  ;;  %v9495_v19 = vld [vmem:[%s13857_s11 + $0x4c8] sm:$0xf] }
 0x33c   : > { %8082 = vmatpush.bf16.msra.mxu3 %v9080_v39  ;;  %8048 = vmatmul.bf16.vlgmr.msra.gmra.mxu0 %v14314_v15  ;;  %v7841_v39 = vpop.f32.mrf.mxu0  ;;  %v7817_v46 = vpop.f32.mrf.mxu2  ;;  %v9208_v48 = vor.u32 %v12103_v37, %v9207_v36  ;;  %v12179_v63 = vld [vmem:[%s13857_s11 + $0x4f4] sm:$0xf0]  ;;  %v9623_v35 = vld [vmem:[%s13857_s11 + $0x5c8] sm:$0xf] }
 0x33d   : > { %8092 = vmatpush.bf16.msrb.mxu0 %v9256_v31  ;;  %12014 = vmatmul.msk.bf16.vlgmr.msra.gmra.mxu1 %vm7413_vm0, %v12879_v38  ;;  %v9335_v31 = vld [vmem:[%s13857_s11 + $0x388] sm:$0xf]  ;;  %v14838_v45 = vadd.f32 %v7841_v39, %v7829_v40  ;;  %v9512_v40 = vor.u32 %v12179_v63, %v9511_v62  ;;  %v12127_v2 = vld [vmem:[%s13857_s11 + $0x354] sm:$0xf0] }
 0x33e   : > { %8105 = vmatpush.bf16.msrb.mxu1 %v9384_v41  ;;  %v8887_v41 = vld [vmem:[%s13857_s11 + $0x8] sm:$0xf]  ;;  %v12175_v32 = vld [vmem:[%s13857_s11 + $0x4d4] sm:$0xf0] }
 0x33f   : > { %8070 = vmatpush.bf16.msra.mxu2 %v8936_v42  ;;  %v12055_v42 = vld [vmem:[%s13857_s11 + $0x114] sm:$0xf0]  ;;  %v9496_v39 = vor.u32 %v12175_v32, %v9495_v19  ;;  %v9143_v51 = vld [vmem:[%s13857_s11 + $0x208] sm:$0xf] }
 0x340   : > { %8083 = vmatpush.bf16.msra.mxu3 %v9064_v53  ;;  %v9336_v53 = vor.u32 %v12135_v43, %v9335_v31  ;;  %v9016_v3 = vor.u32 %v12055_v42, %v9015_v50  ;;  %v12207_v36 = vld [vmem:[%s13857_s11 + $0x5d4] sm:$0xf0]  ;;  %v9159_v31 = vld [vmem:[%s13857_s11 + $0x228] sm:$0xf] }
 0x341   : > { %8093 = vmatpush.bf16.msrb.mxu0 %v9240_v58  ;;  %v9191_v58 = vld [vmem:[%s13857_s11 + $0x268] sm:$0xf]  ;;  %v12091_v43 = vld [vmem:[%s13857_s11 + $0x234] sm:$0xf0] }
 0x342   : > { %8106 = vmatpush.bf16.msrb.mxu1 %v9368_v52  ;;  %v8888_v52 = vor.u32 %v12023_v49, %v8887_v41  ;;  %v9192_v5 = vor.u32 %v12099_v59, %v9191_v58  ;;  %v9624_v41 = vor.u32 %v12207_v36, %v9623_v35  ;;  %v12123_v46 = vld [vmem:[%s13857_s11 + $0x334] sm:$0xf0]  ;;  %v9607_v49 = vld [vmem:[%s13857_s11 + $0x5a8] sm:$0xf]  ;;  %v9160_v42 = vor.u32 %v12091_v43, %v9159_v31 }
 0x343   : > { %8071 = vmatpush.bf16.msra.mxu2 %v8920_v11  ;;  %v12095_v11 = vld [vmem:[%s13857_s11 + $0x254] sm:$0xf0]  ;;  %v9271_v60 = vld [vmem:[%s13857_s11 + $0x308] sm:$0xf] }
 0x344   : > { %8084 = vmatpush.bf16.msra.mxu3 %v9048_v16  ;;  %v9303_v16 = vld [vmem:[%s13857_s11 + $0x348] sm:$0xf]  ;;  %v9176_v37 = vor.u32 %v12095_v11, %v9175_v7  ;;  %v12203_v50 = vld [vmem:[%s13857_s11 + $0x5b4] sm:$0xf0] }
 0x345   : > { %8094 = vmatpush.bf16.msrb.mxu0 %v9224_v18  ;;  %v9640_v18 = vor.u32 %v12211_v1, %v9639_v0  ;;  %v9304_v38 = vor.u32 %v12127_v2, %v9303_v16  ;;  %v12087_v59 = vld [vmem:[%s13857_s11 + $0x214] sm:$0xf0]  ;;  %v9608_v62 = vor.u32 %v12203_v50, %v9607_v49  ;;  %v9463_v63 = vld [vmem:[%s13857_s11 + $0x488] sm:$0xf] }
 0x346   : > { %8107 = vmatpush.bf16.msrb.mxu1 %v9352_v33  ;;  %v7843_v33 = vpop.f32.mrf.mxu0  ;;  %v12119_v61 = vld [vmem:[%s13857_s11 + $0x314] sm:$0xf0]  ;;  %v9591_v0 = vld [vmem:[%s13857_s11 + $0x588] sm:$0xf]  ;;  %v9144_v7 = vor.u32 %v12087_v59, %v9143_v51 }
 0x347   : > { %8072 = vmatpush.bf16.msra.mxu2 %v8904_v44  ;;  %v9287_v44 = vld [vmem:[%s13857_s11 + $0x328] sm:$0xf]  ;;  %v12275_v16 = vld [vmem:[%s13857_s11 + $0x7f4] sm:$0xf0] }
 0x348   : > { %8085 = vmatpush.bf16.msra.mxu3 %v9032_v47  ;;  %v9479_v47 = vld [vmem:[%s13857_s11 + $0x4a8] sm:$0xf]  ;;  %v12163_v35 = vld [vmem:[%s13857_s11 + $0x474] sm:$0xf0] }
 0x349   : > { %8095 = vmatpush.bf16.msrb.mxu0 %v9208_v48  ;;  %v12171_v48 = vld [vmem:[%s13857_s11 + $0x4b4] sm:$0xf0]  ;;  %v9895_v11 = vld [vmem:[%s13857_s11 + $0x7e8] sm:$0xf] }
 0x34a   : > { %8108 = vmatpush.bf16.msrb.mxu1 %v9336_v53  ;;  %v9288_v53 = vor.u32 %v12123_v46, %v9287_v44  ;;  %v9480_v58 = vor.u32 %v12171_v48, %v9479_v47  ;;  %v7854_v1 = vpop.f32.mrf.mxu1  ;;  %v9447_v33 = vld [vmem:[%s13857_s11 + $0x468] sm:$0xf]  ;;  %v12271_v43 = vld [vmem:[%s13857_s11 + $0x7d4] sm:$0xf0] }
 0x34b   : > { %8073 = vmatpush.bf16.msra.mxu2 %v8888_v52  ;;  %v12167_v52 = vld [vmem:[%s13857_s11 + $0x494] sm:$0xf0]  ;;  %v9575_v36 = vld [vmem:[%s13857_s11 + $0x568] sm:$0xf]  ;;  %v9448_v44 = vor.u32 %v12163_v35, %v9447_v33 }
 0x34c   : > { %8086 = vmatpush.bf16.msra.mxu3 %v9016_v3  ;;  %v12199_v3 = vld [vmem:[%s13857_s11 + $0x594] sm:$0xf0]  ;;  %v9464_v2 = vor.u32 %v12167_v52, %v9463_v63  ;;  %v9879_v31 = vld [vmem:[%s13857_s11 + $0x7c8] sm:$0xf] }
 0x34d   : > { %8096 = vmatpush.bf16.msrb.mxu0 %v9192_v5  ;;  %v9767_v5 = vld [vmem:[%s13857_s11 + $0x6e8] sm:$0xf]  ;;  %v9592_v19 = vor.u32 %v12199_v3, %v9591_v0  ;;  %v12159_v50 = vld [vmem:[%s13857_s11 + $0x454] sm:$0xf0] }
 0x34e   : > { %8109 = vmatpush.bf16.msrb.mxu1 %v9320_v6  ;;  %8074 = vmatmul.bf16.vlgmr.msra.gmra.mxu2 %v13964_v29  ;;  %v12243_v6 = vld [vmem:[%s13857_s11 + $0x6f4] sm:$0xf0]  ;;  %v9431_v49 = vld [vmem:[%s13857_s11 + $0x448] sm:$0xf] }
 0x34f   : > { %8118 = vmatpush.bf16.msrb.mxu2 %v9512_v40  ;;  %8087 = vmatmul.bf16.vlgmr.msra.gmra.mxu3 %v13971_v34  ;;  %v7855_v40 = vadd.f32 %v7854_v1, %v14838_v45  ;;  %v9768_v32 = vor.u32 %v12243_v6, %v9767_v5  ;;  %v12195_v45 = vld [vmem:[%s13857_s11 + $0x574] sm:$0xf0]  ;;  %v9735_v59 = vld [vmem:[%s13857_s11 + $0x6a8] sm:$0xf]  ;;  %v9432_v0 = vor.u32 %v12159_v50, %v9431_v49 }
 0x350   : > { %8131 = vmatpush.bf16.msrb.mxu3 %v9640_v18  ;;  %v9272_v18 = vor.u32 %v12119_v61, %v9271_v60  ;;  %v12235_v60 = vld [vmem:[%s13857_s11 + $0x6b4] sm:$0xf0]  ;;  %v9415_v5 = vld [vmem:[%s13857_s11 + $0x428] sm:$0xf] }
 0x351   : > { %8097 = vmatpush.bf16.msrb.mxu0 %v9176_v37  ;;  %v9896_v37 = vor.u32 %v12275_v16, %v9895_v11  ;;  %v7867_v46 = vpop.f32.mrf.mxu2  ;;  %v12267_v63 = vld [vmem:[%s13857_s11 + $0x7b4] sm:$0xf0]  ;;  %v9736_v3 = vor.u32 %v12235_v60, %v9735_v59  ;;  %v9719_v16 = vld [vmem:[%s13857_s11 + $0x688] sm:$0xf] }
 0x352   : > { %8110 = vmatpush.bf16.msrb.mxu1 %v9304_v38  ;;  %v9751_v38 = vld [vmem:[%s13857_s11 + $0x6c8] sm:$0xf]  ;;  %v7880_v48 = vpop.f32.mrf.mxu3  ;;  %v7868_v51 = vadd.f32 %v7867_v46, %v7855_v40  ;;  %v7856_v61 = vpop.f32.mrf.mxu1  ;;  %v12155_v6 = vld [vmem:[%s13857_s11 + $0x434] sm:$0xf0] }
 0x353   : > { %8119 = vmatpush.bf16.msrb.mxu2 %v9496_v39  ;;  %v12239_v39 = vld [vmem:[%s13857_s11 + $0x6d4] sm:$0xf0]  ;;  %v9543_v40 = vld [vmem:[%s13857_s11 + $0x528] sm:$0xf]  ;;  %v9416_v35 = vor.u32 %v12155_v6, %v9415_v5 }
 0x354   : > { %8132 = vmatpush.bf16.msrb.mxu3 %v9624_v41  ;;  %v9576_v41 = vor.u32 %v12195_v45, %v9575_v36  ;;  %v9752_v47 = vor.u32 %v12239_v39, %v9751_v38  ;;  %v7881_v52 = vadd.f32 %v7880_v48, %v7868_v51  ;;  %v12187_v11 = vld [vmem:[%s13857_s11 + $0x534] sm:$0xf0]  ;;  %v9399_v36 = vld [vmem:[%s13857_s11 + $0x408] sm:$0xf] }
 0x355   : > { %8098 = vmatpush.bf16.msrb.mxu0 %v9160_v42  ;;  %v9559_v42 = vld [vmem:[%s13857_s11 + $0x548] sm:$0xf]  ;;  %v12151_v38 = vld [vmem:[%s13857_s11 + $0x414] sm:$0xf0] }
 0x356   : > { %8111 = vmatpush.bf16.msrb.mxu1 %v9288_v53  ;;  %v9880_v53 = vor.u32 %v12271_v43, %v9879_v31  ;;  %v9527_v39 = vld [vmem:[%s13857_s11 + $0x508] sm:$0xf]  ;;  %v12183_v31 = vld [vmem:[%s13857_s11 + $0x514] sm:$0xf0]  ;;  %v9400_v51 = vor.u32 %v12151_v38, %v9399_v36 }
 0x357   : > { %8120 = vmatpush.bf16.msrb.mxu2 %v9480_v58  ;;  %v12191_v58 = vld [vmem:[%s13857_s11 + $0x554] sm:$0xf0]  ;;  %v9703_v46 = vld [vmem:[%s13857_s11 + $0x668] sm:$0xf]  ;;  %v9528_v59 = vor.u32 %v12183_v31, %v9527_v39 }
 0x358   : > { %8133 = vmatpush.bf16.msrb.mxu3 %v9608_v62  ;;  %v9863_v62 = vld [vmem:[%s13857_s11 + $0x7a8] sm:$0xf]  ;;  %v9560_v1 = vor.u32 %v12191_v58, %v9559_v42  ;;  %v12259_v49 = vld [vmem:[%s13857_s11 + $0x774] sm:$0xf0] }
 0x359   : > { %8099 = vmatpush.bf16.msrb.mxu0 %v9144_v7  ;;  %v9864_v7 = vor.u32 %v12267_v63, %v9863_v62  ;;  %v7869_v43 = vpop.f32.mrf.mxu2  ;;  %v9831_v48 = vld [vmem:[%s13857_s11 + $0x768] sm:$0xf]  ;;  %v12307_v42 = vld [vmem:[%s13857_s11 + $0x8f4] sm:$0xf0] }
 0x35a   : > { %8112 = vmatpush.bf16.msrb.mxu1 %v9272_v18  ;;  %v12231_v18 = vld [vmem:[%s13857_s11 + $0x694] sm:$0xf0]  ;;  %v10023_v50 = vld [vmem:[%s13857_s11 + $0x8e8] sm:$0xf]  ;;  %v9832_v61 = vor.u32 %v12259_v49, %v9831_v48 }
 0x35b   : > { %8121 = vmatpush.bf16.msrb.mxu2 %v9464_v2  ;;  %v7893_v2 = vpop.f32.mrf.mxu0  ;;  %v9720_v45 = vor.u32 %v12231_v18, %v9719_v16  ;;  %v12339_v58 = vld [vmem:[%s13857_s11 + $0x9f4] sm:$0xf0]  ;;  %v10024_v62 = vor.u32 %v12307_v42, %v10023_v50  ;;  %v9687_v63 = vld [vmem:[%s13857_s11 + $0x648] sm:$0xf] }
 0x35c   : > { %8134 = vmatpush.bf16.msrb.mxu3 %v9592_v19  ;;  %8100 = vmatmul.bf16.vlgmr.msrb.gmra.mxu0 %v13962_v28  ;;  %v9847_v19 = vld [vmem:[%s13857_s11 + $0x788] sm:$0xf]  ;;  %v14909_v33 = vadd.f32 %v7893_v2, %v7881_v52  ;;  %v12223_v52 = vld [vmem:[%s13857_s11 + $0x654] sm:$0xf0] }
 0x35d   : > { %8144 = vmatpush.bf16.msra.mxu0 %v9768_v32  ;;  %8113 = vmatmul.bf16.vlgmr.msrb.gmra.mxu1 %v13966_v30  ;;  %v12263_v32 = vld [vmem:[%s13857_s11 + $0x794] sm:$0xf0]  ;;  %v10007_v5 = vld [vmem:[%s13857_s11 + $0x8c8] sm:$0xf]  ;;  %v9688_v16 = vor.u32 %v12223_v52, %v9687_v63 }
 0x35e   : > { %8157 = vmatpush.bf16.msra.mxu1 %v9896_v37  ;;  %v9544_v37 = vor.u32 %v12187_v11, %v9543_v40  ;;  %v12303_v6 = vld [vmem:[%s13857_s11 + $0x8d4] sm:$0xf0]  ;;  %v10119_v39 = vld [vmem:[%s13857_s11 + $0x9a8] sm:$0xf] }
 0x35f   : > { %8122 = vmatpush.bf16.msrb.mxu2 %v9448_v44  ;;  %v7882_v44 = vpop.f32.mrf.mxu3  ;;  %v12335_v11 = vld [vmem:[%s13857_s11 + $0x9d4] sm:$0xf0]  ;;  %v10008_v2 = vor.u32 %v12303_v6, %v10007_v5  ;;  %v9783_v48 = vld [vmem:[%s13857_s11 + $0x708] sm:$0xf] }
 0x360   : > { %8135 = vmatpush.bf16.msrb.mxu3 %v9576_v41  ;;  %v9848_v41 = vor.u32 %v12263_v32, %v9847_v19  ;;  %v9671_v19 = vld [vmem:[%s13857_s11 + $0x628] sm:$0xf]  ;;  %v12219_v32 = vld [vmem:[%s13857_s11 + $0x634] sm:$0xf0] }
 0x361   : > { %8145 = vmatpush.bf16.msra.mxu0 %v9752_v47  ;;  %v12227_v47 = vld [vmem:[%s13857_s11 + $0x674] sm:$0xf0]  ;;  %v9672_v43 = vor.u32 %v12219_v32, %v9671_v19  ;;  %v9655_v44 = vld [vmem:[%s13857_s11 + $0x608] sm:$0xf] }
 0x362   : > { %8158 = vmatpush.bf16.msra.mxu1 %v9880_v53  ;;  %v10151_v53 = vld [vmem:[%s13857_s11 + $0x9e8] sm:$0xf]  ;;  %v9704_v60 = vor.u32 %v12227_v47, %v9703_v46  ;;  %v12299_v38 = vld [vmem:[%s13857_s11 + $0x8b4] sm:$0xf0] }
 0x363   : > { %8123 = vmatpush.bf16.msrb.mxu2 %v9432_v0  ;;  %v9815_v0 = vld [vmem:[%s13857_s11 + $0x748] sm:$0xf]  ;;  %v7895_v40 = vpop.f32.mrf.mxu0  ;;  %v12331_v31 = vld [vmem:[%s13857_s11 + $0x9b4] sm:$0xf0] }
 0x364   : > { %8136 = vmatpush.bf16.msrb.mxu3 %v9560_v1  ;;  %v10152_v1 = vor.u32 %v12339_v58, %v10151_v53  ;;  %v12215_v47 = vld [vmem:[%s13857_s11 + $0x614] sm:$0xf0]  ;;  %v10120_v50 = vor.u32 %v12331_v31, %v10119_v39  ;;  %v9975_v42 = vld [vmem:[%s13857_s11 + $0x888] sm:$0xf] }
 0x365   : > { %8146 = vmatpush.bf16.msra.mxu0 %v9736_v3  ;;  %v12255_v3 = vld [vmem:[%s13857_s11 + $0x754] sm:$0xf0]  ;;  %v10103_v53 = vld [vmem:[%s13857_s11 + $0x988] sm:$0xf]  ;;  %v9656_v63 = vor.u32 %v12215_v47, %v9655_v44 }
 0x366   : > { %8159 = vmatpush.bf16.msra.mxu1 %v9864_v7  ;;  %v10135_v7 = vld [vmem:[%s13857_s11 + $0x9c8] sm:$0xf]  ;;  %v9816_v18 = vor.u32 %v12255_v3, %v9815_v0  ;;  %v12247_v49 = vld [vmem:[%s13857_s11 + $0x714] sm:$0xf0] }
 0x367   : > { %8124 = vmatpush.bf16.msrb.mxu2 %v9416_v35  ;;  %v9799_v35 = vld [vmem:[%s13857_s11 + $0x728] sm:$0xf]  ;;  %v10136_v36 = vor.u32 %v12335_v11, %v10135_v7  ;;  %v12403_v0 = vld [vmem:[%s13857_s11 + $0xbf4] sm:$0xf0] }
 0x368   : > { %8137 = vmatpush.bf16.msrb.mxu3 %v9544_v37  ;;  %v12251_v37 = vld [vmem:[%s13857_s11 + $0x734] sm:$0xf0]  ;;  %v10407_v52 = vld [vmem:[%s13857_s11 + $0xbe8] sm:$0xf] }
 0x369   : > { %8147 = vmatpush.bf16.msra.mxu0 %v9720_v45  ;;  %v9991_v45 = vld [vmem:[%s13857_s11 + $0x8a8] sm:$0xf]  ;;  %v12291_v7 = vld [vmem:[%s13857_s11 + $0x874] sm:$0xf0] }
 0x36a   : > { %8160 = vmatpush.bf16.msra.mxu1 %v9848_v41  ;;  %v9800_v41 = vor.u32 %v12251_v37, %v9799_v35  ;;  %v9992_v46 = vor.u32 %v12299_v38, %v9991_v45  ;;  %v7906_v58 = vpop.f32.mrf.mxu1  ;;  %v9959_v40 = vld [vmem:[%s13857_s11 + $0x868] sm:$0xf]  ;;  %v12399_v32 = vld [vmem:[%s13857_s11 + $0xbd4] sm:$0xf0] }
 0x36b   : > { %8125 = vmatpush.bf16.msrb.mxu2 %v9400_v51  ;;  %v12295_v51 = vld [vmem:[%s13857_s11 + $0x894] sm:$0xf0]  ;;  %v10087_v11 = vld [vmem:[%s13857_s11 + $0x968] sm:$0xf]  ;;  %v9960_v35 = vor.u32 %v12291_v7, %v9959_v40 }
 0x36c   : > { %8138 = vmatpush.bf16.msrb.mxu3 %v9528_v59  ;;  %v12327_v59 = vld [vmem:[%s13857_s11 + $0x994] sm:$0xf0]  ;;  %v9976_v3 = vor.u32 %v12295_v51, %v9975_v42  ;;  %v10391_v19 = vld [vmem:[%s13857_s11 + $0xbc8] sm:$0xf] }
 0x36d   : > { %8148 = vmatpush.bf16.msra.mxu0 %v9704_v60  ;;  %v10279_v60 = vld [vmem:[%s13857_s11 + $0xae8] sm:$0xf]  ;;  %v10104_v5 = vor.u32 %v12327_v59, %v10103_v53  ;;  %v12287_v31 = vld [vmem:[%s13857_s11 + $0x854] sm:$0xf0] }
 0x36e   : > { %8161 = vmatpush.bf16.msra.mxu1 %v9832_v61  ;;  %8126 = vmatmul.bf16.vlgmr.msrb.gmra.mxu2 %v14005_v8  ;;  %v12371_v61 = vld [vmem:[%s13857_s11 + $0xaf4] sm:$0xf0]  ;;  %v9943_v39 = vld [vmem:[%s13857_s11 + $0x848] sm:$0xf] }
 0x36f   : > { %8170 = vmatpush.bf16.msra.mxu2 %v10024_v62  ;;  %8139 = vmatmul.bf16.vlgmr.msrb.gmra.mxu3 %v14009_v10  ;;  %v7907_v62 = vadd.f32 %v7906_v58, %v14909_v33  ;;  %v10280_v6 = vor.u32 %v12371_v61, %v10279_v60  ;;  %v12323_v33 = vld [vmem:[%s13857_s11 + $0x974] sm:$0xf0]  ;;  %v10247_v47 = vld [vmem:[%s13857_s11 + $0xaa8] sm:$0xf]  ;;  %v9944_v53 = vor.u32 %v12287_v31, %v9943_v39 }
 0x370   : > { %8183 = vmatpush.bf16.msra.mxu3 %v10152_v1  ;;  %v9784_v1 = vor.u32 %v12247_v49, %v9783_v48  ;;  %v12363_v48 = vld [vmem:[%s13857_s11 + $0xab4] sm:$0xf0]  ;;  %v9927_v60 = vld [vmem:[%s13857_s11 + $0x828] sm:$0xf] }
 0x371   : > { %8149 = vmatpush.bf16.msra.mxu0 %v9688_v16  ;;  %v10408_v16 = vor.u32 %v12403_v0, %v10407_v52  ;;  %v7919_v37 = vpop.f32.mrf.mxu2  ;;  %v12395_v42 = vld [vmem:[%s13857_s11 + $0xbb4] sm:$0xf0]  ;;  %v10248_v59 = vor.u32 %v12363_v48, %v10247_v47  ;;  %v10231_v0 = vld [vmem:[%s13857_s11 + $0xa88] sm:$0xf] }
 0x372   : > { %8162 = vmatpush.bf16.msra.mxu1 %v9816_v18  ;;  %v10263_v18 = vld [vmem:[%s13857_s11 + $0xac8] sm:$0xf]  ;;  %v7932_v38 = vpop.f32.mrf.mxu3  ;;  %v7920_v44 = vadd.f32 %v7919_v37, %v7907_v62  ;;  %v7908_v49 = vpop.f32.mrf.mxu1  ;;  %v12283_v61 = vld [vmem:[%s13857_s11 + $0x834] sm:$0xf0] }
 0x373   : > { %8171 = vmatpush.bf16.msra.mxu2 %v10008_v2  ;;  %v12367_v2 = vld [vmem:[%s13857_s11 + $0xad4] sm:$0xf0]  ;;  %v10055_v62 = vld [vmem:[%s13857_s11 + $0x928] sm:$0xf]  ;;  %v9928_v7 = vor.u32 %v12283_v61, %v9927_v60 }
 0x374   : > { %8184 = vmatpush.bf16.msra.mxu3 %v10136_v36  ;;  %v10088_v36 = vor.u32 %v12323_v33, %v10087_v11  ;;  %v10264_v45 = vor.u32 %v12367_v2, %v10263_v18  ;;  %v7933_v51 = vadd.f32 %v7932_v38, %v7920_v44  ;;  %v12315_v52 = vld [vmem:[%s13857_s11 + $0x934] sm:$0xf0]  ;;  %v9911_v11 = vld [vmem:[%s13857_s11 + $0x808] sm:$0xf] }
 0x375   : > { %8150 = vmatpush.bf16.msra.mxu0 %v9672_v43  ;;  %v10071_v43 = vld [vmem:[%s13857_s11 + $0x948] sm:$0xf]  ;;  %v12279_v18 = vld [vmem:[%s13857_s11 + $0x814] sm:$0xf0] }
 0x376   : > { %8163 = vmatpush.bf16.msra.mxu1 %v9800_v41  ;;  %v10392_v41 = vor.u32 %v12399_v32, %v10391_v19  ;;  %v10039_v2 = vld [vmem:[%s13857_s11 + $0x908] sm:$0xf]  ;;  %v12311_v19 = vld [vmem:[%s13857_s11 + $0x914] sm:$0xf0]  ;;  %v9912_v44 = vor.u32 %v12279_v18, %v9911_v11 }
 0x377   : > { %8172 = vmatpush.bf16.msra.mxu2 %v9992_v46  ;;  %v12319_v46 = vld [vmem:[%s13857_s11 + $0x954] sm:$0xf0]  ;;  %v10215_v37 = vld [vmem:[%s13857_s11 + $0xa68] sm:$0xf]  ;;  %v10040_v47 = vor.u32 %v12311_v19, %v10039_v2 }
 0x378   : > { %8185 = vmatpush.bf16.msra.mxu3 %v10120_v50  ;;  %v10375_v50 = vld [vmem:[%s13857_s11 + $0xba8] sm:$0xf]  ;;  %v10072_v58 = vor.u32 %v12319_v46, %v10071_v43  ;;  %v12387_v39 = vld [vmem:[%s13857_s11 + $0xb74] sm:$0xf0] }
 0x379   : > { %8151 = vmatpush.bf16.msra.mxu0 %v9656_v63  ;;  %v10376_v63 = vor.u32 %v12395_v42, %v10375_v50  ;;  %v7921_v32 = vpop.f32.mrf.mxu2  ;;  %v10343_v38 = vld [vmem:[%s13857_s11 + $0xb68] sm:$0xf]  ;;  %v12435_v43 = vld [vmem:[%s13857_s11 + $0xcf4] sm:$0xf0] }
 0x37a   : > { %8164 = vmatpush.bf16.msra.mxu1 %v9784_v1  ;;  %v12359_v1 = vld [vmem:[%s13857_s11 + $0xa94] sm:$0xf0]  ;;  %v10535_v31 = vld [vmem:[%s13857_s11 + $0xce8] sm:$0xf]  ;;  %v10344_v49 = vor.u32 %v12387_v39, %v10343_v38 }
 0x37b   : > { %8173 = vmatpush.bf16.msra.mxu2 %v9976_v3  ;;  %v7945_v3 = vpop.f32.mrf.mxu0  ;;  %v10232_v33 = vor.u32 %v12359_v1, %v10231_v0  ;;  %v12467_v46 = vld [vmem:[%s13857_s11 + $0xdf4] sm:$0xf0]  ;;  %v10536_v50 = vor.u32 %v12435_v43, %v10535_v31  ;;  %v10199_v42 = vld [vmem:[%s13857_s11 + $0xa48] sm:$0xf] }
 0x37c   : > { %8186 = vmatpush.bf16.msra.mxu3 %v10104_v5  ;;  %8152 = vmatmul.bf16.vlgmr.msra.gmra.mxu0 %v14000_v4  ;;  %v10359_v5 = vld [vmem:[%s13857_s11 + $0xb88] sm:$0xf]  ;;  %v14980_v40 = vadd.f32 %v7945_v3, %v7933_v51  ;;  %v12351_v51 = vld [vmem:[%s13857_s11 + $0xa54] sm:$0xf0] }
 0x37d   : > { %8196 = vmatpush.bf16.msrb.mxu0 %v10280_v6  ;;  %8165 = vmatmul.bf16.vlgmr.msra.gmra.mxu1 %v14007_v9  ;;  %v12391_v6 = vld [vmem:[%s13857_s11 + $0xb94] sm:$0xf0]  ;;  %v10519_v60 = vld [vmem:[%s13857_s11 + $0xcc8] sm:$0xf]  ;;  %v10200_v0 = vor.u32 %v12351_v51, %v10199_v42 }
 0x37e   : > { %8209 = vmatpush.bf16.msrb.mxu1 %v10408_v16  ;;  %v10056_v16 = vor.u32 %v12315_v52, %v10055_v62  ;;  %v12431_v61 = vld [vmem:[%s13857_s11 + $0xcd4] sm:$0xf0]  ;;  %v10631_v2 = vld [vmem:[%s13857_s11 + $0xda8] sm:$0xf] }
 0x37f   : > { %8174 = vmatpush.bf16.msra.mxu2 %v9960_v35  ;;  %v7934_v35 = vpop.f32.mrf.mxu3  ;;  %v12463_v52 = vld [vmem:[%s13857_s11 + $0xdd4] sm:$0xf0]  ;;  %v10520_v3 = vor.u32 %v12431_v61, %v10519_v60  ;;  %v10295_v38 = vld [vmem:[%s13857_s11 + $0xb08] sm:$0xf] }
 0x380   : > { %8187 = vmatpush.bf16.msra.mxu3 %v10088_v36  ;;  %v10360_v36 = vor.u32 %v12391_v6, %v10359_v5  ;;  %v10183_v5 = vld [vmem:[%s13857_s11 + $0xa28] sm:$0xf]  ;;  %v12347_v6 = vld [vmem:[%s13857_s11 + $0xa34] sm:$0xf0] }
 0x381   : > { %8197 = vmatpush.bf16.msrb.mxu0 %v10264_v45  ;;  %v12355_v45 = vld [vmem:[%s13857_s11 + $0xa74] sm:$0xf0]  ;;  %v10184_v32 = vor.u32 %v12347_v6, %v10183_v5  ;;  %v10167_v35 = vld [vmem:[%s13857_s11 + $0xa08] sm:$0xf] }
 0x382   : > { %8210 = vmatpush.bf16.msrb.mxu1 %v10392_v41  ;;  %v10663_v41 = vld [vmem:[%s13857_s11 + $0xde8] sm:$0xf]  ;;  %v10216_v48 = vor.u32 %v12355_v45, %v10215_v37  ;;  %v12427_v18 = vld [vmem:[%s13857_s11 + $0xcb4] sm:$0xf0] }
 0x383   : > { %8175 = vmatpush.bf16.msra.mxu2 %v9944_v53  ;;  %v10327_v53 = vld [vmem:[%s13857_s11 + $0xb48] sm:$0xf]  ;;  %v7947_v62 = vpop.f32.mrf.mxu0  ;;  %v12459_v19 = vld [vmem:[%s13857_s11 + $0xdb4] sm:$0xf0] }
 0x384   : > { %8188 = vmatpush.bf16.msra.mxu3 %v10072_v58  ;;  %v10664_v58 = vor.u32 %v12467_v46, %v10663_v41  ;;  %v12343_v45 = vld [vmem:[%s13857_s11 + $0xa14] sm:$0xf0]  ;;  %v10632_v31 = vor.u32 %v12459_v19, %v10631_v2  ;;  %v10487_v43 = vld [vmem:[%s13857_s11 + $0xc88] sm:$0xf] }
 0x385   : > { %8198 = vmatpush.bf16.msrb.mxu0 %v10248_v59  ;;  %v12383_v59 = vld [vmem:[%s13857_s11 + $0xb54] sm:$0xf0]  ;;  %v10615_v41 = vld [vmem:[%s13857_s11 + $0xd88] sm:$0xf]  ;;  %v10168_v42 = vor.u32 %v12343_v45, %v10167_v35 }
 0x386   : > { %8211 = vmatpush.bf16.msrb.mxu1 %v10376_v63  ;;  %v10647_v63 = vld [vmem:[%s13857_s11 + $0xdc8] sm:$0xf]  ;;  %v10328_v1 = vor.u32 %v12383_v59, %v10327_v53  ;;  %v12375_v39 = vld [vmem:[%s13857_s11 + $0xb14] sm:$0xf0] }
 0x387   : > { %8176 = vmatpush.bf16.msra.mxu2 %v9928_v7  ;;  %v10311_v7 = vld [vmem:[%s13857_s11 + $0xb28] sm:$0xf]  ;;  %v10648_v11 = vor.u32 %v12463_v52, %v10647_v63  ;;  %v12531_v53 = vld [vmem:[%s13857_s11 + $0xff4] sm:$0xf0] }
 0x388   : > { %8189 = vmatpush.bf16.msra.mxu3 %v10056_v16  ;;  %v12379_v16 = vld [vmem:[%s13857_s11 + $0xb34] sm:$0xf0]  ;;  %v10919_v51 = vld [vmem:[%s13857_s11 + $0xfe8] sm:$0xf] }
 0x389   : > { %8199 = vmatpush.bf16.msrb.mxu0 %v10232_v33  ;;  %v10503_v33 = vld [vmem:[%s13857_s11 + $0xca8] sm:$0xf]  ;;  %v12419_v63 = vld [vmem:[%s13857_s11 + $0xc74] sm:$0xf0] }
 0x38a   : > { %8212 = vmatpush.bf16.msrb.mxu1 %v10360_v36  ;;  %v10312_v36 = vor.u32 %v12379_v16, %v10311_v7  ;;  %v10504_v37 = vor.u32 %v12427_v18, %v10503_v33  ;;  %v7958_v46 = vpop.f32.mrf.mxu1  ;;  %v10471_v62 = vld [vmem:[%s13857_s11 + $0xc68] sm:$0xf]  ;;  %v12527_v6 = vld [vmem:[%s13857_s11 + $0xfd4] sm:$0xf0] }
 0x38b   : > { %8177 = vmatpush.bf16.msra.mxu2 %v9912_v44  ;;  %v12423_v44 = vld [vmem:[%s13857_s11 + $0xc94] sm:$0xf0]  ;;  %v10599_v52 = vld [vmem:[%s13857_s11 + $0xd68] sm:$0xf]  ;;  %v10472_v7 = vor.u32 %v12419_v63, %v10471_v62 }
 0x38c   : > { %8190 = vmatpush.bf16.msra.mxu3 %v10040_v47  ;;  %v12455_v47 = vld [vmem:[%s13857_s11 + $0xd94] sm:$0xf0]  ;;  %v10488_v59 = vor.u32 %v12423_v44, %v10487_v43  ;;  %v10903_v5 = vld [vmem:[%s13857_s11 + $0xfc8] sm:$0xf] }
 0x38d   : > { %8200 = vmatpush.bf16.msrb.mxu0 %v10216_v48  ;;  %v10791_v48 = vld [vmem:[%s13857_s11 + $0xee8] sm:$0xf]  ;;  %v10616_v60 = vor.u32 %v12455_v47, %v10615_v41  ;;  %v12415_v19 = vld [vmem:[%s13857_s11 + $0xc54] sm:$0xf0] }
 0x38e   : > { %8213 = vmatpush.bf16.msrb.mxu1 %v10344_v49  ;;  %8178 = vmatmul.bf16.vlgmr.msra.gmra.mxu2 %v14095_v20  ;;  %v12499_v49 = vld [vmem:[%s13857_s11 + $0xef4] sm:$0xf0]  ;;  %v10455_v2 = vld [vmem:[%s13857_s11 + $0xc48] sm:$0xf] }
 0x38f   : > { %8222 = vmatpush.bf16.msrb.mxu2 %v10536_v50  ;;  %8191 = vmatmul.bf16.vlgmr.msra.gmra.mxu3 %v14101_v24  ;;  %v7959_v50 = vadd.f32 %v7958_v46, %v14980_v40  ;;  %v10792_v61 = vor.u32 %v12499_v49, %v10791_v48  ;;  %v12451_v40 = vld [vmem:[%s13857_s11 + $0xd74] sm:$0xf0]  ;;  %v10759_v45 = vld [vmem:[%s13857_s11 + $0xea8] sm:$0xf]  ;;  %v10456_v41 = vor.u32 %v12415_v19, %v10455_v2 }
 0x390   : > { %8235 = vmatpush.bf16.msrb.mxu3 %v10664_v58  ;;  %v10296_v58 = vor.u32 %v12375_v39, %v10295_v38  ;;  %v12491_v38 = vld [vmem:[%s13857_s11 + $0xeb4] sm:$0xf0]  ;;  %v10439_v48 = vld [vmem:[%s13857_s11 + $0xc28] sm:$0xf] }
 0x391   : > { %8201 = vmatpush.bf16.msrb.mxu0 %v10200_v0  ;;  %v10920_v0 = vor.u32 %v12531_v53, %v10919_v51  ;;  %v7971_v16 = vpop.f32.mrf.mxu2  ;;  %v12523_v43 = vld [vmem:[%s13857_s11 + $0xfb4] sm:$0xf0]  ;;  %v10760_v47 = vor.u32 %v12491_v38, %v10759_v45  ;;  %v10743_v53 = vld [vmem:[%s13857_s11 + $0xe88] sm:$0xf] }
 0x392   : > { %8214 = vmatpush.bf16.msrb.mxu1 %v10328_v1  ;;  %v10775_v1 = vld [vmem:[%s13857_s11 + $0xec8] sm:$0xf]  ;;  %v7984_v18 = vpop.f32.mrf.mxu3  ;;  %v7972_v35 = vadd.f32 %v7971_v16, %v7959_v50  ;;  %v7960_v39 = vpop.f32.mrf.mxu1  ;;  %v12411_v49 = vld [vmem:[%s13857_s11 + $0xc34] sm:$0xf0] }
 0x393   : > { %8223 = vmatpush.bf16.msrb.mxu2 %v10520_v3  ;;  %v12495_v3 = vld [vmem:[%s13857_s11 + $0xed4] sm:$0xf0]  ;;  %v10567_v50 = vld [vmem:[%s13857_s11 + $0xd28] sm:$0xf]  ;;  %v10440_v63 = vor.u32 %v12411_v49, %v10439_v48 }
 0x394   : > { %8236 = vmatpush.bf16.msrb.mxu3 %v10648_v11  ;;  %v10600_v11 = vor.u32 %v12451_v40, %v10599_v52  ;;  %v10776_v33 = vor.u32 %v12495_v3, %v10775_v1  ;;  %v7985_v44 = vadd.f32 %v7984_v18, %v7972_v35  ;;  %v12443_v51 = vld [vmem:[%s13857_s11 + $0xd34] sm:$0xf0]  ;;  %v10423_v52 = vld [vmem:[%s13857_s11 + $0xc08] sm:$0xf] }
 0x395   : > { %8202 = vmatpush.bf16.msrb.mxu0 %v10184_v32  ;;  %v10583_v32 = vld [vmem:[%s13857_s11 + $0xd48] sm:$0xf]  ;;  %v12407_v1 = vld [vmem:[%s13857_s11 + $0xc14] sm:$0xf0] }
 0x396   : > { %8215 = vmatpush.bf16.msrb.mxu1 %v10312_v36  ;;  %v10904_v36 = vor.u32 %v12527_v6, %v10903_v5  ;;  %v10551_v3 = vld [vmem:[%s13857_s11 + $0xd08] sm:$0xf]  ;;  %v12439_v5 = vld [vmem:[%s13857_s11 + $0xd14] sm:$0xf0]  ;;  %v10424_v35 = vor.u32 %v12407_v1, %v10423_v52 }
 0x397   : > { %8224 = vmatpush.bf16.msrb.mxu2 %v10504_v37  ;;  %v12447_v37 = vld [vmem:[%s13857_s11 + $0xd54] sm:$0xf0]  ;;  %v10727_v16 = vld [vmem:[%s13857_s11 + $0xe68] sm:$0xf]  ;;  %v10552_v45 = vor.u32 %v12439_v5, %v10551_v3 }
 0x398   : > { %8237 = vmatpush.bf16.msrb.mxu3 %v10632_v31  ;;  %v10887_v31 = vld [vmem:[%s13857_s11 + $0xfa8] sm:$0xf]  ;;  %v10584_v46 = vor.u32 %v12447_v37, %v10583_v32  ;;  %v12515_v2 = vld [vmem:[%s13857_s11 + $0xf74] sm:$0xf0] }
 0x399   : > { %8203 = vmatpush.bf16.msrb.mxu0 %v10168_v42  ;;  %v10888_v42 = vor.u32 %v12523_v43, %v10887_v31  ;;  %v7973_v6 = vpop.f32.mrf.mxu2  ;;  %v10855_v18 = vld [vmem:[%s13857_s11 + $0xf68] sm:$0xf]  ;;  %v12563_v32 = vld [vmem:[%s13857_s11 + $0x10f4] sm:$0xf0] }
 0x39a   : > { %8216 = vmatpush.bf16.msrb.mxu1 %v10296_v58  ;;  %v12487_v58 = vld [vmem:[%s13857_s11 + $0xe94] sm:$0xf0]  ;;  %v11047_v19 = vld [vmem:[%s13857_s11 + $0x10e8] sm:$0xf]  ;;  %v10856_v39 = vor.u32 %v12515_v2, %v10855_v18 }
 0x39b   : > { %8225 = vmatpush.bf16.msrb.mxu2 %v10488_v59  ;;  %v7997_v59 = vpop.f32.mrf.mxu0  ;;  %v10744_v40 = vor.u32 %v12487_v58, %v10743_v53  ;;  %v12595_v37 = vld [vmem:[%s13857_s11 + $0x11f4] sm:$0xf0]  ;;  %v11048_v31 = vor.u32 %v12563_v32, %v11047_v19  ;;  %v10711_v43 = vld [vmem:[%s13857_s11 + $0xe48] sm:$0xf] }
 0x39c   : > { %8238 = vmatpush.bf16.msrb.mxu3 %v10616_v60  ;;  %8204 = vmatmul.bf16.vlgmr.msrb.gmra.mxu0 %v14099_v23  ;;  %v10871_v60 = vld [vmem:[%s13857_s11 + $0xf88] sm:$0xf]  ;;  %v15051_v62 = vadd.f32 %v7997_v59, %v7985_v44  ;;  %v12479_v44 = vld [vmem:[%s13857_s11 + $0xe54] sm:$0xf0] }
 0x39d   : > { %8248 = vmatpush.bf16.msra.mxu0 %v10792_v61  ;;  %8217 = vmatmul.bf16.vlgmr.msrb.gmra.mxu1 %v14103_v25  ;;  %v12519_v61 = vld [vmem:[%s13857_s11 + $0xf94] sm:$0xf0]  ;;  %v11031_v48 = vld [vmem:[%s13857_s11 + $0x10c8] sm:$0xf]  ;;  %v10712_v53 = vor.u32 %v12479_v44, %v10711_v43 }
 0x39e   : > { %8261 = vmatpush.bf16.msra.mxu1 %v10920_v0  ;;  %v10568_v0 = vor.u32 %v12443_v51, %v10567_v50  ;;  %v12559_v49 = vld [vmem:[%s13857_s11 + $0x10d4] sm:$0xf0]  ;;  %v11143_v3 = vld [vmem:[%s13857_s11 + $0x11a8] sm:$0xf] }
 0x39f   : > { %8226 = vmatpush.bf16.msrb.mxu2 %v10472_v7  ;;  %v7986_v7 = vpop.f32.mrf.mxu3  ;;  %v12591_v51 = vld [vmem:[%s13857_s11 + $0x11d4] sm:$0xf0]  ;;  %v11032_v59 = vor.u32 %v12559_v49, %v11031_v48  ;;  %v10807_v18 = vld [vmem:[%s13857_s11 + $0xf08] sm:$0xf] }
 0x3a0   : > { %8239 = vmatpush.bf16.msrb.mxu3 %v10600_v11  ;;  %v10872_v11 = vor.u32 %v12519_v61, %v10871_v60  ;;  %v10695_v60 = vld [vmem:[%s13857_s11 + $0xe28] sm:$0xf]  ;;  %v12475_v61 = vld [vmem:[%s13857_s11 + $0xe34] sm:$0xf0] }
 0x3a1   : > { %8249 = vmatpush.bf16.msra.mxu0 %v10776_v33  ;;  %v12483_v33 = vld [vmem:[%s13857_s11 + $0xe74] sm:$0xf0]  ;;  %v10696_v6 = vor.u32 %v12475_v61, %v10695_v60  ;;  %v10679_v7 = vld [vmem:[%s13857_s11 + $0xe08] sm:$0xf] }
 0x3a2   : > { %8262 = vmatpush.bf16.msra.mxu1 %v10904_v36  ;;  %v11175_v36 = vld [vmem:[%s13857_s11 + $0x11e8] sm:$0xf]  ;;  %v10728_v38 = vor.u32 %v12483_v33, %v10727_v16  ;;  %v12555_v1 = vld [vmem:[%s13857_s11 + $0x10b4] sm:$0xf0] }
 0x3a3   : > { %8227 = vmatpush.bf16.msrb.mxu2 %v10456_v41  ;;  %v10839_v41 = vld [vmem:[%s13857_s11 + $0xf48] sm:$0xf]  ;;  %v7999_v50 = vpop.f32.mrf.mxu0  ;;  %v12587_v5 = vld [vmem:[%s13857_s11 + $0x11b4] sm:$0xf0] }
 0x3a4   : > { %8240 = vmatpush.bf16.msrb.mxu3 %v10584_v46  ;;  %v11176_v46 = vor.u32 %v12595_v37, %v11175_v36  ;;  %v12471_v33 = vld [vmem:[%s13857_s11 + $0xe14] sm:$0xf0]  ;;  %v11144_v19 = vor.u32 %v12587_v5, %v11143_v3  ;;  %v10999_v32 = vld [vmem:[%s13857_s11 + $0x1088] sm:$0xf] }
 0x3a5   : > { %8250 = vmatpush.bf16.msra.mxu0 %v10760_v47  ;;  %v12511_v47 = vld [vmem:[%s13857_s11 + $0xf54] sm:$0xf0]  ;;  %v11127_v36 = vld [vmem:[%s13857_s11 + $0x1188] sm:$0xf]  ;;  %v10680_v43 = vor.u32 %v12471_v33, %v10679_v7 }
 0x3a6   : > { %8263 = vmatpush.bf16.msra.mxu1 %v10888_v42  ;;  %v11159_v42 = vld [vmem:[%s13857_s11 + $0x11c8] sm:$0xf]  ;;  %v10840_v58 = vor.u32 %v12511_v47, %v10839_v41  ;;  %v12503_v2 = vld [vmem:[%s13857_s11 + $0xf14] sm:$0xf0] }
 0x3a7   : > { %8228 = vmatpush.bf16.msrb.mxu2 %v10440_v63  ;;  %v10823_v63 = vld [vmem:[%s13857_s11 + $0xf28] sm:$0xf]  ;;  %v11160_v52 = vor.u32 %v12591_v51, %v11159_v42  ;;  %v12659_v41 = vld [vmem:[%s13857_s11 + $0x13f4] sm:$0xf0] }
 0x3a8   : > { %8241 = vmatpush.bf16.msrb.mxu3 %v10568_v0  ;;  %v12507_v0 = vld [vmem:[%s13857_s11 + $0xf34] sm:$0xf0]  ;;  %v11431_v44 = vld [vmem:[%s13857_s11 + $0x13e8] sm:$0xf] }
 0x3a9   : > { %8251 = vmatpush.bf16.msra.mxu0 %v10744_v40  ;;  %v11015_v40 = vld [vmem:[%s13857_s11 + $0x10a8] sm:$0xf]  ;;  %v12547_v42 = vld [vmem:[%s13857_s11 + $0x1074] sm:$0xf0] }
 0x3aa   : > { %8264 = vmatpush.bf16.msra.mxu1 %v10872_v11  ;;  %v10824_v11 = vor.u32 %v12507_v0, %v10823_v63  ;;  %v11016_v16 = vor.u32 %v12555_v1, %v11015_v40  ;;  %v8010_v37 = vpop.f32.mrf.mxu1  ;;  %v10983_v50 = vld [vmem:[%s13857_s11 + $0x1068] sm:$0xf]  ;;  %v12655_v61 = vld [vmem:[%s13857_s11 + $0x13d4] sm:$0xf0] }
 0x3ab   : > { %8229 = vmatpush.bf16.msrb.mxu2 %v10424_v35  ;;  %v12551_v35 = vld [vmem:[%s13857_s11 + $0x1094] sm:$0xf0]  ;;  %v11111_v51 = vld [vmem:[%s13857_s11 + $0x1168] sm:$0xf]  ;;  %v10984_v63 = vor.u32 %v12547_v42, %v10983_v50 }
 0x3ac   : > { %8242 = vmatpush.bf16.msrb.mxu3 %v10552_v45  ;;  %v12583_v45 = vld [vmem:[%s13857_s11 + $0x1194] sm:$0xf0]  ;;  %v11000_v47 = vor.u32 %v12551_v35, %v10999_v32  ;;  %v11415_v60 = vld [vmem:[%s13857_s11 + $0x13c8] sm:$0xf] }
 0x3ad   : > { %8252 = vmatpush.bf16.msra.mxu0 %v10728_v38  ;;  %v11303_v38 = vld [vmem:[%s13857_s11 + $0x12e8] sm:$0xf]  ;;  %v11128_v48 = vor.u32 %v12583_v45, %v11127_v36  ;;  %v12543_v5 = vld [vmem:[%s13857_s11 + $0x1054] sm:$0xf0] }
 0x3ae   : > { %8265 = vmatpush.bf16.msra.mxu1 %v10856_v39  ;;  %8230 = vmatmul.bf16.vlgmr.msrb.gmra.mxu2 %v14161_v54  ;;  %v12627_v39 = vld [vmem:[%s13857_s11 + $0x12f4] sm:$0xf0]  ;;  %v10967_v3 = vld [vmem:[%s13857_s11 + $0x1048] sm:$0xf] }
 0x3af   : > { %8274 = vmatpush.bf16.msra.mxu2 %v11048_v31  ;;  %8243 = vmatmul.bf16.vlgmr.msrb.gmra.mxu3 %v14165_v56  ;;  %v8011_v31 = vadd.f32 %v8010_v37, %v15051_v62  ;;  %v11304_v49 = vor.u32 %v12627_v39, %v11303_v38  ;;  %v12579_v62 = vld [vmem:[%s13857_s11 + $0x1174] sm:$0xf0]  ;;  %v10968_v36 = vor.u32 %v12543_v5, %v10967_v3  ;;  %v10951_v38 = vld [vmem:[%s13857_s11 + $0x1028] sm:$0xf] }
 0x3b0   : > { %8287 = vmatpush.bf16.msra.mxu3 %v11176_v46  ;;  %v10808_v46 = vor.u32 %v12503_v2, %v10807_v18  ;;  %v12575_v33 = vld [vmem:[%s13857_s11 + $0x1154] sm:$0xf0]  ;;  %v11271_v18 = vld [vmem:[%s13857_s11 + $0x12a8] sm:$0xf] }
 0x3b1   : > { %8253 = vmatpush.bf16.msra.mxu0 %v10712_v53  ;;  %v11432_v53 = vor.u32 %v12659_v41, %v11431_v44  ;;  %v8023_v0 = vpop.f32.mrf.mxu2  ;;  %v12619_v2 = vld [vmem:[%s13857_s11 + $0x12b4] sm:$0xf0]  ;;  %v11255_v41 = vld [vmem:[%s13857_s11 + $0x1288] sm:$0xf] }
 0x3b2   : > { %8266 = vmatpush.bf16.msra.mxu1 %v10840_v58  ;;  %v11287_v58 = vld [vmem:[%s13857_s11 + $0x12c8] sm:$0xf]  ;;  %v8036_v1 = vpop.f32.mrf.mxu3  ;;  %v8024_v7 = vadd.f32 %v8023_v0, %v8011_v31  ;;  %v12651_v32 = vld [vmem:[%s13857_s11 + $0x13b4] sm:$0xf0]  ;;  %v11272_v45 = vor.u32 %v12619_v2, %v11271_v18 }
 0x3b3   : > { %8275 = vmatpush.bf16.msra.mxu2 %v11032_v59  ;;  %v12623_v59 = vld [vmem:[%s13857_s11 + $0x12d4] sm:$0xf0]  ;;  %v11079_v31 = vld [vmem:[%s13857_s11 + $0x1128] sm:$0xf] }
 0x3b4   : > { %8288 = vmatpush.bf16.msra.mxu3 %v11160_v52  ;;  %v11112_v52 = vor.u32 %v12579_v62, %v11111_v51  ;;  %v11288_v40 = vor.u32 %v12623_v59, %v11287_v58  ;;  %v8037_v35 = vadd.f32 %v8036_v1, %v8024_v7  ;;  %v12539_v39 = vld [vmem:[%s13857_s11 + $0x1034] sm:$0xf0]  ;;  %v10935_v51 = vld [vmem:[%s13857_s11 + $0x1008] sm:$0xf] }
 0x3b5   : > { %8254 = vmatpush.bf16.msra.mxu0 %v10696_v6  ;;  %v11095_v6 = vld [vmem:[%s13857_s11 + $0x1148] sm:$0xf]  ;;  %v12571_v44 = vld [vmem:[%s13857_s11 + $0x1134] sm:$0xf0]  ;;  %v10952_v42 = vor.u32 %v12539_v39, %v10951_v38 }
 0x3b6   : > { %8267 = vmatpush.bf16.msra.mxu1 %v10824_v11  ;;  %v11416_v11 = vor.u32 %v12655_v61, %v11415_v60  ;;  %v11096_v37 = vor.u32 %v12575_v33, %v11095_v6  ;;  %v12535_v58 = vld [vmem:[%s13857_s11 + $0x1014] sm:$0xf0]  ;;  %v11063_v59 = vld [vmem:[%s13857_s11 + $0x1108] sm:$0xf] }
 0x3b7   : > { %8276 = vmatpush.bf16.msra.mxu2 %v11016_v16  ;;  %v8012_v16 = vpop.f32.mrf.mxu1  ;;  %v12567_v60 = vld [vmem:[%s13857_s11 + $0x1114] sm:$0xf0]  ;;  %v11239_v0 = vld [vmem:[%s13857_s11 + $0x1268] sm:$0xf] }
 0x3b8   : > { %8289 = vmatpush.bf16.msra.mxu3 %v11144_v19  ;;  %v11399_v19 = vld [vmem:[%s13857_s11 + $0x13a8] sm:$0xf]  ;;  %v12643_v3 = vld [vmem:[%s13857_s11 + $0x1374] sm:$0xf0]  ;;  %v11064_v2 = vor.u32 %v12567_v60, %v11063_v59 }
 0x3b9   : > { %8255 = vmatpush.bf16.msra.mxu0 %v10680_v43  ;;  %v11400_v43 = vor.u32 %v12651_v32, %v11399_v19  ;;  %v11367_v1 = vld [vmem:[%s13857_s11 + $0x1368] sm:$0xf]  ;;  %v12691_v6 = vld [vmem:[%s13857_s11 + $0x14f4] sm:$0xf0] }
 0x3ba   : > { %8268 = vmatpush.bf16.msra.mxu1 %v10808_v46  ;;  %v12615_v46 = vld [vmem:[%s13857_s11 + $0x1294] sm:$0xf0]  ;;  %v8038_v61 = vpop.f32.mrf.mxu3  ;;  %v11559_v5 = vld [vmem:[%s13857_s11 + $0x14e8] sm:$0xf] }
 0x3bb   : > { %8277 = vmatpush.bf16.msra.mxu2 %v11000_v47  ;;  %v8049_v47 = vpop.f32.mrf.mxu0  ;;  %v11256_v62 = vor.u32 %v12615_v46, %v11255_v41  ;;  %v11687_v16 = vld [vmem:[%s13857_s11 + $0x15e8] sm:$0xf]  ;;  %v12723_v33 = vld [vmem:[%s13857_s11 + $0x15f4] sm:$0xf0] }
 0x3bc   : > { %8290 = vmatpush.bf16.msra.mxu3 %v11128_v48  ;;  %8256 = vmatmul.bf16.vlgmr.msra.gmra.mxu0 %v14163_v55  ;;  %v11383_v48 = vld [vmem:[%s13857_s11 + $0x1388] sm:$0xf]  ;;  %v8050_v50 = vadd.f32 %v8049_v47, %v8037_v35  ;;  %v11368_v35 = vor.u32 %v12643_v3, %v11367_v1  ;;  %v12639_v38 = vld [vmem:[%s13857_s11 + $0x1354] sm:$0xf0] }
 0x3bd   : > { %8300 = vmatpush.bf16.msrb.mxu0 %v11304_v49  ;;  %8269 = vmatmul.bf16.vlgmr.msra.gmra.mxu1 %v14167_v57  ;;  %v12647_v49 = vld [vmem:[%s13857_s11 + $0x1394] sm:$0xf0]  ;;  %v11223_v32 = vld [vmem:[%s13857_s11 + $0x1248] sm:$0xf] }
 0x3be   : > { %8313 = vmatpush.bf16.msrb.mxu1 %v11432_v53  ;;  %v11080_v53 = vor.u32 %v12571_v44, %v11079_v31  ;;  %v11688_v31 = vor.u32 %v12723_v33, %v11687_v16  ;;  %v12687_v44 = vld [vmem:[%s13857_s11 + $0x14d4] sm:$0xf0]  ;;  %v11671_v46 = vld [vmem:[%s13857_s11 + $0x15c8] sm:$0xf] }
 0x3bf   : > { %8278 = vmatpush.bf16.msra.mxu2 %v10984_v63  ;;  %v8025_v63 = vpop.f32.mrf.mxu2  ;;  %v8062_v7 = vpop.f32.mrf.mxu1  ;;  %v12719_v47 = vld [vmem:[%s13857_s11 + $0x15d4] sm:$0xf0]  ;;  %v11527_v61 = vld [vmem:[%s13857_s11 + $0x14a8] sm:$0xf] }
 0x3c0   : > { %8291 = vmatpush.bf16.msra.mxu3 %v11112_v52  ;;  %v11384_v52 = vor.u32 %v12647_v49, %v11383_v48  ;;  %v8063_v18 = vadd.f32 %v8062_v7, %v8050_v50  ;;  %v8716_v48 = vmax.f32 %v14705_v27, 0.0  ;;  %v11672_v27 = vor.u32 %v12719_v47, %v11671_v46  ;;  %v12635_v60 = vld [vmem:[%s13857_s11 + $0x1334] sm:$0xf0]  ;;  %v11191_v3 = vld [vmem:[%s13857_s11 + $0x1208] sm:$0xf] }
 0x3c1   : > { %8301 = vmatpush.bf16.msrb.mxu0 %v11288_v40  ;;  %v12611_v40 = vld [vmem:[%s13857_s11 + $0x1274] sm:$0xf0]  ;;  %v11623_v47 = vld [vmem:[%s13857_s11 + $0x1568] sm:$0xf] }
 0x3c2   : > { %8314 = vmatpush.bf16.msrb.mxu1 %v11416_v11  ;;  %v10936_v11 = vor.u32 %v12535_v58, %v10935_v51  ;;  %v11240_v19 = vor.u32 %v12611_v40, %v11239_v0  ;;  %v8717_v39 = vmax.f32 %v8063_v18, 0.0  ;;  %v11335_v58 = vld [vmem:[%s13857_s11 + $0x1328] sm:$0xf]  ;;  %v12683_v63 = vld [vmem:[%s13857_s11 + $0x14b4] sm:$0xf0] }
 0x3c3   : > { %8279 = vmatpush.bf16.msra.mxu2 %v10968_v36  ;;  %v11560_v36 = vor.u32 %v12691_v6, %v11559_v5  ;;  %v8051_v41 = vpop.f32.mrf.mxu0  ;;  %v12715_v0 = vld [vmem:[%s13857_s11 + $0x15b4] sm:$0xf0]  ;;  %v11336_v5 = vor.u32 %v12635_v60, %v11335_v58  ;;  %v11528_v6 = vor.u32 %v12683_v63, %v11527_v61  ;;  %v11511_v18 = vld [vmem:[%s13857_s11 + $0x1488] sm:$0xf] }
 0x3c4   : > { %8292 = vmatpush.bf16.msra.mxu3 %v11096_v37  ;;  %v12607_v37 = vld [vmem:[%s13857_s11 + $0x1254] sm:$0xf0]  ;;  %v8724_v49 = vrot.slane %v8717_v39, 6 }
 0x3c5   : > { %8302 = vmatpush.bf16.msrb.mxu0 %v11272_v45  ;;  %v11351_v45 = vld [vmem:[%s13857_s11 + $0x1348] sm:$0xf]  ;;  %v11224_v50 = vor.u32 %v12607_v37, %v11223_v32  ;;  %v12599_v7 = vld [vmem:[%s13857_s11 + $0x1214] sm:$0xf0] }
 0x3c6   : > { %8315 = vmatpush.bf16.msrb.mxu1 %v11400_v43  ;;  %v11543_v43 = vld [vmem:[%s13857_s11 + $0x14c8] sm:$0xf]  ;;  %v15147_v59 = vsel %vm8727_vm1, %v8716_v48, %v8724_v49  ;;  %v12631_v16 = vld [vmem:[%s13857_s11 + $0x1314] sm:$0xf0]  ;;  %v11192_v37 = vor.u32 %v12599_v7, %v11191_v3 }
 0x3c7   : > { %8280 = vmatpush.bf16.msra.mxu2 %v10952_v42  ;;  %v11352_v42 = vor.u32 %v12639_v38, %v11351_v45  ;;  %v11544_v51 = vor.u32 %v12687_v44, %v11543_v43  ;;  %v8064_v40 = vpop.f32.mrf.mxu1  ;;  %v12711_v32 = vld [vmem:[%s13857_s11 + $0x1594] sm:$0xf0]  ;;  %v11943_v45 = vld [vmem:[%s13857_s11 + $0x17e8] sm:$0xf] }
 0x3c8   : > { %8293 = vmatpush.bf16.msra.mxu3 %v11080_v53  ;;  %v11207_v53 = vld [vmem:[%s13857_s11 + $0x1228] sm:$0xf]  ;;  %v12787_v38 = vld [vmem:[%s13857_s11 + $0x17f4] sm:$0xf0] }
 0x3c9   : > { %8303 = vmatpush.bf16.msrb.mxu0 %v11256_v62  ;;  %v12603_v62 = vld [vmem:[%s13857_s11 + $0x1234] sm:$0xf0]  ;;  %v11495_v43 = vld [vmem:[%s13857_s11 + $0x1468] sm:$0xf] }
 0x3ca   : > { %8316 = vmatpush.bf16.msrb.mxu1 %v11384_v52  ;;  %v11655_v52 = vld [vmem:[%s13857_s11 + $0x15a8] sm:$0xf]  ;;  %v11208_v1 = vor.u32 %v12603_v62, %v11207_v53  ;;  %v12675_v46 = vld [vmem:[%s13857_s11 + $0x1474] sm:$0xf0] }
 0x3cb   : > { %8281 = vmatpush.bf16.msra.mxu2 %v10936_v11  ;;  %v11319_v11 = vld [vmem:[%s13857_s11 + $0x1308] sm:$0xf]  ;;  %v11656_v33 = vor.u32 %v12715_v0, %v11655_v52  ;;  %v12880_v48 = vld [vmem:[%s14299_s27] sm:$0xf] }
 0x3cc   : > { %8294 = vmatpush.bf16.msra.mxu3 %v11064_v2  ;;  %v12679_v2 = vld [vmem:[%s13857_s11 + $0x1494] sm:$0xf0]  ;;  %v11320_v39 = vor.u32 %v12631_v16, %v11319_v11  ;;  %v3430_v49 = vperm.slane %v12880_v48, 2  ;;  %v11927_v62 = vld [vmem:[%s13857_s11 + $0x17c8] sm:$0xf] }
 0x3cd   : > { %8304 = vmatpush.bf16.msrb.mxu0 %v11240_v19  ;;  %v11639_v19 = vld [vmem:[%s13857_s11 + $0x1588] sm:$0xf]  ;;  %v12751_v53 = vld [vmem:[%s13857_s11 + $0x16d4] sm:$0xf0] }
 0x3ce   : > { %8317 = vmatpush.bf16.msrb.mxu1 %v11368_v35  ;;  %8282 = vmatmul.bf16.vlgmr.msra.gmra.mxu2 %v14251_v17  ;;  %v11815_v35 = vld [vmem:[%s13857_s11 + $0x16e8] sm:$0xf]  ;;  %v11640_v44 = vor.u32 %v12711_v32, %v11639_v19  ;;  %v12783_v58 = vld [vmem:[%s13857_s11 + $0x17d4] sm:$0xf0] }
 0x3cf   : > { %8326 = vmatpush.bf16.msrb.mxu2 %v11560_v36  ;;  %8295 = vmatmul.bf16.vlgmr.msra.gmra.mxu3 %v14263_v22  ;;  %v12755_v36 = vld [vmem:[%s13857_s11 + $0x16f4] sm:$0xf0]  ;;  %v11479_v52 = vld [vmem:[%s13857_s11 + $0x1448] sm:$0xf] }
 0x3d0   : > { %8339 = vmatpush.bf16.msrb.mxu3 %v11688_v31  ;;  %v11512_v31 = vor.u32 %v12679_v2, %v11511_v18  ;;  %v11816_v41 = vor.u32 %v12755_v36, %v11815_v35  ;;  %v12671_v0 = vld [vmem:[%s13857_s11 + $0x1454] sm:$0xf0]  ;;  %v11607_v40 = vld [vmem:[%s13857_s11 + $0x1548] sm:$0xf] }
 0x3d1   : > { %8305 = vmatpush.bf16.msrb.mxu0 %v11224_v50  ;;  %v11944_v50 = vor.u32 %v12787_v38, %v11943_v45  ;;  %v8075_v60 = vpop.f32.mrf.mxu2  ;;  %v11783_v7 = vld [vmem:[%s13857_s11 + $0x16a8] sm:$0xf]  ;;  %v12747_v11 = vld [vmem:[%s13857_s11 + $0x16b4] sm:$0xf0]  ;;  %v11480_v2 = vor.u32 %v12671_v0, %v11479_v52 }
 0x3d2   : > { %8318 = vmatpush.bf16.msrb.mxu1 %v11352_v42  ;;  %v12707_v42 = vld [vmem:[%s13857_s11 + $0x1574] sm:$0xf0]  ;;  %v8088_v3 = vpop.f32.mrf.mxu3  ;;  %v11911_v16 = vld [vmem:[%s13857_s11 + $0x17a8] sm:$0xf]  ;;  %v11784_v32 = vor.u32 %v12747_v11, %v11783_v7  ;;  %v9001_v7 = vld [vmem:[%s13857_s11 + $0xf8] sm:$0xf0] }
 0x3d3   : > { %8327 = vmatpush.bf16.msrb.mxu2 %v11544_v51  ;;  %v11799_v51 = vld [vmem:[%s13857_s11 + $0x16c8] sm:$0xf]  ;;  %v11624_v61 = vor.u32 %v12707_v42, %v11623_v47  ;;  %v12667_v36 = vld [vmem:[%s13857_s11 + $0x1434] sm:$0xf0] }
 0x3d4   : > { %8340 = vmatpush.bf16.msrb.mxu3 %v11672_v27  ;;  %v11496_v27 = vor.u32 %v12675_v46, %v11495_v43  ;;  %v11800_v63 = vor.u32 %v12751_v53, %v11799_v51  ;;  %v11463_v35 = vld [vmem:[%s13857_s11 + $0x1428] sm:$0xf]  ;;  %v12699_v38 = vld [vmem:[%s13857_s11 + $0x1534] sm:$0xf0] }
 0x3d5   : > { %8306 = vmatpush.bf16.msrb.mxu0 %v11208_v1  ;;  %v8076_v1 = vadd.f32 %v8075_v60, %v3430_v49  ;;  %v11895_v43 = vld [vmem:[%s13857_s11 + $0x1788] sm:$0xf]  ;;  %v11464_v46 = vor.u32 %v12667_v36, %v11463_v35  ;;  %v12663_v53 = vld [vmem:[%s13857_s11 + $0x1414] sm:$0xf0] }
 0x3d6   : > { %8319 = vmatpush.bf16.msrb.mxu1 %v11336_v5  ;;  %v11928_v5 = vor.u32 %v12783_v58, %v11927_v62  ;;  %v11447_v47 = vld [vmem:[%s13857_s11 + $0x1408] sm:$0xf]  ;;  %v12695_v58 = vld [vmem:[%s13857_s11 + $0x1514] sm:$0xf0] }
 0x3d7   : > { %8328 = vmatpush.bf16.msrb.mxu2 %v11528_v6  ;;  %v12703_v6 = vld [vmem:[%s13857_s11 + $0x1554] sm:$0xf0]  ;;  %v8089_v18 = vadd.f32 %v8088_v3, %v8076_v1  ;;  %v11575_v62 = vld [vmem:[%s13857_s11 + $0x1508] sm:$0xf] }
 0x3d8   : > { %8341 = vmatpush.bf16.msrb.mxu3 %v11656_v33  ;;  %v12779_v33 = vld [vmem:[%s13857_s11 + $0x17b4] sm:$0xf0]  ;;  %v11608_v19 = vor.u32 %v12703_v6, %v11607_v40  ;;  %v11879_v52 = vld [vmem:[%s13857_s11 + $0x1768] sm:$0xf]  ;;  %v12049_v6 = vld [vmem:[%s13857_s11 + $0xec] sm:$0xf]  ;;  %v11576_v11 = vor.u32 %v12695_v58, %v11575_v62 }
 0x3d9   : > { %8307 = vmatpush.bf16.msrb.mxu0 %v11192_v37  ;;  %v11591_v37 = vld [vmem:[%s13857_s11 + $0x1528] sm:$0xf]  ;;  %v11912_v45 = vor.u32 %v12779_v33, %v11911_v16  ;;  %v12771_v40 = vld [vmem:[%s13857_s11 + $0x1774] sm:$0xf0]  ;;  %v9004_v35 = vor.u32 %v12049_v6, %v9001_v7  ;;  %v12041_v62 = vld [vmem:[%s13857_s11 + $0xac] sm:$0xf] }
 0x3da   : > { %8320 = vmatpush.bf16.msrb.mxu1 %v11320_v39  ;;  %v11767_v39 = vld [vmem:[%s13857_s11 + $0x1688] sm:$0xf]  ;;  %v8114_v49 = vpop.f32.mrf.mxu1  ;;  %v11592_v42 = vor.u32 %v12699_v38, %v11591_v37  ;;  %v12803_v3 = vld [vmem:[%s13857_s11 + $0x1874] sm:$0xf0]  ;;  %v11880_v33 = vor.u32 %v12771_v40, %v11879_v52  ;;  %v8969_v58 = vld [vmem:[%s13857_s11 + $0xb8] sm:$0xf0] }
 0x3db   : > { %8329 = vmatpush.bf16.msrb.mxu2 %v11512_v31  ;;  %v12743_v31 = vld [vmem:[%s13857_s11 + $0x1694] sm:$0xf0]  ;;  %v12007_v1 = vld [vmem:[%s13857_s11 + $0x1868] sm:$0xf]  ;;  %v12037_v7 = vld [vmem:[%s13857_s11 + $0x8c] sm:$0xf] }
 0x3dc   : > { %8342 = vmatpush.bf16.msrb.mxu3 %v11640_v44  ;;  %8308 = vmatmul.bf16.vlgmr.msrb.gmra.mxu0 %v14261_v21  ;;  %v12775_v44 = vld [vmem:[%s13857_s11 + $0x1794] sm:$0xf0]  ;;  %v11768_v51 = vor.u32 %v12743_v31, %v11767_v39  ;;  %v11991_v37 = vld [vmem:[%s13857_s11 + $0x1848] sm:$0xf]  ;;  %v12045_v39 = vld [vmem:[%s13857_s11 + $0xcc] sm:$0xf] }
 0x3dd   : > { %8352 = vmatpush.bf16.msra.mxu0 %v11816_v41  ;;  %8321 = vmatmul.bf16.vlgmr.msrb.gmra.mxu1 %v14265_v26  ;;  %v8101_v41 = vpop.f32.mrf.mxu0  ;;  %v11896_v60 = vor.u32 %v12775_v44, %v11895_v43  ;;  %v12767_v36 = vld [vmem:[%s13857_s11 + $0x1754] sm:$0xf0]  ;;  %v8985_v31 = vld [vmem:[%s13857_s11 + $0xd8] sm:$0xf0]  ;;  %v11831_v40 = vld [vmem:[%s13857_s11 + $0x1708] sm:$0xf] }
 0x3de   : > { %8365 = vmatpush.bf16.msra.mxu1 %v11944_v50  ;;  %v8102_v48 = vadd.f32 %v8101_v41, %v8089_v18  ;;  %v8077_v50 = vpop.f32.mrf.mxu2  ;;  %v12008_v18 = vor.u32 %v12803_v3, %v12007_v1  ;;  %v12759_v1 = vld [vmem:[%s13857_s11 + $0x1714] sm:$0xf0]  ;;  %v11959_v3 = vld [vmem:[%s13857_s11 + $0x1808] sm:$0xf] }
 0x3df   : > { %8330 = vmatpush.bf16.msrb.mxu2 %v11496_v27  ;;  %v8090_v27 = vpop.f32.mrf.mxu3  ;;  %v8988_v50 = vor.u32 %v12045_v39, %v8985_v31  ;;  %v12791_v6 = vld [vmem:[%s13857_s11 + $0x1814] sm:$0xf0]  ;;  %v12033_v39 = vld [vmem:[%s13857_s11 + $0x6c] sm:$0xf]  ;;  %v8937_v31 = vld [vmem:[%s13857_s11 + $0x78] sm:$0xf0] }
 0x3e0   : > { %8343 = vmatpush.bf16.msrb.mxu3 %v11624_v61  ;;  %v11751_v61 = vld [vmem:[%s13857_s11 + $0x1668] sm:$0xf]  ;;  %v15202_v0 = vadd.f32 %v8114_v49, %v8102_v48  ;;  %v12731_v48 = vld [vmem:[%s13857_s11 + $0x1634] sm:$0xf0] }
 0x3e1   : > { %8353 = vmatpush.bf16.msra.mxu0 %v11800_v63  ;;  %v12739_v63 = vld [vmem:[%s13857_s11 + $0x1674] sm:$0xf0]  ;;  %v11847_v49 = vld [vmem:[%s13857_s11 + $0x1728] sm:$0xf] }
 0x3e2   : > { %8366 = vmatpush.bf16.msra.mxu1 %v11928_v5  ;;  %v11448_v5 = vor.u32 %v12663_v53, %v11447_v47  ;;  %v11752_v16 = vor.u32 %v12739_v63, %v11751_v61  ;;  %v8116_v43 = vpop.f32.mrf.mxu1  ;;  %v11719_v47 = vld [vmem:[%s13857_s11 + $0x1628] sm:$0xf]  ;;  %v12795_v53 = vld [vmem:[%s13857_s11 + $0x1834] sm:$0xf0] }
 0x3e3   : > { %8331 = vmatpush.bf16.msrb.mxu2 %v11480_v2  ;;  %v11735_v2 = vld [vmem:[%s13857_s11 + $0x1648] sm:$0xf]  ;;  %v11720_v27 = vor.u32 %v12731_v48, %v11719_v47  ;;  %v12727_v61 = vld [vmem:[%s13857_s11 + $0x1614] sm:$0xf0]  ;;  %v12109_v47 = vld [vmem:[%s13857_s11 + $0x2cc] sm:$0xf] }
 0x3e4   : > { %8344 = vmatpush.bf16.msrb.mxu3 %v11608_v19  ;;  %v12735_v19 = vld [vmem:[%s13857_s11 + $0x1654] sm:$0xf0]  ;;  %v9241_v48 = vld [vmem:[%s13857_s11 + $0x2d8] sm:$0xf0] }
 0x3e5   : > { %8354 = vmatpush.bf16.msra.mxu0 %v11784_v32  ;;  %v11863_v32 = vld [vmem:[%s13857_s11 + $0x1748] sm:$0xf]  ;;  %v8103_v38 = vpop.f32.mrf.mxu0  ;;  %v11736_v44 = vor.u32 %v12735_v19, %v11735_v2  ;;  %v9257_v19 = vld [vmem:[%s13857_s11 + $0x2f8] sm:$0xf0] }
 0x3e6   : > { %8367 = vmatpush.bf16.msra.mxu1 %v11912_v45  ;;  %v12799_v45 = vld [vmem:[%s13857_s11 + $0x1854] sm:$0xf0]  ;;  %v11864_v41 = vor.u32 %v12767_v36, %v11863_v32  ;;  %v12145_v32 = vld [vmem:[%s13857_s11 + $0x3ec] sm:$0xf]  ;;  %v11832_v36 = vor.u32 %v12759_v1, %v11831_v40  ;;  %v9097_v40 = vld [vmem:[%s13857_s11 + $0x1b8] sm:$0xf0] }
 0x3e7   : > { %8332 = vmatpush.bf16.msrb.mxu2 %v11464_v46  ;;  %v11992_v46 = vor.u32 %v12799_v45, %v11991_v37  ;;  %v11960_v37 = vor.u32 %v12791_v6, %v11959_v3  ;;  %v12105_v1 = vld [vmem:[%s13857_s11 + $0x2ac] sm:$0xf]  ;;  %v9225_v3 = vld [vmem:[%s13857_s11 + $0x2b8] sm:$0xf0] }
 0x3e8   : > { %8345 = vmatpush.bf16.msrb.mxu3 %v11592_v42  ;;  %v12763_v42 = vld [vmem:[%s13857_s11 + $0x1734] sm:$0xf0] }
 0x3e9   : > { %8355 = vmatpush.bf16.msra.mxu0 %v11768_v51  ;;  %v11975_v51 = vld [vmem:[%s13857_s11 + $0x1828] sm:$0xf]  ;;  %v11848_v63 = vor.u32 %v12763_v42, %v11847_v49  ;;  %v12141_v49 = vld [vmem:[%s13857_s11 + $0x3cc] sm:$0xf] }
 0x3ea   : > { %8368 = vmatpush.bf16.msra.mxu1 %v11896_v60  ;;  %v11703_v60 = vld [vmem:[%s13857_s11 + $0x1608] sm:$0xf]  ;;  %v11976_v52 = vor.u32 %v12795_v53, %v11975_v51  ;;  %v8940_v51 = vor.u32 %v12033_v39, %v8937_v31  ;;  %v9337_v39 = vld [vmem:[%s13857_s11 + $0x398] sm:$0xf0] }
 0x3eb   : > { %8333 = vmatpush.bf16.msrb.mxu2 %v11448_v5  ;;  %v8972_v5 = vor.u32 %v12041_v62, %v8969_v58  ;;  %v11704_v2 = vor.u32 %v12727_v61, %v11703_v60  ;;  %v12029_v62 = vld [vmem:[%s13857_s11 + $0x4c] sm:$0xf]  ;;  %v8921_v58 = vld [vmem:[%s13857_s11 + $0x58] sm:$0xf0]  ;;  %v9244_v61 = vor.u32 %v12109_v47, %v9241_v48 }
 0x3ec   : > { %8346 = vmatpush.bf16.msrb.mxu3 %v11576_v11  ;;  %v8953_v11 = vld [vmem:[%s13857_s11 + $0x98] sm:$0xf0]  ;;  %v12021_v47 = vld [vmem:[%s13857_s11 + $0xc] sm:$0xf] }
 0x3ed   : > { %8356 = vmatpush.bf16.msra.mxu0 %v11752_v16  ;;  %v12081_v16 = vld [vmem:[%s13857_s11 + $0x1ec] sm:$0xf]  ;;  %v8956_v45 = vor.u32 %v12037_v7, %v8953_v11  ;;  %v8924_v7 = vor.u32 %v12029_v62, %v8921_v58  ;;  %v8889_v48 = vld [vmem:[%s13857_s11 + $0x18] sm:$0xf0] }
 0x3ee   : > { %8369 = vmatpush.bf16.msra.mxu1 %v11880_v33  ;;  %8334 = vmatmul.bf16.vlgmr.msrb.gmra.mxu2 %v14308_v12  ;;  %v9129_v33 = vld [vmem:[%s13857_s11 + $0x1f8] sm:$0xf0]  ;;  %v12097_v58 = vld [vmem:[%s13857_s11 + $0x26c] sm:$0xf] }
 0x3ef   : > { %8382 = vmatpush.bf16.msra.mxu2 %v12008_v18  ;;  %8347 = vmatmul.bf16.vlgmr.msrb.gmra.mxu3 %v14312_v14  ;;  %v12113_v18 = vld [vmem:[%s13857_s11 + $0x2ec] sm:$0xf]  ;;  %v9132_v38 = vor.u32 %v12081_v16, %v9129_v33  ;;  %v8905_v33 = vld [vmem:[%s13857_s11 + $0x38] sm:$0xf0] }
 0x3f0   : > { %8391 = vmatpush.bf16.msra.mxu3 %v9004_v35  ;;  %v9385_v35 = vld [vmem:[%s13857_s11 + $0x3f8] sm:$0xf0]  ;;  %v9260_v43 = vor.u32 %v12113_v18, %v9257_v19  ;;  %v12025_v16 = vld [vmem:[%s13857_s11 + $0x2c] sm:$0xf]  ;;  %v9228_v18 = vor.u32 %v12105_v1, %v9225_v3 }
 0x3f1   : > { %8357 = vmatpush.bf16.msra.mxu0 %v11736_v44  ;;  %v9388_v44 = vor.u32 %v12145_v32, %v9385_v35  ;;  %v8127_v42 = vpop.f32.mrf.mxu2  ;;  %v12069_v19 = vld [vmem:[%s13857_s11 + $0x18c] sm:$0xf]  ;;  %v9081_v32 = vld [vmem:[%s13857_s11 + $0x198] sm:$0xf0] }
 0x3f2   : > { %8370 = vmatpush.bf16.msra.mxu1 %v11864_v41  ;;  %v12077_v41 = vld [vmem:[%s13857_s11 + $0x1cc] sm:$0xf]  ;;  %v8140_v60 = vpop.f32.mrf.mxu3  ;;  %v9065_v62 = vld [vmem:[%s13857_s11 + $0x178] sm:$0xf0] }
 0x3f3   : > { %8383 = vmatpush.bf16.msra.mxu2 %v11992_v46  ;;  %v9113_v46 = vld [vmem:[%s13857_s11 + $0x1d8] sm:$0xf0]  ;;  %v12101_v35 = vld [vmem:[%s13857_s11 + $0x28c] sm:$0xf] }
 0x3f4   : > { %8392 = vmatpush.bf16.msra.mxu3 %v8988_v50  ;;  %v9369_v50 = vld [vmem:[%s13857_s11 + $0x3d8] sm:$0xf0]  ;;  %v9116_v53 = vor.u32 %v12077_v41, %v9113_v46  ;;  %v8908_v41 = vor.u32 %v12025_v16, %v8905_v33  ;;  %v9084_v46 = vor.u32 %v12069_v19, %v9081_v32  ;;  %v12125_v33 = vld [vmem:[%s13857_s11 + $0x34c] sm:$0xf] }
 0x3f5   : > { %8358 = vmatpush.bf16.msra.mxu0 %v11720_v27  ;;  %v8128_v27 = vadd.f32 %v8127_v42, %v15202_v0  ;;  %v9353_v0 = vld [vmem:[%s13857_s11 + $0x3b8] sm:$0xf0]  ;;  %v12173_v19 = vld [vmem:[%s13857_s11 + $0x4cc] sm:$0xf] }
 0x3f6   : > { %8371 = vmatpush.bf16.msra.mxu1 %v11848_v63  ;;  %v9372_v63 = vor.u32 %v12141_v49, %v9369_v50  ;;  %v9177_v16 = vld [vmem:[%s13857_s11 + $0x258] sm:$0xf0] }
 0x3f7   : > { %8384 = vmatpush.bf16.msra.mxu2 %v11976_v52  ;;  %v12073_v52 = vld [vmem:[%s13857_s11 + $0x1ac] sm:$0xf]  ;;  %v8141_v6 = vadd.f32 %v8140_v60, %v8128_v27  ;;  %v9193_v27 = vld [vmem:[%s13857_s11 + $0x278] sm:$0xf0] }
 0x3f8   : > { %8393 = vmatpush.bf16.msra.mxu3 %v8972_v5  ;;  %v12137_v5 = vld [vmem:[%s13857_s11 + $0x3ac] sm:$0xf]  ;;  %v9100_v11 = vor.u32 %v12073_v52, %v9097_v40  ;;  %v9513_v52 = vld [vmem:[%s13857_s11 + $0x4f8] sm:$0xf0]  ;;  %v8892_v40 = vor.u32 %v12021_v47, %v8889_v48  ;;  %v9196_v3 = vor.u32 %v12097_v58, %v9193_v27 }
 0x3f9   : > { %8359 = vmatpush.bf16.msra.mxu0 %v11704_v2  ;;  %v9356_v2 = vor.u32 %v12137_v5, %v9353_v0  ;;  %v12129_v60 = vld [vmem:[%s13857_s11 + $0x36c] sm:$0xf]  ;;  %v9497_v32 = vld [vmem:[%s13857_s11 + $0x4d8] sm:$0xf0] }
 0x3fa   : > { %8372 = vmatpush.bf16.msra.mxu1 %v11832_v36  ;;  %v12881_v36 = vld [vmem:[#allocation1] sm:$0xff]  ;;  %v8142_v49 = vpop.f32.mrf.mxu3  ;;  %v12061_v0 = vld [vmem:[%s13857_s11 + $0x14c] sm:$0xf] }
 0x3fb   : > { %8385 = vmatpush.bf16.msra.mxu2 %v11960_v37  ;;  %v8153_v37 = vpop.f32.mrf.mxu0  ;;  %v12169_v47 = vld [vmem:[%s13857_s11 + $0x4ac] sm:$0xf]  ;;  %v9481_v48 = vld [vmem:[%s13857_s11 + $0x4b8] sm:$0xf0] }
 0x3fc   : > { %8394 = vmatpush.bf16.msra.mxu3 %v8956_v45  ;;  %8360 = vmatmul.bf16.vlgmr.msra.gmra.mxu0 %v14310_v13  ;;  %v9209_v45 = vld [vmem:[%s13857_s11 + $0x298] sm:$0xf0]  ;;  %v8154_v31 = vadd.f32 %v8153_v37, %v8141_v6  ;;  %v12085_v58 = vld [vmem:[%s13857_s11 + $0x20c] sm:$0xf] }
 0x3fd   : > { %8404 = vmatpush.bf16.msrb.mxu0 %v9132_v38  ;;  %8373 = vmatmul.bf16.vlgmr.msra.gmra.mxu1 %v14314_v15  ;;  %v12133_v38 = vld [vmem:[%s13857_s11 + $0x38c] sm:$0xf]  ;;  %v9212_v50 = vor.u32 %v12101_v35, %v9209_v45  ;;  %v9049_v6 = vld [vmem:[%s13857_s11 + $0x158] sm:$0xf0] }
 0x3fe   : > { %8417 = vmatpush.bf16.msrb.mxu1 %v9260_v43  ;;  %12015 = vmatmul.msk.bf16.vlgmr.msra.gmra.mxu2 %vm7413_vm0, %v12881_v36  ;;  %v8166_v43 = vpop.f32.mrf.mxu1  ;;  %v9340_v42 = vor.u32 %v12133_v38, %v9337_v39  ;;  %v9052_v36 = vor.u32 %v12061_v0, %v9049_v6  ;;  %v12057_v38 = vld [vmem:[%s13857_s11 + $0x12c] sm:$0xf]  ;;  %v9033_v39 = vld [vmem:[%s13857_s11 + $0x138] sm:$0xf0] }
 0x3ff   : > { %8430 = vmatpush.bf16.msrb.mxu2 %v9388_v44  ;;  %v8129_v44 = vpop.f32.mrf.mxu2  ;;  %v9036_v49 = vor.u32 %v12057_v38, %v9033_v39  ;;  %v9145_v27 = vld [vmem:[%s13857_s11 + $0x218] sm:$0xf0]  ;;  %v12273_v6 = vld [vmem:[%s13857_s11 + $0x7ec] sm:$0xf] }
 0x400   : > { %8395 = vmatpush.bf16.msra.mxu3 %v8940_v51  ;;  %v15271_v51 = vadd.f32 %v8166_v43, %v8154_v31  ;;  %v12089_v31 = vld [vmem:[%s13857_s11 + $0x22c] sm:$0xf]  ;;  %v9500_v43 = vor.u32 %v12173_v19, %v9497_v32  ;;  %v9161_v44 = vld [vmem:[%s13857_s11 + $0x238] sm:$0xf0] }
 0x401   : > { %8405 = vmatpush.bf16.msrb.mxu0 %v9116_v53  ;;  %v12065_v53 = vld [vmem:[%s13857_s11 + $0x16c] sm:$0xf]  ;;  %v9769_v0 = vld [vmem:[%s13857_s11 + $0x6f8] sm:$0xf0] }
 0x402   : > { %8418 = vmatpush.bf16.msrb.mxu1 %v9244_v61  ;;  %v9321_v61 = vld [vmem:[%s13857_s11 + $0x378] sm:$0xf0]  ;;  %v9068_v1 = vor.u32 %v12065_v53, %v9065_v62  ;;  %v9164_v53 = vor.u32 %v12089_v31, %v9161_v44  ;;  %v12269_v39 = vld [vmem:[%s13857_s11 + $0x7cc] sm:$0xf] }
 0x403   : > { %8431 = vmatpush.bf16.msrb.mxu2 %v9372_v63  ;;  %v12177_v63 = vld [vmem:[%s13857_s11 + $0x4ec] sm:$0xf]  ;;  %v9324_v5 = vor.u32 %v12129_v60, %v9321_v61  ;;  %v9273_v61 = vld [vmem:[%s13857_s11 + $0x318] sm:$0xf0] }
 0x404   : > { %8396 = vmatpush.bf16.msra.mxu3 %v8924_v7  ;;  %v12093_v7 = vld [vmem:[%s13857_s11 + $0x24c] sm:$0xf]  ;;  %v9449_v19 = vld [vmem:[%s13857_s11 + $0x478] sm:$0xf0] }
 0x405   : > { %8406 = vmatpush.bf16.msrb.mxu0 %v9100_v11  ;;  %v9516_v11 = vor.u32 %v12177_v63, %v9513_v52  ;;  %v9180_v37 = vor.u32 %v12093_v7, %v9177_v16  ;;  %v12117_v60 = vld [vmem:[%s13857_s11 + $0x30c] sm:$0xf]  ;;  %v9465_v52 = vld [vmem:[%s13857_s11 + $0x498] sm:$0xf0] }
 0x406   : > { %8419 = vmatpush.bf16.msrb.mxu1 %v9228_v18  ;;  %v9305_v18 = vld [vmem:[%s13857_s11 + $0x358] sm:$0xf0]  ;;  %v8168_v35 = vpop.f32.mrf.mxu1  ;;  %v12165_v63 = vld [vmem:[%s13857_s11 + $0x48c] sm:$0xf]  ;;  %v9276_v16 = vor.u32 %v12117_v60, %v9273_v61 }
 0x407   : > { %8432 = vmatpush.bf16.msrb.mxu2 %v9356_v2  ;;  %v8155_v2 = vpop.f32.mrf.mxu0  ;;  %v9308_v45 = vor.u32 %v12125_v33, %v9305_v18  ;;  %v9897_v7 = vld [vmem:[%s13857_s11 + $0x7f8] sm:$0xf0]  ;;  %v9468_v33 = vor.u32 %v12165_v63, %v9465_v52  ;;  %v12153_v52 = vld [vmem:[%s13857_s11 + $0x42c] sm:$0xf] }
 0x408   : > { %8397 = vmatpush.bf16.msra.mxu3 %v8908_v41  ;;  %v12121_v41 = vld [vmem:[%s13857_s11 + $0x32c] sm:$0xf]  ;;  %v9900_v35 = vor.u32 %v12273_v6, %v9897_v7  ;;  %v9753_v38 = vld [vmem:[%s13857_s11 + $0x6d8] sm:$0xf0] }
 0x409   : > { %8407 = vmatpush.bf16.msrb.mxu0 %v9084_v46  ;;  %v9289_v46 = vld [vmem:[%s13857_s11 + $0x338] sm:$0xf0]  ;;  %v12161_v2 = vld [vmem:[%s13857_s11 + $0x46c] sm:$0xf] }
 0x40a   : > { %8420 = vmatpush.bf16.msrb.mxu1 %v9212_v50  ;;  %v12053_v50 = vld [vmem:[%s13857_s11 + $0x10c] sm:$0xf]  ;;  %v9292_v62 = vor.u32 %v12121_v41, %v9289_v46  ;;  %v9881_v31 = vld [vmem:[%s13857_s11 + $0x7d8] sm:$0xf0]  ;;  %v9452_v44 = vor.u32 %v12161_v2, %v9449_v19 }
 0x40b   : > { %8433 = vmatpush.bf16.msrb.mxu2 %v9340_v42  ;;  %v9017_v42 = vld [vmem:[%s13857_s11 + $0x118] sm:$0xf0]  ;;  %v12149_v19 = vld [vmem:[%s13857_s11 + $0x40c] sm:$0xf] }
 0x40c   : > { %8398 = vmatpush.bf16.msra.mxu3 %v8892_v40  ;;  %v12209_v40 = vld [vmem:[%s13857_s11 + $0x5ec] sm:$0xf]  ;;  %v9737_v60 = vld [vmem:[%s13857_s11 + $0x6b8] sm:$0xf0] }
 0x40d   : > { %8408 = vmatpush.bf16.msrb.mxu0 %v9068_v1  ;;  %v9641_v1 = vld [vmem:[%s13857_s11 + $0x5f8] sm:$0xf0] }
 0x40e   : > { %8421 = vmatpush.bf16.msrb.mxu1 %v9196_v3  ;;  %v12241_v3 = vld [vmem:[%s13857_s11 + $0x6ec] sm:$0xf]  ;;  %v9644_v18 = vor.u32 %v12209_v40, %v9641_v1  ;;  %v9865_v61 = vld [vmem:[%s13857_s11 + $0x7b8] sm:$0xf0] }
 0x40f   : > { %8434 = vmatpush.bf16.msrb.mxu2 %v9324_v5  ;;  %8399 = vmatmul.bf16.vlgmr.msra.gmra.mxu3 %v13964_v29  ;;  %v9484_v29 = vor.u32 %v12169_v47, %v9481_v48  ;;  %v9020_v5 = vor.u32 %v12053_v50, %v9017_v42  ;;  %v9772_v32 = vor.u32 %v12241_v3, %v9769_v0  ;;  %v12157_v48 = vld [vmem:[%s13857_s11 + $0x44c] sm:$0xf]  ;;  %v9417_v40 = vld [vmem:[%s13857_s11 + $0x438] sm:$0xf0] }
 0x410   : > { %8443 = vmatpush.bf16.msrb.mxu3 %v9516_v11  ;;  %v9148_v11 = vor.u32 %v12085_v58, %v9145_v27  ;;  %v9884_v42 = vor.u32 %v12269_v39, %v9881_v31  ;;  %v12233_v58 = vld [vmem:[%s13857_s11 + $0x6ac] sm:$0xf]  ;;  %v9721_v6 = vld [vmem:[%s13857_s11 + $0x698] sm:$0xf0] }
 0x411   : > { %8409 = vmatpush.bf16.msrb.mxu0 %v9052_v36  ;;  %v12205_v36 = vld [vmem:[%s13857_s11 + $0x5cc] sm:$0xf]  ;;  %v9740_v1 = vor.u32 %v12233_v58, %v9737_v60  ;;  %v9849_v7 = vld [vmem:[%s13857_s11 + $0x798] sm:$0xf0] }
 0x412   : > { %8422 = vmatpush.bf16.msrb.mxu1 %v9180_v37  ;;  %v9625_v37 = vld [vmem:[%s13857_s11 + $0x5d8] sm:$0xf0]  ;;  %v8192_v47 = vpop.f32.mrf.mxu3  ;;  %v12225_v31 = vld [vmem:[%s13857_s11 + $0x66c] sm:$0xf] }
 0x413   : > { %8435 = vmatpush.bf16.msrb.mxu2 %v9308_v45  ;;  %v12237_v45 = vld [vmem:[%s13857_s11 + $0x6cc] sm:$0xf]  ;;  %v9628_v46 = vor.u32 %v12205_v36, %v9625_v37  ;;  %v9577_v39 = vld [vmem:[%s13857_s11 + $0x578] sm:$0xf0] }
 0x414   : > { %8444 = vmatpush.bf16.msrb.mxu3 %v9500_v43  ;;  %v8179_v43 = vpop.f32.mrf.mxu2  ;;  %v9756_v50 = vor.u32 %v12237_v45, %v9753_v38  ;;  %v12193_v38 = vld [vmem:[%s13857_s11 + $0x56c] sm:$0xf]  ;;  %v9689_v60 = vld [vmem:[%s13857_s11 + $0x658] sm:$0xf0] }
 0x415   : > { %8410 = vmatpush.bf16.msrb.mxu0 %v9036_v49  ;;  %v8180_v41 = vadd.f32 %v8179_v43, %v15271_v51  ;;  %v9433_v49 = vld [vmem:[%s13857_s11 + $0x458] sm:$0xf0]  ;;  %v12221_v58 = vld [vmem:[%s13857_s11 + $0x64c] sm:$0xf] }
 0x416   : > { %8423 = vmatpush.bf16.msrb.mxu1 %v9164_v53  ;;  %v12201_v53 = vld [vmem:[%s13857_s11 + $0x5ac] sm:$0xf]  ;;  %v9436_v51 = vor.u32 %v12157_v48, %v9433_v49  ;;  %v9705_v43 = vld [vmem:[%s13857_s11 + $0x678] sm:$0xf0]  ;;  %v9580_v49 = vor.u32 %v12193_v38, %v9577_v39 }
 0x417   : > { %8436 = vmatpush.bf16.msrb.mxu2 %v9292_v62  ;;  %v9609_v62 = vld [vmem:[%s13857_s11 + $0x5b8] sm:$0xf0]  ;;  %v8193_v27 = vadd.f32 %v8192_v47, %v8180_v41 }
 0x418   : > { %8445 = vmatpush.bf16.msrb.mxu3 %v9484_v29  ;;  %v12265_v29 = vld [vmem:[%s13857_s11 + $0x7ac] sm:$0xf]  ;;  %v9612_v63 = vor.u32 %v12201_v53, %v9609_v62  ;;  %v9833_v41 = vld [vmem:[%s13857_s11 + $0x778] sm:$0xf0] }
 0x419   : > { %8411 = vmatpush.bf16.msrb.mxu0 %v9020_v5  ;;  %v9868_v3 = vor.u32 %v12265_v29, %v9865_v61  ;;  %v9593_v5 = vld [vmem:[%s13857_s11 + $0x598] sm:$0xf0]  ;;  %v8205_v0 = vpop.f32.mrf.mxu0  ;;  %v12189_v53 = vld [vmem:[%s13857_s11 + $0x54c] sm:$0xf] }
 0x41a   : > { %8424 = vmatpush.bf16.msrb.mxu1 %v9148_v11  ;;  %v8206_v11 = vadd.f32 %v8205_v0, %v8193_v27  ;;  %v10025_v47 = vld [vmem:[%s13857_s11 + $0x8f8] sm:$0xf0]  ;;  %v12253_v29 = vld [vmem:[%s13857_s11 + $0x74c] sm:$0xf] }
 0x41b   : > { %8437 = vmatpush.bf16.msrb.mxu2 %v9276_v16  ;;  %v8218_v16 = vpop.f32.mrf.mxu1  ;;  %v9561_v62 = vld [vmem:[%s13857_s11 + $0x558] sm:$0xf0]  ;;  %v12217_v0 = vld [vmem:[%s13857_s11 + $0x62c] sm:$0xf] }
 0x41c   : > { %8446 = vmatpush.bf16.msrb.mxu3 %v9468_v33  ;;  %8412 = vmatmul.bf16.vlgmr.msrb.gmra.mxu0 %v13971_v34  ;;  %v12229_v34 = vld [vmem:[%s13857_s11 + $0x68c] sm:$0xf]  ;;  %v8181_v33 = vpop.f32.mrf.mxu2  ;;  %v15342_v45 = vadd.f32 %v8218_v16, %v8206_v11  ;;  %v9817_v61 = vld [vmem:[%s13857_s11 + $0x758] sm:$0xf0] }
 0x41d   : > { %8456 = vmatpush.bf16.msra.mxu0 %v9644_v18  ;;  %8425 = vmatmul.bf16.vlgmr.msrb.gmra.mxu1 %v13962_v28  ;;  %v12261_v28 = vld [vmem:[%s13857_s11 + $0x78c] sm:$0xf]  ;;  %v9420_v18 = vor.u32 %v12153_v52, %v9417_v40  ;;  %v9724_v36 = vor.u32 %v12229_v34, %v9721_v6  ;;  %v10009_v52 = vld [vmem:[%s13857_s11 + $0x8d8] sm:$0xf0] }
 0x41e   : > { %8469 = vmatpush.bf16.msra.mxu1 %v9772_v32  ;;  %8438 = vmatmul.bf16.vlgmr.msrb.gmra.mxu2 %v13966_v30  ;;  %v12197_v30 = vld [vmem:[%s13857_s11 + $0x58c] sm:$0xf]  ;;  %v9401_v32 = vld [vmem:[%s13857_s11 + $0x418] sm:$0xf0]  ;;  %v9852_v37 = vor.u32 %v12261_v28, %v9849_v7 }
 0x41f   : > { %8482 = vmatpush.bf16.msra.mxu2 %v9900_v35  ;;  %v9596_v2 = vor.u32 %v12197_v30, %v9593_v5  ;;  %v8194_v35 = vpop.f32.mrf.mxu3  ;;  %v9404_v48 = vor.u32 %v12149_v19, %v9401_v32  ;;  %v9820_v30 = vor.u32 %v12253_v29, %v9817_v61  ;;  %v12185_v5 = vld [vmem:[%s13857_s11 + $0x52c] sm:$0xf]  ;;  %v9545_v34 = vld [vmem:[%s13857_s11 + $0x538] sm:$0xf0] }
 0x420   : > { %8447 = vmatpush.bf16.msrb.mxu3 %v9452_v44  ;;  %v12257_v44 = vld [vmem:[%s13857_s11 + $0x76c] sm:$0xf]  ;;  %v9673_v28 = vld [vmem:[%s13857_s11 + $0x638] sm:$0xf0] }
 0x421   : > { %8457 = vmatpush.bf16.msra.mxu0 %v9628_v46  ;;  %v12305_v46 = vld [vmem:[%s13857_s11 + $0x8ec] sm:$0xf]  ;;  %v9801_v11 = vld [vmem:[%s13857_s11 + $0x738] sm:$0xf0]  ;;  %v9676_v32 = vor.u32 %v12217_v0, %v9673_v28 }
 0x422   : > { %8470 = vmatpush.bf16.msra.mxu1 %v9756_v50  ;;  %v9708_v50 = vor.u32 %v12225_v31, %v9705_v43  ;;  %v10028_v27 = vor.u32 %v12305_v46, %v10025_v47  ;;  %v12249_v7 = vld [vmem:[%s13857_s11 + $0x72c] sm:$0xf]  ;;  %v9993_v33 = vld [vmem:[%s13857_s11 + $0x8b8] sm:$0xf0] }
 0x423   : > { %8483 = vmatpush.bf16.msra.mxu2 %v9884_v42  ;;  %v9836_v42 = vor.u32 %v12257_v44, %v9833_v41  ;;  %v8220_v40 = vpop.f32.mrf.mxu1  ;;  %v12297_v16 = vld [vmem:[%s13857_s11 + $0x8ac] sm:$0xf]  ;;  %v9529_v19 = vld [vmem:[%s13857_s11 + $0x518] sm:$0xf0]  ;;  %v9804_v35 = vor.u32 %v12249_v7, %v9801_v11 }
 0x424   : > { %8448 = vmatpush.bf16.msrb.mxu3 %v9436_v51  ;;  %v8207_v51 = vpop.f32.mrf.mxu0  ;;  %v9996_v38 = vor.u32 %v12297_v16, %v9993_v33  ;;  %v9785_v39 = vld [vmem:[%s13857_s11 + $0x718] sm:$0xf0]  ;;  %v12293_v31 = vld [vmem:[%s13857_s11 + $0x88c] sm:$0xf] }
 0x425   : > { %8458 = vmatpush.bf16.msra.mxu0 %v9612_v63  ;;  %v12301_v63 = vld [vmem:[%s13857_s11 + $0x8cc] sm:$0xf]  ;;  %v9977_v43 = vld [vmem:[%s13857_s11 + $0x898] sm:$0xf0] }
 0x426   : > { %8471 = vmatpush.bf16.msra.mxu1 %v9740_v1  ;;  %v9564_v1 = vor.u32 %v12189_v53, %v9561_v62  ;;  %v10012_v6 = vor.u32 %v12301_v63, %v10009_v52  ;;  %v12337_v44 = vld [vmem:[%s13857_s11 + $0x9ec] sm:$0xf]  ;;  %v10153_v41 = vld [vmem:[%s13857_s11 + $0x9f8] sm:$0xf0]  ;;  %v9980_v62 = vor.u32 %v12293_v31, %v9977_v43 }
 0x427   : > { %8484 = vmatpush.bf16.msra.mxu2 %v9868_v3  ;;  %v9692_v3 = vor.u32 %v12221_v58, %v9689_v60  ;;  %v12369_v46 = vld [vmem:[%s13857_s11 + $0xaec] sm:$0xf]  ;;  %v10156_v58 = vor.u32 %v12337_v44, %v10153_v41  ;;  %v9961_v60 = vld [vmem:[%s13857_s11 + $0x878] sm:$0xf0] }
 0x428   : > { %8449 = vmatpush.bf16.msrb.mxu3 %v9420_v18  ;;  %v9548_v18 = vor.u32 %v12185_v5, %v9545_v34  ;;  %v12333_v51 = vld [vmem:[%s13857_s11 + $0x9cc] sm:$0xf]  ;;  %v10137_v63 = vld [vmem:[%s13857_s11 + $0x9d8] sm:$0xf0] }
 0x429   : > { %8459 = vmatpush.bf16.msra.mxu0 %v9596_v2  ;;  %v12181_v2 = vld [vmem:[%s13857_s11 + $0x50c] sm:$0xf]  ;;  %v10265_v40 = vld [vmem:[%s13857_s11 + $0xad8] sm:$0xf0]  ;;  %v10140_v0 = vor.u32 %v12333_v51, %v10137_v63 }
 0x42a   : > { %8472 = vmatpush.bf16.msra.mxu1 %v9724_v36  ;;  %v9657_v36 = vld [vmem:[%s13857_s11 + $0x618] sm:$0xf0]  ;;  %v9532_v47 = vor.u32 %v12181_v2, %v9529_v19  ;;  %v12365_v52 = vld [vmem:[%s13857_s11 + $0xacc] sm:$0xf] }
 0x42b   : > { %8485 = vmatpush.bf16.msra.mxu2 %v9852_v37  ;;  %v12245_v37 = vld [vmem:[%s13857_s11 + $0x70c] sm:$0xf]  ;;  %v9945_v7 = vld [vmem:[%s13857_s11 + $0x858] sm:$0xf0]  ;;  %v10268_v11 = vor.u32 %v12365_v52, %v10265_v40 }
 0x42c   : > { %8450 = vmatpush.bf16.msrb.mxu3 %v9404_v48  ;;  %v10281_v48 = vld [vmem:[%s13857_s11 + $0xaf8] sm:$0xf0]  ;;  %v9788_v53 = vor.u32 %v12245_v37, %v9785_v39  ;;  %v12285_v28 = vld [vmem:[%s13857_s11 + $0x84c] sm:$0xf] }
 0x42d   : > { %8460 = vmatpush.bf16.msra.mxu0 %v9580_v49  ;;  %v12401_v49 = vld [vmem:[%s13857_s11 + $0xbec] sm:$0xf]  ;;  %v10284_v29 = vor.u32 %v12369_v46, %v10281_v48  ;;  %v10249_v19 = vld [vmem:[%s13857_s11 + $0xab8] sm:$0xf0] }
 0x42e   : > { %8473 = vmatpush.bf16.msra.mxu1 %v9708_v50  ;;  %v10409_v50 = vld [vmem:[%s13857_s11 + $0xbf8] sm:$0xf0]  ;;  %v12329_v33 = vld [vmem:[%s13857_s11 + $0x9ac] sm:$0xf] }
 0x42f   : > { %8486 = vmatpush.bf16.msra.mxu2 %v9836_v42  ;;  %8451 = vmatmul.bf16.vlgmr.msrb.gmra.mxu3 %v14005_v8  ;;  %v12213_v8 = vld [vmem:[%s13857_s11 + $0x60c] sm:$0xf]  ;;  %v10412_v61 = vor.u32 %v12401_v49, %v10409_v50  ;;  %v10105_v31 = vld [vmem:[%s13857_s11 + $0x998] sm:$0xf0] }
 0x430   : > { %8495 = vmatpush.bf16.msra.mxu3 %v10028_v27  ;;  %v9660_v42 = vor.u32 %v12213_v8, %v9657_v36  ;;  %v12289_v27 = vld [vmem:[%s13857_s11 + $0x86c] sm:$0xf]  ;;  %v9948_v8 = vor.u32 %v12285_v28, %v9945_v7  ;;  %v10233_v41 = vld [vmem:[%s13857_s11 + $0xa98] sm:$0xf0] }
 0x431   : > { %8461 = vmatpush.bf16.msra.mxu0 %v9564_v1  ;;  %v12397_v1 = vld [vmem:[%s13857_s11 + $0xbcc] sm:$0xf]  ;;  %v9964_v5 = vor.u32 %v12289_v27, %v9961_v60  ;;  %v10361_v46 = vld [vmem:[%s13857_s11 + $0xb98] sm:$0xf0] }
 0x432   : > { %8474 = vmatpush.bf16.msra.mxu1 %v9692_v3  ;;  %v10393_v3 = vld [vmem:[%s13857_s11 + $0xbd8] sm:$0xf0]  ;;  %v12361_v2 = vld [vmem:[%s13857_s11 + $0xaac] sm:$0xf] }
 0x433   : > { %8487 = vmatpush.bf16.msra.mxu2 %v9820_v30  ;;  %v8231_v30 = vpop.f32.mrf.mxu2  ;;  %v10396_v16 = vor.u32 %v12397_v1, %v10393_v3  ;;  %v12281_v37 = vld [vmem:[%s13857_s11 + $0x82c] sm:$0xf]  ;;  %v10089_v51 = vld [vmem:[%s13857_s11 + $0x978] sm:$0xf0] }
 0x434   : > { %8496 = vmatpush.bf16.msra.mxu3 %v10012_v6  ;;  %v8232_v34 = vadd.f32 %v8231_v30, %v15342_v45  ;;  %v8244_v6 = vpop.f32.mrf.mxu3  ;;  %v12325_v39 = vld [vmem:[%s13857_s11 + $0x98c] sm:$0xf]  ;;  %v10217_v52 = vld [vmem:[%s13857_s11 + $0xa78] sm:$0xf0] }
 0x435   : > { %8462 = vmatpush.bf16.msra.mxu0 %v9548_v18  ;;  %v10121_v18 = vld [vmem:[%s13857_s11 + $0x9b8] sm:$0xf0]  ;;  %v12357_v43 = vld [vmem:[%s13857_s11 + $0xa8c] sm:$0xf] }
 0x436   : > { %8475 = vmatpush.bf16.msra.mxu1 %v9676_v32  ;;  %v8245_v45 = vadd.f32 %v8244_v6, %v8232_v34  ;;  %v12393_v32 = vld [vmem:[%s13857_s11 + $0xbac] sm:$0xf]  ;;  %v10124_v36 = vor.u32 %v12329_v33, %v10121_v18  ;;  %v10236_v27 = vor.u32 %v12357_v43, %v10233_v41  ;;  %v10345_v1 = vld [vmem:[%s13857_s11 + $0xb78] sm:$0xf0] }
 0x437   : > { %8488 = vmatpush.bf16.msra.mxu2 %v9804_v35  ;;  %v10377_v35 = vld [vmem:[%s13857_s11 + $0xbb8] sm:$0xf0]  ;;  %v12353_v63 = vld [vmem:[%s13857_s11 + $0xa6c] sm:$0xf] }
 0x438   : > { %8497 = vmatpush.bf16.msra.mxu3 %v9996_v38  ;;  %v10380_v38 = vor.u32 %v12393_v32, %v10377_v35  ;;  %v12385_v40 = vld [vmem:[%s13857_s11 + $0xb6c] sm:$0xf]  ;;  %v10537_v30 = vld [vmem:[%s13857_s11 + $0xcf8] sm:$0xf0] }
 0x439   : > { %8463 = vmatpush.bf16.msra.mxu0 %v9532_v47  ;;  %v8257_v44 = vpop.f32.mrf.mxu0  ;;  %v12433_v3 = vld [vmem:[%s13857_s11 + $0xcec] sm:$0xf]  ;;  %v10348_v6 = vor.u32 %v12385_v40, %v10345_v1  ;;  %v10073_v7 = vld [vmem:[%s13857_s11 + $0x958] sm:$0xf0] }
 0x43a   : > { %8476 = vmatpush.bf16.msra.mxu1 %v9660_v42  ;;  %v8258_v47 = vadd.f32 %v8257_v44, %v8245_v45  ;;  %v8270_v48 = vpop.f32.mrf.mxu1  ;;  %v10108_v42 = vor.u32 %v12325_v39, %v10105_v31  ;;  %v12317_v28 = vld [vmem:[%s13857_s11 + $0x94c] sm:$0xf]  ;;  %v10201_v33 = vld [vmem:[%s13857_s11 + $0xa58] sm:$0xf0] }
 0x43b   : > { %8489 = vmatpush.bf16.msra.mxu2 %v9788_v53  ;;  %v8233_v49 = vpop.f32.mrf.mxu2  ;;  %v12277_v53 = vld [vmem:[%s13857_s11 + $0x80c] sm:$0xf]  ;;  %v10521_v32 = vld [vmem:[%s13857_s11 + $0xcd8] sm:$0xf0] }
 0x43c   : > { %8498 = vmatpush.bf16.msra.mxu3 %v9980_v62  ;;  %8464 = vmatmul.bf16.vlgmr.msra.gmra.mxu0 %v14009_v10  ;;  %v10252_v10 = vor.u32 %v12361_v2, %v10249_v19  ;;  %v9913_v62 = vld [vmem:[%s13857_s11 + $0x818] sm:$0xf0]  ;;  %v12381_v18 = vld [vmem:[%s13857_s11 + $0xb4c] sm:$0xf] }
 0x43d   : > { %8508 = vmatpush.bf16.msrb.mxu0 %v10156_v58  ;;  %8477 = vmatmul.bf16.vlgmr.msra.gmra.mxu1 %v14000_v4  ;;  %v12389_v4 = vld [vmem:[%s13857_s11 + $0xb8c] sm:$0xf]  ;;  %v8246_v58 = vpop.f32.mrf.mxu3  ;;  %v10329_v2 = vld [vmem:[%s13857_s11 + $0xb58] sm:$0xf0] }
 0x43e   : > { %8521 = vmatpush.bf16.msrb.mxu1 %v10284_v29  ;;  %8490 = vmatmul.bf16.vlgmr.msra.gmra.mxu2 %v14007_v9  ;;  %v9929_v9 = vld [vmem:[%s13857_s11 + $0x838] sm:$0xf0]  ;;  %v10364_v60 = vor.u32 %v12389_v4, %v10361_v46  ;;  %v15413_v29 = vadd.f32 %v8270_v48, %v8258_v47  ;;  %v12429_v19 = vld [vmem:[%s13857_s11 + $0xccc] sm:$0xf] }
 0x43f   : > { %8534 = vmatpush.bf16.msrb.mxu2 %v10412_v61  ;;  %v9932_v50 = vor.u32 %v12281_v37, %v9929_v9  ;;  %v12321_v61 = vld [vmem:[%s13857_s11 + $0x96c] sm:$0xf]  ;;  %v10332_v37 = vor.u32 %v12381_v18, %v10329_v2  ;;  %v10524_v39 = vor.u32 %v12429_v19, %v10521_v32  ;;  %v10185_v31 = vld [vmem:[%s13857_s11 + $0xa38] sm:$0xf0] }
 0x440   : > { %8499 = vmatpush.bf16.msra.mxu3 %v9964_v5  ;;  %v9916_v5 = vor.u32 %v12277_v53, %v9913_v62  ;;  %v10092_v34 = vor.u32 %v12321_v61, %v10089_v51  ;;  %v12313_v9 = vld [vmem:[%s13857_s11 + $0x92c] sm:$0xf]  ;;  %v10313_v44 = vld [vmem:[%s13857_s11 + $0xb38] sm:$0xf0] }
 0x441   : > { %8509 = vmatpush.bf16.msrb.mxu0 %v10140_v0  ;;  %v10220_v0 = vor.u32 %v12353_v63, %v10217_v52  ;;  %v8259_v45 = vpop.f32.mrf.mxu0  ;;  %v12377_v43 = vld [vmem:[%s13857_s11 + $0xb2c] sm:$0xf]  ;;  %v10505_v4 = vld [vmem:[%s13857_s11 + $0xcb8] sm:$0xf0] }
 0x442   : > { %8522 = vmatpush.bf16.msrb.mxu1 %v10268_v11  ;;  %v12349_v11 = vld [vmem:[%s13857_s11 + $0xa4c] sm:$0xf]  ;;  %v8272_v35 = vpop.f32.mrf.mxu1  ;;  %v10041_v48 = vld [vmem:[%s13857_s11 + $0x918] sm:$0xf0] }
 0x443   : > { %8535 = vmatpush.bf16.msrb.mxu2 %v10396_v16  ;;  %v10540_v16 = vor.u32 %v12433_v3, %v10537_v30  ;;  %v12425_v41 = vld [vmem:[%s13857_s11 + $0xcac] sm:$0xf]  ;;  %v10297_v58 = vld [vmem:[%s13857_s11 + $0xb18] sm:$0xf0] }
 0x444   : > { %8500 = vmatpush.bf16.msra.mxu3 %v9948_v8  ;;  %v10076_v8 = vor.u32 %v12317_v28, %v10073_v7  ;;  %v12309_v47 = vld [vmem:[%s13857_s11 + $0x90c] sm:$0xf]  ;;  %v10508_v62 = vor.u32 %v12425_v41, %v10505_v4  ;;  %v10665_v51 = vld [vmem:[%s13857_s11 + $0xdf8] sm:$0xf0] }
 0x445   : > { %8510 = vmatpush.bf16.msrb.mxu0 %v10124_v36  ;;  %v10204_v36 = vor.u32 %v12349_v11, %v10201_v33  ;;  %v12373_v53 = vld [vmem:[%s13857_s11 + $0xb0c] sm:$0xf]  ;;  %v10044_v52 = vor.u32 %v12309_v47, %v10041_v48  ;;  %v10793_v40 = vld [vmem:[%s13857_s11 + $0xef8] sm:$0xf0] }
 0x446   : > { %8523 = vmatpush.bf16.msrb.mxu1 %v10252_v10  ;;  %v10057_v10 = vld [vmem:[%s13857_s11 + $0x938] sm:$0xf0]  ;;  %v12465_v61 = vld [vmem:[%s13857_s11 + $0xdec] sm:$0xf] }
 0x447   : > { %8536 = vmatpush.bf16.msrb.mxu2 %v10380_v38  ;;  %v12345_v38 = vld [vmem:[%s13857_s11 + $0xa2c] sm:$0xf]  ;;  %v10060_v46 = vor.u32 %v12313_v9, %v10057_v10  ;;  %v10921_v3 = vld [vmem:[%s13857_s11 + $0xff8] sm:$0xf0] }
 0x448   : > { %8501 = vmatpush.bf16.msra.mxu3 %v9932_v50  ;;  %v10188_v49 = vor.u32 %v12345_v38, %v10185_v31  ;;  %v10316_v50 = vor.u32 %v12377_v43, %v10313_v44  ;;  %v12497_v63 = vld [vmem:[%s13857_s11 + $0xeec] sm:$0xf]  ;;  %v10473_v28 = vld [vmem:[%s13857_s11 + $0xc78] sm:$0xf0] }
 0x449   : > { %8511 = vmatpush.bf16.msrb.mxu0 %v10108_v42  ;;  %v10169_v42 = vld [vmem:[%s13857_s11 + $0xa18] sm:$0xf0]  ;;  %v12529_v1 = vld [vmem:[%s13857_s11 + $0xfec] sm:$0xf]  ;;  %v10796_v7 = vor.u32 %v12497_v63, %v10793_v40 }
 0x44a   : > { %8524 = vmatpush.bf16.msrb.mxu1 %v10236_v27  ;;  %v12421_v27 = vld [vmem:[%s13857_s11 + $0xc8c] sm:$0xf]  ;;  %v10924_v11 = vor.u32 %v12529_v1, %v10921_v3  ;;  %v10649_v33 = vld [vmem:[%s13857_s11 + $0xdd8] sm:$0xf0] }
 0x44b   : > { %8537 = vmatpush.bf16.msrb.mxu2 %v10364_v60  ;;  %v10489_v60 = vld [vmem:[%s13857_s11 + $0xc98] sm:$0xf0]  ;;  %v12493_v18 = vld [vmem:[%s13857_s11 + $0xecc] sm:$0xf] }
 0x44c   : > { %8502 = vmatpush.bf16.msra.mxu3 %v9916_v5  ;;  %v10300_v5 = vor.u32 %v12373_v53, %v10297_v58  ;;  %v10777_v2 = vld [vmem:[%s13857_s11 + $0xed8] sm:$0xf0]  ;;  %v12525_v45 = vld [vmem:[%s13857_s11 + $0xfcc] sm:$0xf] }
 0x44d   : > { %8512 = vmatpush.bf16.msrb.mxu0 %v10092_v34  ;;  %v10492_v34 = vor.u32 %v12421_v27, %v10489_v60  ;;  %v10905_v19 = vld [vmem:[%s13857_s11 + $0xfd8] sm:$0xf0]  ;;  %v12413_v9 = vld [vmem:[%s13857_s11 + $0xc4c] sm:$0xf]  ;;  %v10780_v38 = vor.u32 %v12493_v18, %v10777_v2 }
 0x44e   : > { %8525 = vmatpush.bf16.msrb.mxu1 %v10220_v0  ;;  %v10668_v0 = vor.u32 %v12465_v61, %v10665_v51  ;;  %v10457_v10 = vld [vmem:[%s13857_s11 + $0xc58] sm:$0xf0]  ;;  %v12457_v31 = vld [vmem:[%s13857_s11 + $0xdac] sm:$0xf] }
 0x44f   : > { %8538 = vmatpush.bf16.msrb.mxu2 %v10348_v6  ;;  %8503 = vmatmul.bf16.vlgmr.msra.gmra.mxu3 %v14095_v20  ;;  %v12341_v20 = vld [vmem:[%s13857_s11 + $0xa0c] sm:$0xf]  ;;  %v10633_v43 = vld [vmem:[%s13857_s11 + $0xdb8] sm:$0xf0]  ;;  %v10460_v47 = vor.u32 %v12413_v9, %v10457_v10 }
 0x450   : > { %8547 = vmatpush.bf16.msrb.mxu3 %v10540_v16  ;;  %v10172_v30 = vor.u32 %v12341_v20, %v10169_v42  ;;  %v12417_v6 = vld [vmem:[%s13857_s11 + $0xc6c] sm:$0xf]  ;;  %v10761_v41 = vld [vmem:[%s13857_s11 + $0xeb8] sm:$0xf0]  ;;  %v10636_v48 = vor.u32 %v12457_v31, %v10633_v43 }
 0x451   : > { %8513 = vmatpush.bf16.msrb.mxu0 %v10076_v8  ;;  %v12461_v16 = vld [vmem:[%s13857_s11 + $0xdcc] sm:$0xf]  ;;  %v8283_v32 = vpop.f32.mrf.mxu2  ;;  %v10476_v35 = vor.u32 %v12417_v6, %v10473_v28  ;;  %v10617_v42 = vld [vmem:[%s13857_s11 + $0xd98] sm:$0xf0] }
 0x452   : > { %8526 = vmatpush.bf16.msrb.mxu1 %v10204_v36  ;;  %v8284_v8 = vadd.f32 %v8283_v32, %v15413_v29  ;;  %v10652_v36 = vor.u32 %v12461_v16, %v10649_v33  ;;  %v12489_v44 = vld [vmem:[%s13857_s11 + $0xeac] sm:$0xf]  ;;  %v10745_v58 = vld [vmem:[%s13857_s11 + $0xe98] sm:$0xf0] }
 0x453   : > { %8539 = vmatpush.bf16.msrb.mxu2 %v10332_v37  ;;  %v8296_v37 = vpop.f32.mrf.mxu3  ;;  %v12521_v4 = vld [vmem:[%s13857_s11 + $0xfac] sm:$0xf]  ;;  %v10873_v27 = vld [vmem:[%s13857_s11 + $0xf98] sm:$0xf0] }
 0x454   : > { %8548 = vmatpush.bf16.msrb.mxu3 %v10524_v39  ;;  %v10908_v39 = vor.u32 %v12525_v45, %v10905_v19  ;;  %v8297_v29 = vadd.f32 %v8296_v37, %v8284_v8  ;;  %v12453_v20 = vld [vmem:[%s13857_s11 + $0xd8c] sm:$0xf]  ;;  %v10425_v1 = vld [vmem:[%s13857_s11 + $0xc18] sm:$0xf0] }
 0x455   : > { %8514 = vmatpush.bf16.msrb.mxu0 %v10060_v46  ;;  %v10889_v46 = vld [vmem:[%s13857_s11 + $0xfb8] sm:$0xf0]  ;;  %v12485_v53 = vld [vmem:[%s13857_s11 + $0xe8c] sm:$0xf] }
 0x456   : > { %8527 = vmatpush.bf16.msrb.mxu1 %v10188_v49  ;;  %v12409_v49 = vld [vmem:[%s13857_s11 + $0xc2c] sm:$0xf]  ;;  %v10601_v6 = vld [vmem:[%s13857_s11 + $0xd78] sm:$0xf0] }
 0x457   : > { %8540 = vmatpush.bf16.msrb.mxu2 %v10316_v50  ;;  %v10892_v50 = vor.u32 %v12521_v4, %v10889_v46  ;;  %v12405_v40 = vld [vmem:[%s13857_s11 + $0xc0c] sm:$0xf]  ;;  %v10857_v16 = vld [vmem:[%s13857_s11 + $0xf78] sm:$0xf0] }
 0x458   : > { %8549 = vmatpush.bf16.msrb.mxu3 %v10508_v62  ;;  %v12481_v28 = vld [vmem:[%s13857_s11 + $0xe6c] sm:$0xf]  ;;  %v11049_v18 = vld [vmem:[%s13857_s11 + $0x10f8] sm:$0xf0]  ;;  %v10428_v2 = vor.u32 %v12405_v40, %v10425_v1 }
 0x459   : > { %8515 = vmatpush.bf16.msrb.mxu0 %v10044_v52  ;;  %v8309_v62 = vpop.f32.mrf.mxu0  ;;  %v8285_v51 = vpop.f32.mrf.mxu2  ;;  %v10620_v52 = vor.u32 %v12453_v20, %v10617_v42  ;;  %v12561_v33 = vld [vmem:[%s13857_s11 + $0x10ec] sm:$0xf]  ;;  %v10585_v8 = vld [vmem:[%s13857_s11 + $0xd58] sm:$0xf0] }
 0x45a   : > { %8528 = vmatpush.bf16.msrb.mxu1 %v10172_v30  ;;  %v8310_v60 = vadd.f32 %v8309_v62, %v8297_v29  ;;  %v8322_v61 = vpop.f32.mrf.mxu1  ;;  %v10748_v30 = vor.u32 %v12485_v53, %v10745_v58  ;;  %v11052_v37 = vor.u32 %v12561_v33, %v11049_v18  ;;  %v10713_v9 = vld [vmem:[%s13857_s11 + $0xe58] sm:$0xf0]  ;;  %v12509_v10 = vld [vmem:[%s13857_s11 + $0xf4c] sm:$0xf] }
 0x45b   : > { %8541 = vmatpush.bf16.msrb.mxu2 %v10300_v5  ;;  %v8298_v3 = vpop.f32.mrf.mxu3  ;;  %v12557_v31 = vld [vmem:[%s13857_s11 + $0x10cc] sm:$0xf]  ;;  %v11033_v43 = vld [vmem:[%s13857_s11 + $0x10d8] sm:$0xf0] }
 0x45c   : > { %8550 = vmatpush.bf16.msrb.mxu3 %v10492_v34  ;;  %8516 = vmatmul.bf16.vlgmr.msrb.gmra.mxu0 %v14101_v24  ;;  %v10441_v24 = vld [vmem:[%s13857_s11 + $0xc38] sm:$0xf0]  ;;  %v15484_v34 = vadd.f32 %v8322_v61, %v8310_v60  ;;  %v12441_v46 = vld [vmem:[%s13857_s11 + $0xd2c] sm:$0xf] }
 0x45d   : > { %8560 = vmatpush.bf16.msra.mxu0 %v10668_v0  ;;  %8529 = vmatmul.bf16.vlgmr.msrb.gmra.mxu1 %v14099_v23  ;;  %v12517_v23 = vld [vmem:[%s13857_s11 + $0xf8c] sm:$0xf]  ;;  %v10444_v63 = vor.u32 %v12409_v49, %v10441_v24  ;;  %v11036_v49 = vor.u32 %v12557_v31, %v11033_v43  ;;  %v10697_v24 = vld [vmem:[%s13857_s11 + $0xe38] sm:$0xf0] }
 0x45e   : > { %8573 = vmatpush.bf16.msra.mxu1 %v10796_v7  ;;  %8542 = vmatmul.bf16.vlgmr.msrb.gmra.mxu2 %v14103_v25  ;;  %v10764_v25 = vor.u32 %v12489_v44, %v10761_v41  ;;  %v10876_v5 = vor.u32 %v12517_v23, %v10873_v27  ;;  %v12449_v0 = vld [vmem:[%s13857_s11 + $0xd6c] sm:$0xf]  ;;  %v10729_v7 = vld [vmem:[%s13857_s11 + $0xe78] sm:$0xf0] }
 0x45f   : > { %8586 = vmatpush.bf16.msra.mxu2 %v10924_v11  ;;  %v12513_v11 = vld [vmem:[%s13857_s11 + $0xf6c] sm:$0xf]  ;;  %v10604_v45 = vor.u32 %v12449_v0, %v10601_v6  ;;  %v10732_v19 = vor.u32 %v12481_v28, %v10729_v7  ;;  %v11017_v42 = vld [vmem:[%s13857_s11 + $0x10b8] sm:$0xf0] }
 0x460   : > { %8551 = vmatpush.bf16.msrb.mxu3 %v10476_v35  ;;  %v10860_v32 = vor.u32 %v12513_v11, %v10857_v16  ;;  %v12445_v35 = vld [vmem:[%s13857_s11 + $0xd4c] sm:$0xf]  ;;  %v10553_v58 = vld [vmem:[%s13857_s11 + $0xd18] sm:$0xf0] }
 0x461   : > { %8561 = vmatpush.bf16.msra.mxu0 %v10652_v36  ;;  %v12477_v36 = vld [vmem:[%s13857_s11 + $0xe4c] sm:$0xf]  ;;  %v10588_v29 = vor.u32 %v12445_v35, %v10585_v8  ;;  %v10681_v60 = vld [vmem:[%s13857_s11 + $0xe18] sm:$0xf0] }
 0x462   : > { %8574 = vmatpush.bf16.msra.mxu1 %v10780_v38  ;;  %v10841_v38 = vld [vmem:[%s13857_s11 + $0xf58] sm:$0xf0]  ;;  %v8324_v44 = vpop.f32.mrf.mxu1  ;;  %v10716_v41 = vor.u32 %v12477_v36, %v10713_v9  ;;  %v12553_v20 = vld [vmem:[%s13857_s11 + $0x10ac] sm:$0xf] }
 0x463   : > { %8587 = vmatpush.bf16.msra.mxu2 %v10908_v39  ;;  %v8311_v39 = vpop.f32.mrf.mxu0  ;;  %v10844_v4 = vor.u32 %v12509_v10, %v10841_v38  ;;  %v12437_v62 = vld [vmem:[%s13857_s11 + $0xd0c] sm:$0xf]  ;;  %v11020_v51 = vor.u32 %v12553_v20, %v11017_v42  ;;  %v11001_v40 = vld [vmem:[%s13857_s11 + $0x1098] sm:$0xf0] }
 0x464   : > { %8552 = vmatpush.bf16.msrb.mxu3 %v10460_v47  ;;  %v10569_v47 = vld [vmem:[%s13857_s11 + $0xd38] sm:$0xf0]  ;;  %v12501_v61 = vld [vmem:[%s13857_s11 + $0xf0c] sm:$0xf] }
 0x465   : > { %8562 = vmatpush.bf16.msra.mxu0 %v10636_v48  ;;  %v12473_v48 = vld [vmem:[%s13857_s11 + $0xe2c] sm:$0xf]  ;;  %v10572_v53 = vor.u32 %v12441_v46, %v10569_v47  ;;  %v11177_v3 = vld [vmem:[%s13857_s11 + $0x11f8] sm:$0xf0] }
 0x466   : > { %8575 = vmatpush.bf16.msra.mxu1 %v10764_v25  ;;  %v12505_v25 = vld [vmem:[%s13857_s11 + $0xf2c] sm:$0xf]  ;;  %v10700_v23 = vor.u32 %v12473_v48, %v10697_v24  ;;  %v11305_v0 = vld [vmem:[%s13857_s11 + $0x12f8] sm:$0xf0] }
 0x467   : > { %8588 = vmatpush.bf16.msra.mxu2 %v10892_v50  ;;  %v10825_v50 = vld [vmem:[%s13857_s11 + $0xf38] sm:$0xf0]  ;;  %v12593_v1 = vld [vmem:[%s13857_s11 + $0x11ec] sm:$0xf] }
 0x468   : > { %8553 = vmatpush.bf16.msrb.mxu3 %v10444_v63  ;;  %v10828_v27 = vor.u32 %v12505_v25, %v10825_v50  ;;  %v10809_v63 = vld [vmem:[%s13857_s11 + $0xf18] sm:$0xf0]  ;;  %v12657_v6 = vld [vmem:[%s13857_s11 + $0x13ec] sm:$0xf]  ;;  %v11180_v33 = vor.u32 %v12593_v1, %v11177_v3 }
 0x469   : > { %8563 = vmatpush.bf16.msra.mxu0 %v10620_v52  ;;  %v12549_v52 = vld [vmem:[%s13857_s11 + $0x108c] sm:$0xf]  ;;  %v11433_v28 = vld [vmem:[%s13857_s11 + $0x13f8] sm:$0xf0]  ;;  %v10812_v11 = vor.u32 %v12501_v61, %v10809_v63 }
 0x46a   : > { %8576 = vmatpush.bf16.msra.mxu1 %v10748_v30  ;;  %v12625_v30 = vld [vmem:[%s13857_s11 + $0x12ec] sm:$0xf]  ;;  %v11004_v16 = vor.u32 %v12549_v52, %v11001_v40  ;;  %v11161_v35 = vld [vmem:[%s13857_s11 + $0x11d8] sm:$0xf0] }
 0x46b   : > { %8589 = vmatpush.bf16.msra.mxu2 %v10876_v5  ;;  %v10556_v5 = vor.u32 %v12437_v62, %v10553_v58  ;;  %v12545_v18 = vld [vmem:[%s13857_s11 + $0x106c] sm:$0xf]  ;;  %v11289_v36 = vld [vmem:[%s13857_s11 + $0x12d8] sm:$0xf0] }
 0x46c   : > { %8554 = vmatpush.bf16.msrb.mxu3 %v10428_v2  ;;  %v10985_v2 = vld [vmem:[%s13857_s11 + $0x1078] sm:$0xf0]  ;;  %v12621_v8 = vld [vmem:[%s13857_s11 + $0x12cc] sm:$0xf] }
 0x46d   : > { %8564 = vmatpush.bf16.msra.mxu0 %v10604_v45  ;;  %v11308_v45 = vor.u32 %v12625_v30, %v11305_v0  ;;  %v11417_v9 = vld [vmem:[%s13857_s11 + $0x13d8] sm:$0xf0]  ;;  %v10988_v38 = vor.u32 %v12545_v18, %v10985_v2  ;;  %v12541_v44 = vld [vmem:[%s13857_s11 + $0x104c] sm:$0xf] }
 0x46e   : > { %8577 = vmatpush.bf16.msra.mxu1 %v10732_v19  ;;  %v11436_v19 = vor.u32 %v12657_v6, %v11433_v28  ;;  %v12585_v46 = vld [vmem:[%s13857_s11 + $0x11ac] sm:$0xf]  ;;  %v11145_v47 = vld [vmem:[%s13857_s11 + $0x11b8] sm:$0xf0] }
 0x46f   : > { %8590 = vmatpush.bf16.msra.mxu2 %v10860_v32  ;;  %8555 = vmatmul.bf16.vlgmr.msrb.gmra.mxu3 %v14161_v54  ;;  %v12469_v54 = vld [vmem:[%s13857_s11 + $0xe0c] sm:$0xf]  ;;  %v11401_v25 = vld [vmem:[%s13857_s11 + $0x13b8] sm:$0xf0]  ;;  %v11148_v20 = vor.u32 %v12585_v46, %v11145_v47 }
 0x470   : > { %8599 = vmatpush.bf16.msra.mxu3 %v11052_v37  ;;  %v10684_v7 = vor.u32 %v12469_v54, %v10681_v60  ;;  %v12589_v32 = vld [vmem:[%s13857_s11 + $0x11cc] sm:$0xf]  ;;  %v11129_v58 = vld [vmem:[%s13857_s11 + $0x1198] sm:$0xf0] }
 0x471   : > { %8565 = vmatpush.bf16.msra.mxu0 %v10588_v29  ;;  %v12653_v37 = vld [vmem:[%s13857_s11 + $0x13cc] sm:$0xf]  ;;  %v8335_v10 = vpop.f32.mrf.mxu2  ;;  %v11164_v31 = vor.u32 %v12589_v32, %v11161_v35  ;;  %v10969_v29 = vld [vmem:[%s13857_s11 + $0x1058] sm:$0xf0] }
 0x472   : > { %8578 = vmatpush.bf16.msra.mxu1 %v10716_v41  ;;  %v8336_v39 = vadd.f32 %v8335_v10, %v15484_v34  ;;  %v8348_v43 = vpop.f32.mrf.mxu3  ;;  %v11292_v41 = vor.u32 %v12621_v8, %v11289_v36  ;;  %v12617_v48 = vld [vmem:[%s13857_s11 + $0x12ac] sm:$0xf]  ;;  %v10972_v50 = vor.u32 %v12541_v44, %v10969_v29  ;;  %v11385_v60 = vld [vmem:[%s13857_s11 + $0x1398] sm:$0xf0] }
 0x473   : > { %8591 = vmatpush.bf16.msra.mxu2 %v10844_v4  ;;  %v11420_v4 = vor.u32 %v12653_v37, %v11417_v9  ;;  %v12649_v24 = vld [vmem:[%s13857_s11 + $0x13ac] sm:$0xf]  ;;  %v10937_v3 = vld [vmem:[%s13857_s11 + $0x1018] sm:$0xf0] }
 0x474   : > { %8600 = vmatpush.bf16.msra.mxu3 %v11036_v49  ;;  %v8349_v34 = vadd.f32 %v8348_v43, %v8336_v39  ;;  %v11273_v49 = vld [vmem:[%s13857_s11 + $0x12b8] sm:$0xf0]  ;;  %v12537_v42 = vld [vmem:[%s13857_s11 + $0x102c] sm:$0xf] }
 0x475   : > { %8566 = vmatpush.bf16.msra.mxu0 %v10572_v53  ;;  %v11404_v53 = vor.u32 %v12649_v24, %v11401_v25  ;;  %v12581_v62 = vld [vmem:[%s13857_s11 + $0x118c] sm:$0xf]  ;;  %v11113_v28 = vld [vmem:[%s13857_s11 + $0x1178] sm:$0xf0] }
 0x476   : > { %8579 = vmatpush.bf16.msra.mxu1 %v10700_v23  ;;  %v12613_v23 = vld [vmem:[%s13857_s11 + $0x128c] sm:$0xf]  ;;  %v11132_v52 = vor.u32 %v12581_v62, %v11129_v58  ;;  %v11369_v18 = vld [vmem:[%s13857_s11 + $0x1378] sm:$0xf0] }
 0x477   : > { %8592 = vmatpush.bf16.msra.mxu2 %v10828_v27  ;;  %v11257_v27 = vld [vmem:[%s13857_s11 + $0x1298] sm:$0xf0]  ;;  %v12645_v54 = vld [vmem:[%s13857_s11 + $0x138c] sm:$0xf] }
 0x478   : > { %8601 = vmatpush.bf16.msra.mxu3 %v11020_v51  ;;  %v12533_v1 = vld [vmem:[%s13857_s11 + $0x100c] sm:$0xf]  ;;  %v11388_v0 = vor.u32 %v12645_v54, %v11385_v60  ;;  %v11097_v37 = vld [vmem:[%s13857_s11 + $0x1158] sm:$0xf0] }
 0x479   : > { %8567 = vmatpush.bf16.msra.mxu0 %v10556_v5  ;;  %v8337_v61 = vpop.f32.mrf.mxu2  ;;  %v11260_v5 = vor.u32 %v12613_v23, %v11257_v27  ;;  %v12577_v6 = vld [vmem:[%s13857_s11 + $0x116c] sm:$0xf]  ;;  %v11545_v44 = vld [vmem:[%s13857_s11 + $0x14d8] sm:$0xf0] }
 0x47a   : > { %8580 = vmatpush.bf16.msra.mxu1 %v10684_v7  ;;  %v8374_v40 = vpop.f32.mrf.mxu1  ;;  %v8350_v30 = vpop.f32.mrf.mxu3  ;;  %v12609_v7 = vld [vmem:[%s13857_s11 + $0x126c] sm:$0xf]  ;;  %v11116_v32 = vor.u32 %v12577_v6, %v11113_v28  ;;  %v11065_v23 = vld [vmem:[%s13857_s11 + $0x1118] sm:$0xf0] }
 0x47b   : > { %8593 = vmatpush.bf16.msra.mxu2 %v10812_v11  ;;  %v12689_v2 = vld [vmem:[%s13857_s11 + $0x14ec] sm:$0xf]  ;;  %v11193_v60 = vld [vmem:[%s13857_s11 + $0x1218] sm:$0xf0] }
 0x47c   : > { %8602 = vmatpush.bf16.msra.mxu3 %v11004_v16  ;;  %8568 = vmatmul.bf16.vlgmr.msra.gmra.mxu0 %v14165_v56  ;;  %v10953_v56 = vld [vmem:[%s13857_s11 + $0x1038] sm:$0xf0]  ;;  %v12573_v36 = vld [vmem:[%s13857_s11 + $0x114c] sm:$0xf] }
 0x47d   : > { %8612 = vmatpush.bf16.msrb.mxu0 %v11180_v33  ;;  %8581 = vmatmul.bf16.vlgmr.msra.gmra.mxu1 %v14163_v55  ;;  %v8361_v55 = vpop.f32.mrf.mxu0  ;;  %v10956_v63 = vor.u32 %v12537_v42, %v10953_v56  ;;  %v11241_v16 = vld [vmem:[%s13857_s11 + $0x1278] sm:$0xf0]  ;;  %v12641_v33 = vld [vmem:[%s13857_s11 + $0x136c] sm:$0xf] }
 0x47e   : > { %8625 = vmatpush.bf16.msrb.mxu1 %v11308_v45  ;;  %8594 = vmatmul.bf16.vlgmr.msra.gmra.mxu2 %v14167_v57  ;;  %v11276_v57 = vor.u32 %v12617_v48, %v11273_v49  ;;  %v8362_v51 = vadd.f32 %v8361_v55, %v8349_v34  ;;  %v11561_v45 = vld [vmem:[%s13857_s11 + $0x14f8] sm:$0xf0]  ;;  %v11244_v35 = vor.u32 %v12609_v7, %v11241_v16  ;;  %v12605_v9 = vld [vmem:[%s13857_s11 + $0x124c] sm:$0xf] }
 0x47f   : > { %8638 = vmatpush.bf16.msrb.mxu2 %v11436_v19  ;;  %v10940_v19 = vor.u32 %v12533_v1, %v10937_v3  ;;  %v11372_v8 = vor.u32 %v12641_v33, %v11369_v18  ;;  %v11564_v10 = vor.u32 %v12689_v2, %v11561_v45  ;;  %v12637_v39 = vld [vmem:[%s13857_s11 + $0x134c] sm:$0xf]  ;;  %v11081_v49 = vld [vmem:[%s13857_s11 + $0x1138] sm:$0xf0] }
 0x480   : > { %8603 = vmatpush.bf16.msra.mxu3 %v10988_v38  ;;  %v8375_v11 = vadd.f32 %v8374_v40, %v8362_v51  ;;  %v11225_v38 = vld [vmem:[%s13857_s11 + $0x1258] sm:$0xf0]  ;;  %v12685_v43 = vld [vmem:[%s13857_s11 + $0x14cc] sm:$0xf] }
 0x481   : > { %8613 = vmatpush.bf16.msrb.mxu0 %v11164_v31  ;;  %v11353_v31 = vld [vmem:[%s13857_s11 + $0x1358] sm:$0xf0]  ;;  %v8387_v46 = vpop.f32.mrf.mxu2  ;;  %v11228_v47 = vor.u32 %v12605_v9, %v11225_v38  ;;  %v12569_v34 = vld [vmem:[%s13857_s11 + $0x112c] sm:$0xf] }
 0x482   : > { %8626 = vmatpush.bf16.msrb.mxu1 %v11292_v41  ;;  %v11100_v41 = vor.u32 %v12573_v36, %v11097_v37  ;;  %v11356_v48 = vor.u32 %v12637_v39, %v11353_v31  ;;  %v12601_v24 = vld [vmem:[%s13857_s11 + $0x122c] sm:$0xf]  ;;  %v15574_v25 = vadd.f32 %v8387_v46, %v8375_v11  ;;  %v11337_v56 = vld [vmem:[%s13857_s11 + $0x1338] sm:$0xf0]  ;;  %v11084_v62 = vor.u32 %v12569_v34, %v11081_v49 }
 0x483   : > { %8639 = vmatpush.bf16.msrb.mxu2 %v11420_v4  ;;  %v8376_v4 = vpop.f32.mrf.mxu1  ;;  %v12633_v42 = vld [vmem:[%s13857_s11 + $0x132c] sm:$0xf]  ;;  %v11321_v51 = vld [vmem:[%s13857_s11 + $0x1318] sm:$0xf0] }
 0x484   : > { %8604 = vmatpush.bf16.msra.mxu3 %v10972_v50  ;;  %v11548_v50 = vor.u32 %v12685_v43, %v11545_v44  ;;  %v12565_v58 = vld [vmem:[%s13857_s11 + $0x110c] sm:$0xf]  ;;  %v11340_v54 = vor.u32 %v12633_v42, %v11337_v56  ;;  %v11689_v1 = vld [vmem:[%s13857_s11 + $0x15f8] sm:$0xf0]  ;;  %v12882_v43 = vld [vmem:[%s14299_s27] sm:$0xf] }
 0x485   : > { %8614 = vmatpush.bf16.msrb.mxu0 %v11148_v20  ;;  %v8363_v29 = vpop.f32.mrf.mxu0  ;;  %v11209_v20 = vld [vmem:[%s13857_s11 + $0x1238] sm:$0xf0]  ;;  %v12629_v55 = vld [vmem:[%s13857_s11 + $0x130c] sm:$0xf]  ;;  %v11068_v30 = vor.u32 %v12565_v58, %v11065_v23  ;;  %v3431_v44 = vperm.slane %v12882_v43, 3 }
 0x486   : > { %8627 = vmatpush.bf16.msrb.mxu1 %v11276_v57  ;;  %v12681_v57 = vld [vmem:[%s13857_s11 + $0x14ac] sm:$0xf]  ;;  %v11212_v27 = vor.u32 %v12601_v24, %v11209_v20  ;;  %v11945_v6 = vld [vmem:[%s13857_s11 + $0x17f8] sm:$0xf0]  ;;  %v11324_v7 = vor.u32 %v12629_v55, %v11321_v51 }
 0x487   : > { %8640 = vmatpush.bf16.msrb.mxu2 %v11404_v53  ;;  %v11529_v53 = vld [vmem:[%s13857_s11 + $0x14b8] sm:$0xf0]  ;;  %v12721_v40 = vld [vmem:[%s13857_s11 + $0x15ec] sm:$0xf] }
 0x488   : > { %8605 = vmatpush.bf16.msra.mxu3 %v10956_v63  ;;  %v11532_v61 = vor.u32 %v12681_v57, %v11529_v53  ;;  %v12677_v63 = vld [vmem:[%s13857_s11 + $0x148c] sm:$0xf]  ;;  %v11692_v33 = vor.u32 %v12721_v40, %v11689_v1  ;;  %v11497_v2 = vld [vmem:[%s13857_s11 + $0x1478] sm:$0xf0] }
 0x489   : > { %8615 = vmatpush.bf16.msrb.mxu0 %v11132_v52  ;;  %v11513_v52 = vld [vmem:[%s13857_s11 + $0x1498] sm:$0xf0]  ;;  %v12753_v3 = vld [vmem:[%s13857_s11 + $0x16ec] sm:$0xf]  ;;  %v8389_v11 = vpop.f32.mrf.mxu2 }
 0x48a   : > { %8628 = vmatpush.bf16.msrb.mxu1 %v11260_v5  ;;  %v11817_v5 = vld [vmem:[%s13857_s11 + $0x16f8] sm:$0xf0]  ;;  %v11516_v16 = vor.u32 %v12677_v63, %v11513_v52  ;;  %v12673_v18 = vld [vmem:[%s13857_s11 + $0x146c] sm:$0xf] }
 0x48b   : > { %8641 = vmatpush.bf16.msrb.mxu2 %v11388_v0  ;;  %v12785_v0 = vld [vmem:[%s13857_s11 + $0x17ec] sm:$0xf]  ;;  %v11820_v45 = vor.u32 %v12753_v3, %v11817_v5  ;;  %v11801_v36 = vld [vmem:[%s13857_s11 + $0x16d8] sm:$0xf0] }
 0x48c   : > { %8606 = vmatpush.bf16.msra.mxu3 %v10940_v19  ;;  %v11948_v19 = vor.u32 %v12785_v0, %v11945_v6  ;;  %v12781_v37 = vld [vmem:[%s13857_s11 + $0x17cc] sm:$0xf]  ;;  %v11929_v9 = vld [vmem:[%s13857_s11 + $0x17d8] sm:$0xf0] }
 0x48d   : > { %8616 = vmatpush.bf16.msrb.mxu0 %v11116_v32  ;;  %v12717_v32 = vld [vmem:[%s13857_s11 + $0x15cc] sm:$0xf]  ;;  %v11481_v31 = vld [vmem:[%s13857_s11 + $0x1458] sm:$0xf0]  ;;  %v11932_v4 = vor.u32 %v12781_v37, %v11929_v9 }
 0x48e   : > { %8629 = vmatpush.bf16.msrb.mxu1 %v11244_v35  ;;  %v11673_v35 = vld [vmem:[%s13857_s11 + $0x15d8] sm:$0xf0]  ;;  %v12669_v39 = vld [vmem:[%s13857_s11 + $0x144c] sm:$0xf] }
 0x48f   : > { %8642 = vmatpush.bf16.msrb.mxu2 %v11372_v8  ;;  %8607 = vmatmul.bf16.vlgmr.msra.gmra.mxu3 %v14251_v17  ;;  %v12597_v17 = vld [vmem:[%s13857_s11 + $0x120c] sm:$0xf]  ;;  %v11676_v38 = vor.u32 %v12717_v32, %v11673_v35  ;;  %v11785_v34 = vld [vmem:[%s13857_s11 + $0x16b8] sm:$0xf0] }
 0x490   : > { %8651 = vmatpush.bf16.msrb.mxu3 %v11564_v10  ;;  %v11196_v28 = vor.u32 %v12597_v17, %v11193_v60  ;;  %v12749_v8 = vld [vmem:[%s13857_s11 + $0x16cc] sm:$0xf]  ;;  %v11500_v10 = vor.u32 %v12673_v18, %v11497_v2  ;;  %v11913_v24 = vld [vmem:[%s13857_s11 + $0x17b8] sm:$0xf0] }
 0x491   : > { %8617 = vmatpush.bf16.msrb.mxu0 %v11100_v41  ;;  %v11804_v41 = vor.u32 %v12749_v8, %v11801_v36  ;;  %v12713_v46 = vld [vmem:[%s13857_s11 + $0x15ac] sm:$0xf]  ;;  %v11465_v56 = vld [vmem:[%s13857_s11 + $0x1438] sm:$0xf0] }
 0x492   : > { %8630 = vmatpush.bf16.msrb.mxu1 %v11228_v47  ;;  %v8400_v29 = vpop.f32.mrf.mxu3  ;;  %v11657_v47 = vld [vmem:[%s13857_s11 + $0x15b8] sm:$0xf0]  ;;  %v12777_v49 = vld [vmem:[%s13857_s11 + $0x17ac] sm:$0xf] }
 0x493   : > { %8643 = vmatpush.bf16.msrb.mxu2 %v11356_v48  ;;  %v12745_v48 = vld [vmem:[%s13857_s11 + $0x16ac] sm:$0xf]  ;;  %v11660_v20 = vor.u32 %v12713_v46, %v11657_v47  ;;  %v11916_v57 = vor.u32 %v12777_v49, %v11913_v24  ;;  %v11769_v23 = vld [vmem:[%s13857_s11 + $0x1698] sm:$0xf0] }
 0x494   : > { %8652 = vmatpush.bf16.msrb.mxu3 %v11548_v50  ;;  %v11484_v50 = vor.u32 %v12669_v39, %v11481_v31  ;;  %v12665_v42 = vld [vmem:[%s13857_s11 + $0x142c] sm:$0xf]  ;;  %v11753_v0 = vld [vmem:[%s13857_s11 + $0x1678] sm:$0xf0] }
 0x495   : > { %8618 = vmatpush.bf16.msrb.mxu0 %v11084_v62  ;;  %v12709_v53 = vld [vmem:[%s13857_s11 + $0x158c] sm:$0xf]  ;;  %v11641_v62 = vld [vmem:[%s13857_s11 + $0x1598] sm:$0xf0]  ;;  %v11468_v17 = vor.u32 %v12665_v42, %v11465_v56 }
 0x496   : > { %8631 = vmatpush.bf16.msrb.mxu1 %v11212_v27  ;;  %v12741_v58 = vld [vmem:[%s13857_s11 + $0x168c] sm:$0xf]  ;;  %v11897_v27 = vld [vmem:[%s13857_s11 + $0x1798] sm:$0xf0]  ;;  %v11644_v60 = vor.u32 %v12709_v53, %v11641_v62 }
 0x497   : > { %8644 = vmatpush.bf16.msrb.mxu2 %v11340_v54  ;;  %v12661_v55 = vld [vmem:[%s13857_s11 + $0x140c] sm:$0xf]  ;;  %v11772_v40 = vor.u32 %v12741_v58, %v11769_v23  ;;  %v11609_v32 = vld [vmem:[%s13857_s11 + $0x1558] sm:$0xf0] }
 0x498   : > { %8653 = vmatpush.bf16.msrb.mxu3 %v11532_v61  ;;  %v11449_v61 = vld [vmem:[%s13857_s11 + $0x1418] sm:$0xf0]  ;;  %v12705_v3 = vld [vmem:[%s13857_s11 + $0x156c] sm:$0xf] }
 0x499   : > { %8619 = vmatpush.bf16.msrb.mxu0 %v11068_v30  ;;  %v8413_v54 = vpop.f32.mrf.mxu0  ;;  %v11625_v30 = vld [vmem:[%s13857_s11 + $0x1578] sm:$0xf0]  ;;  %v12737_v5 = vld [vmem:[%s13857_s11 + $0x166c] sm:$0xf] }
 0x49a   : > { %8632 = vmatpush.bf16.msrb.mxu1 %v11196_v28  ;;  %v8426_v63 = vpop.f32.mrf.mxu1  ;;  %v8402_v52 = vpop.f32.mrf.mxu3  ;;  %v12769_v6 = vld [vmem:[%s13857_s11 + $0x176c] sm:$0xf]  ;;  %v11881_v28 = vld [vmem:[%s13857_s11 + $0x1778] sm:$0xf0]  ;;  %v11628_v18 = vor.u32 %v12705_v3, %v11625_v30  ;;  %v11756_v2 = vor.u32 %v12737_v5, %v11753_v0 }
 0x49b   : > { %8645 = vmatpush.bf16.msrb.mxu2 %v11324_v7  ;;  %v12801_v11 = vld [vmem:[%s13857_s11 + $0x186c] sm:$0xf]  ;;  %v11737_v37 = vld [vmem:[%s13857_s11 + $0x1658] sm:$0xf0] }
 0x49c   : > { %8654 = vmatpush.bf16.msrb.mxu3 %v11516_v16  ;;  %8620 = vmatmul.bf16.vlgmr.msrb.gmra.mxu0 %v14263_v22  ;;  %v8401_v22 = vadd.f32 %v8400_v29, %v3431_v44  ;;  %v12009_v16 = vld [vmem:[%s13857_s11 + $0x1878] sm:$0xf0]  ;;  %v12733_v35 = vld [vmem:[%s13857_s11 + $0x164c] sm:$0xf] }
 0x49d   : > { %8664 = vmatpush.bf16.msra.mxu0 %v11692_v33  ;;  %8633 = vmatmul.bf16.vlgmr.msrb.gmra.mxu1 %v14261_v21  ;;  %v12773_v21 = vld [vmem:[%s13857_s11 + $0x178c] sm:$0xf]  ;;  %v11452_v33 = vor.u32 %v12661_v55, %v11449_v61  ;;  %v12012_v36 = vor.u32 %v12801_v11, %v12009_v16  ;;  %v11993_v31 = vld [vmem:[%s13857_s11 + $0x1858] sm:$0xf0] }
 0x49e   : > { %8677 = vmatpush.bf16.msra.mxu1 %v11820_v45  ;;  %8646 = vmatmul.bf16.vlgmr.msrb.gmra.mxu2 %v14265_v26  ;;  %v11788_v26 = vor.u32 %v12745_v48, %v11785_v34  ;;  %v8414_v51 = vadd.f32 %v8413_v54, %v8401_v22  ;;  %v11900_v1 = vor.u32 %v12773_v21, %v11897_v27  ;;  %v12765_v9 = vld [vmem:[%s13857_s11 + $0x174c] sm:$0xf]  ;;  %v11593_v47 = vld [vmem:[%s13857_s11 + $0x1538] sm:$0xf0] }
 0x49f   : > { %8690 = vmatpush.bf16.msra.mxu2 %v11948_v19  ;;  %v11884_v45 = vor.u32 %v12769_v6, %v11881_v28  ;;  %v12701_v19 = vld [vmem:[%s13857_s11 + $0x154c] sm:$0xf]  ;;  %v11721_v49 = vld [vmem:[%s13857_s11 + $0x1638] sm:$0xf0] }
 0x4a0   : > { %8655 = vmatpush.bf16.msrb.mxu3 %v11500_v10  ;;  %v8427_v7 = vadd.f32 %v8426_v63, %v8414_v51  ;;  %v11865_v10 = vld [vmem:[%s13857_s11 + $0x1758] sm:$0xf0]  ;;  %v12797_v39 = vld [vmem:[%s13857_s11 + $0x184c] sm:$0xf]  ;;  %v11612_v44 = vor.u32 %v12701_v19, %v11609_v32 }
 0x4a1   : > { %8665 = vmatpush.bf16.msra.mxu0 %v11676_v38  ;;  %v8439_v8 = vpop.f32.mrf.mxu2  ;;  %v8415_v43 = vpop.f32.mrf.mxu0  ;;  %v12697_v46 = vld [vmem:[%s13857_s11 + $0x152c] sm:$0xf]  ;;  %v11996_v34 = vor.u32 %v12797_v39, %v11993_v31  ;;  %v11977_v42 = vld [vmem:[%s13857_s11 + $0x1838] sm:$0xf0] }
 0x4a2   : > { %8678 = vmatpush.bf16.msra.mxu1 %v11804_v41  ;;  %v8440_v38 = vadd.f32 %v8439_v8, %v8427_v7  ;;  %v8428_v29 = vpop.f32.mrf.mxu1  ;;  %v11740_v41 = vor.u32 %v12733_v35, %v11737_v37  ;;  %v12729_v48 = vld [vmem:[%s13857_s11 + $0x162c] sm:$0xf]  ;;  %v11596_v56 = vor.u32 %v12697_v46, %v11593_v47  ;;  %v11577_v53 = vld [vmem:[%s13857_s11 + $0x1518] sm:$0xf0] }
 0x4a3   : > { %8691 = vmatpush.bf16.msra.mxu2 %v11932_v4  ;;  %v11868_v4 = vor.u32 %v12765_v9, %v11865_v10  ;;  %v12761_v24 = vld [vmem:[%s13857_s11 + $0x172c] sm:$0xf]  ;;  %v11724_v22 = vor.u32 %v12729_v48, %v11721_v49  ;;  %v11705_v21 = vld [vmem:[%s13857_s11 + $0x1618] sm:$0xf0] }
 0x4a4   : > { %8656 = vmatpush.bf16.msrb.mxu3 %v11484_v50  ;;  %v11849_v50 = vld [vmem:[%s13857_s11 + $0x1738] sm:$0xf0]  ;;  %v12725_v62 = vld [vmem:[%s13857_s11 + $0x160c] sm:$0xf] }
 0x4a5   : > { %8666 = vmatpush.bf16.msra.mxu0 %v11660_v20  ;;  %v12793_v20 = vld [vmem:[%s13857_s11 + $0x182c] sm:$0xf]  ;;  %v11833_v27 = vld [vmem:[%s13857_s11 + $0x1718] sm:$0xf0]  ;;  %v11708_v55 = vor.u32 %v12725_v62, %v11705_v21 }
 0x4a6   : > { %8679 = vmatpush.bf16.msra.mxu1 %v11788_v26  ;;  %v11852_v26 = vor.u32 %v12761_v24, %v11849_v50  ;;  %v11980_v23 = vor.u32 %v12793_v20, %v11977_v42  ;;  %v12789_v54 = vld [vmem:[%s13857_s11 + $0x180c] sm:$0xf] }
 0x4a7   : > { %8692 = vmatpush.bf16.msra.mxu2 %v11916_v57  ;;  %v12693_v57 = vld [vmem:[%s13857_s11 + $0x150c] sm:$0xf] }
 0x4a8   : > { %8657 = vmatpush.bf16.msrb.mxu3 %v11468_v17  ;;  %v11961_v17 = vld [vmem:[%s13857_s11 + $0x1818] sm:$0xf0] }
 0x4a9   : > { %8667 = vmatpush.bf16.msra.mxu0 %v11644_v60  ;;  %v8441_v58 = vpop.f32.mrf.mxu2  ;;  %v11580_v60 = vor.u32 %v12693_v57, %v11577_v53  ;;  %v11964_v51 = vor.u32 %v12789_v54, %v11961_v17 }
 0x4aa   : > { %8680 = vmatpush.bf16.msra.mxu1 %v11772_v40  ;;  %v12883_v40 = vld [vmem:[#allocation1] sm:$0xff] }
 0x4ab   : > { %8693 = vmatpush.bf16.msra.mxu2 %v11900_v1 }
 0x4ac   : > { %8658 = vmatpush.bf16.msrb.mxu3 %v11452_v33 }
 0x4ad   : > { %8668 = vmatpush.bf16.msra.mxu0 %v11628_v18 }
 0x4ae   : > { %8681 = vmatpush.bf16.msra.mxu1 %v11756_v2 }
 0x4af   : > { %8694 = vmatpush.bf16.msra.mxu2 %v11884_v45  ;;  %8659 = vmatmul.bf16.vlgmr.msrb.gmra.mxu3 %v14308_v12  ;;  %v12757_v12 = vld [vmem:[%s13857_s11 + $0x170c] sm:$0xf] }
 0x4b0   : > { %8707 = vmatpush.bf16.msra.mxu3 %v12012_v36  ;;  %v11836_v61 = vor.u32 %v12757_v12, %v11833_v27 }
 0x4b1   : > { %8669 = vmatpush.bf16.msra.mxu0 %v11612_v44 }
 0x4b2   : > { %8682 = vmatpush.bf16.msra.mxu1 %v11740_v41  ;;  %v8452_v63 = vpop.f32.mrf.mxu3 }
 0x4b3   : > { %8695 = vmatpush.bf16.msra.mxu2 %v11868_v4  ;;  %v8453_v52 = vadd.f32 %v8452_v63, %v8440_v38 }
 0x4b4   : > { %8708 = vmatpush.bf16.msra.mxu3 %v11996_v34 }
 0x4b5   : > { %8670 = vmatpush.bf16.msra.mxu0 %v11596_v56 }
 0x4b6   : > { %8683 = vmatpush.bf16.msra.mxu1 %v11724_v22 }
 0x4b7   : > { %8696 = vmatpush.bf16.msra.mxu2 %v11852_v26 }
 0x4b8   : > { %8709 = vmatpush.bf16.msra.mxu3 %v11980_v23 }
 0x4b9   : > { %8671 = vmatpush.bf16.msra.mxu0 %v11580_v60  ;;  %v8465_v1 = vpop.f32.mrf.mxu0 }
 0x4ba   : > { %8684 = vmatpush.bf16.msra.mxu1 %v11708_v55  ;;  %v8466_v3 = vadd.f32 %v8465_v1, %v8453_v52  ;;  %v8478_v30 = vpop.f32.mrf.mxu1  ;;  %v8454_v5 = vpop.f32.mrf.mxu3 }
 0x4bb   : > { %8697 = vmatpush.bf16.msra.mxu2 %v11836_v61 }
 0x4bc   : > { %8710 = vmatpush.bf16.msra.mxu3 %v11964_v51  ;;  %8672 = vmatmul.bf16.vlgmr.msra.gmra.mxu0 %v14312_v14  ;;  %v8479_v0 = vadd.f32 %v8478_v30, %v8466_v3  ;;  %v8718_v51 = vmax.f32 %v15574_v25, 0.0 }
 0x4bd   : > { %8685 = vmatmul.bf16.vlgmr.msra.gmra.mxu1 %v14310_v13 }
 0x4be   : > { %8698 = vmatmul.bf16.vlgmr.msra.gmra.mxu2 %v14314_v15 }
 0x4bf   : > { %12016 = vmatmul.msk.bf16.vlgmr.msra.gmra.mxu3 %vm7413_vm0, %v12883_v40  ;;  %v8725_v40 = vrot.slane %v8718_v51, 4 }
 0x4c1   : > { %v8491_v6 = vpop.f32.mrf.mxu2  ;;  %v8467_v7 = vpop.f32.mrf.mxu0 }
 0x4c2   : > { %v8492_v28 = vadd.f32 %v8491_v6, %v8479_v0  ;;  %v8480_v11 = vpop.f32.mrf.mxu1 }
 0x4c9   : > { %v8493_v16 = vpop.f32.mrf.mxu2 }
 0x4d2   : > { %v8504_v33 = vpop.f32.mrf.mxu3 }
 0x4d3   : > { %v8505_v14 = vadd.f32 %v8504_v33, %v8492_v28 }
 0x4d9   : > { %v8517_v18 = vpop.f32.mrf.mxu0 }
 0x4da   : > { %v8518_v2 = vadd.f32 %v8517_v18, %v8505_v14  ;;  %v8530_v13 = vpop.f32.mrf.mxu1  ;;  %v8506_v45 = vpop.f32.mrf.mxu3 }
 0x4dc   : > { %v8531_v15 = vadd.f32 %v8530_v13, %v8518_v2 }
 0x4e1   : > { %v8543_v19 = vpop.f32.mrf.mxu2  ;;  %v8519_v35 = vpop.f32.mrf.mxu0 }
 0x4e2   : > { %v8544_v32 = vadd.f32 %v8543_v19, %v8531_v15  ;;  %v8532_v8 = vpop.f32.mrf.mxu1 }
 0x4e9   : > { %v8545_v36 = vpop.f32.mrf.mxu2 }
 0x4f2   : > { %v8556_v37 = vpop.f32.mrf.mxu3 }
 0x4f3   : > { %v8557_v34 = vadd.f32 %v8556_v37, %v8544_v32 }
 0x4f9   : > { %v8569_v9 = vpop.f32.mrf.mxu0 }
 0x4fa   : > { %v8582_v10 = vpop.f32.mrf.mxu1  ;;  %v8558_v38 = vpop.f32.mrf.mxu3  ;;  %v8570_v24 = vadd.f32 %v8569_v9, %v8557_v34 }
 0x4fc   : > { %v8583_v20 = vadd.f32 %v8582_v10, %v8570_v24 }
 0x501   : > { %v8595_v39 = vpop.f32.mrf.mxu2  ;;  %v8571_v31 = vpop.f32.mrf.mxu0 }
 0x502   : > { %v8584_v43 = vpop.f32.mrf.mxu1  ;;  %v8596_v42 = vadd.f32 %v8595_v39, %v8583_v20 }
 0x509   : > { %v8597_v44 = vpop.f32.mrf.mxu2 }
 0x512   : > { %v8608_v29 = vpop.f32.mrf.mxu3 }
 0x513   : > { %v8609_v56 = vadd.f32 %v8608_v29, %v8596_v42 }
 0x519   : > { %v8621_v41 = vpop.f32.mrf.mxu0 }
 0x51a   : > { %v8634_v4 = vpop.f32.mrf.mxu1  ;;  %v8610_v46 = vpop.f32.mrf.mxu3  ;;  %v8622_v22 = vadd.f32 %v8621_v41, %v8609_v56 }
 0x51c   : > { %v8635_v57 = vadd.f32 %v8634_v4, %v8622_v22 }
 0x521   : > { %v8647_v47 = vpop.f32.mrf.mxu2  ;;  %v8623_v48 = vpop.f32.mrf.mxu0 }
 0x522   : > { %v8636_v49 = vpop.f32.mrf.mxu1  ;;  %v8648_v53 = vadd.f32 %v8647_v47, %v8635_v57 }
 0x529   : > { %v8649_v50 = vpop.f32.mrf.mxu2 }
 0x532   : > { %v8660_v26 = vpop.f32.mrf.mxu3 }
 0x533   : > { %v8661_v62 = vadd.f32 %v8660_v26, %v8648_v53 }
 0x539   : > { %v8673_v58 = vpop.f32.mrf.mxu0 }
 0x53a   : > { %v8686_v23 = vpop.f32.mrf.mxu1  ;;  %v8674_v21 = vadd.f32 %v8673_v58, %v8661_v62  ;;  %v8662_v12 = vpop.f32.mrf.mxu3 }
 0x53c   : > { %v8687_v27 = vadd.f32 %v8686_v23, %v8674_v21 }
 0x541   : > { %v8699_v54 = vpop.f32.mrf.mxu2  ;;  %v8675_v60 = vpop.f32.mrf.mxu0 }
 0x542   : > { %v8700_v17 = vadd.f32 %v8699_v54, %v8687_v27  ;;  %v8688_v55 = vpop.f32.mrf.mxu1  ;;  %v8712_v61 = vpop.f32.mrf.mxu3 }
 0x544   : > { %v8713_v63 = vadd.f32 %v8712_v61, %v8700_v17 }
 0x546   : > { %v8719_v52 = vmax.f32 %v8713_v63, 0.0 }
 0x548   : > { %v8726_v1 = vrot.slane %v8719_v52, 2 }
 0x549   : > { %v8701_v3 = vpop.f32.mrf.mxu2 }
 0x54a   : > { %v8730_v30 = vsel %vm8729_vm2, %v8725_v40, %v8726_v1  ;;  %v8714_v0 = vpop.f32.mrf.mxu3 }
 0x54b   : > { %v8732_v5 = vsel %vm8731_vm3, %v15147_v59, %v8730_v30 }
 0x54c   : > { %8734 = vst [vmem:[%s2635_s6] sm:$0xff] %v8732_v5 }
 0x54d PF: > { %s13_s16 = sadd.s32 1, %s12938_s16   ;;  %s15694_s12 = smov %s12926_s13 }
 0x54e   : > { %p10_p12 = scmp.ge.s32.totalorder %s13_s16, 4   ;;  %s15695_s13 = smov %s13011_s20 }
 0x54f   : > { %s15696_s14 = smov %s12934_s15  ;;  %s15697_s15 = smov %s15699_s17 }
 0x550   :  { %12 = sbr.rel (!%p10_p12) target bundleno = 3 (0x3), region = 123 }

</bundles_post_ra>
